<compile_context>
chip_gen: v6e
topology: v6e:2x2x1
jax: 0.10.0
libtpu: 0.0.40
codegen_flags: <defaults>
</compile_context>

<pallas_src>
import functools

import jax
import jax.numpy as jnp
from jax.experimental import pallas as pl
from jax.experimental.pallas import tpu as pltpu


# ------------------------------ Pallas kernel --------------------------------

def _mcg_fused_kernel(H, W,
                      rpad_ref, dpad_ref,
                      wD_ref, bD_ref,
                      w2r_ref, w2d_ref, b2_ref,
                      w1_ref, b1_ref, bnw_ref, bnb_ref,
                      wh_ref, bh_ref, ww_ref, bw_ref,
                      o_ref,
                      d1p_ref):
    """Whole MCG forward for one batch element.

    rpad/dpad are zero-padded (H+2, W+2, C) halo blocks so each 3x3 conv is
    nine shifted (HW, Cin) x (Cin, Cout) MXU matmuls.  W should be a multiple
    of 8 so the (H, W, C) <-> (HW, C) reshapes stay layout-cheap.
    """
    HW = H * W
    Cd = dpad_ref.shape[-1]
    C = o_ref.shape[-1]
    cdt = wD_ref.dtype  # compute dtype for the big matmuls (bf16 or f32)

    taps = [(dy, dx) for dy in range(3) for dx in range(3)]

    # ---- d = relu(convDtoR(d)) : 9 shifted matmuls on the halo block --------
    accD = jnp.zeros((HW, C), jnp.float32)
    for t, (dy, dx) in enumerate(taps):
        patch = dpad_ref[dy:dy + H, dx:dx + W, :].reshape(HW, Cd)
        accD = accD + jnp.dot(patch, wD_ref[t],
                              preferred_element_type=jnp.float32)
    d1 = jnp.maximum(accD + bD_ref[...], 0.0)                # (HW, C) f32

    # Zero-padded copy of d1 in VMEM so the second conv gets its halo without
    # ever writing the intermediate to HBM.
    d1p_ref[...] = jnp.zeros_like(d1p_ref)
    d1p_ref[1:H + 1, 1:W + 1, :] = d1.reshape(H, W, C)

    # ---- H_conv = sigmoid(convTo2(cat(r, d1))) ; g = global_avg_pool --------
    # conv(cat(r, d1), w2) == conv(r, w2[:, :C]) + conv(d1, w2[:, C:])
    acc2 = jnp.zeros((HW, 2), jnp.float32)
    for t, (dy, dx) in enumerate(taps):
        rp = rpad_ref[dy:dy + H, dx:dx + W, :].reshape(HW, C)
        dp = d1p_ref[dy:dy + H, dx:dx + W, :].reshape(HW, C).astype(cdt)
        acc2 = acc2 + jnp.dot(rp, w2r_ref[t],
                              preferred_element_type=jnp.float32)
        acc2 = acc2 + jnp.dot(dp, w2d_ref[t],
                              preferred_element_type=jnp.float32)
    hc = jax.nn.sigmoid(acc2 + b2_ref[...])                  # (HW, 2)
    g = jnp.sum(hc, axis=0, keepdims=True) * (1.0 / HW)      # (1, 2)
    ga = g[0, 0]
    gm = g[0, 1]

    r_int = rpad_ref[1:H + 1, 1:W + 1, :].reshape(HW, C).astype(jnp.float32)
    Ga = r_int * ga                                          # (HW, C)
    Gm = d1 * gm                                             # (HW, C)

    # ---- CoordAtt(Gm): pooled means + shared 1x1 conv + gates ---------------
    Gm3 = Gm.reshape(H, W, C)
    x_h = jnp.sum(Gm3, axis=1) * (1.0 / W)                   # (H, C) pool over W
    x_w = jnp.sum(Gm3, axis=0) * (1.0 / H)                   # (W, C) pool over H

    def squeeze(x):
        y = jnp.dot(x, w1_ref[...], preferred_element_type=jnp.float32) + b1_ref[...]
        y = y * bnw_ref[...] + bnb_ref[...]                  # folded eval-mode BN
        return y * jnp.clip(y + 3.0, 0.0, 6.0) * (1.0 / 6.0)  # h_swish

    a_h = jax.nn.sigmoid(
        jnp.dot(squeeze(x_h), wh_ref[...], preferred_element_type=jnp.float32)
        + bh_ref[...])                                       # (H, C)
    a_w = jax.nn.sigmoid(
        jnp.dot(squeeze(x_w), ww_ref[...], preferred_element_type=jnp.float32)
        + bw_ref[...])                                       # (W, C)

    out3 = Gm3 * a_h[:, None, :] * a_w[None, :, :] + Ga.reshape(H, W, C)
    o_ref[...] = out3.astype(o_ref.dtype)


# --------------------------------- glue --------------------------------------

def init_params(key, rgb_c, depth_c):
    mip = max(8, rgb_c // 32)     # CoordAtt hidden width (reduction=32)
    ks = jax.random.split(key, 8)
    s = 0.1
    return dict(
        wD=jax.random.normal(ks[0], (3, 3, depth_c, rgb_c), jnp.float32) * s,  # convDtoR (HWIO)
        bD=jax.random.normal(ks[1], (rgb_c,), jnp.float32) * s,
        w2=jax.random.normal(ks[2], (3, 3, 2 * rgb_c, 2), jnp.float32) * s,    # convTo2 (HWIO)
        b2=jax.random.normal(ks[3], (2,), jnp.float32) * s,
        w1=jax.random.normal(ks[4], (rgb_c, mip), jnp.float32) * s,            # CoordAtt conv1 (1x1)
        b1=jnp.zeros((mip,), jnp.float32),
        bn_gamma=jnp.ones((mip,), jnp.float32),
        bn_beta=jnp.zeros((mip,), jnp.float32),
        bn_mean=jnp.zeros((mip,), jnp.float32),
        bn_var=jnp.ones((mip,), jnp.float32),
        wh=jax.random.normal(ks[5], (mip, rgb_c), jnp.float32) * s,            # conv_h (1x1)
        bh=jax.random.normal(ks[6], (rgb_c,), jnp.float32) * s,
        ww=jax.random.normal(ks[7], (mip, rgb_c), jnp.float32) * s,            # conv_w (1x1)
        bw=jnp.zeros((rgb_c,), jnp.float32),
    )


def mcg_forward(r, d, params, compute_dtype=jnp.bfloat16):
    """Fused MCG forward.  compute_dtype controls the MXU operand precision for
    the two 3x3 convolutions (bf16 = native MXU, halves HBM/VMEM bytes)."""
    B, H, W, C = r.shape
    Cd = d.shape[-1]
    mip = params["w1"].shape[1]
    cdt = compute_dtype

    # Halo-padded activations (SAME conv, pad=1); big tensors go in compute dtype.
    rpad = jnp.pad(r, ((0, 0), (1, 1), (1, 1), (0, 0))).astype(cdt)
    dpad = jnp.pad(d, ((0, 0), (1, 1), (1, 1), (0, 0))).astype(cdt)

    # 3x3 conv weights as 9 per-tap matrices; convTo2 split into r / d halves.
    wD = params["wD"].reshape(9, Cd, C).astype(cdt)
    w2 = params["w2"].reshape(9, 2 * C, 2)
    w2r = w2[:, :C, :].astype(cdt)
    w2d = w2[:, C:, :].astype(cdt)

    eps = 1e-5
    bn_scale = params["bn_gamma"] / jnp.sqrt(params["bn_var"] + eps)
    bn_bias = params["bn_beta"] - params["bn_mean"] * bn_scale

    def fullspec(shape):
        return pl.BlockSpec(shape, lambda b: (0,) * len(shape))

    kernel = functools.partial(_mcg_fused_kernel, H, W)
    out = pl.pallas_call(
        kernel,
        out_shape=jax.ShapeDtypeStruct((B, H, W, C), jnp.float32),
        grid=(B,),
        in_specs=[
            pl.BlockSpec((None, H + 2, W + 2, C), lambda b: (b, 0, 0, 0)),
            pl.BlockSpec((None, H + 2, W + 2, Cd), lambda b: (b, 0, 0, 0)),
            fullspec((9, Cd, C)),
            fullspec((1, C)),
            fullspec((9, C, 2)),
            fullspec((9, C, 2)),
            fullspec((1, 2)),
            fullspec((C, mip)),
            fullspec((1, mip)),
            fullspec((1, mip)),
            fullspec((1, mip)),
            fullspec((mip, C)),
            fullspec((1, C)),
            fullspec((mip, C)),
            fullspec((1, C)),
        ],
        out_specs=pl.BlockSpec((None, H, W, C), lambda b: (b, 0, 0, 0)),
        scratch_shapes=[pltpu.VMEM((H + 2, W + 2, C), jnp.float32)],
        compiler_params=pltpu.CompilerParams(
            dimension_semantics=("parallel",),
            vmem_limit_bytes=64 * 1024 * 1024),
    )(rpad, dpad, wD, params["bD"].reshape(1, C),
      w2r, w2d, params["b2"].reshape(1, 2),
      params["w1"], params["b1"].reshape(1, mip),
      bn_scale.reshape(1, mip), bn_bias.reshape(1, mip),
      params["wh"], params["bh"].reshape(1, C),
      params["ww"], params["bw"].reshape(1, C))
    return out


# ----------------------- pure-JAX reference (NHWC) ---------------------------

def mcg_reference(r, d, params):
    dn = ("NHWC", "HWIO", "NHWC")
    eps = 1e-5
    d1 = jax.lax.conv_general_dilated(d, params["wD"], (1, 1), "SAME", dimension_numbers=dn)
    d1 = jnp.maximum(d1 + params["bD"], 0.0)
    hcat = jnp.concatenate([r, d1], axis=-1)
    hc = jax.lax.conv_general_dilated(hcat, params["w2"], (1, 1), "SAME", dimension_numbers=dn)
    hc = jax.nn.sigmoid(hc + params["b2"])
    g = jnp.mean(hc, axis=(1, 2), keepdims=True)                      # (B,1,1,2)
    Ga = r * g[..., 0:1]
    Gm = d1 * g[..., 1:2]
    x_h = jnp.mean(Gm, axis=2)                                        # (B,H,C)
    x_w = jnp.mean(Gm, axis=1)                                        # (B,W,C)

    def squeeze(x):
        y = jnp.einsum("bnc,cm->bnm", x, params["w1"]) + params["b1"]
        y = ((y - params["bn_mean"]) / jnp.sqrt(params["bn_var"] + eps)
             * params["bn_gamma"] + params["bn_beta"])
        return y * jnp.clip(y + 3.0, 0.0, 6.0) / 6.0

    a_h = jax.nn.sigmoid(jnp.einsum("bhm,mc->bhc", squeeze(x_h), params["wh"]) + params["bh"])
    a_w = jax.nn.sigmoid(jnp.einsum("bwm,mc->bwc", squeeze(x_w), params["ww"]) + params["bw"])
    return Gm * a_h[:, :, None, :] * a_w[:, None, :, :] + Ga


if __name__ == "__main__":
    B, C, Cd, H, W = 2, 4, 4, 16, 16
    key = jax.random.PRNGKey(0)
    kr, kd, kp = jax.random.split(key, 3)
    r = jax.random.normal(kr, (B, H, W, C), jnp.float32)
    d = jax.random.normal(kd, (B, H, W, Cd), jnp.float32)
    params = init_params(kp, C, Cd)

    ref = mcg_reference(r, d, params)

    # Strict parity check with f32 MXU operands.
    out_f32 = jax.jit(functools.partial(mcg_forward, compute_dtype=jnp.float32))(r, d, params)
    out_f32 = jax.block_until_ready(out_f32)
    err32 = float(jnp.max(jnp.abs(out_f32 - ref)))
    assert err32 < 1e-4, f"f32 mismatch vs reference: {err32}"

    # Default perf path: bf16 MXU operands, f32 accumulation / elementwise.
    out_bf16 = jax.jit(mcg_forward)(r, d, params)
    out_bf16 = jax.block_until_ready(out_bf16)
    err16 = float(jnp.max(jnp.abs(out_bf16 - ref)))
    assert err16 < 1e-1, f"bf16 mismatch vs reference: {err16}"

    print("KERNEL_OK")
</pallas_src>

<mosaic_0001>
module attributes {stable_mosaic.version = 11 : i64} {
  func.func @_mcg_fused_kernel(%arg0: i32, %arg1: memref<1x18x18x4xf32, #tpu.memory_space<vmem>>, %arg2: memref<1x18x18x4xf32, #tpu.memory_space<vmem>>, %arg3: memref<9x4x4xf32, #tpu.memory_space<vmem>>, %arg4: memref<1x4xf32, #tpu.memory_space<vmem>>, %arg5: memref<9x4x2xf32, #tpu.memory_space<vmem>>, %arg6: memref<9x4x2xf32, #tpu.memory_space<vmem>>, %arg7: memref<1x2xf32, #tpu.memory_space<vmem>>, %arg8: memref<4x8xf32, #tpu.memory_space<vmem>>, %arg9: memref<1x8xf32, #tpu.memory_space<vmem>>, %arg10: memref<1x8xf32, #tpu.memory_space<vmem>>, %arg11: memref<1x8xf32, #tpu.memory_space<vmem>>, %arg12: memref<8x4xf32, #tpu.memory_space<vmem>>, %arg13: memref<1x4xf32, #tpu.memory_space<vmem>>, %arg14: memref<8x4xf32, #tpu.memory_space<vmem>>, %arg15: memref<1x4xf32, #tpu.memory_space<vmem>>, %arg16: memref<1x16x16x4xf32, #tpu.memory_space<vmem>>, %arg17: memref<18x18x4xf32, #tpu.memory_space<vmem>>) attributes {dimension_semantics = [#tpu.dimension_semantics<parallel>], iteration_bounds = array<i64: 2>, scalar_prefetch = 0 : i64, scratch_operands = 1 : i64, tpu.core_type = #tpu.core_type<tc>, window_params = [{transform_indices = @transform_0, window_bounds = array<i64: 1, 18, 18, 4>}, {transform_indices = @transform_1, window_bounds = array<i64: 1, 18, 18, 4>}, {pipeline_mode = #tpu.pipeline_mode<synchronous>, transform_indices = @transform_2, window_bounds = array<i64: 9, 4, 4>}, {pipeline_mode = #tpu.pipeline_mode<synchronous>, transform_indices = @transform_3, window_bounds = array<i64: 1, 4>}, {pipeline_mode = #tpu.pipeline_mode<synchronous>, transform_indices = @transform_4, window_bounds = array<i64: 9, 4, 2>}, {pipeline_mode = #tpu.pipeline_mode<synchronous>, transform_indices = @transform_5, window_bounds = array<i64: 9, 4, 2>}, {pipeline_mode = #tpu.pipeline_mode<synchronous>, transform_indices = @transform_6, window_bounds = array<i64: 1, 2>}, {pipeline_mode = #tpu.pipeline_mode<synchronous>, transform_indices = @transform_7, window_bounds = array<i64: 4, 8>}, {pipeline_mode = #tpu.pipeline_mode<synchronous>, transform_indices = @transform_8, window_bounds = array<i64: 1, 8>}, {pipeline_mode = #tpu.pipeline_mode<synchronous>, transform_indices = @transform_9, window_bounds = array<i64: 1, 8>}, {pipeline_mode = #tpu.pipeline_mode<synchronous>, transform_indices = @transform_10, window_bounds = array<i64: 1, 8>}, {pipeline_mode = #tpu.pipeline_mode<synchronous>, transform_indices = @transform_11, window_bounds = array<i64: 8, 4>}, {pipeline_mode = #tpu.pipeline_mode<synchronous>, transform_indices = @transform_12, window_bounds = array<i64: 1, 4>}, {pipeline_mode = #tpu.pipeline_mode<synchronous>, transform_indices = @transform_13, window_bounds = array<i64: 8, 4>}, {pipeline_mode = #tpu.pipeline_mode<synchronous>, transform_indices = @transform_14, window_bounds = array<i64: 1, 4>}, {transform_indices = @transform_15, window_bounds = array<i64: 1, 16, 16, 4>}]} {
    %cst = arith.constant 0.000000e+00 : f32
    %0 = vector.broadcast %cst : f32 to vector<256x4xf32>
    %c0 = arith.constant 0 : index
    %c0_0 = arith.constant 0 : index
    %c0_1 = arith.constant 0 : index
    %c0_2 = arith.constant 0 : index
    %1 = vector.load %arg2[%c0, %c0_0, %c0_1, %c0_2] : memref<1x18x18x4xf32, #tpu.memory_space<vmem>>, vector<1x16x16x4xf32>
    %2 = vector.shape_cast %1 : vector<1x16x16x4xf32> to vector<16x16x4xf32>
    %3 = vector.shape_cast %2 : vector<16x16x4xf32> to vector<256x4xf32>
    %c0_3 = arith.constant 0 : index
    %c0_4 = arith.constant 0 : index
    %c0_5 = arith.constant 0 : index
    %4 = vector.load %arg3[%c0_3, %c0_4, %c0_5] : memref<9x4x4xf32, #tpu.memory_space<vmem>>, vector<1x4x4xf32>
    %5 = vector.shape_cast %4 : vector<1x4x4xf32> to vector<4x4xf32>
    %cst_6 = arith.constant dense<0.000000e+00> : vector<256x4xf32>
    %6 = tpu.matmul %3, %5, %cst_6 {dimension_numbers = #tpu.dot_dimension_numbers<[1], [0], [0], [1], [0, 0, 1, 1], [], []>} : vector<256x4xf32>, vector<4x4xf32>, vector<256x4xf32> -> vector<256x4xf32>
    %7 = arith.addf %0, %6 : vector<256x4xf32>
    %c0_7 = arith.constant 0 : index
    %c0_8 = arith.constant 0 : index
    %c1 = arith.constant 1 : index
    %c0_9 = arith.constant 0 : index
    %8 = vector.load %arg2[%c0_7, %c0_8, %c1, %c0_9] : memref<1x18x18x4xf32, #tpu.memory_space<vmem>>, vector<1x16x16x4xf32>
    %9 = vector.shape_cast %8 : vector<1x16x16x4xf32> to vector<16x16x4xf32>
    %10 = vector.shape_cast %9 : vector<16x16x4xf32> to vector<256x4xf32>
    %c1_10 = arith.constant 1 : index
    %c0_11 = arith.constant 0 : index
    %c0_12 = arith.constant 0 : index
    %11 = vector.load %arg3[%c1_10, %c0_11, %c0_12] : memref<9x4x4xf32, #tpu.memory_space<vmem>>, vector<1x4x4xf32>
    %12 = vector.shape_cast %11 : vector<1x4x4xf32> to vector<4x4xf32>
    %cst_13 = arith.constant dense<0.000000e+00> : vector<256x4xf32>
    %13 = tpu.matmul %10, %12, %cst_13 {dimension_numbers = #tpu.dot_dimension_numbers<[1], [0], [0], [1], [0, 0, 1, 1], [], []>} : vector<256x4xf32>, vector<4x4xf32>, vector<256x4xf32> -> vector<256x4xf32>
    %14 = arith.addf %7, %13 : vector<256x4xf32>
    %c0_14 = arith.constant 0 : index
    %c0_15 = arith.constant 0 : index
    %c2 = arith.constant 2 : index
    %c0_16 = arith.constant 0 : index
    %15 = vector.load %arg2[%c0_14, %c0_15, %c2, %c0_16] : memref<1x18x18x4xf32, #tpu.memory_space<vmem>>, vector<1x16x16x4xf32>
    %16 = vector.shape_cast %15 : vector<1x16x16x4xf32> to vector<16x16x4xf32>
    %17 = vector.shape_cast %16 : vector<16x16x4xf32> to vector<256x4xf32>
    %c2_17 = arith.constant 2 : index
    %c0_18 = arith.constant 0 : index
    %c0_19 = arith.constant 0 : index
    %18 = vector.load %arg3[%c2_17, %c0_18, %c0_19] : memref<9x4x4xf32, #tpu.memory_space<vmem>>, vector<1x4x4xf32>
    %19 = vector.shape_cast %18 : vector<1x4x4xf32> to vector<4x4xf32>
    %cst_20 = arith.constant dense<0.000000e+00> : vector<256x4xf32>
    %20 = tpu.matmul %17, %19, %cst_20 {dimension_numbers = #tpu.dot_dimension_numbers<[1], [0], [0], [1], [0, 0, 1, 1], [], []>} : vector<256x4xf32>, vector<4x4xf32>, vector<256x4xf32> -> vector<256x4xf32>
    %21 = arith.addf %14, %20 : vector<256x4xf32>
    %c0_21 = arith.constant 0 : index
    %c1_22 = arith.constant 1 : index
    %c0_23 = arith.constant 0 : index
    %c0_24 = arith.constant 0 : index
    %22 = vector.load %arg2[%c0_21, %c1_22, %c0_23, %c0_24] : memref<1x18x18x4xf32, #tpu.memory_space<vmem>>, vector<1x16x16x4xf32>
    %23 = vector.shape_cast %22 : vector<1x16x16x4xf32> to vector<16x16x4xf32>
    %24 = vector.shape_cast %23 : vector<16x16x4xf32> to vector<256x4xf32>
    %c3 = arith.constant 3 : index
    %c0_25 = arith.constant 0 : index
    %c0_26 = arith.constant 0 : index
    %25 = vector.load %arg3[%c3, %c0_25, %c0_26] : memref<9x4x4xf32, #tpu.memory_space<vmem>>, vector<1x4x4xf32>
    %26 = vector.shape_cast %25 : vector<1x4x4xf32> to vector<4x4xf32>
    %cst_27 = arith.constant dense<0.000000e+00> : vector<256x4xf32>
    %27 = tpu.matmul %24, %26, %cst_27 {dimension_numbers = #tpu.dot_dimension_numbers<[1], [0], [0], [1], [0, 0, 1, 1], [], []>} : vector<256x4xf32>, vector<4x4xf32>, vector<256x4xf32> -> vector<256x4xf32>
    %28 = arith.addf %21, %27 : vector<256x4xf32>
    %c0_28 = arith.constant 0 : index
    %c1_29 = arith.constant 1 : index
    %c1_30 = arith.constant 1 : index
    %c0_31 = arith.constant 0 : index
    %29 = vector.load %arg2[%c0_28, %c1_29, %c1_30, %c0_31] : memref<1x18x18x4xf32, #tpu.memory_space<vmem>>, vector<1x16x16x4xf32>
    %30 = vector.shape_cast %29 : vector<1x16x16x4xf32> to vector<16x16x4xf32>
    %31 = vector.shape_cast %30 : vector<16x16x4xf32> to vector<256x4xf32>
    %c4 = arith.constant 4 : index
    %c0_32 = arith.constant 0 : index
    %c0_33 = arith.constant 0 : index
    %32 = vector.load %arg3[%c4, %c0_32, %c0_33] : memref<9x4x4xf32, #tpu.memory_space<vmem>>, vector<1x4x4xf32>
    %33 = vector.shape_cast %32 : vector<1x4x4xf32> to vector<4x4xf32>
    %cst_34 = arith.constant dense<0.000000e+00> : vector<256x4xf32>
    %34 = tpu.matmul %31, %33, %cst_34 {dimension_numbers = #tpu.dot_dimension_numbers<[1], [0], [0], [1], [0, 0, 1, 1], [], []>} : vector<256x4xf32>, vector<4x4xf32>, vector<256x4xf32> -> vector<256x4xf32>
    %35 = arith.addf %28, %34 : vector<256x4xf32>
    %c0_35 = arith.constant 0 : index
    %c1_36 = arith.constant 1 : index
    %c2_37 = arith.constant 2 : index
    %c0_38 = arith.constant 0 : index
    %36 = vector.load %arg2[%c0_35, %c1_36, %c2_37, %c0_38] : memref<1x18x18x4xf32, #tpu.memory_space<vmem>>, vector<1x16x16x4xf32>
    %37 = vector.shape_cast %36 : vector<1x16x16x4xf32> to vector<16x16x4xf32>
    %38 = vector.shape_cast %37 : vector<16x16x4xf32> to vector<256x4xf32>
    %c5 = arith.constant 5 : index
    %c0_39 = arith.constant 0 : index
    %c0_40 = arith.constant 0 : index
    %39 = vector.load %arg3[%c5, %c0_39, %c0_40] : memref<9x4x4xf32, #tpu.memory_space<vmem>>, vector<1x4x4xf32>
    %40 = vector.shape_cast %39 : vector<1x4x4xf32> to vector<4x4xf32>
    %cst_41 = arith.constant dense<0.000000e+00> : vector<256x4xf32>
    %41 = tpu.matmul %38, %40, %cst_41 {dimension_numbers = #tpu.dot_dimension_numbers<[1], [0], [0], [1], [0, 0, 1, 1], [], []>} : vector<256x4xf32>, vector<4x4xf32>, vector<256x4xf32> -> vector<256x4xf32>
    %42 = arith.addf %35, %41 : vector<256x4xf32>
    %c0_42 = arith.constant 0 : index
    %c2_43 = arith.constant 2 : index
    %c0_44 = arith.constant 0 : index
    %c0_45 = arith.constant 0 : index
    %43 = vector.load %arg2[%c0_42, %c2_43, %c0_44, %c0_45] : memref<1x18x18x4xf32, #tpu.memory_space<vmem>>, vector<1x16x16x4xf32>
    %44 = vector.shape_cast %43 : vector<1x16x16x4xf32> to vector<16x16x4xf32>
    %45 = vector.shape_cast %44 : vector<16x16x4xf32> to vector<256x4xf32>
    %c6 = arith.constant 6 : index
    %c0_46 = arith.constant 0 : index
    %c0_47 = arith.constant 0 : index
    %46 = vector.load %arg3[%c6, %c0_46, %c0_47] : memref<9x4x4xf32, #tpu.memory_space<vmem>>, vector<1x4x4xf32>
    %47 = vector.shape_cast %46 : vector<1x4x4xf32> to vector<4x4xf32>
    %cst_48 = arith.constant dense<0.000000e+00> : vector<256x4xf32>
    %48 = tpu.matmul %45, %47, %cst_48 {dimension_numbers = #tpu.dot_dimension_numbers<[1], [0], [0], [1], [0, 0, 1, 1], [], []>} : vector<256x4xf32>, vector<4x4xf32>, vector<256x4xf32> -> vector<256x4xf32>
    %49 = arith.addf %42, %48 : vector<256x4xf32>
    %c0_49 = arith.constant 0 : index
    %c2_50 = arith.constant 2 : index
    %c1_51 = arith.constant 1 : index
    %c0_52 = arith.constant 0 : index
    %50 = vector.load %arg2[%c0_49, %c2_50, %c1_51, %c0_52] : memref<1x18x18x4xf32, #tpu.memory_space<vmem>>, vector<1x16x16x4xf32>
    %51 = vector.shape_cast %50 : vector<1x16x16x4xf32> to vector<16x16x4xf32>
    %52 = vector.shape_cast %51 : vector<16x16x4xf32> to vector<256x4xf32>
    %c7 = arith.constant 7 : index
    %c0_53 = arith.constant 0 : index
    %c0_54 = arith.constant 0 : index
    %53 = vector.load %arg3[%c7, %c0_53, %c0_54] : memref<9x4x4xf32, #tpu.memory_space<vmem>>, vector<1x4x4xf32>
    %54 = vector.shape_cast %53 : vector<1x4x4xf32> to vector<4x4xf32>
    %cst_55 = arith.constant dense<0.000000e+00> : vector<256x4xf32>
    %55 = tpu.matmul %52, %54, %cst_55 {dimension_numbers = #tpu.dot_dimension_numbers<[1], [0], [0], [1], [0, 0, 1, 1], [], []>} : vector<256x4xf32>, vector<4x4xf32>, vector<256x4xf32> -> vector<256x4xf32>
    %56 = arith.addf %49, %55 : vector<256x4xf32>
    %c0_56 = arith.constant 0 : index
    %c2_57 = arith.constant 2 : index
    %c2_58 = arith.constant 2 : index
    %c0_59 = arith.constant 0 : index
    %57 = vector.load %arg2[%c0_56, %c2_57, %c2_58, %c0_59] : memref<1x18x18x4xf32, #tpu.memory_space<vmem>>, vector<1x16x16x4xf32>
    %58 = vector.shape_cast %57 : vector<1x16x16x4xf32> to vector<16x16x4xf32>
    %59 = vector.shape_cast %58 : vector<16x16x4xf32> to vector<256x4xf32>
    %c8 = arith.constant 8 : index
    %c0_60 = arith.constant 0 : index
    %c0_61 = arith.constant 0 : index
    %60 = vector.load %arg3[%c8, %c0_60, %c0_61] : memref<9x4x4xf32, #tpu.memory_space<vmem>>, vector<1x4x4xf32>
    %61 = vector.shape_cast %60 : vector<1x4x4xf32> to vector<4x4xf32>
    %cst_62 = arith.constant dense<0.000000e+00> : vector<256x4xf32>
    %62 = tpu.matmul %59, %61, %cst_62 {dimension_numbers = #tpu.dot_dimension_numbers<[1], [0], [0], [1], [0, 0, 1, 1], [], []>} : vector<256x4xf32>, vector<4x4xf32>, vector<256x4xf32> -> vector<256x4xf32>
    %63 = arith.addf %56, %62 : vector<256x4xf32>
    %c0_63 = arith.constant 0 : index
    %c0_64 = arith.constant 0 : index
    %64 = vector.load %arg4[%c0_63, %c0_64] : memref<1x4xf32, #tpu.memory_space<vmem>>, vector<1x4xf32>
    %65 = vector.broadcast %64 : vector<1x4xf32> to vector<256x4xf32>
    %66 = arith.addf %63, %65 : vector<256x4xf32>
    %cst_65 = arith.constant 0.000000e+00 : f32
    %67 = vector.broadcast %cst_65 : f32 to vector<256x4xf32>
    %68 = arith.maximumf %66, %67 : vector<256x4xf32>
    %cst_66 = arith.constant 0.000000e+00 : f32
    %69 = vector.broadcast %cst_66 : f32 to vector<18x18x4xf32>
    %c0_67 = arith.constant 0 : index
    %c0_68 = arith.constant 0 : index
    %c0_69 = arith.constant 0 : index
    %70 = vector.load %arg17[%c0_67, %c0_68, %c0_69] : memref<18x18x4xf32, #tpu.memory_space<vmem>>, vector<18x18x4xf32>
    tpu.vector_store %arg17[%c0_67, %c0_68, %c0_69], %69 {strides = array<i32>} : memref<18x18x4xf32, #tpu.memory_space<vmem>>, vector<18x18x4xf32>,
    %71 = vector.shape_cast %68 : vector<256x4xf32> to vector<16x16x4xf32>
    %c1_70 = arith.constant 1 : index
    %c1_71 = arith.constant 1 : index
    %c0_72 = arith.constant 0 : index
    %72 = vector.load %arg17[%c1_70, %c1_71, %c0_72] : memref<18x18x4xf32, #tpu.memory_space<vmem>>, vector<16x16x4xf32>
    tpu.vector_store %arg17[%c1_70, %c1_71, %c0_72], %71 {strides = array<i32>} : memref<18x18x4xf32, #tpu.memory_space<vmem>>, vector<16x16x4xf32>,
    %cst_73 = arith.constant 0.000000e+00 : f32
    %73 = vector.broadcast %cst_73 : f32 to vector<256x2xf32>
    %c0_74 = arith.constant 0 : index
    %c0_75 = arith.constant 0 : index
    %c0_76 = arith.constant 0 : index
    %c0_77 = arith.constant 0 : index
    %74 = vector.load %arg1[%c0_74, %c0_75, %c0_76, %c0_77] : memref<1x18x18x4xf32, #tpu.memory_space<vmem>>, vector<1x16x16x4xf32>
    %75 = vector.shape_cast %74 : vector<1x16x16x4xf32> to vector<16x16x4xf32>
    %76 = vector.shape_cast %75 : vector<16x16x4xf32> to vector<256x4xf32>
    %c0_78 = arith.constant 0 : index
    %c0_79 = arith.constant 0 : index
    %c0_80 = arith.constant 0 : index
    %77 = vector.load %arg17[%c0_78, %c0_79, %c0_80] : memref<18x18x4xf32, #tpu.memory_space<vmem>>, vector<16x16x4xf32>
    %78 = vector.shape_cast %77 : vector<16x16x4xf32> to vector<256x4xf32>
    %c0_81 = arith.constant 0 : index
    %c0_82 = arith.constant 0 : index
    %c0_83 = arith.constant 0 : index
    %79 = vector.load %arg5[%c0_81, %c0_82, %c0_83] : memref<9x4x2xf32, #tpu.memory_space<vmem>>, vector<1x4x2xf32>
    %80 = vector.shape_cast %79 : vector<1x4x2xf32> to vector<4x2xf32>
    %cst_84 = arith.constant dense<0.000000e+00> : vector<256x2xf32>
    %81 = tpu.matmul %76, %80, %cst_84 {dimension_numbers = #tpu.dot_dimension_numbers<[1], [0], [0], [1], [0, 0, 1, 1], [], []>} : vector<256x4xf32>, vector<4x2xf32>, vector<256x2xf32> -> vector<256x2xf32>
    %82 = arith.addf %73, %81 : vector<256x2xf32>
    %c0_85 = arith.constant 0 : index
    %c0_86 = arith.constant 0 : index
    %c0_87 = arith.constant 0 : index
    %83 = vector.load %arg6[%c0_85, %c0_86, %c0_87] : memref<9x4x2xf32, #tpu.memory_space<vmem>>, vector<1x4x2xf32>
    %84 = vector.shape_cast %83 : vector<1x4x2xf32> to vector<4x2xf32>
    %cst_88 = arith.constant dense<0.000000e+00> : vector<256x2xf32>
    %85 = tpu.matmul %78, %84, %cst_88 {dimension_numbers = #tpu.dot_dimension_numbers<[1], [0], [0], [1], [0, 0, 1, 1], [], []>} : vector<256x4xf32>, vector<4x2xf32>, vector<256x2xf32> -> vector<256x2xf32>
    %86 = arith.addf %82, %85 : vector<256x2xf32>
    %c0_89 = arith.constant 0 : index
    %c0_90 = arith.constant 0 : index
    %c1_91 = arith.constant 1 : index
    %c0_92 = arith.constant 0 : index
    %87 = vector.load %arg1[%c0_89, %c0_90, %c1_91, %c0_92] : memref<1x18x18x4xf32, #tpu.memory_space<vmem>>, vector<1x16x16x4xf32>
    %88 = vector.shape_cast %87 : vector<1x16x16x4xf32> to vector<16x16x4xf32>
    %89 = vector.shape_cast %88 : vector<16x16x4xf32> to vector<256x4xf32>
    %c0_93 = arith.constant 0 : index
    %c1_94 = arith.constant 1 : index
    %c0_95 = arith.constant 0 : index
    %90 = vector.load %arg17[%c0_93, %c1_94, %c0_95] : memref<18x18x4xf32, #tpu.memory_space<vmem>>, vector<16x16x4xf32>
    %91 = vector.shape_cast %90 : vector<16x16x4xf32> to vector<256x4xf32>
    %c1_96 = arith.constant 1 : index
    %c0_97 = arith.constant 0 : index
    %c0_98 = arith.constant 0 : index
    %92 = vector.load %arg5[%c1_96, %c0_97, %c0_98] : memref<9x4x2xf32, #tpu.memory_space<vmem>>, vector<1x4x2xf32>
    %93 = vector.shape_cast %92 : vector<1x4x2xf32> to vector<4x2xf32>
    %cst_99 = arith.constant dense<0.000000e+00> : vector<256x2xf32>
    %94 = tpu.matmul %89, %93, %cst_99 {dimension_numbers = #tpu.dot_dimension_numbers<[1], [0], [0], [1], [0, 0, 1, 1], [], []>} : vector<256x4xf32>, vector<4x2xf32>, vector<256x2xf32> -> vector<256x2xf32>
    %95 = arith.addf %86, %94 : vector<256x2xf32>
    %c1_100 = arith.constant 1 : index
    %c0_101 = arith.constant 0 : index
    %c0_102 = arith.constant 0 : index
    %96 = vector.load %arg6[%c1_100, %c0_101, %c0_102] : memref<9x4x2xf32, #tpu.memory_space<vmem>>, vector<1x4x2xf32>
    %97 = vector.shape_cast %96 : vector<1x4x2xf32> to vector<4x2xf32>
    %cst_103 = arith.constant dense<0.000000e+00> : vector<256x2xf32>
    %98 = tpu.matmul %91, %97, %cst_103 {dimension_numbers = #tpu.dot_dimension_numbers<[1], [0], [0], [1], [0, 0, 1, 1], [], []>} : vector<256x4xf32>, vector<4x2xf32>, vector<256x2xf32> -> vector<256x2xf32>
    %99 = arith.addf %95, %98 : vector<256x2xf32>
    %c0_104 = arith.constant 0 : index
    %c0_105 = arith.constant 0 : index
    %c2_106 = arith.constant 2 : index
    %c0_107 = arith.constant 0 : index
    %100 = vector.load %arg1[%c0_104, %c0_105, %c2_106, %c0_107] : memref<1x18x18x4xf32, #tpu.memory_space<vmem>>, vector<1x16x16x4xf32>
    %101 = vector.shape_cast %100 : vector<1x16x16x4xf32> to vector<16x16x4xf32>
    %102 = vector.shape_cast %101 : vector<16x16x4xf32> to vector<256x4xf32>
    %c0_108 = arith.constant 0 : index
    %c2_109 = arith.constant 2 : index
    %c0_110 = arith.constant 0 : index
    %103 = vector.load %arg17[%c0_108, %c2_109, %c0_110] : memref<18x18x4xf32, #tpu.memory_space<vmem>>, vector<16x16x4xf32>
    %104 = vector.shape_cast %103 : vector<16x16x4xf32> to vector<256x4xf32>
    %c2_111 = arith.constant 2 : index
    %c0_112 = arith.constant 0 : index
    %c0_113 = arith.constant 0 : index
    %105 = vector.load %arg5[%c2_111, %c0_112, %c0_113] : memref<9x4x2xf32, #tpu.memory_space<vmem>>, vector<1x4x2xf32>
    %106 = vector.shape_cast %105 : vector<1x4x2xf32> to vector<4x2xf32>
    %cst_114 = arith.constant dense<0.000000e+00> : vector<256x2xf32>
    %107 = tpu.matmul %102, %106, %cst_114 {dimension_numbers = #tpu.dot_dimension_numbers<[1], [0], [0], [1], [0, 0, 1, 1], [], []>} : vector<256x4xf32>, vector<4x2xf32>, vector<256x2xf32> -> vector<256x2xf32>
    %108 = arith.addf %99, %107 : vector<256x2xf32>
    %c2_115 = arith.constant 2 : index
    %c0_116 = arith.constant 0 : index
    %c0_117 = arith.constant 0 : index
    %109 = vector.load %arg6[%c2_115, %c0_116, %c0_117] : memref<9x4x2xf32, #tpu.memory_space<vmem>>, vector<1x4x2xf32>
    %110 = vector.shape_cast %109 : vector<1x4x2xf32> to vector<4x2xf32>
    %cst_118 = arith.constant dense<0.000000e+00> : vector<256x2xf32>
    %111 = tpu.matmul %104, %110, %cst_118 {dimension_numbers = #tpu.dot_dimension_numbers<[1], [0], [0], [1], [0, 0, 1, 1], [], []>} : vector<256x4xf32>, vector<4x2xf32>, vector<256x2xf32> -> vector<256x2xf32>
    %112 = arith.addf %108, %111 : vector<256x2xf32>
    %c0_119 = arith.constant 0 : index
    %c1_120 = arith.constant 1 : index
    %c0_121 = arith.constant 0 : index
    %c0_122 = arith.constant 0 : index
    %113 = vector.load %arg1[%c0_119, %c1_120, %c0_121, %c0_122] : memref<1x18x18x4xf32, #tpu.memory_space<vmem>>, vector<1x16x16x4xf32>
    %114 = vector.shape_cast %113 : vector<1x16x16x4xf32> to vector<16x16x4xf32>
    %115 = vector.shape_cast %114 : vector<16x16x4xf32> to vector<256x4xf32>
    %c1_123 = arith.constant 1 : index
    %c0_124 = arith.constant 0 : index
    %c0_125 = arith.constant 0 : index
    %116 = vector.load %arg17[%c1_123, %c0_124, %c0_125] : memref<18x18x4xf32, #tpu.memory_space<vmem>>, vector<16x16x4xf32>
    %117 = vector.shape_cast %116 : vector<16x16x4xf32> to vector<256x4xf32>
    %c3_126 = arith.constant 3 : index
    %c0_127 = arith.constant 0 : index
    %c0_128 = arith.constant 0 : index
    %118 = vector.load %arg5[%c3_126, %c0_127, %c0_128] : memref<9x4x2xf32, #tpu.memory_space<vmem>>, vector<1x4x2xf32>
    %119 = vector.shape_cast %118 : vector<1x4x2xf32> to vector<4x2xf32>
    %cst_129 = arith.constant dense<0.000000e+00> : vector<256x2xf32>
    %120 = tpu.matmul %115, %119, %cst_129 {dimension_numbers = #tpu.dot_dimension_numbers<[1], [0], [0], [1], [0, 0, 1, 1], [], []>} : vector<256x4xf32>, vector<4x2xf32>, vector<256x2xf32> -> vector<256x2xf32>
    %121 = arith.addf %112, %120 : vector<256x2xf32>
    %c3_130 = arith.constant 3 : index
    %c0_131 = arith.constant 0 : index
    %c0_132 = arith.constant 0 : index
    %122 = vector.load %arg6[%c3_130, %c0_131, %c0_132] : memref<9x4x2xf32, #tpu.memory_space<vmem>>, vector<1x4x2xf32>
    %123 = vector.shape_cast %122 : vector<1x4x2xf32> to vector<4x2xf32>
    %cst_133 = arith.constant dense<0.000000e+00> : vector<256x2xf32>
    %124 = tpu.matmul %117, %123, %cst_133 {dimension_numbers = #tpu.dot_dimension_numbers<[1], [0], [0], [1], [0, 0, 1, 1], [], []>} : vector<256x4xf32>, vector<4x2xf32>, vector<256x2xf32> -> vector<256x2xf32>
    %125 = arith.addf %121, %124 : vector<256x2xf32>
    %c0_134 = arith.constant 0 : index
    %c1_135 = arith.constant 1 : index
    %c1_136 = arith.constant 1 : index
    %c0_137 = arith.constant 0 : index
    %126 = vector.load %arg1[%c0_134, %c1_135, %c1_136, %c0_137] : memref<1x18x18x4xf32, #tpu.memory_space<vmem>>, vector<1x16x16x4xf32>
    %127 = vector.shape_cast %126 : vector<1x16x16x4xf32> to vector<16x16x4xf32>
    %128 = vector.shape_cast %127 : vector<16x16x4xf32> to vector<256x4xf32>
    %c1_138 = arith.constant 1 : index
    %c1_139 = arith.constant 1 : index
    %c0_140 = arith.constant 0 : index
    %129 = vector.load %arg17[%c1_138, %c1_139, %c0_140] : memref<18x18x4xf32, #tpu.memory_space<vmem>>, vector<16x16x4xf32>
    %130 = vector.shape_cast %129 : vector<16x16x4xf32> to vector<256x4xf32>
    %c4_141 = arith.constant 4 : index
    %c0_142 = arith.constant 0 : index
    %c0_143 = arith.constant 0 : index
    %131 = vector.load %arg5[%c4_141, %c0_142, %c0_143] : memref<9x4x2xf32, #tpu.memory_space<vmem>>, vector<1x4x2xf32>
    %132 = vector.shape_cast %131 : vector<1x4x2xf32> to vector<4x2xf32>
    %cst_144 = arith.constant dense<0.000000e+00> : vector<256x2xf32>
    %133 = tpu.matmul %128, %132, %cst_144 {dimension_numbers = #tpu.dot_dimension_numbers<[1], [0], [0], [1], [0, 0, 1, 1], [], []>} : vector<256x4xf32>, vector<4x2xf32>, vector<256x2xf32> -> vector<256x2xf32>
    %134 = arith.addf %125, %133 : vector<256x2xf32>
    %c4_145 = arith.constant 4 : index
    %c0_146 = arith.constant 0 : index
    %c0_147 = arith.constant 0 : index
    %135 = vector.load %arg6[%c4_145, %c0_146, %c0_147] : memref<9x4x2xf32, #tpu.memory_space<vmem>>, vector<1x4x2xf32>
    %136 = vector.shape_cast %135 : vector<1x4x2xf32> to vector<4x2xf32>
    %cst_148 = arith.constant dense<0.000000e+00> : vector<256x2xf32>
    %137 = tpu.matmul %130, %136, %cst_148 {dimension_numbers = #tpu.dot_dimension_numbers<[1], [0], [0], [1], [0, 0, 1, 1], [], []>} : vector<256x4xf32>, vector<4x2xf32>, vector<256x2xf32> -> vector<256x2xf32>
    %138 = arith.addf %134, %137 : vector<256x2xf32>
    %c0_149 = arith.constant 0 : index
    %c1_150 = arith.constant 1 : index
    %c2_151 = arith.constant 2 : index
    %c0_152 = arith.constant 0 : index
    %139 = vector.load %arg1[%c0_149, %c1_150, %c2_151, %c0_152] : memref<1x18x18x4xf32, #tpu.memory_space<vmem>>, vector<1x16x16x4xf32>
    %140 = vector.shape_cast %139 : vector<1x16x16x4xf32> to vector<16x16x4xf32>
    %141 = vector.shape_cast %140 : vector<16x16x4xf32> to vector<256x4xf32>
    %c1_153 = arith.constant 1 : index
    %c2_154 = arith.constant 2 : index
    %c0_155 = arith.constant 0 : index
    %142 = vector.load %arg17[%c1_153, %c2_154, %c0_155] : memref<18x18x4xf32, #tpu.memory_space<vmem>>, vector<16x16x4xf32>
    %143 = vector.shape_cast %142 : vector<16x16x4xf32> to vector<256x4xf32>
    %c5_156 = arith.constant 5 : index
    %c0_157 = arith.constant 0 : index
    %c0_158 = arith.constant 0 : index
    %144 = vector.load %arg5[%c5_156, %c0_157, %c0_158] : memref<9x4x2xf32, #tpu.memory_space<vmem>>, vector<1x4x2xf32>
    %145 = vector.shape_cast %144 : vector<1x4x2xf32> to vector<4x2xf32>
    %cst_159 = arith.constant dense<0.000000e+00> : vector<256x2xf32>
    %146 = tpu.matmul %141, %145, %cst_159 {dimension_numbers = #tpu.dot_dimension_numbers<[1], [0], [0], [1], [0, 0, 1, 1], [], []>} : vector<256x4xf32>, vector<4x2xf32>, vector<256x2xf32> -> vector<256x2xf32>
    %147 = arith.addf %138, %146 : vector<256x2xf32>
    %c5_160 = arith.constant 5 : index
    %c0_161 = arith.constant 0 : index
    %c0_162 = arith.constant 0 : index
    %148 = vector.load %arg6[%c5_160, %c0_161, %c0_162] : memref<9x4x2xf32, #tpu.memory_space<vmem>>, vector<1x4x2xf32>
    %149 = vector.shape_cast %148 : vector<1x4x2xf32> to vector<4x2xf32>
    %cst_163 = arith.constant dense<0.000000e+00> : vector<256x2xf32>
    %150 = tpu.matmul %143, %149, %cst_163 {dimension_numbers = #tpu.dot_dimension_numbers<[1], [0], [0], [1], [0, 0, 1, 1], [], []>} : vector<256x4xf32>, vector<4x2xf32>, vector<256x2xf32> -> vector<256x2xf32>
    %151 = arith.addf %147, %150 : vector<256x2xf32>
    %c0_164 = arith.constant 0 : index
    %c2_165 = arith.constant 2 : index
    %c0_166 = arith.constant 0 : index
    %c0_167 = arith.constant 0 : index
    %152 = vector.load %arg1[%c0_164, %c2_165, %c0_166, %c0_167] : memref<1x18x18x4xf32, #tpu.memory_space<vmem>>, vector<1x16x16x4xf32>
    %153 = vector.shape_cast %152 : vector<1x16x16x4xf32> to vector<16x16x4xf32>
    %154 = vector.shape_cast %153 : vector<16x16x4xf32> to vector<256x4xf32>
    %c2_168 = arith.constant 2 : index
    %c0_169 = arith.constant 0 : index
    %c0_170 = arith.constant 0 : index
    %155 = vector.load %arg17[%c2_168, %c0_169, %c0_170] : memref<18x18x4xf32, #tpu.memory_space<vmem>>, vector<16x16x4xf32>
    %156 = vector.shape_cast %155 : vector<16x16x4xf32> to vector<256x4xf32>
    %c6_171 = arith.constant 6 : index
    %c0_172 = arith.constant 0 : index
    %c0_173 = arith.constant 0 : index
    %157 = vector.load %arg5[%c6_171, %c0_172, %c0_173] : memref<9x4x2xf32, #tpu.memory_space<vmem>>, vector<1x4x2xf32>
    %158 = vector.shape_cast %157 : vector<1x4x2xf32> to vector<4x2xf32>
    %cst_174 = arith.constant dense<0.000000e+00> : vector<256x2xf32>
    %159 = tpu.matmul %154, %158, %cst_174 {dimension_numbers = #tpu.dot_dimension_numbers<[1], [0], [0], [1], [0, 0, 1, 1], [], []>} : vector<256x4xf32>, vector<4x2xf32>, vector<256x2xf32> -> vector<256x2xf32>
    %160 = arith.addf %151, %159 : vector<256x2xf32>
    %c6_175 = arith.constant 6 : index
    %c0_176 = arith.constant 0 : index
    %c0_177 = arith.constant 0 : index
    %161 = vector.load %arg6[%c6_175, %c0_176, %c0_177] : memref<9x4x2xf32, #tpu.memory_space<vmem>>, vector<1x4x2xf32>
    %162 = vector.shape_cast %161 : vector<1x4x2xf32> to vector<4x2xf32>
    %cst_178 = arith.constant dense<0.000000e+00> : vector<256x2xf32>
    %163 = tpu.matmul %156, %162, %cst_178 {dimension_numbers = #tpu.dot_dimension_numbers<[1], [0], [0], [1], [0, 0, 1, 1], [], []>} : vector<256x4xf32>, vector<4x2xf32>, vector<256x2xf32> -> vector<256x2xf32>
    %164 = arith.addf %160, %163 : vector<256x2xf32>
    %c0_179 = arith.constant 0 : index
    %c2_180 = arith.constant 2 : index
    %c1_181 = arith.constant 1 : index
    %c0_182 = arith.constant 0 : index
    %165 = vector.load %arg1[%c0_179, %c2_180, %c1_181, %c0_182] : memref<1x18x18x4xf32, #tpu.memory_space<vmem>>, vector<1x16x16x4xf32>
    %166 = vector.shape_cast %165 : vector<1x16x16x4xf32> to vector<16x16x4xf32>
    %167 = vector.shape_cast %166 : vector<16x16x4xf32> to vector<256x4xf32>
    %c2_183 = arith.constant 2 : index
    %c1_184 = arith.constant 1 : index
    %c0_185 = arith.constant 0 : index
    %168 = vector.load %arg17[%c2_183, %c1_184, %c0_185] : memref<18x18x4xf32, #tpu.memory_space<vmem>>, vector<16x16x4xf32>
    %169 = vector.shape_cast %168 : vector<16x16x4xf32> to vector<256x4xf32>
    %c7_186 = arith.constant 7 : index
    %c0_187 = arith.constant 0 : index
    %c0_188 = arith.constant 0 : index
    %170 = vector.load %arg5[%c7_186, %c0_187, %c0_188] : memref<9x4x2xf32, #tpu.memory_space<vmem>>, vector<1x4x2xf32>
    %171 = vector.shape_cast %170 : vector<1x4x2xf32> to vector<4x2xf32>
    %cst_189 = arith.constant dense<0.000000e+00> : vector<256x2xf32>
    %172 = tpu.matmul %167, %171, %cst_189 {dimension_numbers = #tpu.dot_dimension_numbers<[1], [0], [0], [1], [0, 0, 1, 1], [], []>} : vector<256x4xf32>, vector<4x2xf32>, vector<256x2xf32> -> vector<256x2xf32>
    %173 = arith.addf %164, %172 : vector<256x2xf32>
    %c7_190 = arith.constant 7 : index
    %c0_191 = arith.constant 0 : index
    %c0_192 = arith.constant 0 : index
    %174 = vector.load %arg6[%c7_190, %c0_191, %c0_192] : memref<9x4x2xf32, #tpu.memory_space<vmem>>, vector<1x4x2xf32>
    %175 = vector.shape_cast %174 : vector<1x4x2xf32> to vector<4x2xf32>
    %cst_193 = arith.constant dense<0.000000e+00> : vector<256x2xf32>
    %176 = tpu.matmul %169, %175, %cst_193 {dimension_numbers = #tpu.dot_dimension_numbers<[1], [0], [0], [1], [0, 0, 1, 1], [], []>} : vector<256x4xf32>, vector<4x2xf32>, vector<256x2xf32> -> vector<256x2xf32>
    %177 = arith.addf %173, %176 : vector<256x2xf32>
    %c0_194 = arith.constant 0 : index
    %c2_195 = arith.constant 2 : index
    %c2_196 = arith.constant 2 : index
    %c0_197 = arith.constant 0 : index
    %178 = vector.load %arg1[%c0_194, %c2_195, %c2_196, %c0_197] : memref<1x18x18x4xf32, #tpu.memory_space<vmem>>, vector<1x16x16x4xf32>
    %179 = vector.shape_cast %178 : vector<1x16x16x4xf32> to vector<16x16x4xf32>
    %180 = vector.shape_cast %179 : vector<16x16x4xf32> to vector<256x4xf32>
    %c2_198 = arith.constant 2 : index
    %c2_199 = arith.constant 2 : index
    %c0_200 = arith.constant 0 : index
    %181 = vector.load %arg17[%c2_198, %c2_199, %c0_200] : memref<18x18x4xf32, #tpu.memory_space<vmem>>, vector<16x16x4xf32>
    %182 = vector.shape_cast %181 : vector<16x16x4xf32> to vector<256x4xf32>
    %c8_201 = arith.constant 8 : index
    %c0_202 = arith.constant 0 : index
    %c0_203 = arith.constant 0 : index
    %183 = vector.load %arg5[%c8_201, %c0_202, %c0_203] : memref<9x4x2xf32, #tpu.memory_space<vmem>>, vector<1x4x2xf32>
    %184 = vector.shape_cast %183 : vector<1x4x2xf32> to vector<4x2xf32>
    %cst_204 = arith.constant dense<0.000000e+00> : vector<256x2xf32>
    %185 = tpu.matmul %180, %184, %cst_204 {dimension_numbers = #tpu.dot_dimension_numbers<[1], [0], [0], [1], [0, 0, 1, 1], [], []>} : vector<256x4xf32>, vector<4x2xf32>, vector<256x2xf32> -> vector<256x2xf32>
    %186 = arith.addf %177, %185 : vector<256x2xf32>
    %c8_205 = arith.constant 8 : index
    %c0_206 = arith.constant 0 : index
    %c0_207 = arith.constant 0 : index
    %187 = vector.load %arg6[%c8_205, %c0_206, %c0_207] : memref<9x4x2xf32, #tpu.memory_space<vmem>>, vector<1x4x2xf32>
    %188 = vector.shape_cast %187 : vector<1x4x2xf32> to vector<4x2xf32>
    %cst_208 = arith.constant dense<0.000000e+00> : vector<256x2xf32>
    %189 = tpu.matmul %182, %188, %cst_208 {dimension_numbers = #tpu.dot_dimension_numbers<[1], [0], [0], [1], [0, 0, 1, 1], [], []>} : vector<256x4xf32>, vector<4x2xf32>, vector<256x2xf32> -> vector<256x2xf32>
    %190 = arith.addf %186, %189 : vector<256x2xf32>
    %c0_209 = arith.constant 0 : index
    %c0_210 = arith.constant 0 : index
    %191 = vector.load %arg7[%c0_209, %c0_210] : memref<1x2xf32, #tpu.memory_space<vmem>>, vector<1x2xf32>
    %192 = vector.broadcast %191 : vector<1x2xf32> to vector<256x2xf32>
    %193 = arith.addf %190, %192 : vector<256x2xf32>
    %194 = arith.negf %193 : vector<256x2xf32>
    %195 = math.exp %194 : vector<256x2xf32>
    %cst_211 = arith.constant 1.000000e+00 : f32
    %196 = vector.broadcast %cst_211 : f32 to vector<256x2xf32>
    %197 = arith.addf %196, %195 : vector<256x2xf32>
    %198 = arith.divf %196, %197 : vector<256x2xf32>
    %cst_212 = arith.constant dense<0.000000e+00> : vector<2xf32>
    %199 = vector.multi_reduction <add>, %198, %cst_212 [0] : vector<256x2xf32> to vector<2xf32>
    %200 = vector.shape_cast %199 : vector<2xf32> to vector<1x2xf32>
    %cst_213 = arith.constant 3.906250e-03 : f32
    %201 = vector.broadcast %cst_213 : f32 to vector<1x2xf32>
    %202 = arith.mulf %200, %201 : vector<1x2xf32>
    %203 = vector.extract_strided_slice %202 {offsets = [0, 0], sizes = [1, 1], strides = [1, 1]} : vector<1x2xf32> to vector<1x1xf32>
    %204 = vector.extract %203[0, 0] : f32 from vector<1x1xf32>
    %205 = vector.extract_strided_slice %202 {offsets = [0, 1], sizes = [1, 1], strides = [1, 1]} : vector<1x2xf32> to vector<1x1xf32>
    %206 = vector.extract %205[0, 0] : f32 from vector<1x1xf32>
    %c0_214 = arith.constant 0 : index
    %c1_215 = arith.constant 1 : index
    %c1_216 = arith.constant 1 : index
    %c0_217 = arith.constant 0 : index
    %207 = vector.load %arg1[%c0_214, %c1_215, %c1_216, %c0_217] : memref<1x18x18x4xf32, #tpu.memory_space<vmem>>, vector<1x16x16x4xf32>
    %208 = vector.shape_cast %207 : vector<1x16x16x4xf32> to vector<16x16x4xf32>
    %209 = vector.shape_cast %208 : vector<16x16x4xf32> to vector<256x4xf32>
    %210 = vector.broadcast %204 : f32 to vector<256x4xf32>
    %211 = arith.mulf %209, %210 : vector<256x4xf32>
    %212 = vector.broadcast %206 : f32 to vector<256x4xf32>
    %213 = arith.mulf %68, %212 : vector<256x4xf32>
    %214 = vector.shape_cast %213 : vector<256x4xf32> to vector<16x16x4xf32>
    %cst_218 = arith.constant dense<0.000000e+00> : vector<16x4xf32>
    %215 = vector.multi_reduction <add>, %214, %cst_218 [1] : vector<16x16x4xf32> to vector<16x4xf32>
    %cst_219 = arith.constant 6.250000e-02 : f32
    %216 = vector.broadcast %cst_219 : f32 to vector<16x4xf32>
    %217 = arith.mulf %215, %216 : vector<16x4xf32>
    %cst_220 = arith.constant dense<0.000000e+00> : vector<16x4xf32>
    %218 = vector.multi_reduction <add>, %214, %cst_220 [0] : vector<16x16x4xf32> to vector<16x4xf32>
    %cst_221 = arith.constant 6.250000e-02 : f32
    %219 = vector.broadcast %cst_221 : f32 to vector<16x4xf32>
    %220 = arith.mulf %218, %219 : vector<16x4xf32>
    %c0_222 = arith.constant 0 : index
    %c0_223 = arith.constant 0 : index
    %221 = vector.load %arg8[%c0_222, %c0_223] : memref<4x8xf32, #tpu.memory_space<vmem>>, vector<4x8xf32>
    %cst_224 = arith.constant dense<0.000000e+00> : vector<16x8xf32>
    %222 = tpu.matmul %217, %221, %cst_224 {dimension_numbers = #tpu.dot_dimension_numbers<[1], [0], [0], [1], [0, 0, 1, 1], [], []>} : vector<16x4xf32>, vector<4x8xf32>, vector<16x8xf32> -> vector<16x8xf32>
    %c0_225 = arith.constant 0 : index
    %c0_226 = arith.constant 0 : index
    %223 = vector.load %arg9[%c0_225, %c0_226] : memref<1x8xf32, #tpu.memory_space<vmem>>, vector<1x8xf32>
    %224 = vector.broadcast %223 : vector<1x8xf32> to vector<16x8xf32>
    %225 = arith.addf %222, %224 : vector<16x8xf32>
    %c0_227 = arith.constant 0 : index
    %c0_228 = arith.constant 0 : index
    %226 = vector.load %arg10[%c0_227, %c0_228] : memref<1x8xf32, #tpu.memory_space<vmem>>, vector<1x8xf32>
    %227 = vector.broadcast %226 : vector<1x8xf32> to vector<16x8xf32>
    %228 = arith.mulf %225, %227 : vector<16x8xf32>
    %c0_229 = arith.constant 0 : index
    %c0_230 = arith.constant 0 : index
    %229 = vector.load %arg11[%c0_229, %c0_230] : memref<1x8xf32, #tpu.memory_space<vmem>>, vector<1x8xf32>
    %230 = vector.broadcast %229 : vector<1x8xf32> to vector<16x8xf32>
    %231 = arith.addf %228, %230 : vector<16x8xf32>
    %cst_231 = arith.constant 3.000000e+00 : f32
    %232 = vector.broadcast %cst_231 : f32 to vector<16x8xf32>
    %233 = arith.addf %231, %232 : vector<16x8xf32>
    %cst_232 = arith.constant 0.000000e+00 : f32
    %cst_233 = arith.constant 6.000000e+00 : f32
    %234 = vector.broadcast %cst_232 : f32 to vector<16x8xf32>
    %235 = arith.maximumf %234, %233 : vector<16x8xf32>
    %236 = vector.broadcast %cst_233 : f32 to vector<16x8xf32>
    %237 = arith.minimumf %236, %235 : vector<16x8xf32>
    %238 = arith.mulf %231, %237 : vector<16x8xf32>
    %cst_234 = arith.constant 0.166666672 : f32
    %239 = vector.broadcast %cst_234 : f32 to vector<16x8xf32>
    %240 = arith.mulf %238, %239 : vector<16x8xf32>
    %c0_235 = arith.constant 0 : index
    %c0_236 = arith.constant 0 : index
    %241 = vector.load %arg12[%c0_235, %c0_236] : memref<8x4xf32, #tpu.memory_space<vmem>>, vector<8x4xf32>
    %cst_237 = arith.constant dense<0.000000e+00> : vector<16x4xf32>
    %242 = tpu.matmul %240, %241, %cst_237 {dimension_numbers = #tpu.dot_dimension_numbers<[1], [0], [0], [1], [0, 0, 1, 1], [], []>} : vector<16x8xf32>, vector<8x4xf32>, vector<16x4xf32> -> vector<16x4xf32>
    %c0_238 = arith.constant 0 : index
    %c0_239 = arith.constant 0 : index
    %243 = vector.load %arg13[%c0_238, %c0_239] : memref<1x4xf32, #tpu.memory_space<vmem>>, vector<1x4xf32>
    %244 = vector.broadcast %243 : vector<1x4xf32> to vector<16x4xf32>
    %245 = arith.addf %242, %244 : vector<16x4xf32>
    %246 = arith.negf %245 : vector<16x4xf32>
    %247 = math.exp %246 : vector<16x4xf32>
    %cst_240 = arith.constant 1.000000e+00 : f32
    %248 = vector.broadcast %cst_240 : f32 to vector<16x4xf32>
    %249 = arith.addf %248, %247 : vector<16x4xf32>
    %250 = arith.divf %248, %249 : vector<16x4xf32>
    %c0_241 = arith.constant 0 : index
    %c0_242 = arith.constant 0 : index
    %251 = vector.load %arg8[%c0_241, %c0_242] : memref<4x8xf32, #tpu.memory_space<vmem>>, vector<4x8xf32>
    %cst_243 = arith.constant dense<0.000000e+00> : vector<16x8xf32>
    %252 = tpu.matmul %220, %251, %cst_243 {dimension_numbers = #tpu.dot_dimension_numbers<[1], [0], [0], [1], [0, 0, 1, 1], [], []>} : vector<16x4xf32>, vector<4x8xf32>, vector<16x8xf32> -> vector<16x8xf32>
    %c0_244 = arith.constant 0 : index
    %c0_245 = arith.constant 0 : index
    %253 = vector.load %arg9[%c0_244, %c0_245] : memref<1x8xf32, #tpu.memory_space<vmem>>, vector<1x8xf32>
    %254 = vector.broadcast %253 : vector<1x8xf32> to vector<16x8xf32>
    %255 = arith.addf %252, %254 : vector<16x8xf32>
    %c0_246 = arith.constant 0 : index
    %c0_247 = arith.constant 0 : index
    %256 = vector.load %arg10[%c0_246, %c0_247] : memref<1x8xf32, #tpu.memory_space<vmem>>, vector<1x8xf32>
    %257 = vector.broadcast %256 : vector<1x8xf32> to vector<16x8xf32>
    %258 = arith.mulf %255, %257 : vector<16x8xf32>
    %c0_248 = arith.constant 0 : index
    %c0_249 = arith.constant 0 : index
    %259 = vector.load %arg11[%c0_248, %c0_249] : memref<1x8xf32, #tpu.memory_space<vmem>>, vector<1x8xf32>
    %260 = vector.broadcast %259 : vector<1x8xf32> to vector<16x8xf32>
    %261 = arith.addf %258, %260 : vector<16x8xf32>
    %cst_250 = arith.constant 3.000000e+00 : f32
    %262 = vector.broadcast %cst_250 : f32 to vector<16x8xf32>
    %263 = arith.addf %261, %262 : vector<16x8xf32>
    %cst_251 = arith.constant 0.000000e+00 : f32
    %cst_252 = arith.constant 6.000000e+00 : f32
    %264 = vector.broadcast %cst_251 : f32 to vector<16x8xf32>
    %265 = arith.maximumf %264, %263 : vector<16x8xf32>
    %266 = vector.broadcast %cst_252 : f32 to vector<16x8xf32>
    %267 = arith.minimumf %266, %265 : vector<16x8xf32>
    %268 = arith.mulf %261, %267 : vector<16x8xf32>
    %cst_253 = arith.constant 0.166666672 : f32
    %269 = vector.broadcast %cst_253 : f32 to vector<16x8xf32>
    %270 = arith.mulf %268, %269 : vector<16x8xf32>
    %c0_254 = arith.constant 0 : index
    %c0_255 = arith.constant 0 : index
    %271 = vector.load %arg14[%c0_254, %c0_255] : memref<8x4xf32, #tpu.memory_space<vmem>>, vector<8x4xf32>
    %cst_256 = arith.constant dense<0.000000e+00> : vector<16x4xf32>
    %272 = tpu.matmul %270, %271, %cst_256 {dimension_numbers = #tpu.dot_dimension_numbers<[1], [0], [0], [1], [0, 0, 1, 1], [], []>} : vector<16x8xf32>, vector<8x4xf32>, vector<16x4xf32> -> vector<16x4xf32>
    %c0_257 = arith.constant 0 : index
    %c0_258 = arith.constant 0 : index
    %273 = vector.load %arg15[%c0_257, %c0_258] : memref<1x4xf32, #tpu.memory_space<vmem>>, vector<1x4xf32>
    %274 = vector.broadcast %273 : vector<1x4xf32> to vector<16x4xf32>
    %275 = arith.addf %272, %274 : vector<16x4xf32>
    %276 = arith.negf %275 : vector<16x4xf32>
    %277 = math.exp %276 : vector<16x4xf32>
    %cst_259 = arith.constant 1.000000e+00 : f32
    %278 = vector.broadcast %cst_259 : f32 to vector<16x4xf32>
    %279 = arith.addf %278, %277 : vector<16x4xf32>
    %280 = arith.divf %278, %279 : vector<16x4xf32>
    %281 = vector.shape_cast %250 : vector<16x4xf32> to vector<16x1x4xf32>
    %282 = vector.broadcast %281 : vector<16x1x4xf32> to vector<16x16x4xf32>
    %283 = arith.mulf %214, %282 : vector<16x16x4xf32>
    %284 = vector.shape_cast %280 : vector<16x4xf32> to vector<1x16x4xf32>
    %285 = vector.broadcast %284 : vector<1x16x4xf32> to vector<16x16x4xf32>
    %286 = arith.mulf %283, %285 : vector<16x16x4xf32>
    %287 = vector.shape_cast %211 : vector<256x4xf32> to vector<16x16x4xf32>
    %288 = arith.addf %286, %287 : vector<16x16x4xf32>
    %c0_260 = arith.constant 0 : index
    %c0_261 = arith.constant 0 : index
    %c0_262 = arith.constant 0 : index
    %c0_263 = arith.constant 0 : index
    %289 = vector.load %arg16[%c0_260, %c0_261, %c0_262, %c0_263] : memref<1x16x16x4xf32, #tpu.memory_space<vmem>>, vector<1x16x16x4xf32>
    %290 = vector.shape_cast %289 : vector<1x16x16x4xf32> to vector<16x16x4xf32>
    %291 = vector.shape_cast %288 : vector<16x16x4xf32> to vector<1x16x16x4xf32>
    tpu.vector_store %arg16[%c0_260, %c0_261, %c0_262, %c0_263], %291 {strides = array<i32>} : memref<1x16x16x4xf32, #tpu.memory_space<vmem>>, vector<1x16x16x4xf32>,
    return
  }
  func.func @transform_0(%arg0: i32) -> (i32, i32, i32, i32) {
    %c0_i32 = arith.constant 0 : i32
    %c0_i32_0 = arith.constant 0 : i32
    %c0_i32_1 = arith.constant 0 : i32
    %c0_i32_2 = arith.constant 0 : i32
    return %arg0, %c0_i32, %c0_i32_0, %c0_i32_1 : i32, i32, i32, i32
  }
  func.func @transform_1(%arg0: i32) -> (i32, i32, i32, i32) {
    %c0_i32 = arith.constant 0 : i32
    %c0_i32_0 = arith.constant 0 : i32
    %c0_i32_1 = arith.constant 0 : i32
    %c0_i32_2 = arith.constant 0 : i32
    return %arg0, %c0_i32, %c0_i32_0, %c0_i32_1 : i32, i32, i32, i32
  }
  func.func @transform_2(%arg0: i32) -> (i32, i32, i32) {
    %c0_i32 = arith.constant 0 : i32
    %c0_i32_0 = arith.constant 0 : i32
    %c0_i32_1 = arith.constant 0 : i32
    %c0_i32_2 = arith.constant 0 : i32
    return %c0_i32, %c0_i32_0, %c0_i32_1 : i32, i32, i32
  }
  func.func @transform_3(%arg0: i32) -> (i32, i32) {
    %c0_i32 = arith.constant 0 : i32
    %c0_i32_0 = arith.constant 0 : i32
    %c0_i32_1 = arith.constant 0 : i32
    return %c0_i32, %c0_i32_0 : i32, i32
  }
  func.func @transform_4(%arg0: i32) -> (i32, i32, i32) {
    %c0_i32 = arith.constant 0 : i32
    %c0_i32_0 = arith.constant 0 : i32
    %c0_i32_1 = arith.constant 0 : i32
    %c0_i32_2 = arith.constant 0 : i32
    return %c0_i32, %c0_i32_0, %c0_i32_1 : i32, i32, i32
  }
  func.func @transform_5(%arg0: i32) -> (i32, i32, i32) {
    %c0_i32 = arith.constant 0 : i32
    %c0_i32_0 = arith.constant 0 : i32
    %c0_i32_1 = arith.constant 0 : i32
    %c0_i32_2 = arith.constant 0 : i32
    return %c0_i32, %c0_i32_0, %c0_i32_1 : i32, i32, i32
  }
  func.func @transform_6(%arg0: i32) -> (i32, i32) {
    %c0_i32 = arith.constant 0 : i32
    %c0_i32_0 = arith.constant 0 : i32
    %c0_i32_1 = arith.constant 0 : i32
    return %c0_i32, %c0_i32_0 : i32, i32
  }
  func.func @transform_7(%arg0: i32) -> (i32, i32) {
    %c0_i32 = arith.constant 0 : i32
    %c0_i32_0 = arith.constant 0 : i32
    %c0_i32_1 = arith.constant 0 : i32
    return %c0_i32, %c0_i32_0 : i32, i32
  }
  func.func @transform_8(%arg0: i32) -> (i32, i32) {
    %c0_i32 = arith.constant 0 : i32
    %c0_i32_0 = arith.constant 0 : i32
    %c0_i32_1 = arith.constant 0 : i32
    return %c0_i32, %c0_i32_0 : i32, i32
  }
  func.func @transform_9(%arg0: i32) -> (i32, i32) {
    %c0_i32 = arith.constant 0 : i32
    %c0_i32_0 = arith.constant 0 : i32
    %c0_i32_1 = arith.constant 0 : i32
    return %c0_i32, %c0_i32_0 : i32, i32
  }
  func.func @transform_10(%arg0: i32) -> (i32, i32) {
    %c0_i32 = arith.constant 0 : i32
    %c0_i32_0 = arith.constant 0 : i32
    %c0_i32_1 = arith.constant 0 : i32
    return %c0_i32, %c0_i32_0 : i32, i32
  }
  func.func @transform_11(%arg0: i32) -> (i32, i32) {
    %c0_i32 = arith.constant 0 : i32
    %c0_i32_0 = arith.constant 0 : i32
    %c0_i32_1 = arith.constant 0 : i32
    return %c0_i32, %c0_i32_0 : i32, i32
  }
  func.func @transform_12(%arg0: i32) -> (i32, i32) {
    %c0_i32 = arith.constant 0 : i32
    %c0_i32_0 = arith.constant 0 : i32
    %c0_i32_1 = arith.constant 0 : i32
    return %c0_i32, %c0_i32_0 : i32, i32
  }
  func.func @transform_13(%arg0: i32) -> (i32, i32) {
    %c0_i32 = arith.constant 0 : i32
    %c0_i32_0 = arith.constant 0 : i32
    %c0_i32_1 = arith.constant 0 : i32
    return %c0_i32, %c0_i32_0 : i32, i32
  }
  func.func @transform_14(%arg0: i32) -> (i32, i32) {
    %c0_i32 = arith.constant 0 : i32
    %c0_i32_0 = arith.constant 0 : i32
    %c0_i32_1 = arith.constant 0 : i32
    return %c0_i32, %c0_i32_0 : i32, i32
  }
  func.func @transform_15(%arg0: i32) -> (i32, i32, i32, i32) {
    %c0_i32 = arith.constant 0 : i32
    %c0_i32_0 = arith.constant 0 : i32
    %c0_i32_1 = arith.constant 0 : i32
    %c0_i32_2 = arith.constant 0 : i32
    return %arg0, %c0_i32, %c0_i32_0, %c0_i32_1 : i32, i32, i32, i32
  }
}

</mosaic_0001>

<bundles_post_ra>
// kernel: mcg_forward.1
= control target key start
LH: loop header
LB: loop body
LE: loop exit
PB: predicated region body
PF: predicated region fallthrough
CT: control target
= control target key end

     0   :  { %s16394_s18 = smov 0   ;;  %s21920_s0 = inlined_call_operand.vmem [shape: f32[2,18,18,4], index: 0, kind: input, shape index: {}]   ;;  %s21921_s1 = inlined_call_operand.vmem [shape: f32[2,18,18,4], index: 1, kind: input, shape index: {}]   ;;  %s21922_s2 = inlined_call_operand.vmem [shape: f32[9,4,4], index: 2, kind: input, shape index: {}]   ;;  %s21923_s3 = inlined_call_operand.vmem [shape: f32[1,4], index: 3, kind: input, shape index: {}]   ;;  %s21924_s4 = inlined_call_operand.vmem [shape: f32[9,4,2], index: 4, kind: input, shape index: {}]   ;;  %s21925_s5 = inlined_call_operand.vmem [shape: f32[9,4,2], index: 5, kind: input, shape index: {}]   ;;  %s21926_s6 = inlined_call_operand.vmem [shape: f32[1,2], index: 6, kind: input, shape index: {}]   ;;  %s21927_s7 = inlined_call_operand.vmem [shape: f32[4,8], index: 7, kind: input, shape index: {}]   ;;  %s21928_s8 = inlined_call_operand.vmem [shape: f32[1,8], index: 8, kind: input, shape index: {}]   ;;  %s21929_s9 = inlined_call_operand.vmem [shape: f32[1,8], index: 9, kind: input, shape index: {}]   ;;  %s21930_s10 = inlined_call_operand.vmem [shape: f32[1,8], index: 10, kind: input, shape index: {}]   ;;  %s21931_s11 = inlined_call_operand.vmem [shape: f32[8,4], index: 11, kind: input, shape index: {}]   ;;  %s21932_s12 = inlined_call_operand.vmem [shape: f32[1,4], index: 12, kind: input, shape index: {}]   ;;  %s21933_s13 = inlined_call_operand.vmem [shape: f32[8,4], index: 13, kind: input, shape index: {}]   ;;  %s21934_s14 = inlined_call_operand.vmem [shape: f32[1,4], index: 14, kind: input, shape index: {}]   ;;  %s21935_s15 = inlined_call_operand.vmem [shape: f32[2,16,16,4], index: 15, kind: output, shape index: {}]  }
   0x1 LB: > { %s12472_s19 = sadd.s32 4294967295, %s16309_s18   ;;  %p12476_p0 = scmp.ge.s32.totalorder %s16309_s18, 1  ;;  %s16309_s18 = sphi %s16394_s18, %s25_s18  }
   0x2   : > { %p447_p1 = scmp.lt.s32.totalorder %s16309_s18, 3 }
   0x4   : > { %p448_p2 = pnand %p12476_p0, %p447_p1 }
   0x6   : > { %451 = sbr.rel (%p448_p2) target bundleno = 2193 (0x891), region = 80 }
   0xb   : > { %v12481_v0 = vld [vmem:[%s21922_s2 + $0x4] sm:$0xf]  ;;  %vm679_vm0 = vcmask 1043456   ;;  %p500_p3 = scmp.lt.s32.totalorder %s12472_s19, 1  ;;  %v12548_v1 = vld [vmem:[%s21922_s2 + $0x8] sm:$0xf] }
   0xc   : > { %14739 = vmatprep.subr.msk.mxu0 %vm679_vm0, %v12481_v0  ;;  %16109 = vmatprep.subr.msk.mxu1 %vm679_vm0, %v12481_v0  ;;  %v547_v2 = vld [vmem:[%s21922_s2] sm:$0xf]  ;;  %vm582_vm1 = vcmask 31744   ;;  %v12614_v9 = vld [vmem:[%s21922_s2 + $0xc] sm:$0xf]  ;;  %vm4037_vm2 = vcmask 25600  }
   0xd   : > { %14740 = vmatpush3.msk.msra.mxu0 %vm679_vm0, %v12481_v0  ;;  %16110 = vmatpush3.msk.msra.mxu1 %vm679_vm0, %v12481_v0  ;;  %s22884_s19 = smov (!%p500_p3, %s12472_s19), 1  ;;  %v16453_v10 = vld [vmem:[%s21922_s2 + $0x10] sm:$0xf]  ;;  %v16577_v35 = vld [vmem:[%s21922_s2 + $0x14] sm:$0xf]  ;;  %vm11311_vm3 = vcmask 15360  }
   0xe   : > { %14839 = vmatprep.subr.msk.mxu0 %vm679_vm0, %v12548_v1  ;;  %14789 = vmatprep.subr.msk.mxu1 %vm679_vm0, %v547_v2  ;;  %s16111_s26 = smul.u32 432, %s22884_s19  ;;  %v16656_v52 = vld [vmem:[%s21922_s2 + $0x18] sm:$0xf]  ;;  %s16312_s25 = smov 127   ;;  %vm11668_vm4 = vcmask 1041409   ;;  %vm11670_vm5 = vcmask 1042434  }
   0xf   : > { %vm11672_vm6 = vcmask 1043459   ;;  %vm11674_vm7 = vcmask 1044484   ;;  %vm11676_vm8 = vcmask 1045509   ;;  %vm11678_vm9 = vcmask 1046534  }
  0x10   : > { %s16425_s29 = scalar_lea.vmem %s21921_s1, %s16111_s26  ;;  %s17482_s24 = scalar_lea.vmem %s21920_s0, %s16111_s26  ;;  %vm11680_vm10 = vcmask 1047559   ;;  %vm11807_vm11 = vcmask 64512  }
  0x11   : > { %v548_v3 = vld [vmem:[%s16425_s29 + $0x1] sm:$0xff]  ;;  %v16429_v4 = vld [vmem:[%s16425_s29 + $0xf1] sm:$0xff]  ;;  %v549_v5 = vld [vmem:[%s16425_s29 + $0x9] sm:$0xff] }
  0x12   : > { %14741 = vmatprep.mubr.msk.f32.mxu0 %vm582_vm1, %v548_v3  ;;  %14771 = vmatprep.mubr.msk.f32.mxu1 %vm582_vm1, %v16429_v4  ;;  %v16436_v6 = vld [vmem:[%s16425_s29 + $0xf9] sm:$0xff]  ;;  %v16442_v8 = vld [vmem:[%s16425_s29 + $0x109] sm:$0xff]  ;;  %v16459_v11 = vld [vmem:[%s16425_s29 + $0x21] sm:$0xff] }
  0x13   : > { %v16439_v7 = vld [vmem:[%s16425_s29 + $0x19] sm:$0xff]  ;;  %14742 = vmatmul.mubr.msk.f32.vlgmr.msra.gmra.mxu0 %vm582_vm1, %v549_v5  ;;  %14772 = vmatmul.mubr.msk.f32.vlgmr.msra.gmra.mxu1 %vm582_vm1, %v16436_v6  ;;  %v16462_v12 = vld [vmem:[%s16425_s29 + $0x111] sm:$0xff]  ;;  %v16470_v14 = vld [vmem:[%s16425_s29 + $0x121] sm:$0xff] }
  0x14   : > { %14840 = vmatpush3.msk.msra.mxu0 %vm679_vm0, %v12548_v1  ;;  %14744 = vmatprep.mubr.msk.f32.mxu0 %vm582_vm1, %v16439_v7  ;;  %v16467_v13 = vld [vmem:[%s16425_s29 + $0x31] sm:$0xff]  ;;  %v16485_v15 = vld [vmem:[%s16425_s29 + $0x39] sm:$0xff]  ;;  %v16488_v16 = vld [vmem:[%s16425_s29 + $0x129] sm:$0xff] }
  0x15   : > { %14774 = vmatprep.mubr.msk.f32.mxu1 %vm582_vm1, %v16442_v8  ;;  %14790 = vmatpush3.msk.msra.mxu1 %vm679_vm0, %v547_v2  ;;  %v16491_v17 = vld [vmem:[%s16425_s29 + $0x49] sm:$0xff]  ;;  %v16494_v18 = vld [vmem:[%s16425_s29 + $0x139] sm:$0xff]  ;;  %v16505_v19 = vld [vmem:[%s16425_s29 + $0x51] sm:$0xff] }
  0x16   : > { %14889 = vmatprep.subr.msk.mxu1 %vm679_vm0, %v12614_v9  ;;  %14939 = vmatprep.subr.msk.mxu0 %vm679_vm0, %v16453_v10  ;;  %v16508_v20 = vld [vmem:[%s16425_s29 + $0x141] sm:$0xff]  ;;  %v16514_v22 = vld [vmem:[%s16425_s29 + $0x151] sm:$0xff]  ;;  %v16525_v23 = vld [vmem:[%s16425_s29 + $0x69] sm:$0xff] }
  0x17   : > { %14745 = vmatmul.mubr.msk.f32.gmra.mxu0 %vm582_vm1, %v16459_v11  ;;  %14775 = vmatmul.mubr.msk.f32.gmra.mxu1 %vm582_vm1, %v16462_v12  ;;  %v16511_v21 = vld [vmem:[%s16425_s29 + $0x61] sm:$0xff]  ;;  %22087 = vst [vmem:[#allocation3_spill] sm:$0xff] %v16514_v22  ;;  %v16528_v24 = vld [vmem:[%s16425_s29 + $0x159] sm:$0xff]  ;;  %v16534_v26 = vld [vmem:[%s16425_s29 + $0x169] sm:$0xff] }
  0x18   : > { %14747 = vmatprep.mubr.msk.f32.mxu0 %vm582_vm1, %v16467_v13  ;;  %14777 = vmatprep.mubr.msk.f32.mxu1 %vm582_vm1, %v16470_v14  ;;  %22088 = vst [vmem:[#allocation4_spill] sm:$0xff] %v16528_v24  ;;  %v16531_v25 = vld [vmem:[%s16425_s29 + $0x79] sm:$0xff]  ;;  %22089 = vst [vmem:[#allocation5_spill] sm:$0xff] %v16534_v26  ;;  %v16545_v27 = vld [vmem:[%s16425_s29 + $0x81] sm:$0xff] }
  0x19   : > { %v16548_v28 = vld [vmem:[%s16425_s29 + $0x171] sm:$0xff]  ;;  %v515_v30 = vld [vmem:[%s16425_s29] sm:$0xff]  ;;  %v516_v32 = vld [vmem:[%s16425_s29 + $0x8] sm:$0xff] }
  0x1a   : > { %22090 = vst [vmem:[#allocation6_spill] sm:$0xff] %v16548_v28  ;;  %v16551_v29 = vld [vmem:[%s16425_s29 + $0x91] sm:$0xff]  ;;  %v16562_v31 = vld [vmem:[%s16425_s29 + $0x99] sm:$0xff]  ;;  %v16566_v33 = vld [vmem:[%s16425_s29 + $0xa9] sm:$0xff] }
  0x1b   : > { %14748 = vmatmul.mubr.msk.f32.gmra.mxu0 %vm582_vm1, %v16485_v15  ;;  %14778 = vmatmul.mubr.msk.f32.gmra.mxu1 %vm582_vm1, %v16488_v16  ;;  %v16569_v34 = vld [vmem:[%s16425_s29 + $0x18] sm:$0xff]  ;;  %v16587_v37 = vld [vmem:[%s16425_s29 + $0x20] sm:$0xff]  ;;  %v16593_v39 = vld [vmem:[%s16425_s29 + $0x30] sm:$0xff] }
  0x1c   : > { %14750 = vmatprep.mubr.msk.f32.mxu0 %vm582_vm1, %v16491_v17  ;;  %14780 = vmatprep.mubr.msk.f32.mxu1 %vm582_vm1, %v16494_v18  ;;  %v16584_v36 = vld [vmem:[%s16425_s29 + $0xb1] sm:$0xff]  ;;  %v16590_v38 = vld [vmem:[%s16425_s29 + $0xc1] sm:$0xff]  ;;  %v16607_v40 = vld [vmem:[%s16425_s29 + $0xc9] sm:$0xff] }
  0x1d   : > { %v16610_v41 = vld [vmem:[%s16425_s29 + $0x38] sm:$0xff]  ;;  %v16616_v43 = vld [vmem:[%s16425_s29 + $0x48] sm:$0xff]  ;;  %v16630_v45 = vld [vmem:[%s16425_s29 + $0x50] sm:$0xff] }
  0x1e   : > { %v16613_v42 = vld [vmem:[%s16425_s29 + $0xd9] sm:$0xff]  ;;  %v16627_v44 = vld [vmem:[%s16425_s29 + $0xe1] sm:$0xff]  ;;  %v1233_v49 = vld [vmem:[%s16425_s29 + $0xa] sm:$0xff] }
  0x1f   : > { %14751 = vmatmul.mubr.msk.f32.gmra.mxu0 %vm582_vm1, %v16505_v19  ;;  %14781 = vmatmul.mubr.msk.f32.gmra.mxu1 %vm582_vm1, %v16508_v20  ;;  %v16633_v46 = vld [vmem:[%s16425_s29 + $0x60] sm:$0xff]  ;;  %v16644_v48 = vld [vmem:[%s16425_s29 + $0x68] sm:$0xff]  ;;  %v16648_v50 = vld [vmem:[%s16425_s29 + $0x78] sm:$0xff] }
  0x20   : > { %14753 = vmatprep.mubr.msk.f32.mxu0 %vm582_vm1, %v16511_v21  ;;  %14783 = vmatprep.mubr.msk.f32.mxu1 %vm582_vm1, %v16514_v22  ;;  %v1232_v47 = vld [vmem:[%s16425_s29 + $0x2] sm:$0xff]  ;;  %v16651_v51 = vld [vmem:[%s16425_s29 + $0x1a] sm:$0xff]  ;;  %v16674_v55 = vld [vmem:[%s16425_s29 + $0x90] sm:$0xff] }
  0x21   : > { %v16666_v53 = vld [vmem:[%s16425_s29 + $0x80] sm:$0xff]  ;;  %v16677_v56 = vld [vmem:[%s16425_s29 + $0x32] sm:$0xff]  ;;  %v16696_v59 = vld [vmem:[%s16425_s29 + $0xa8] sm:$0xff] }
  0x22   : > { %v16669_v54 = vld [vmem:[%s16425_s29 + $0x22] sm:$0xff]  ;;  %22091 = vst [vmem:[#allocation7_spill] sm:$0xff] %v16677_v56  ;;  %v16690_v57 = vld [vmem:[%s16425_s29 + $0x98] sm:$0xff]  ;;  %v16699_v60 = vld [vmem:[%s16425_s29 + $0x4a] sm:$0xff] }
  0x23   : > { %14754 = vmatmul.mubr.msk.f32.gmra.mxu0 %vm582_vm1, %v16525_v23  ;;  %14784 = vmatmul.mubr.msk.f32.gmra.mxu1 %vm582_vm1, %v16528_v24  ;;  %v16693_v58 = vld [vmem:[%s16425_s29 + $0x3a] sm:$0xff]  ;;  %22093 = vst [vmem:[#allocation9_spill] sm:$0xff] %v16699_v60  ;;  %v16710_v61 = vld [vmem:[%s16425_s29 + $0xb0] sm:$0xff]  ;;  %v16719_v0 = vld [vmem:[%s16425_s29 + $0x62] sm:$0xff] }
  0x24   : > { %14756 = vmatprep.mubr.msk.f32.mxu0 %vm582_vm1, %v16531_v25  ;;  %14786 = vmatprep.mubr.msk.f32.mxu1 %vm582_vm1, %v16534_v26  ;;  %22092 = vst [vmem:[#allocation8_spill] sm:$0xff] %v16693_v58  ;;  %v16713_v62 = vld [vmem:[%s16425_s29 + $0x52] sm:$0xff]  ;;  %v16716_v63 = vld [vmem:[%s16425_s29 + $0xc0] sm:$0xff]  ;;  %22095 = vst [vmem:[#allocation11_spill] sm:$0xff] %v16719_v0 }
  0x25   : > { %22094 = vst [vmem:[#allocation10_spill] sm:$0xff] %v16713_v62  ;;  %v16730_v1 = vld [vmem:[%s16425_s29 + $0xc8] sm:$0xff]  ;;  %v16736_v3 = vld [vmem:[%s16425_s29 + $0xd8] sm:$0xff]  ;;  %v16836_v26 = vld [vmem:[%s16425_s29 + $0x150] sm:$0xff] }
  0x26   : > { %v16733_v2 = vld [vmem:[%s16425_s29 + $0x6a] sm:$0xff]  ;;  %v16739_v5 = vld [vmem:[%s16425_s29 + $0x7a] sm:$0xff]  ;;  %v16876_v22 = vld [vmem:[%s16425_s29 + $0x122] sm:$0xff] }
  0x27   : > { %14757 = vmatmul.mubr.msk.f32.gmra.mxu0 %vm582_vm1, %v16545_v27  ;;  %14787 = vmatmul.mubr.msk.f32.gmra.mxu1 %vm582_vm1, %v16548_v28  ;;  %22096 = vst [vmem:[#allocation12_spill] sm:$0xff] %v16733_v2  ;;  %22097 = vst [vmem:[#allocation13_spill] sm:$0xff] %v16739_v5  ;;  %v16816_v28 = vld [vmem:[%s16425_s29 + $0x138] sm:$0xff]  ;;  %v16856_v24 = vld [vmem:[%s16425_s29 + $0x168] sm:$0xff] }
  0x28   : > { %14759 = vmatprep.mubr.msk.f32.mxu0 %vm582_vm1, %v16551_v29  ;;  %14791 = vmatprep.mubr.msk.f32.mxu1 %vm582_vm1, %v515_v30  ;;  %v16756_v30 = vld [vmem:[%s16425_s29 + $0xf0] sm:$0xff]  ;;  %22111 = vst [vmem:[#allocation27_spill] sm:$0xff] %v16876_v22 }
  0x2b   : > { %14760 = vmatmul.mubr.msk.f32.gmra.mxu0 %vm582_vm1, %v16562_v31  ;;  %14792 = vmatmul.mubr.msk.f32.vlgmr.msra.gmra.mxu1 %vm582_vm1, %v516_v32  ;;  %v16759_v32 = vld [vmem:[%s16425_s29 + $0x92] sm:$0xff] }
  0x2c   : > { %14762 = vmatprep.mubr.msk.f32.mxu0 %vm582_vm1, %v16566_v33  ;;  %14794 = vmatprep.mubr.msk.f32.mxu1 %vm582_vm1, %v16569_v34  ;;  %22099 = vst [vmem:[#allocation15_spill] sm:$0xff] %v16759_v32 }
  0x2d   : > { %14890 = vmatpush3.msk.msra.mxu1 %vm679_vm0, %v12614_v9  ;;  %v16750_v9 = vld [vmem:[%s16425_s29 + $0xe0] sm:$0xff] }
  0x2e   : > { %14989 = vmatprep.subr.msk.mxu1 %vm679_vm0, %v16577_v35 }
  0x2f   : > { %14763 = vmatmul.mubr.msk.f32.gmra.mxu0 %vm582_vm1, %v16584_v36  ;;  %14795 = vmatmul.mubr.msk.f32.gmra.mxu1 %vm582_vm1, %v16587_v37 }
  0x30   : > { %14765 = vmatprep.mubr.msk.f32.mxu0 %vm582_vm1, %v16590_v38  ;;  %14797 = vmatprep.mubr.msk.f32.mxu1 %vm582_vm1, %v16593_v39 }
  0x33   : > { %14766 = vmatmul.mubr.msk.f32.gmra.mxu0 %vm582_vm1, %v16607_v40  ;;  %14798 = vmatmul.mubr.msk.f32.gmra.mxu1 %vm582_vm1, %v16610_v41 }
  0x34   : > { %14768 = vmatprep.mubr.msk.f32.mxu0 %vm582_vm1, %v16613_v42  ;;  %14800 = vmatprep.mubr.msk.f32.mxu1 %vm582_vm1, %v16616_v43 }
  0x37   : > { %14769 = vmatmul.mubr.msk.f32.gmra.mxu0 %vm582_vm1, %v16627_v44  ;;  %14801 = vmatmul.mubr.msk.f32.gmra.mxu1 %vm582_vm1, %v16630_v45 }
  0x38   : > { %14803 = vmatprep.mubr.msk.f32.mxu1 %vm582_vm1, %v16633_v46  ;;  %14841 = vmatprep.mubr.msk.f32.mxu0 %vm582_vm1, %v1232_v47  ;;  %v16770_v47 = vld [vmem:[%s16425_s29 + $0xf8] sm:$0xff] }
  0x3b   : > { %14804 = vmatmul.mubr.msk.f32.gmra.mxu1 %vm582_vm1, %v16644_v48  ;;  %14842 = vmatmul.mubr.msk.f32.vlgmr.msra.gmra.mxu0 %vm582_vm1, %v1233_v49  ;;  %v16773_v49 = vld [vmem:[%s16425_s29 + $0x9a] sm:$0xff] }
  0x3c   : > { %14940 = vmatpush3.msk.msra.mxu0 %vm679_vm0, %v16453_v10  ;;  %14806 = vmatprep.mubr.msk.f32.mxu1 %vm582_vm1, %v16648_v50  ;;  %v16753_v10 = vld [vmem:[%s16425_s29 + $0x82] sm:$0xff]  ;;  %22100 = vst [vmem:[#allocation16_spill] sm:$0xff] %v16773_v49 }
  0x3d   : > { %14844 = vmatprep.mubr.msk.f32.mxu0 %vm582_vm1, %v16651_v51  ;;  %15039 = vmatprep.subr.msk.mxu0 %vm679_vm0, %v16656_v52  ;;  %22098 = vst [vmem:[#allocation14_spill] sm:$0xff] %v16753_v10 }
  0x3f   : > { %14807 = vmatmul.mubr.msk.f32.gmra.mxu1 %vm582_vm1, %v16666_v53  ;;  %14845 = vmatmul.mubr.msk.f32.gmra.mxu0 %vm582_vm1, %v16669_v54 }
  0x40   : > { %14809 = vmatprep.mubr.msk.f32.mxu1 %vm582_vm1, %v16674_v55  ;;  %14847 = vmatprep.mubr.msk.f32.mxu0 %vm582_vm1, %v16677_v56  ;;  %v16859_v56 = vld [vmem:[%s16425_s29 + $0x10a] sm:$0xff] }
  0x41   : > { %22109 = vst [vmem:[#allocation25_spill] sm:$0xff] %v16859_v56 }
  0x43   : > { %14810 = vmatmul.mubr.msk.f32.gmra.mxu1 %vm582_vm1, %v16690_v57  ;;  %14848 = vmatmul.mubr.msk.f32.gmra.mxu0 %vm582_vm1, %v16693_v58  ;;  %v16839_v58 = vld [vmem:[%s16425_s29 + $0xf2] sm:$0xff] }
  0x44   : > { %14812 = vmatprep.mubr.msk.f32.mxu1 %vm582_vm1, %v16696_v59  ;;  %14850 = vmatprep.mubr.msk.f32.mxu0 %vm582_vm1, %v16699_v60  ;;  %v16819_v60 = vld [vmem:[%s16425_s29 + $0xda] sm:$0xff]  ;;  %22107 = vst [vmem:[#allocation23_spill] sm:$0xff] %v16839_v58 }
  0x45   : > { %22105 = vst [vmem:[#allocation21_spill] sm:$0xff] %v16819_v60 }
  0x47   : > { %14813 = vmatmul.mubr.msk.f32.gmra.mxu1 %vm582_vm1, %v16710_v61  ;;  %14851 = vmatmul.mubr.msk.f32.gmra.mxu0 %vm582_vm1, %v16713_v62  ;;  %v16799_v62 = vld [vmem:[%s16425_s29 + $0xc2] sm:$0xff] }
  0x48   : > { %14815 = vmatprep.mubr.msk.f32.mxu1 %vm582_vm1, %v16716_v63  ;;  %14853 = vmatprep.mubr.msk.f32.mxu0 %vm582_vm1, %v16719_v0  ;;  %v16796_v0 = vld [vmem:[%s16425_s29 + $0x120] sm:$0xff]  ;;  %22103 = vst [vmem:[#allocation19_spill] sm:$0xff] %v16799_v62 }
  0x4b   : > { %14816 = vmatmul.mubr.msk.f32.gmra.mxu1 %vm582_vm1, %v16730_v1  ;;  %14854 = vmatmul.mubr.msk.f32.gmra.mxu0 %vm582_vm1, %v16733_v2  ;;  %v16779_v2 = vld [vmem:[%s16425_s29 + $0xaa] sm:$0xff] }
  0x4c   : > { %14818 = vmatprep.mubr.msk.f32.mxu1 %vm582_vm1, %v16736_v3  ;;  %14856 = vmatprep.mubr.msk.f32.mxu0 %vm582_vm1, %v16739_v5  ;;  %v16776_v5 = vld [vmem:[%s16425_s29 + $0x108] sm:$0xff]  ;;  %22101 = vst [vmem:[#allocation17_spill] sm:$0xff] %v16779_v2 }
  0x4f   : > { %14819 = vmatmul.mubr.msk.f32.gmra.mxu1 %vm582_vm1, %v16750_v9  ;;  %14857 = vmatmul.mubr.msk.f32.gmra.mxu0 %vm582_vm1, %v16753_v10  ;;  %v16793_v10 = vld [vmem:[%s16425_s29 + $0xb2] sm:$0xff] }
  0x50   : > { %14821 = vmatprep.mubr.msk.f32.mxu1 %vm582_vm1, %v16756_v30  ;;  %14859 = vmatprep.mubr.msk.f32.mxu0 %vm582_vm1, %v16759_v32  ;;  %v16790_v32 = vld [vmem:[%s16425_s29 + $0x110] sm:$0xff]  ;;  %22102 = vst [vmem:[#allocation18_spill] sm:$0xff] %v16793_v10 }
  0x53   : > { %14822 = vmatmul.mubr.msk.f32.gmra.mxu1 %vm582_vm1, %v16770_v47  ;;  %14860 = vmatmul.mubr.msk.f32.gmra.mxu0 %vm582_vm1, %v16773_v49  ;;  %v16813_v49 = vld [vmem:[%s16425_s29 + $0xca] sm:$0xff] }
  0x54   : > { %14824 = vmatprep.mubr.msk.f32.mxu1 %vm582_vm1, %v16776_v5  ;;  %14862 = vmatprep.mubr.msk.f32.mxu0 %vm582_vm1, %v16779_v2  ;;  %v16810_v2 = vld [vmem:[%s16425_s29 + $0x128] sm:$0xff]  ;;  %22104 = vst [vmem:[#allocation20_spill] sm:$0xff] %v16813_v49 }
  0x57   : > { %14825 = vmatmul.mubr.msk.f32.gmra.mxu1 %vm582_vm1, %v16790_v32  ;;  %14863 = vmatmul.mubr.msk.f32.gmra.mxu0 %vm582_vm1, %v16793_v10  ;;  %v16833_v10 = vld [vmem:[%s16425_s29 + $0xe2] sm:$0xff] }
  0x58   : > { %14827 = vmatprep.mubr.msk.f32.mxu1 %vm582_vm1, %v16796_v0  ;;  %14865 = vmatprep.mubr.msk.f32.mxu0 %vm582_vm1, %v16799_v62  ;;  %v16830_v62 = vld [vmem:[%s16425_s29 + $0x140] sm:$0xff]  ;;  %22106 = vst [vmem:[#allocation22_spill] sm:$0xff] %v16833_v10 }
  0x5b   : > { %14828 = vmatmul.mubr.msk.f32.gmra.mxu1 %vm582_vm1, %v16810_v2  ;;  %14866 = vmatmul.mubr.msk.f32.gmra.mxu0 %vm582_vm1, %v16813_v49  ;;  %v16853_v49 = vld [vmem:[%s16425_s29 + $0xfa] sm:$0xff] }
  0x5c   : > { %14830 = vmatprep.mubr.msk.f32.mxu1 %vm582_vm1, %v16816_v28  ;;  %14868 = vmatprep.mubr.msk.f32.mxu0 %vm582_vm1, %v16819_v60  ;;  %v16850_v60 = vld [vmem:[%s16425_s29 + $0x158] sm:$0xff]  ;;  %22108 = vst [vmem:[#allocation24_spill] sm:$0xff] %v16853_v49 }
  0x5f   : > { %14831 = vmatmul.mubr.msk.f32.gmra.mxu1 %vm582_vm1, %v16830_v62  ;;  %14869 = vmatmul.mubr.msk.f32.gmra.mxu0 %vm582_vm1, %v16833_v10  ;;  %v16873_v10 = vld [vmem:[%s16425_s29 + $0x112] sm:$0xff] }
  0x60   : > { %14833 = vmatprep.mubr.msk.f32.mxu1 %vm582_vm1, %v16836_v26  ;;  %14871 = vmatprep.mubr.msk.f32.mxu0 %vm582_vm1, %v16839_v58  ;;  %v16870_v58 = vld [vmem:[%s16425_s29 + $0x170] sm:$0xff]  ;;  %22110 = vst [vmem:[#allocation26_spill] sm:$0xff] %v16873_v10 }
  0x63   : > { %14834 = vmatmul.mubr.msk.f32.gmra.mxu1 %vm582_vm1, %v16850_v60  ;;  %14872 = vmatmul.mubr.msk.f32.gmra.mxu0 %vm582_vm1, %v16853_v49  ;;  %v16890_v49 = vld [vmem:[%s16425_s29 + $0x13a] sm:$0xff] }
  0x64   : > { %14836 = vmatprep.mubr.msk.f32.mxu1 %vm582_vm1, %v16856_v24  ;;  %14874 = vmatprep.mubr.msk.f32.mxu0 %vm582_vm1, %v16859_v56  ;;  %v16887_v56 = vld [vmem:[%s16425_s29 + $0x12a] sm:$0xff]  ;;  %22112 = vst [vmem:[#allocation28_spill] sm:$0xff] %v16890_v49 }
  0x67   : > { %14837 = vmatmul.mubr.msk.f32.gmra.mxu1 %vm582_vm1, %v16870_v58  ;;  %14875 = vmatmul.mubr.msk.f32.gmra.mxu0 %vm582_vm1, %v16873_v10  ;;  %v16899_v10 = vld [vmem:[%s21922_s2 + $0x1c] sm:$0xf] }
  0x68   : > { %14877 = vmatprep.mubr.msk.f32.mxu0 %vm582_vm1, %v16876_v22  ;;  %14891 = vmatprep.mubr.msk.f32.mxu1 %vm582_vm1, %v16569_v34  ;;  %v16906_v34 = vld [vmem:[%s16425_s29 + $0x142] sm:$0xff]  ;;  %v16909_v22 = vld [vmem:[%s16425_s29 + $0x152] sm:$0xff] }
  0x6b   : > { %14878 = vmatmul.mubr.msk.f32.gmra.mxu0 %vm582_vm1, %v16887_v56  ;;  %14892 = vmatmul.mubr.msk.f32.vlgmr.msra.gmra.mxu1 %vm582_vm1, %v16587_v37  ;;  %v16924_v37 = vld [vmem:[%s16425_s29 + $0x15a] sm:$0xff] }
  0x6c   : > { %14880 = vmatprep.mubr.msk.f32.mxu0 %vm582_vm1, %v16890_v49  ;;  %14894 = vmatprep.mubr.msk.f32.mxu1 %vm582_vm1, %v16593_v39  ;;  %v16927_v49 = vld [vmem:[%s16425_s29 + $0x16a] sm:$0xff] }
  0x6d   : > { %14990 = vmatpush3.msk.msra.mxu1 %vm679_vm0, %v16577_v35  ;;  %22113 = vst [vmem:[#allocation29_spill] sm:$0xff] %v16927_v49  ;;  %v16938_v35 = vld [vmem:[%s16425_s29 + $0x172] sm:$0xff] }
  0x6e   : > { %15089 = vmatprep.subr.msk.mxu1 %vm679_vm0, %v16899_v10 }
  0x6f   : > { %14881 = vmatmul.mubr.msk.f32.gmra.mxu0 %vm582_vm1, %v16906_v34  ;;  %14895 = vmatmul.mubr.msk.f32.gmra.mxu1 %vm582_vm1, %v16610_v41 }
  0x70   : > { %14883 = vmatprep.mubr.msk.f32.mxu0 %vm582_vm1, %v16909_v22  ;;  %14897 = vmatprep.mubr.msk.f32.mxu1 %vm582_vm1, %v16616_v43 }
  0x73   : > { %14884 = vmatmul.mubr.msk.f32.gmra.mxu0 %vm582_vm1, %v16924_v37  ;;  %14898 = vmatmul.mubr.msk.f32.gmra.mxu1 %vm582_vm1, %v16630_v45 }
  0x74   : > { %14886 = vmatprep.mubr.msk.f32.mxu0 %vm582_vm1, %v16927_v49  ;;  %14900 = vmatprep.mubr.msk.f32.mxu1 %vm582_vm1, %v16633_v46  ;;  %v16951_v49 = vld [vmem:[%s21922_s2 + $0x20] sm:$0xf] }
  0x77   : > { %14887 = vmatmul.mubr.msk.f32.gmra.mxu0 %vm582_vm1, %v16938_v35  ;;  %14901 = vmatmul.mubr.msk.f32.gmra.mxu1 %vm582_vm1, %v16644_v48 }
  0x78   : > { %14903 = vmatprep.mubr.msk.f32.mxu1 %vm582_vm1, %v16648_v50  ;;  %14941 = vmatprep.mubr.msk.f32.mxu0 %vm582_vm1, %v16439_v7  ;;  %v17038_v7 = vld [vmem:[%s16425_s29 + $0x180] sm:$0xff] }
  0x7b   : > { %14904 = vmatmul.mubr.msk.f32.gmra.mxu1 %vm582_vm1, %v16666_v53  ;;  %14942 = vmatmul.mubr.msk.f32.vlgmr.msra.gmra.mxu0 %vm582_vm1, %v16459_v11  ;;  %v22116_v11 = vld [vmem:[#allocation4_spill] sm:$0xff] }
  0x7c   : > { %15040 = vmatpush3.msk.msra.mxu0 %vm679_vm0, %v16656_v52  ;;  %14906 = vmatprep.mubr.msk.f32.mxu1 %vm582_vm1, %v16674_v55  ;;  %v22123_v52 = vld [vmem:[#allocation11_spill] sm:$0xff] }
  0x7d   : > { %14944 = vmatprep.mubr.msk.f32.mxu0 %vm582_vm1, %v16467_v13  ;;  %15139 = vmatprep.subr.msk.mxu0 %vm679_vm0, %v16951_v49 }
  0x7f   : > { %14907 = vmatmul.mubr.msk.f32.gmra.mxu1 %vm582_vm1, %v16690_v57  ;;  %14945 = vmatmul.mubr.msk.f32.gmra.mxu0 %vm582_vm1, %v16485_v15 }
  0x80   : > { %14909 = vmatprep.mubr.msk.f32.mxu1 %vm582_vm1, %v16696_v59  ;;  %14947 = vmatprep.mubr.msk.f32.mxu0 %vm582_vm1, %v16491_v17 }
  0x83   : > { %14910 = vmatmul.mubr.msk.f32.gmra.mxu1 %vm582_vm1, %v16710_v61  ;;  %14948 = vmatmul.mubr.msk.f32.gmra.mxu0 %vm582_vm1, %v16505_v19 }
  0x84   : > { %14912 = vmatprep.mubr.msk.f32.mxu1 %vm582_vm1, %v16716_v63  ;;  %14950 = vmatprep.mubr.msk.f32.mxu0 %vm582_vm1, %v16511_v21 }
  0x87   : > { %14913 = vmatmul.mubr.msk.f32.gmra.mxu1 %vm582_vm1, %v16730_v1  ;;  %14951 = vmatmul.mubr.msk.f32.gmra.mxu0 %vm582_vm1, %v16525_v23 }
  0x88   : > { %14915 = vmatprep.mubr.msk.f32.mxu1 %vm582_vm1, %v16736_v3  ;;  %14953 = vmatprep.mubr.msk.f32.mxu0 %vm582_vm1, %v16531_v25 }
  0x8b   : > { %14916 = vmatmul.mubr.msk.f32.gmra.mxu1 %vm582_vm1, %v16750_v9  ;;  %14954 = vmatmul.mubr.msk.f32.gmra.mxu0 %vm582_vm1, %v16545_v27 }
  0x8c   : > { %14918 = vmatprep.mubr.msk.f32.mxu1 %vm582_vm1, %v16756_v30  ;;  %14956 = vmatprep.mubr.msk.f32.mxu0 %vm582_vm1, %v16551_v29 }
  0x8f   : > { %14919 = vmatmul.mubr.msk.f32.gmra.mxu1 %vm582_vm1, %v16770_v47  ;;  %14957 = vmatmul.mubr.msk.f32.gmra.mxu0 %vm582_vm1, %v16562_v31 }
  0x90   : > { %14921 = vmatprep.mubr.msk.f32.mxu1 %vm582_vm1, %v16776_v5  ;;  %14959 = vmatprep.mubr.msk.f32.mxu0 %vm582_vm1, %v16566_v33 }
  0x93   : > { %14922 = vmatmul.mubr.msk.f32.gmra.mxu1 %vm582_vm1, %v16790_v32  ;;  %14960 = vmatmul.mubr.msk.f32.gmra.mxu0 %vm582_vm1, %v16584_v36 }
  0x94   : > { %14924 = vmatprep.mubr.msk.f32.mxu1 %vm582_vm1, %v16796_v0  ;;  %14962 = vmatprep.mubr.msk.f32.mxu0 %vm582_vm1, %v16590_v38 }
  0x97   : > { %14925 = vmatmul.mubr.msk.f32.gmra.mxu1 %vm582_vm1, %v16810_v2  ;;  %14963 = vmatmul.mubr.msk.f32.gmra.mxu0 %vm582_vm1, %v16607_v40 }
  0x98   : > { %14927 = vmatprep.mubr.msk.f32.mxu1 %vm582_vm1, %v16816_v28  ;;  %14965 = vmatprep.mubr.msk.f32.mxu0 %vm582_vm1, %v16613_v42 }
  0x9b   : > { %14928 = vmatmul.mubr.msk.f32.gmra.mxu1 %vm582_vm1, %v16830_v62  ;;  %14966 = vmatmul.mubr.msk.f32.gmra.mxu0 %vm582_vm1, %v16627_v44 }
  0x9c   : > { %14930 = vmatprep.mubr.msk.f32.mxu1 %vm582_vm1, %v16836_v26  ;;  %14968 = vmatprep.mubr.msk.f32.mxu0 %vm582_vm1, %v16429_v4  ;;  %v17049_v4 = vld [vmem:[%s16425_s29 + $0x188] sm:$0xff] }
  0x9f   : > { %14931 = vmatmul.mubr.msk.f32.gmra.mxu1 %vm582_vm1, %v16850_v60  ;;  %14969 = vmatmul.mubr.msk.f32.gmra.mxu0 %vm582_vm1, %v16436_v6  ;;  %v22114_v6 = vld [vmem:[#allocation3_spill] sm:$0xff] }
  0xa0   : > { %14933 = vmatprep.mubr.msk.f32.mxu1 %vm582_vm1, %v16856_v24  ;;  %14971 = vmatprep.mubr.msk.f32.mxu0 %vm582_vm1, %v16442_v8  ;;  %v22115_v8 = vld [vmem:[#allocation7_spill] sm:$0xff] }
  0xa3   : > { %14934 = vmatmul.mubr.msk.f32.gmra.mxu1 %vm582_vm1, %v16870_v58  ;;  %14972 = vmatmul.mubr.msk.f32.gmra.mxu0 %vm582_vm1, %v16462_v12  ;;  %v22117_v12 = vld [vmem:[#allocation8_spill] sm:$0xff] }
  0xa4   : > { %14936 = vmatprep.mubr.msk.f32.mxu1 %vm582_vm1, %v17038_v7  ;;  %14974 = vmatprep.mubr.msk.f32.mxu0 %vm582_vm1, %v16470_v14  ;;  %v22118_v14 = vld [vmem:[#allocation5_spill] sm:$0xff] }
  0xa7   : > { %14937 = vmatmul.mubr.msk.f32.gmra.mxu1 %vm582_vm1, %v17049_v4  ;;  %14975 = vmatmul.mubr.msk.f32.gmra.mxu0 %vm582_vm1, %v16488_v16  ;;  %v22119_v16 = vld [vmem:[#allocation9_spill] sm:$0xff] }
  0xa8   : > { %14977 = vmatprep.mubr.msk.f32.mxu0 %vm582_vm1, %v16494_v18  ;;  %14991 = vmatprep.mubr.msk.f32.mxu1 %vm582_vm1, %v16651_v51  ;;  %v17078_v18 = vld [vmem:[%s16425_s29 + $0x181] sm:$0xff] }
  0xa9   : > { %22120 = vst [vmem:[#allocation3_spill] sm:$0xff] %v17078_v18  ;;  %v22122_v51 = vld [vmem:[#allocation10_spill] sm:$0xff] }
  0xab   : > { %14978 = vmatmul.mubr.msk.f32.gmra.mxu0 %vm582_vm1, %v16508_v20  ;;  %14992 = vmatmul.mubr.msk.f32.vlgmr.msra.gmra.mxu1 %vm582_vm1, %v16669_v54  ;;  %v22121_v20 = vld [vmem:[#allocation6_spill] sm:$0xff] }
  0xac   : > { %14980 = vmatprep.mubr.msk.f32.mxu0 %vm582_vm1, %v22114_v6  ;;  %14994 = vmatprep.mubr.msk.f32.mxu1 %vm582_vm1, %v22115_v8  ;;  %v17089_v54 = vld [vmem:[%s16425_s29 + $0x189] sm:$0xff]  ;;  %v22126_v6 = vld [vmem:[#allocation13_spill] sm:$0xff] }
  0xad   : > { %15090 = vmatpush3.msk.msra.mxu1 %vm679_vm0, %v16899_v10  ;;  %22124 = vst [vmem:[#allocation7_spill] sm:$0xff] %v17089_v54  ;;  %v22125_v10 = vld [vmem:[#allocation12_spill] sm:$0xff] }
  0xaf   : > { %14981 = vmatmul.mubr.msk.f32.gmra.mxu0 %vm582_vm1, %v22116_v11  ;;  %14995 = vmatmul.mubr.msk.f32.gmra.mxu1 %vm582_vm1, %v22117_v12  ;;  %v22127_v11 = vld [vmem:[#allocation14_spill] sm:$0xff] }
  0xb0   : > { %14983 = vmatprep.mubr.msk.f32.mxu0 %vm582_vm1, %v22118_v14  ;;  %14997 = vmatprep.mubr.msk.f32.mxu1 %vm582_vm1, %v22119_v16  ;;  %v22128_v14 = vld [vmem:[#allocation15_spill] sm:$0xff] }
  0xb3   : > { %14984 = vmatmul.mubr.msk.f32.gmra.mxu0 %vm582_vm1, %v22121_v20  ;;  %14998 = vmatmul.mubr.msk.f32.gmra.mxu1 %vm582_vm1, %v22122_v51  ;;  %v22129_v20 = vld [vmem:[#allocation16_spill] sm:$0xff] }
  0xb4   : > { %14986 = vmatprep.mubr.msk.f32.mxu0 %vm582_vm1, %v17078_v18  ;;  %15000 = vmatprep.mubr.msk.f32.mxu1 %vm582_vm1, %v22123_v52 }
  0xb7   : > { %14987 = vmatmul.mubr.msk.f32.gmra.mxu0 %vm582_vm1, %v17089_v54  ;;  %15001 = vmatmul.mubr.msk.f32.gmra.mxu1 %vm582_vm1, %v22125_v10  ;;  %v22139_v54 = vld [vmem:[#allocation26_spill] sm:$0xff] }
  0xb8   : > { %15003 = vmatprep.mubr.msk.f32.mxu1 %vm582_vm1, %v22126_v6  ;;  %15041 = vmatprep.mubr.msk.f32.mxu0 %vm582_vm1, %v16593_v39  ;;  %v22130_v39 = vld [vmem:[#allocation17_spill] sm:$0xff] }
  0xbb   : > { %15004 = vmatmul.mubr.msk.f32.gmra.mxu1 %vm582_vm1, %v22127_v11  ;;  %15042 = vmatmul.mubr.msk.f32.vlgmr.msra.gmra.mxu0 %vm582_vm1, %v16610_v41  ;;  %v22131_v41 = vld [vmem:[#allocation18_spill] sm:$0xff] }
  0xbc   : > { %15140 = vmatpush3.msk.msra.mxu0 %vm679_vm0, %v16951_v49  ;;  %15006 = vmatprep.mubr.msk.f32.mxu1 %vm582_vm1, %v22128_v14  ;;  %v22132_v49 = vld [vmem:[#allocation19_spill] sm:$0xff] }
  0xbd   : > { %15044 = vmatprep.mubr.msk.f32.mxu0 %vm582_vm1, %v16616_v43  ;;  %v22133_v43 = vld [vmem:[#allocation20_spill] sm:$0xff] }
  0xbf   : > { %15007 = vmatmul.mubr.msk.f32.gmra.mxu1 %vm582_vm1, %v22129_v20  ;;  %15045 = vmatmul.mubr.msk.f32.gmra.mxu0 %vm582_vm1, %v16630_v45  ;;  %v22134_v45 = vld [vmem:[#allocation21_spill] sm:$0xff] }
  0xc0   : > { %15009 = vmatprep.mubr.msk.f32.mxu1 %vm582_vm1, %v22130_v39  ;;  %15047 = vmatprep.mubr.msk.f32.mxu0 %vm582_vm1, %v16633_v46  ;;  %v22135_v46 = vld [vmem:[#allocation22_spill] sm:$0xff] }
  0xc3   : > { %15010 = vmatmul.mubr.msk.f32.gmra.mxu1 %vm582_vm1, %v22131_v41  ;;  %15048 = vmatmul.mubr.msk.f32.gmra.mxu0 %vm582_vm1, %v16644_v48  ;;  %v22136_v48 = vld [vmem:[#allocation23_spill] sm:$0xff] }
  0xc4   : > { %15012 = vmatprep.mubr.msk.f32.mxu1 %vm582_vm1, %v22132_v49  ;;  %15050 = vmatprep.mubr.msk.f32.mxu0 %vm582_vm1, %v16648_v50  ;;  %v22137_v50 = vld [vmem:[#allocation24_spill] sm:$0xff] }
  0xc7   : > { %15013 = vmatmul.mubr.msk.f32.gmra.mxu1 %vm582_vm1, %v22133_v43  ;;  %15051 = vmatmul.mubr.msk.f32.gmra.mxu0 %vm582_vm1, %v16666_v53  ;;  %v22138_v53 = vld [vmem:[#allocation25_spill] sm:$0xff] }
  0xc8   : > { %15015 = vmatprep.mubr.msk.f32.mxu1 %vm582_vm1, %v22134_v45  ;;  %15053 = vmatprep.mubr.msk.f32.mxu0 %vm582_vm1, %v16674_v55 }
  0xcb   : > { %15016 = vmatmul.mubr.msk.f32.gmra.mxu1 %vm582_vm1, %v22135_v46  ;;  %15054 = vmatmul.mubr.msk.f32.gmra.mxu0 %vm582_vm1, %v16690_v57 }
  0xcc   : > { %15018 = vmatprep.mubr.msk.f32.mxu1 %vm582_vm1, %v22136_v48  ;;  %15056 = vmatprep.mubr.msk.f32.mxu0 %vm582_vm1, %v16696_v59  ;;  %v22140_v59 = vld [vmem:[#allocation27_spill] sm:$0xff] }
  0xcf   : > { %15019 = vmatmul.mubr.msk.f32.gmra.mxu1 %vm582_vm1, %v22137_v50  ;;  %15057 = vmatmul.mubr.msk.f32.gmra.mxu0 %vm582_vm1, %v16710_v61 }
  0xd0   : > { %15021 = vmatprep.mubr.msk.f32.mxu1 %vm582_vm1, %v22138_v53  ;;  %15059 = vmatprep.mubr.msk.f32.mxu0 %vm582_vm1, %v16716_v63 }
  0xd3   : > { %v14743_v55 = vpop.f32.mrf.mxu0  ;;  %v17149_v57 = vpop.f32.mrf.mxu1  ;;  %15022 = vmatmul.mubr.msk.f32.gmra.mxu1 %vm582_vm1, %v22139_v54  ;;  %15060 = vmatmul.mubr.msk.f32.gmra.mxu0 %vm582_vm1, %v16730_v1  ;;  %v22142_v54 = vld [vmem:[#allocation28_spill] sm:$0xff] }
  0xd4   : > { %15024 = vmatprep.mubr.msk.f32.mxu1 %vm582_vm1, %v22140_v59  ;;  %15062 = vmatprep.mubr.msk.f32.mxu0 %vm582_vm1, %v16736_v3 }
  0xd5   : > { %v749_v61 = vpop.f32.mrf.mxu0  ;;  %v17159_v18 = vpop.f32.mrf.mxu1 }
  0xd6   : > { %22141 = vst [vmem:[#allocation4_spill] sm:$0xff] %v17159_v18 }
  0xd7   : > { %v14746_v53 = vpop.f32.mrf.mxu0  ;;  %v17161_v63 = vpop.f32.mrf.mxu1  ;;  %15025 = vmatmul.mubr.msk.f32.gmra.mxu1 %vm582_vm1, %v16887_v56  ;;  %15063 = vmatmul.mubr.msk.f32.gmra.mxu0 %vm582_vm1, %v16750_v9 }
  0xd8   : > { %15027 = vmatprep.mubr.msk.f32.mxu1 %vm582_vm1, %v22142_v54  ;;  %15065 = vmatprep.mubr.msk.f32.mxu0 %vm582_vm1, %v16756_v30 }
  0xd9   : > { %v759_v1 = vpop.f32.mrf.mxu0  ;;  %v17171_v3 = vpop.f32.mrf.mxu1 }
  0xda   : > { %22143 = vst [vmem:[#allocation8_spill] sm:$0xff] %v17171_v3 }
  0xdb   : > { %v14749_v59 = vpop.f32.mrf.mxu0  ;;  %v17173_v18 = vpop.f32.mrf.mxu1  ;;  %15028 = vmatmul.mubr.msk.f32.gmra.mxu1 %vm582_vm1, %v16906_v34  ;;  %15066 = vmatmul.mubr.msk.f32.gmra.mxu0 %vm582_vm1, %v16770_v47  ;;  %v22145_v47 = vld [vmem:[#allocation29_spill] sm:$0xff] }
  0xdc   : > { %15030 = vmatprep.mubr.msk.f32.mxu1 %vm582_vm1, %v16909_v22  ;;  %15068 = vmatprep.mubr.msk.f32.mxu0 %vm582_vm1, %v16776_v5  ;;  %v17198_v34 = vld [vmem:[%s16425_s29 + $0x182] sm:$0xff] }
  0xdd   : > { %v769_v56 = vpop.f32.mrf.mxu0  ;;  %v17183_v9 = vpop.f32.mrf.mxu1  ;;  %22147 = vst [vmem:[#allocation6_spill] sm:$0xff] %v17198_v34 }
  0xde   : > { %22144 = vst [vmem:[#allocation5_spill] sm:$0xff] %v17183_v9 }
  0xdf   : > { %v14752_v30 = vpop.f32.mrf.mxu0  ;;  %v17185_v54 = vpop.f32.mrf.mxu1  ;;  %15031 = vmatmul.mubr.msk.f32.gmra.mxu1 %vm582_vm1, %v16924_v37  ;;  %15069 = vmatmul.mubr.msk.f32.gmra.mxu0 %vm582_vm1, %v16790_v32 }
  0xe0   : > { %15033 = vmatprep.mubr.msk.f32.mxu1 %vm582_vm1, %v22145_v47  ;;  %15071 = vmatprep.mubr.msk.f32.mxu0 %vm582_vm1, %v16796_v0  ;;  %v17213_v0 = vld [vmem:[%s16425_s29 + $0x18a] sm:$0xff] }
  0xe1   : > { %v779_v22 = vpop.f32.mrf.mxu0  ;;  %v17195_v5 = vpop.f32.mrf.mxu1  ;;  %22148 = vst [vmem:[#allocation10_spill] sm:$0xff] %v17213_v0 }
  0xe2   : > { %22146 = vst [vmem:[#allocation9_spill] sm:$0xff] %v17195_v5 }
  0xe3   : > { %v17200_v9 = vpop.f32.mrf.mxu0  ;;  %v17202_v3 = vpop.f32.mrf.mxu1  ;;  %15034 = vmatmul.mubr.msk.f32.gmra.mxu1 %vm582_vm1, %v16938_v35  ;;  %15072 = vmatmul.mubr.msk.f32.gmra.mxu0 %vm582_vm1, %v16810_v2 }
  0xe4   : > { %15036 = vmatprep.mubr.msk.f32.mxu1 %vm582_vm1, %v17198_v34  ;;  %15074 = vmatprep.mubr.msk.f32.mxu0 %vm582_vm1, %v16816_v28 }
  0xe5   : > { %v789_v32 = vpop.f32.mrf.mxu0  ;;  %v17215_v37 = vpop.f32.mrf.mxu1 }
  0xe6   : > { %22149 = vst [vmem:[#allocation11_spill] sm:$0xff] %v17215_v37 }
  0xe7   : > { %v17217_v47 = vpop.f32.mrf.mxu0  ;;  %v17219_v5 = vpop.f32.mrf.mxu1  ;;  %15037 = vmatmul.mubr.msk.f32.gmra.mxu1 %vm582_vm1, %v17213_v0  ;;  %15075 = vmatmul.mubr.msk.f32.gmra.mxu0 %vm582_vm1, %v16830_v62 }
  0xe8   : > { %15077 = vmatprep.mubr.msk.f32.mxu0 %vm582_vm1, %v16836_v26  ;;  %15091 = vmatprep.mubr.msk.f32.mxu1 %vm582_vm1, %v16467_v13 }
  0xe9   : > { %v17229_v28 = vpop.f32.mrf.mxu0  ;;  %v17231_v2 = vpop.f32.mrf.mxu1 }
  0xea   : > { %22150 = vst [vmem:[#allocation12_spill] sm:$0xff] %v17231_v2 }
  0xeb   : > { %v17233_v35 = vpop.f32.mrf.mxu0  ;;  %v14793_v37 = vpop.f32.mrf.mxu1  ;;  %15078 = vmatmul.mubr.msk.f32.gmra.mxu0 %vm582_vm1, %v16850_v60  ;;  %15092 = vmatmul.mubr.msk.f32.vlgmr.msra.gmra.mxu1 %vm582_vm1, %v16485_v15  ;;  %v12810_v60 = vld [vmem:[%s16425_s29 + $0x198] sm:$0xff] }
  0xec   : > { %v1079_v62 = vadd.f32 %v14793_v37, %v14743_v55  ;;  %15080 = vmatprep.mubr.msk.f32.mxu0 %vm582_vm1, %v16856_v24  ;;  %15094 = vmatprep.mubr.msk.f32.mxu1 %vm582_vm1, %v16491_v17 }
  0xed   : > { %v17243_v13 = vpop.f32.mrf.mxu0  ;;  %v1073_v26 = vpop.f32.mrf.mxu1 }
  0xee   : > { %v1074_v2 = vadd.f32 %v1073_v26, %v749_v61 }
  0xef   : > { %v17245_v0 = vpop.f32.mrf.mxu0  ;;  %v14796_v34 = vpop.f32.mrf.mxu1  ;;  %15081 = vmatmul.mubr.msk.f32.gmra.mxu0 %vm582_vm1, %v16870_v58  ;;  %15095 = vmatmul.mubr.msk.f32.gmra.mxu1 %vm582_vm1, %v16505_v19 }
  0xf0   : > { %v1089_v15 = vadd.f32 %v14796_v34, %v14746_v53  ;;  %15083 = vmatprep.mubr.msk.f32.mxu0 %vm582_vm1, %v17038_v7  ;;  %15097 = vmatprep.mubr.msk.f32.mxu1 %vm582_vm1, %v16511_v21  ;;  %v12811_v21 = vld [vmem:[%s16425_s29 + $0x1a0] sm:$0xff] }
  0xf1   : > { %v17255_v17 = vpop.f32.mrf.mxu0  ;;  %v1083_v24 = vpop.f32.mrf.mxu1 }
  0xf2   : > { %v1084_v55 = vadd.f32 %v1083_v24, %v759_v1 }
  0xf3   : > { %v17258_v61 = vpop.f32.mrf.mxu0  ;;  %v14799_v37 = vpop.f32.mrf.mxu1  ;;  %15084 = vmatmul.mubr.msk.f32.gmra.mxu0 %vm582_vm1, %v17049_v4  ;;  %15098 = vmatmul.mubr.msk.f32.gmra.mxu1 %vm582_vm1, %v16525_v23 }
  0xf4   : > { %v1099_v19 = vadd.f32 %v14799_v37, %v14749_v59  ;;  %15086 = vmatprep.mubr.msk.f32.mxu0 %vm582_vm1, %v12810_v60  ;;  %15100 = vmatprep.mubr.msk.f32.mxu1 %vm582_vm1, %v16531_v25  ;;  %v4188_v37 = vld [vmem:[%s21925_s5] sm:$0xf] }
  0xf5   : > { %v17268_v58 = vpop.f32.mrf.mxu0  ;;  %v1093_v7 = vpop.f32.mrf.mxu1  ;;  %15189 = vmatprep.subr.msk.mxu1 %vm679_vm0, %v4188_v37 }
  0xf6   : > { %v1094_v53 = vadd.f32 %v1093_v7, %v769_v56  ;;  %15190 = vmatpush3.msk.msra.mxu1 %vm679_vm0, %v4188_v37 }
  0xf7   : > { %v17270_v1 = vpop.f32.mrf.mxu0  ;;  %v14802_v34 = vpop.f32.mrf.mxu1  ;;  %15087 = vmatmul.mubr.msk.f32.gmra.mxu0 %vm582_vm1, %v12811_v21  ;;  %15101 = vmatmul.mubr.msk.f32.gmra.mxu1 %vm582_vm1, %v16545_v27 }
  0xf8   : > { %v1109_v23 = vadd.f32 %v14802_v34, %v14752_v30  ;;  %15103 = vmatprep.mubr.msk.f32.mxu1 %vm582_vm1, %v16551_v29  ;;  %15141 = vmatprep.mubr.msk.f32.mxu0 %vm582_vm1, %v22115_v8 }
  0xf9   : > { %v17279_v25 = vpop.f32.mrf.mxu0  ;;  %v1103_v4 = vpop.f32.mrf.mxu1 }
  0xfa   : > { %v1104_v59 = vadd.f32 %v1103_v4, %v779_v22 }
  0xfb   : > { %v14805_v56 = vpop.f32.mrf.mxu1  ;;  %v14843_v26 = vpop.f32.mrf.mxu0  ;;  %15104 = vmatmul.mubr.msk.f32.gmra.mxu1 %vm582_vm1, %v16562_v31  ;;  %15142 = vmatmul.mubr.msk.f32.vlgmr.msra.gmra.mxu0 %vm582_vm1, %v22117_v12 }
  0xfc   : > { %v1119_v27 = vadd.f32 %v14805_v56, %v17200_v9  ;;  %v17286_v30 = vadd.f32 %v14843_v26, %v1079_v62  ;;  %15106 = vmatprep.mubr.msk.f32.mxu1 %vm582_vm1, %v16566_v33  ;;  %15144 = vmatprep.mubr.msk.f32.mxu0 %vm582_vm1, %v22119_v16 }
  0xfd   : > { %v1113_v29 = vpop.f32.mrf.mxu1  ;;  %v1431_v8 = vpop.f32.mrf.mxu0 }
  0xfe   : > { %v1114_v22 = vadd.f32 %v1113_v29, %v789_v32  ;;  %v17292_v24 = vadd.f32 %v1431_v8, %v1074_v2 }
  0xff   : > { %v14808_v60 = vpop.f32.mrf.mxu1  ;;  %v14846_v31 = vpop.f32.mrf.mxu0  ;;  %15107 = vmatmul.mubr.msk.f32.gmra.mxu1 %vm582_vm1, %v16584_v36  ;;  %15145 = vmatmul.mubr.msk.f32.gmra.mxu0 %vm582_vm1, %v22122_v51 }
 0x100   : > { %v1129_v12 = vadd.f32 %v14808_v60, %v17217_v47  ;;  %v17299_v9 = vadd.f32 %v14846_v31, %v1089_v15  ;;  %15109 = vmatprep.mubr.msk.f32.mxu1 %vm582_vm1, %v16590_v38  ;;  %15147 = vmatprep.mubr.msk.f32.mxu0 %vm582_vm1, %v22123_v52 }
 0x101   : > { %v1123_v33 = vpop.f32.mrf.mxu1  ;;  %v1441_v16 = vpop.f32.mrf.mxu0 }
 0x102   : > { %v1124_v32 = vadd.f32 %v1123_v33, %v17229_v28  ;;  %v17306_v2 = vadd.f32 %v1441_v16, %v1084_v55  ;;  %v12862_v28 = vld [vmem:[%s16425_s29 + $0xf1] sm:$0xff] }
 0x103   : > { %v14811_v36 = vpop.f32.mrf.mxu1  ;;  %v14849_v62 = vpop.f32.mrf.mxu0  ;;  %15110 = vmatmul.mubr.msk.f32.gmra.mxu1 %vm582_vm1, %v16607_v40  ;;  %15148 = vmatmul.mubr.msk.f32.gmra.mxu0 %vm582_vm1, %v22125_v10  ;;  %v4187_v10 = vld [vmem:[%s21924_s4] sm:$0xf] }
 0x104   : > { %v1139_v38 = vadd.f32 %v14811_v36, %v17233_v35  ;;  %v17313_v51 = vadd.f32 %v14849_v62, %v1099_v19  ;;  %15112 = vmatprep.mubr.msk.f32.mxu1 %vm582_vm1, %v16613_v42  ;;  %15150 = vmatprep.mubr.msk.f32.mxu0 %vm582_vm1, %v22126_v6 }
 0x105   : > { %v1133_v52 = vpop.f32.mrf.mxu1  ;;  %v1451_v47 = vpop.f32.mrf.mxu0  ;;  %15239 = vmatprep.subr.msk.mxu0 %vm679_vm0, %v4187_v10 }
 0x106   : > { %v1134_v40 = vadd.f32 %v1133_v52, %v17243_v13  ;;  %v17321_v15 = vadd.f32 %v1451_v47, %v1094_v53  ;;  %v12863_v13 = vld [vmem:[%s16425_s29 + $0xf9] sm:$0xff]  ;;  %15240 = vmatpush3.msk.msra.mxu0 %vm679_vm0, %v4187_v10 }
 0x107   : > { %v14814_v35 = vpop.f32.mrf.mxu1  ;;  %v14852_v55 = vpop.f32.mrf.mxu0  ;;  %15113 = vmatmul.mubr.msk.f32.gmra.mxu1 %vm582_vm1, %v16627_v44  ;;  %15151 = vmatmul.mubr.msk.f32.gmra.mxu0 %vm582_vm1, %v22127_v11  ;;  %v12864_v44 = vld [vmem:[%s16425_s29 + $0x109] sm:$0xff] }
 0x108   : > { %v1149_v42 = vadd.f32 %v14814_v35, %v17245_v0  ;;  %v17331_v6 = vadd.f32 %v14852_v55, %v1109_v23  ;;  %15115 = vmatprep.mubr.msk.f32.mxu1 %vm582_vm1, %v12862_v28  ;;  %15153 = vmatprep.mubr.msk.f32.mxu0 %vm582_vm1, %v22128_v14  ;;  %v12872_v28 = vld [vmem:[%s16425_s29 + $0x169] sm:$0xff]  ;;  %v12873_v55 = vld [vmem:[%s16425_s29 + $0x171] sm:$0xff] }
 0x109   : > { %v1143_v19 = vpop.f32.mrf.mxu1  ;;  %v1461_v21 = vpop.f32.mrf.mxu0 }
 0x10a   : > { %v1144_v11 = vadd.f32 %v1143_v19, %v17255_v17  ;;  %v17344_v0 = vadd.f32 %v1461_v21, %v1104_v59  ;;  %v12865_v17 = vld [vmem:[%s16425_s29 + $0x111] sm:$0xff]  ;;  %v12866_v59 = vld [vmem:[%s16425_s29 + $0x121] sm:$0xff] }
 0x10b   : > { %v14817_v14 = vpop.f32.mrf.mxu1  ;;  %v14855_v7 = vpop.f32.mrf.mxu0  ;;  %15116 = vmatmul.mubr.msk.f32.gmra.mxu1 %vm582_vm1, %v12863_v13  ;;  %15154 = vmatmul.mubr.msk.f32.gmra.mxu0 %vm582_vm1, %v22129_v20 }
 0x10c   : > { %v1159_v53 = vadd.f32 %v14817_v14, %v17258_v61  ;;  %v17352_v34 = vadd.f32 %v14855_v7, %v1119_v27  ;;  %15118 = vmatprep.mubr.msk.f32.mxu1 %vm582_vm1, %v12864_v44  ;;  %15156 = vmatprep.mubr.msk.f32.mxu0 %vm582_vm1, %v22130_v39  ;;  %v12867_v39 = vld [vmem:[%s16425_s29 + $0x129] sm:$0xff] }
 0x10d   : > { %v1153_v23 = vpop.f32.mrf.mxu1  ;;  %v1471_v4 = vpop.f32.mrf.mxu0  ;;  %v22153_v14 = vld [vmem:[#allocation3_spill] sm:$0xff] }
 0x10e   : > { %v1154_v56 = vadd.f32 %v1153_v23, %v17268_v58  ;;  %v17360_v26 = vadd.f32 %v1471_v4, %v1114_v22  ;;  %v12868_v22 = vld [vmem:[%s16425_s29 + $0x139] sm:$0xff]  ;;  %v22154_v7 = vld [vmem:[#allocation27_spill] sm:$0xff] }
 0x10f   : > { %v14820_v20 = vpop.f32.mrf.mxu1  ;;  %v14858_v29 = vpop.f32.mrf.mxu0  ;;  %15119 = vmatmul.mubr.msk.f32.gmra.mxu1 %vm582_vm1, %v12865_v17  ;;  %15157 = vmatmul.mubr.msk.f32.gmra.mxu0 %vm582_vm1, %v22131_v41  ;;  %v12876_v4 = vld [vmem:[%s16425_s29 + $0x199] sm:$0xff] }
 0x110   : > { %v1169_v61 = vadd.f32 %v14820_v20, %v17270_v1  ;;  %v17366_v27 = vadd.f32 %v14858_v29, %v1129_v12  ;;  %15121 = vmatprep.mubr.msk.f32.mxu1 %vm582_vm1, %v12866_v59  ;;  %15159 = vmatprep.mubr.msk.f32.mxu0 %vm582_vm1, %v22132_v49  ;;  %v12869_v49 = vld [vmem:[%s16425_s29 + $0x141] sm:$0xff]  ;;  %v22156_v20 = vld [vmem:[#allocation7_spill] sm:$0xff]  ;;  %v22157_v29 = vld [vmem:[#allocation4_spill] sm:$0xff] }
 0x111   : > { %v1163_v58 = vpop.f32.mrf.mxu1  ;;  %v1481_v8 = vpop.f32.mrf.mxu0  ;;  %v12934_v59 = vld [vmem:[%s16425_s29 + $0x13a] sm:$0xff] }
 0x112   : > { %v17373_v60 = vadd.f32 %v1481_v8, %v1124_v32  ;;  %v12870_v32 = vld [vmem:[%s16425_s29 + $0x151] sm:$0xff]  ;;  %v12877_v8 = vld [vmem:[%s16425_s29 + $0x1a1] sm:$0xff] }
 0x113   : > { %v14823_v31 = vpop.f32.mrf.mxu1  ;;  %v14861_v33 = vpop.f32.mrf.mxu0  ;;  %15122 = vmatmul.mubr.msk.f32.gmra.mxu1 %vm582_vm1, %v12867_v39  ;;  %15160 = vmatmul.mubr.msk.f32.gmra.mxu0 %vm582_vm1, %v22133_v43 }
 0x114   : > { %v1179_v41 = vadd.f32 %v14823_v31, %v17149_v57  ;;  %v17379_v1 = vadd.f32 %v14861_v33, %v1139_v38  ;;  %15124 = vmatprep.mubr.msk.f32.mxu1 %vm582_vm1, %v12868_v22  ;;  %15162 = vmatprep.mubr.msk.f32.mxu0 %vm582_vm1, %v22134_v45  ;;  %v12871_v45 = vld [vmem:[%s16425_s29 + $0x159] sm:$0xff]  ;;  %v12935_v22 = vld [vmem:[%s16425_s29 + $0x142] sm:$0xff] }
 0x115   : > { %v1173_v12 = vpop.f32.mrf.mxu1  ;;  %v1491_v16 = vpop.f32.mrf.mxu0 }
 0x116   : > { %v17386_v36 = vadd.f32 %v1491_v16, %v1134_v40 }
 0x117   : > { %v14826_v62 = vpop.f32.mrf.mxu1  ;;  %v14864_v52 = vpop.f32.mrf.mxu0  ;;  %15125 = vmatmul.mubr.msk.f32.gmra.mxu1 %vm582_vm1, %v12869_v49  ;;  %15163 = vmatmul.mubr.msk.f32.gmra.mxu0 %vm582_vm1, %v22135_v46  ;;  %v12936_v49 = vld [vmem:[%s16425_s29 + $0x152] sm:$0xff] }
 0x118   : > { %v1189_v43 = vadd.f32 %v14826_v62, %v17161_v63  ;;  %v17392_v57 = vadd.f32 %v14864_v52, %v1149_v42  ;;  %15127 = vmatprep.mubr.msk.f32.mxu1 %vm582_vm1, %v12870_v32  ;;  %15165 = vmatprep.mubr.msk.f32.mxu0 %vm582_vm1, %v22136_v48  ;;  %v22151_v48 = vld [vmem:[#allocation25_spill] sm:$0xff] }
 0x119   : > { %v1183_v38 = vpop.f32.mrf.mxu1  ;;  %v1501_v47 = vpop.f32.mrf.mxu0 }
 0x11a   : > { %v17399_v40 = vadd.f32 %v1501_v47, %v1144_v11 }
 0x11b   : > { %v14829_v10 = vpop.f32.mrf.mxu1  ;;  %v14867_v35 = vpop.f32.mrf.mxu0  ;;  %15128 = vmatmul.mubr.msk.f32.gmra.mxu1 %vm582_vm1, %v12871_v45  ;;  %15166 = vmatmul.mubr.msk.f32.gmra.mxu0 %vm582_vm1, %v22137_v50  ;;  %v1164_v50 = vadd.f32 %v1163_v58, %v17279_v25  ;;  %v12937_v45 = vld [vmem:[%s16425_s29 + $0x15a] sm:$0xff] }
 0x11c   : > { %v1199_v46 = vadd.f32 %v14829_v10, %v17173_v18  ;;  %v17405_v63 = vadd.f32 %v14867_v35, %v1159_v53  ;;  %15130 = vmatprep.mubr.msk.f32.mxu1 %vm582_vm1, %v12872_v28  ;;  %15168 = vmatprep.mubr.msk.f32.mxu0 %vm582_vm1, %v22151_v48  ;;  %v22152_v18 = vld [vmem:[#allocation26_spill] sm:$0xff] }
 0x11d   : > { %v1193_v42 = vpop.f32.mrf.mxu1  ;;  %v1511_v13 = vpop.f32.mrf.mxu0  ;;  %v12933_v53 = vld [vmem:[%s16425_s29 + $0x12a] sm:$0xff] }
 0x11e   : > { %v17411_v37 = vadd.f32 %v1511_v13, %v1154_v56  ;;  %v12938_v10 = vld [vmem:[%s16425_s29 + $0x16a] sm:$0xff]  ;;  %v22161_v13 = vld [vmem:[#allocation5_spill] sm:$0xff] }
 0x11f   : > { %v14832_v19 = vpop.f32.mrf.mxu1  ;;  %v14870_v21 = vpop.f32.mrf.mxu0  ;;  %15131 = vmatmul.mubr.msk.f32.gmra.mxu1 %vm582_vm1, %v12873_v55  ;;  %15169 = vmatmul.mubr.msk.f32.gmra.mxu0 %vm582_vm1, %v22152_v18 }
 0x120   : > { %v1209_v44 = vadd.f32 %v14832_v19, %v17185_v54  ;;  %v17418_v11 = vadd.f32 %v14870_v21, %v1169_v61  ;;  %15133 = vmatprep.mubr.msk.f32.mxu1 %vm582_vm1, %v22153_v14  ;;  %15171 = vmatprep.mubr.msk.f32.mxu0 %vm582_vm1, %v22154_v7  ;;  %v1174_v61 = vadd.f32 %v1173_v12, %v22157_v29 }
 0x121   : > { %v1203_v17 = vpop.f32.mrf.mxu1  ;;  %v1521_v23 = vpop.f32.mrf.mxu0  ;;  %v1194_v19 = vadd.f32 %v1193_v42, %v22161_v13 }
 0x122   : > { %v17427_v56 = vadd.f32 %v1521_v23, %v1164_v50 }
 0x123   : > { %v14835_v25 = vpop.f32.mrf.mxu1  ;;  %v14873_v54 = vpop.f32.mrf.mxu0  ;;  %15134 = vmatmul.mubr.msk.f32.gmra.mxu1 %vm582_vm1, %v22156_v20  ;;  %15172 = vmatmul.mubr.msk.f32.gmra.mxu0 %vm582_vm1, %v12933_v53  ;;  %v22163_v53 = vld [vmem:[#allocation9_spill] sm:$0xff]  ;;  %v22167_v20 = vld [vmem:[#allocation11_spill] sm:$0xff] }
 0x124   : > { %22155 = vst [vmem:[#allocation13_spill] sm:$0xff] %v17427_v56  ;;  %v1219_v39 = vadd.f32 %v14835_v25, %v17202_v3  ;;  %v17434_v58 = vadd.f32 %v14873_v54, %v1179_v41  ;;  %15136 = vmatprep.mubr.msk.f32.mxu1 %vm582_vm1, %v12876_v4  ;;  %15174 = vmatprep.mubr.msk.f32.mxu0 %vm582_vm1, %v12934_v59  ;;  %v22159_v3 = vld [vmem:[#allocation8_spill] sm:$0xff] }
 0x125   : > { %v1213_v31 = vpop.f32.mrf.mxu1  ;;  %v1531_v33 = vpop.f32.mrf.mxu0  ;;  %v1184_v41 = vadd.f32 %v1183_v38, %v22159_v3  ;;  %v1204_v23 = vadd.f32 %v1203_v17, %v22163_v53  ;;  %v12942_v25 = vld [vmem:[%s16425_s29 + $0x19a] sm:$0xff]  ;;  %v4127_v53 = vld [vmem:[%s17482_s24 + $0x30] sm:$0xff] }
 0x126   : > { %v17441_v16 = vadd.f32 %v1531_v33, %v1174_v61  ;;  %v1214_v29 = vadd.f32 %v1213_v31, %v22167_v20  ;;  %v22169_v31 = vld [vmem:[#allocation12_spill] sm:$0xff] }
 0x127   : > { %v14838_v32 = vpop.f32.mrf.mxu1  ;;  %v14876_v62 = vpop.f32.mrf.mxu0  ;;  %15137 = vmatmul.mubr.msk.f32.gmra.mxu1 %vm582_vm1, %v12877_v8  ;;  %15175 = vmatmul.mubr.msk.f32.gmra.mxu0 %vm582_vm1, %v12935_v22  ;;  %v12943_v22 = vld [vmem:[%s16425_s29 + $0x1a2] sm:$0xff] }
 0x128   : > { %22158 = vst [vmem:[#allocation14_spill] sm:$0xff] %v17441_v16  ;;  %v1229_v12 = vadd.f32 %v14838_v32, %v17219_v5  ;;  %v17447_v52 = vadd.f32 %v14876_v62, %v1189_v43  ;;  %15177 = vmatprep.mubr.msk.f32.mxu0 %vm582_vm1, %v12936_v49  ;;  %v12939_v43 = vld [vmem:[%s16425_s29 + $0x172] sm:$0xff]  ;;  %v4123_v32 = vld [vmem:[%s17482_s24] sm:$0xff] }
 0x129   : > { %v1223_v47 = vpop.f32.mrf.mxu1  ;;  %v1541_v28 = vpop.f32.mrf.mxu0 }
 0x12a   : > { %v17452_v35 = vadd.f32 %v1541_v28, %v1184_v41  ;;  %v4124_v28 = vld [vmem:[%s17482_s24 + $0x8] sm:$0xff] }
 0x12b   : > { %v14879_v48 = vpop.f32.mrf.mxu0  ;;  %v14893_v55 = vpop.f32.mrf.mxu1  ;;  %15178 = vmatmul.mubr.msk.f32.gmra.mxu0 %vm582_vm1, %v12937_v45 }
 0x12c   : > { %22160 = vst [vmem:[#allocation15_spill] sm:$0xff] %v17452_v35  ;;  %v17456_v38 = vadd.f32 %v14879_v48, %v1199_v46  ;;  %v1982_v5 = vadd.f32 %v14893_v55, %v17286_v30  ;;  %15180 = vmatprep.mubr.msk.f32.mxu0 %vm582_vm1, %v12938_v10  ;;  %v22164_v30 = vld [vmem:[#allocation6_spill] sm:$0xff]  ;;  %v4125_v55 = vld [vmem:[%s17482_s24 + $0x18] sm:$0xff] }
 0x12d   : > { %v1551_v21 = vpop.f32.mrf.mxu0  ;;  %v1822_v18 = vpop.f32.mrf.mxu1 }
 0x12e   : > { %v17461_v50 = vadd.f32 %v1551_v21, %v1194_v19  ;;  %v4126_v21 = vld [vmem:[%s17482_s24 + $0x20] sm:$0xff] }
 0x12f   : > { %v14882_v14 = vpop.f32.mrf.mxu0  ;;  %v14896_v7 = vpop.f32.mrf.mxu1  ;;  %15181 = vmatmul.mubr.msk.f32.gmra.mxu0 %vm582_vm1, %v12939_v43 }
 0x130   : > { %22162 = vst [vmem:[#allocation16_spill] sm:$0xff] %v17461_v50  ;;  %v17465_v46 = vadd.f32 %v14882_v14, %v1209_v44  ;;  %v17468_v42 = vadd.f32 %v14896_v7, %v17299_v9  ;;  %15183 = vmatprep.mubr.msk.f32.mxu0 %vm582_vm1, %v22164_v30  ;;  %v22166_v9 = vld [vmem:[#allocation10_spill] sm:$0xff]  ;;  %v16311_v30 = vmov 0.0  }
 0x131   : > { %v1561_v4 = vpop.f32.mrf.mxu0  ;;  %v17472_v59 = vpop.f32.mrf.mxu1  ;;  %4040 = vst.msk [vmem:[#allocation2 + $0x20] sm:$0xff] %vm582_vm1, %v16311_v30  ;;  %4035 = vst.msk [vmem:[#allocation2] sm:$0xff] %vm582_vm1, %v16311_v30 }
 0x132   : > { %v17475_v54 = vadd.f32 %v1561_v4, %v1204_v23  ;;  %4036 = vst.msk [vmem:[#allocation2 + $0x8] sm:$0xff] %vm582_vm1, %v16311_v30  ;;  %4039 = vst.msk [vmem:[#allocation2 + $0x18] sm:$0xff] %vm582_vm1, %v16311_v30 }
 0x133   : > { %v14885_v44 = vpop.f32.mrf.mxu0  ;;  %v14899_v17 = vpop.f32.mrf.mxu1  ;;  %15184 = vmatmul.mubr.msk.f32.gmra.mxu0 %vm582_vm1, %v22166_v9  ;;  %4042 = vst.msk [vmem:[#allocation2 + $0x30] sm:$0xff] %vm582_vm1, %v16311_v30  ;;  %4043 = vst.msk [vmem:[#allocation2 + $0x38] sm:$0xff] %vm582_vm1, %v16311_v30  ;;  %v4129_v9 = vld [vmem:[%s17482_s24 + $0x48] sm:$0xff] }
 0x134   : > { %22165 = vst [vmem:[#allocation17_spill] sm:$0xff] %v17475_v54  ;;  %v17487_v61 = vadd.f32 %v14885_v44, %v1219_v39  ;;  %v17490_v8 = vadd.f32 %v14899_v17, %v17313_v51  ;;  %15186 = vmatprep.mubr.msk.f32.mxu0 %vm582_vm1, %v12942_v25  ;;  %v1224_v39 = vadd.f32 %v1223_v47, %v22169_v31  ;;  %4045 = vst.msk [vmem:[#allocation2 + $0x48] sm:$0xff] %vm582_vm1, %v16311_v30  ;;  %v4128_v25 = vld [vmem:[%s17482_s24 + $0x38] sm:$0xff] }
 0x135   : > { %v1571_v33 = vpop.f32.mrf.mxu0  ;;  %v17494_v49 = vpop.f32.mrf.mxu1  ;;  %4046 = vst.msk [vmem:[#allocation2 + $0x50] sm:$0xff] %vm582_vm1, %v16311_v30  ;;  %4048 = vst.msk [vmem:[#allocation2 + $0x60] sm:$0xff] %vm582_vm1, %v16311_v30 }
 0x136   : > { %v17497_v62 = vadd.f32 %v1571_v33, %v1214_v29  ;;  %4049 = vst.msk [vmem:[#allocation2 + $0x68] sm:$0xff] %vm582_vm1, %v16311_v30  ;;  %4051 = vst.msk [vmem:[#allocation2 + $0x78] sm:$0xff] %vm582_vm1, %v16311_v30 }
 0x137   : > { %v14888_v3 = vpop.f32.mrf.mxu0  ;;  %v14902_v41 = vpop.f32.mrf.mxu1  ;;  %15187 = vmatmul.mubr.msk.f32.gmra.mxu0 %vm582_vm1, %v12943_v22  ;;  %4052 = vst.msk [vmem:[#allocation2 + $0x80] sm:$0xff] %vm582_vm1, %v16311_v30  ;;  %4054 = vst.msk [vmem:[#allocation2 + $0x90] sm:$0xff] %vm582_vm1, %v16311_v30  ;;  %v4130_v22 = vld [vmem:[%s17482_s24 + $0x50] sm:$0xff] }
 0x138   : > { %22168 = vst [vmem:[#allocation18_spill] sm:$0xff] %v17497_v62  ;;  %v17501_v45 = vadd.f32 %v14888_v3, %v1229_v12  ;;  %v17504_v51 = vadd.f32 %v14902_v41, %v17331_v6  ;;  %15241 = vmatprep.mubr.msk.f32.mxu0 %vm582_vm1, %v4123_v32  ;;  %v1981_v12 = vadd.f32 %v1822_v18, %v17292_v24  ;;  %4055 = vst.msk [vmem:[#allocation2 + $0x98] sm:$0xff] %vm582_vm1, %v16311_v30  ;;  %v4131_v3 = vld [vmem:[%s17482_s24 + $0x60] sm:$0xff] }
 0x139   : > { %v1581_v10 = vpop.f32.mrf.mxu0  ;;  %v17508_v48 = vpop.f32.mrf.mxu1  ;;  %4057 = vst.msk [vmem:[#allocation2 + $0xa8] sm:$0xff] %vm582_vm1, %v16311_v30  ;;  %4058 = vst.msk [vmem:[#allocation2 + $0xb0] sm:$0xff] %vm582_vm1, %v16311_v30  ;;  %v4155_v41 = vld [vmem:[#allocation2] sm:$0xff] }
 0x13a   : > { %v17511_v13 = vadd.f32 %v1581_v10, %v1224_v39  ;;  %4060 = vst.msk [vmem:[#allocation2 + $0xc0] sm:$0xff] %vm582_vm1, %v16311_v30  ;;  %4061 = vst.msk [vmem:[#allocation2 + $0xc8] sm:$0xff] %vm582_vm1, %v16311_v30  ;;  %15191 = vmatprep.mubr.msk.f32.mxu1 %vm582_vm1, %v4155_v41  ;;  %v4156_v39 = vld [vmem:[#allocation2 + $0x8] sm:$0xff] }
 0x13b   : > { %v14905_v19 = vpop.f32.mrf.mxu1  ;;  %v14943_v43 = vpop.f32.mrf.mxu0  ;;  %15242 = vmatmul.mubr.msk.f32.vlgmr.msra.gmra.mxu0 %vm582_vm1, %v4124_v28  ;;  %4063 = vst.msk [vmem:[#allocation2 + $0xd8] sm:$0xff] %vm582_vm1, %v16311_v30  ;;  %4064 = vst.msk [vmem:[#allocation2 + $0xe0] sm:$0xff] %vm582_vm1, %v16311_v30  ;;  %15192 = vmatmul.mubr.msk.f32.vlgmr.msra.gmra.mxu1 %vm582_vm1, %v4156_v39 }
 0x13c   : > { %22170 = vst [vmem:[#allocation19_spill] sm:$0xff] %v17511_v13  ;;  %v17516_v47 = vadd.f32 %v14905_v19, %v17352_v34  ;;  %v17518_v6 = vadd.f32 %v14943_v43, %v1982_v5  ;;  %15244 = vmatprep.mubr.msk.f32.mxu0 %vm582_vm1, %v4125_v55  ;;  %4066 = vst.msk [vmem:[#allocation2 + $0xf0] sm:$0xff] %vm582_vm1, %v16311_v30  ;;  %v1983_v5 = vadd.f32 %v17472_v59, %v17306_v2  ;;  %v4132_v55 = vld [vmem:[%s17482_s24 + $0x68] sm:$0xff] }
 0x13d   : > { %v17522_v14 = vpop.f32.mrf.mxu1  ;;  %v2212_v7 = vpop.f32.mrf.mxu0  ;;  %4067 = vst.msk [vmem:[#allocation2 + $0xf8] sm:$0xff] %vm582_vm1, %v16311_v30  ;;  %4069 = vst.msk [vmem:[#allocation2 + $0x108] sm:$0xff] %vm582_vm1, %v16311_v30  ;;  %v1985_v59 = vadd.f32 %v17494_v49, %v17321_v15  ;;  %v13079_v15 = vld [vmem:[%s21925_s5 + $0x4] sm:$0xf]  ;;  %v1987_v49 = vadd.f32 %v17508_v48, %v17344_v0  ;;  %v17859_v13 = vld [vmem:[%s21924_s4 + $0x8] sm:$0xf] }
 0x13e   : > { %v17525_v23 = vadd.f32 %v2212_v7, %v1981_v12  ;;  %4070 = vst.msk [vmem:[#allocation2 + $0x110] sm:$0xff] %vm582_vm1, %v16311_v30  ;;  %4072 = vst.msk [vmem:[#allocation2 + $0x120] sm:$0xff] %vm582_vm1, %v16311_v30  ;;  %15339 = vmatprep.subr.msk.mxu0 %vm679_vm0, %v13079_v15  ;;  %v4133_v12 = vld [vmem:[%s17482_s24 + $0x78] sm:$0xff] }
 0x13f   : > { %4073 = vst.msk [vmem:[#allocation2 + $0x128] sm:$0xff] %vm582_vm1, %v16311_v30  ;;  %4075 = vst.msk [vmem:[#allocation2 + $0x138] sm:$0xff] %vm582_vm1, %v16311_v30  ;;  %v14908_v24 = vpop.f32.mrf.mxu1  ;;  %v14946_v34 = vpop.f32.mrf.mxu0  ;;  %15245 = vmatmul.mubr.msk.f32.gmra.mxu0 %vm582_vm1, %v4126_v21 }
 0x140   : > { %4076 = vst.msk [vmem:[#allocation2 + $0x140] sm:$0xff] %vm582_vm1, %v16311_v30  ;;  %4078 = vst.msk [vmem:[#allocation2 + $0x150] sm:$0xff] %vm582_vm1, %v16311_v30  ;;  %v17603_v18 = vadd.f32 %v14908_v24, %v17366_v27  ;;  %v17606_v4 = vadd.f32 %v14946_v34, %v17468_v42  ;;  %15247 = vmatprep.mubr.msk.f32.mxu0 %vm582_vm1, %v4127_v53  ;;  %15340 = vmatpush3.msk.msra.mxu0 %vm679_vm0, %v13079_v15  ;;  %v4134_v53 = vld [vmem:[%s17482_s24 + $0x80] sm:$0xff]  ;;  %v4135_v34 = vld [vmem:[%s17482_s24 + $0x90] sm:$0xff] }
 0x141   : > { %4079 = vst.msk [vmem:[#allocation2 + $0x158] sm:$0xff] %vm582_vm1, %v16311_v30  ;;  %4081 = vst.msk [vmem:[#allocation2 + $0x168] sm:$0xff] %vm582_vm1, %v16311_v30  ;;  %v17610_v44 = vpop.f32.mrf.mxu1  ;;  %v2222_v17 = vpop.f32.mrf.mxu0  ;;  %v4139_v15 = vld [vmem:[%s17482_s24 + $0xc0] sm:$0xff] }
 0x142   : > { %4082 = vst.msk [vmem:[#allocation2 + $0x170] sm:$0xff] %vm582_vm1, %v16311_v30  ;;  %4084 = vst.msk [vmem:[#allocation2 + $0x180] sm:$0xff] %vm582_vm1, %v16311_v30  ;;  %v17649_v2 = vadd.f32 %v2222_v17, %v1983_v5 }
 0x143   : > { %4085 = vst.msk [vmem:[#allocation2 + $0x188] sm:$0xff] %vm582_vm1, %v16311_v30  ;;  %4087 = vst.msk [vmem:[#allocation2 + $0x198] sm:$0xff] %vm582_vm1, %v16311_v30  ;;  %v14911_v27 = vpop.f32.mrf.mxu1  ;;  %v14949_v42 = vpop.f32.mrf.mxu0  ;;  %15248 = vmatmul.mubr.msk.f32.gmra.mxu0 %vm582_vm1, %v4128_v25  ;;  %v13045_v25 = vld [vmem:[%s21924_s4 + $0x4] sm:$0xf] }
 0x144   : > { %4088 = vst.msk [vmem:[#allocation2 + $0x1a0] sm:$0xff] %vm582_vm1, %v16311_v30  ;;  %v1994_v20 = vadd.f32 %v14911_v27, %v17379_v1  ;;  %v17656_v29 = vadd.f32 %v14949_v42, %v17490_v8  ;;  %15250 = vmatprep.mubr.msk.f32.mxu0 %vm582_vm1, %v4129_v9  ;;  %15289 = vmatprep.subr.msk.mxu1 %vm679_vm0, %v13045_v25  ;;  %v4136_v9 = vld [vmem:[%s17482_s24 + $0x98] sm:$0xff]  ;;  %22194 = vst [vmem:[#allocation33_spill] sm:$0xff] %v17859_v13 }
 0x145   : > { %4041 = vst.msk [vmem:[#allocation2 + $0x28] sm:$0x3] %vm4037_vm2, %v16311_v30  ;;  %4038 = vst.msk [vmem:[#allocation2 + $0x10] sm:$0x3] %vm4037_vm2, %v16311_v30  ;;  %v1882_v33 = vpop.f32.mrf.mxu1  ;;  %v2232_v32 = vpop.f32.mrf.mxu0  ;;  %15290 = vmatpush3.msk.msra.mxu1 %vm679_vm0, %v13045_v25 }
 0x146   : > { %4044 = vst.msk [vmem:[#allocation2 + $0x40] sm:$0x3] %vm4037_vm2, %v16311_v30  ;;  %4047 = vst.msk [vmem:[#allocation2 + $0x58] sm:$0x3] %vm4037_vm2, %v16311_v30  ;;  %v17661_v31 = vadd.f32 %v2232_v32, %v1985_v59  ;;  %v4137_v59 = vld [vmem:[%s17482_s24 + $0xa8] sm:$0xff]  ;;  %15389 = vmatprep.subr.msk.mxu1 %vm679_vm0, %v17859_v13 }
 0x147   : > { %4050 = vst.msk [vmem:[#allocation2 + $0x70] sm:$0x3] %vm4037_vm2, %v16311_v30  ;;  %4053 = vst.msk [vmem:[#allocation2 + $0x88] sm:$0x3] %vm4037_vm2, %v16311_v30  ;;  %v14914_v1 = vpop.f32.mrf.mxu1  ;;  %v14952_v8 = vpop.f32.mrf.mxu0  ;;  %15251 = vmatmul.mubr.msk.f32.gmra.mxu0 %vm582_vm1, %v4130_v22 }
 0x148   : > { %4056 = vst.msk [vmem:[#allocation2 + $0xa0] sm:$0x3] %vm4037_vm2, %v16311_v30  ;;  %4059 = vst.msk [vmem:[#allocation2 + $0xb8] sm:$0x3] %vm4037_vm2, %v16311_v30  ;;  %v1996_v28 = vadd.f32 %v14914_v1, %v17392_v57  ;;  %v17673_v10 = vadd.f32 %v14952_v8, %v17504_v51  ;;  %15253 = vmatprep.mubr.msk.f32.mxu0 %vm582_vm1, %v4131_v3  ;;  %v1989_v57 = vadd.f32 %v17522_v14, %v17360_v26  ;;  %v4138_v3 = vld [vmem:[%s17482_s24 + $0xb0] sm:$0xff] }
 0x149   : > { %4062 = vst.msk [vmem:[#allocation2 + $0xd0] sm:$0x3] %vm4037_vm2, %v16311_v30  ;;  %4065 = vst.msk [vmem:[#allocation2 + $0xe8] sm:$0x3] %vm4037_vm2, %v16311_v30  ;;  %v1892_v19 = vpop.f32.mrf.mxu1  ;;  %v2242_v43 = vpop.f32.mrf.mxu0 }
 0x14a   : > { %4068 = vst.msk [vmem:[#allocation2 + $0x100] sm:$0x3] %vm4037_vm2, %v16311_v30  ;;  %4071 = vst.msk [vmem:[#allocation2 + $0x118] sm:$0x3] %vm4037_vm2, %v16311_v30  ;;  %v17680_v21 = vadd.f32 %v2242_v43, %v1987_v49 }
 0x14b   : > { %4074 = vst.msk [vmem:[#allocation2 + $0x130] sm:$0x3] %vm4037_vm2, %v16311_v30  ;;  %4077 = vst.msk [vmem:[#allocation2 + $0x148] sm:$0x3] %vm4037_vm2, %v16311_v30  ;;  %v14917_v0 = vpop.f32.mrf.mxu1  ;;  %v14955_v48 = vpop.f32.mrf.mxu0  ;;  %15254 = vmatmul.mubr.msk.f32.gmra.mxu0 %vm582_vm1, %v4132_v55 }
 0x14c   : > { %4080 = vst.msk [vmem:[#allocation2 + $0x160] sm:$0x3] %vm4037_vm2, %v16311_v30  ;;  %4083 = vst.msk [vmem:[#allocation2 + $0x178] sm:$0x3] %vm4037_vm2, %v16311_v30  ;;  %v1998_v51 = vadd.f32 %v14917_v0, %v17405_v63  ;;  %v17687_v7 = vadd.f32 %v14955_v48, %v17516_v47  ;;  %15256 = vmatprep.mubr.msk.f32.mxu0 %vm582_vm1, %v4133_v12  ;;  %v1991_v63 = vadd.f32 %v17610_v44, %v17373_v60  ;;  %v4141_v12 = vld [vmem:[%s17482_s24 + $0xd8] sm:$0xff] }
 0x14d   : > { %4086 = vst.msk [vmem:[#allocation2 + $0x190] sm:$0x3] %vm4037_vm2, %v16311_v30  ;;  %4089 = vst.msk [vmem:[#allocation2 + $0x1a8] sm:$0x3] %vm4037_vm2, %v16311_v30  ;;  %v1902_v30 = vpop.f32.mrf.mxu1  ;;  %v2252_v24 = vpop.f32.mrf.mxu0 }
 0x14e   : > { %v17692_v5 = vadd.f32 %v2252_v24, %v1989_v57 }
 0x14f   : > { %v14920_v26 = vpop.f32.mrf.mxu1  ;;  %v14958_v14 = vpop.f32.mrf.mxu0  ;;  %15257 = vmatmul.mubr.msk.f32.gmra.mxu0 %vm582_vm1, %v4134_v53 }
 0x150   : > { %v2000_v47 = vadd.f32 %v14920_v26, %v17418_v11  ;;  %v17703_v17 = vadd.f32 %v14958_v14, %v17603_v18  ;;  %15259 = vmatprep.mubr.msk.f32.mxu0 %vm582_vm1, %v4135_v34  ;;  %v1993_v11 = vadd.f32 %v1882_v33, %v17386_v36  ;;  %v1995_v36 = vadd.f32 %v1892_v19, %v17399_v40  ;;  %v4140_v33 = vld [vmem:[%s17482_s24 + $0xc8] sm:$0xff]  ;;  %v4142_v19 = vld [vmem:[%s17482_s24 + $0xe0] sm:$0xff]  ;;  %v4143_v34 = vld [vmem:[%s17482_s24 + $0xf0] sm:$0xff] }
 0x151   : > { %v17708_v27 = vpop.f32.mrf.mxu1  ;;  %v2262_v42 = vpop.f32.mrf.mxu0  ;;  %v1997_v40 = vadd.f32 %v1902_v30, %v17411_v37 }
 0x152   : > { %22171 = vst [vmem:[#allocation20_spill] sm:$0xff] %v17708_v27  ;;  %v17711_v22 = vadd.f32 %v2262_v42, %v1991_v63 }
 0x153   : > { %v14923_v32 = vpop.f32.mrf.mxu1  ;;  %v14961_v60 = vpop.f32.mrf.mxu0  ;;  %15260 = vmatmul.mubr.msk.f32.gmra.mxu0 %vm582_vm1, %v4136_v9  ;;  %v4145_v9 = vld [vmem:[%s17482_s24 + $0x108] sm:$0xff] }
 0x154   : > { %v2002_v18 = vadd.f32 %v14923_v32, %v17434_v58  ;;  %v17716_v44 = vadd.f32 %v14961_v60, %v1994_v20  ;;  %15262 = vmatprep.mubr.msk.f32.mxu0 %vm582_vm1, %v4137_v59 }
 0x155   : > { %v17720_v41 = vpop.f32.mrf.mxu1  ;;  %v2272_v39 = vpop.f32.mrf.mxu0 }
 0x156   : > { %22172 = vst [vmem:[#allocation21_spill] sm:$0xff] %v17720_v41  ;;  %v17723_v1 = vadd.f32 %v2272_v39, %v1993_v11 }
 0x157   : > { %v14926_v8 = vpop.f32.mrf.mxu1  ;;  %v14964_v49 = vpop.f32.mrf.mxu0  ;;  %15263 = vmatmul.mubr.msk.f32.gmra.mxu0 %vm582_vm1, %v4138_v3  ;;  %v4147_v3 = vld [vmem:[%s17482_s24 + $0x120] sm:$0xff] }
 0x158   : > { %v2004_v58 = vadd.f32 %v14926_v8, %v17447_v52  ;;  %v17728_v20 = vadd.f32 %v14964_v49, %v1996_v28  ;;  %15265 = vmatprep.mubr.msk.f32.mxu0 %vm582_vm1, %v4139_v15 }
 0x159   : > { %v17732_v55 = vpop.f32.mrf.mxu1  ;;  %v2282_v43 = vpop.f32.mrf.mxu0 }
 0x15a   : > { %22173 = vst [vmem:[#allocation22_spill] sm:$0xff] %v17732_v55  ;;  %v17735_v0 = vadd.f32 %v2282_v43, %v1995_v36 }
 0x15b   : > { %v14929_v48 = vpop.f32.mrf.mxu1  ;;  %v14967_v57 = vpop.f32.mrf.mxu0  ;;  %15266 = vmatmul.mubr.msk.f32.gmra.mxu0 %vm582_vm1, %v4140_v33  ;;  %v4149_v33 = vld [vmem:[%s17482_s24 + $0x138] sm:$0xff] }
 0x15c   : > { %v2006_v52 = vadd.f32 %v14929_v48, %v17456_v38  ;;  %v17740_v28 = vadd.f32 %v14967_v57, %v1998_v51  ;;  %15268 = vmatprep.mubr.msk.f32.mxu0 %vm582_vm1, %v4141_v12  ;;  %v4144_v51 = vld [vmem:[%s17482_s24 + $0xf8] sm:$0xff] }
 0x15d   : > { %v17744_v53 = vpop.f32.mrf.mxu1  ;;  %v2292_v24 = vpop.f32.mrf.mxu0 }
 0x15e   : > { %22174 = vst [vmem:[#allocation23_spill] sm:$0xff] %v17740_v28  ;;  %22175 = vst [vmem:[#allocation24_spill] sm:$0xff] %v17744_v53  ;;  %v17747_v25 = vadd.f32 %v2292_v24, %v1997_v40  ;;  %v4151_v40 = vld [vmem:[%s17482_s24 + $0x150] sm:$0xff] }
 0x15f   : > { %v14932_v26 = vpop.f32.mrf.mxu1  ;;  %v14970_v14 = vpop.f32.mrf.mxu0  ;;  %15269 = vmatmul.mubr.msk.f32.gmra.mxu0 %vm582_vm1, %v4142_v19 }
 0x160   : > { %22176 = vst [vmem:[#allocation28_spill] sm:$0xff] %v17747_v25  ;;  %v2008_v37 = vadd.f32 %v14932_v26, %v17465_v46  ;;  %v17751_v38 = vadd.f32 %v14970_v14, %v2000_v47  ;;  %15271 = vmatprep.mubr.msk.f32.mxu0 %vm582_vm1, %v4143_v34  ;;  %v4146_v47 = vld [vmem:[%s17482_s24 + $0x110] sm:$0xff] }
 0x161   : > { %v17755_v30 = vpop.f32.mrf.mxu1  ;;  %v17757_v63 = vpop.f32.mrf.mxu0 }
 0x162   : > { %22177 = vst [vmem:[#allocation29_spill] sm:$0xff] %v17751_v38  ;;  %22178 = vst [vmem:[#allocation25_spill] sm:$0xff] %v17755_v30 }
 0x163   : > { %22179 = vst [vmem:[#allocation26_spill] sm:$0xff] %v17757_v63  ;;  %v14935_v42 = vpop.f32.mrf.mxu1  ;;  %v14973_v59 = vpop.f32.mrf.mxu0  ;;  %15272 = vmatmul.mubr.msk.f32.gmra.mxu0 %vm582_vm1, %v4144_v51  ;;  %v4153_v51 = vld [vmem:[%s17482_s24 + $0x168] sm:$0xff] }
 0x164   : > { %v2010_v32 = vadd.f32 %v14935_v42, %v17487_v61  ;;  %v17762_v46 = vadd.f32 %v14973_v59, %v2002_v18  ;;  %15274 = vmatprep.mubr.msk.f32.mxu0 %vm582_vm1, %v4145_v9  ;;  %v4148_v18 = vld [vmem:[%s17482_s24 + $0x128] sm:$0xff] }
 0x165   : > { %v17766_v60 = vpop.f32.mrf.mxu1  ;;  %v17768_v11 = vpop.f32.mrf.mxu0 }
 0x166   : > { %22180 = vst [vmem:[#allocation3_spill] sm:$0xff] %v17762_v46  ;;  %22181 = vst [vmem:[#allocation27_spill] sm:$0xff] %v17766_v60 }
 0x167   : > { %22182 = vst [vmem:[#allocation7_spill] sm:$0xff] %v17768_v11  ;;  %v14938_v39 = vpop.f32.mrf.mxu1  ;;  %v14976_v15 = vpop.f32.mrf.mxu0  ;;  %15275 = vmatmul.mubr.msk.f32.gmra.mxu0 %vm582_vm1, %v4146_v47  ;;  %v4154_v47 = vld [vmem:[%s17482_s24 + $0x170] sm:$0xff] }
 0x168   : > { %v2012_v8 = vadd.f32 %v14938_v39, %v17501_v45  ;;  %v17773_v61 = vadd.f32 %v14976_v15, %v2004_v58  ;;  %15277 = vmatprep.mubr.msk.f32.mxu0 %vm582_vm1, %v4147_v3  ;;  %v4150_v45 = vld [vmem:[%s17482_s24 + $0x140] sm:$0xff] }
 0x169   : > { %v17777_v49 = vpop.f32.mrf.mxu1  ;;  %v17779_v36 = vpop.f32.mrf.mxu0  ;;  %v4869_v39 = vld [vmem:[#allocation2 + $0x1] sm:$0xff] }
 0x16a   : > { %22183 = vst [vmem:[#allocation4_spill] sm:$0xff] %v17773_v61  ;;  %22184 = vst [vmem:[#allocation8_spill] sm:$0xff] %v17777_v49 }
 0x16b   : > { %22185 = vst [vmem:[#allocation5_spill] sm:$0xff] %v17779_v36  ;;  %v14979_v43 = vpop.f32.mrf.mxu0  ;;  %v17782_v12 = vpop.f32.mrf.mxu1  ;;  %15278 = vmatmul.mubr.msk.f32.gmra.mxu0 %vm582_vm1, %v4148_v18 }
 0x16c   : > { %v17785_v48 = vadd.f32 %v14979_v43, %v2006_v52  ;;  %15280 = vmatprep.mubr.msk.f32.mxu0 %vm582_vm1, %v4149_v33  ;;  %v4152_v52 = vld [vmem:[%s17482_s24 + $0x158] sm:$0xff]  ;;  %v4870_v43 = vld [vmem:[#allocation2 + $0x9] sm:$0xff] }
 0x16d   : > { %v17789_v58 = vpop.f32.mrf.mxu0  ;;  %v17791_v57 = vpop.f32.mrf.mxu1 }
 0x16e   : > { %22186 = vst [vmem:[#allocation9_spill] sm:$0xff] %v17785_v48  ;;  %22187 = vst [vmem:[#allocation6_spill] sm:$0xff] %v17789_v58 }
 0x16f   : > { %v14982_v19 = vpop.f32.mrf.mxu0  ;;  %v17794_v24 = vpop.f32.mrf.mxu1  ;;  %15281 = vmatmul.mubr.msk.f32.gmra.mxu0 %vm582_vm1, %v4150_v45 }
 0x170   : > { %v17797_v34 = vadd.f32 %v14982_v19, %v2008_v37  ;;  %15283 = vmatprep.mubr.msk.f32.mxu0 %vm582_vm1, %v4151_v40 }
 0x171   : > { %v17801_v26 = vpop.f32.mrf.mxu0  ;;  %v17803_v14 = vpop.f32.mrf.mxu1 }
 0x172   : > { %22188 = vst [vmem:[#allocation10_spill] sm:$0xff] %v17797_v34  ;;  %22189 = vst [vmem:[#allocation11_spill] sm:$0xff] %v17801_v26 }
 0x173   : > { %v14985_v9 = vpop.f32.mrf.mxu0  ;;  %v17806_v42 = vpop.f32.mrf.mxu1  ;;  %15284 = vmatmul.mubr.msk.f32.gmra.mxu0 %vm582_vm1, %v4152_v52 }
 0x174   : > { %v17809_v59 = vadd.f32 %v14985_v9, %v2010_v32  ;;  %15286 = vmatprep.mubr.msk.f32.mxu0 %vm582_vm1, %v4153_v51 }
 0x175   : > { %v17813_v37 = vpop.f32.mrf.mxu0  ;;  %v17815_v3 = vpop.f32.mrf.mxu1 }
 0x176   : > { %22190 = vst [vmem:[#allocation12_spill] sm:$0xff] %v17809_v59  ;;  %22191 = vst [vmem:[#allocation30_spill] sm:$0xff] %v17813_v37 }
 0x177   : > { %v14988_v15 = vpop.f32.mrf.mxu0  ;;  %v17817_v18 = vpop.f32.mrf.mxu1  ;;  %15287 = vmatmul.mubr.msk.f32.gmra.mxu0 %vm582_vm1, %v4154_v47 }
 0x178   : > { %v17820_v33 = vadd.f32 %v14988_v15, %v2012_v8  ;;  %15341 = vmatprep.mubr.msk.f32.mxu0 %vm582_vm1, %v4869_v39 }
 0x179   : > { %v17823_v32 = vpop.f32.mrf.mxu0  ;;  %v17825_v45 = vpop.f32.mrf.mxu1 }
 0x17a   : > { %22192 = vst [vmem:[#allocation31_spill] sm:$0xff] %v17820_v33  ;;  %22193 = vst [vmem:[#allocation32_spill] sm:$0xff] %v17823_v32 }
 0x17b   : > { %v17827_v40 = vpop.f32.mrf.mxu1  ;;  %v17829_v19 = vpop.f32.mrf.mxu0  ;;  %15342 = vmatmul.mubr.msk.f32.vlgmr.msra.gmra.mxu0 %vm582_vm1, %v4870_v43  ;;  %v13147_v43 = vld [vmem:[%s21925_s5 + $0x8] sm:$0xf] }
 0x17c   : > { %15439 = vmatprep.subr.msk.mxu0 %vm679_vm0, %v13147_v43 }
 0x17d   : > { %v17832_v52 = vpop.f32.mrf.mxu1  ;;  %v17834_v51 = vpop.f32.mrf.mxu0  ;;  %15440 = vmatpush3.msk.msra.mxu0 %vm679_vm0, %v13147_v43 }
 0x17f   : > { %v17836_v9 = vpop.f32.mrf.mxu1  ;;  %v17838_v8 = vpop.f32.mrf.mxu0 }
 0x181   : > { %v17840_v47 = vpop.f32.mrf.mxu1  ;;  %v17842_v39 = vpop.f32.mrf.mxu0 }
 0x183   : > { %v17844_v15 = vpop.f32.mrf.mxu1  ;;  %v17846_v33 = vpop.f32.mrf.mxu0 }
 0x185   : > { %v17848_v32 = vpop.f32.mrf.mxu1  ;;  %v17850_v49 = vpop.f32.mrf.mxu0 }
 0x187   : > { %v17861_v59 = vpop.f32.mrf.mxu1  ;;  %v17863_v37 = vpop.f32.mrf.mxu0 }
 0x189   : > { %v17868_v60 = vpop.f32.mrf.mxu1  ;;  %v17870_v62 = vpop.f32.mrf.mxu0 }
 0x18b   : > { %v17872_v34 = vpop.f32.mrf.mxu1  ;;  %v17874_v26 = vpop.f32.mrf.mxu0 }
 0x18c   : > { %22195 = vst [vmem:[#allocation34_spill] sm:$0xff] %v17872_v34 }
 0x18d   : > { %v17876_v30 = vpop.f32.mrf.mxu1  ;;  %v17878_v54 = vpop.f32.mrf.mxu0 }
 0x18e   : > { %22196 = vst [vmem:[#allocation35_spill] sm:$0xff] %v17876_v30 }
 0x18f   : > { %v17880_v48 = vpop.f32.mrf.mxu1  ;;  %v17882_v58 = vpop.f32.mrf.mxu0 }
 0x190   : > { %22197 = vst [vmem:[#allocation36_spill] sm:$0xff] %v17880_v48 }
 0x191   : > { %v17884_v53 = vpop.f32.mrf.mxu1  ;;  %v17886_v13 = vpop.f32.mrf.mxu0 }
 0x192   : > { %22198 = vst [vmem:[#allocation37_spill] sm:$0xff] %v17884_v53 }
 0x193   : > { %v17888_v43 = vpop.f32.mrf.mxu1  ;;  %v17890_v50 = vpop.f32.mrf.mxu0 }
 0x194   : > { %22199 = vst [vmem:[#allocation38_spill] sm:$0xff] %v17888_v43 }
 0x195   : > { %v17892_v61 = vpop.f32.mrf.mxu1  ;;  %v17894_v36 = vpop.f32.mrf.mxu0 }
 0x196   : > { %22200 = vst [vmem:[#allocation39_spill] sm:$0xff] %v17892_v61 }
 0x197   : > { %v17896_v55 = vpop.f32.mrf.mxu1  ;;  %v17898_v35 = vpop.f32.mrf.mxu0 }
 0x198   : > { %22201 = vst [vmem:[#allocation40_spill] sm:$0xff] %v17896_v55 }
 0x199   : > { %v17900_v46 = vpop.f32.mrf.mxu1  ;;  %v17902_v11 = vpop.f32.mrf.mxu0 }
 0x19a   : > { %22202 = vst [vmem:[#allocation41_spill] sm:$0xff] %v17900_v46  ;;  %22203 = vst [vmem:[#allocation42_spill] sm:$0xff] %v17902_v11 }
 0x19b   : > { %v17904_v41 = vpop.f32.mrf.mxu1  ;;  %v17906_v53 = vpop.f32.mrf.mxu0 }
 0x19c   : > { %22204 = vst [vmem:[#allocation43_spill] sm:$0xff] %v17904_v41  ;;  %22205 = vst [vmem:[#allocation44_spill] sm:$0xff] %v17906_v53 }
 0x19d   : > { %v17908_v16 = vpop.f32.mrf.mxu1  ;;  %v17910_v43 = vpop.f32.mrf.mxu0 }
 0x19e   : > { %22206 = vst [vmem:[#allocation45_spill] sm:$0xff] %v17908_v16  ;;  %22207 = vst [vmem:[#allocation46_spill] sm:$0xff] %v17910_v43 }
 0x19f   : > { %v17912_v48 = vpop.f32.mrf.mxu1  ;;  %v17914_v61 = vpop.f32.mrf.mxu0 }
 0x1a0   : > { %22208 = vst [vmem:[#allocation47_spill] sm:$0xff] %v17912_v48  ;;  %22209 = vst [vmem:[#allocation48_spill] sm:$0xff] %v17914_v61 }
 0x1a1   : > { %v17916_v38 = vpop.f32.mrf.mxu1  ;;  %v17918_v55 = vpop.f32.mrf.mxu0 }
 0x1a2   : > { %22210 = vst [vmem:[#allocation49_spill] sm:$0xff] %v17916_v38  ;;  %22211 = vst [vmem:[#allocation50_spill] sm:$0xff] %v17918_v55 }
 0x1a3   : > { %v17920_v63 = vpop.f32.mrf.mxu1  ;;  %v17922_v46 = vpop.f32.mrf.mxu0 }
 0x1a4   : > { %22212 = vst [vmem:[#allocation51_spill] sm:$0xff] %v17920_v63  ;;  %22213 = vst [vmem:[#allocation52_spill] sm:$0xff] %v17922_v46 }
 0x1a5   : > { %v17924_v30 = vpop.f32.mrf.mxu1  ;;  %v17926_v41 = vpop.f32.mrf.mxu0 }
 0x1a6   : > { %22214 = vst [vmem:[#allocation53_spill] sm:$0xff] %v17924_v30  ;;  %22215 = vst [vmem:[#allocation54_spill] sm:$0xff] %v17926_v41 }
 0x1a7   : > { %v17928_v53 = vpop.f32.mrf.mxu1  ;;  %v17930_v16 = vpop.f32.mrf.mxu0 }
 0x1a8   : > { %22216 = vst [vmem:[#allocation55_spill] sm:$0xff] %v17928_v53  ;;  %22217 = vst [vmem:[#allocation56_spill] sm:$0xff] %v17930_v16 }
 0x1a9   : > { %v17932_v43 = vpop.f32.mrf.mxu1  ;;  %v17934_v48 = vpop.f32.mrf.mxu0 }
 0x1aa   : > { %22218 = vst [vmem:[#allocation57_spill] sm:$0xff] %v17932_v43  ;;  %22219 = vst [vmem:[#allocation58_spill] sm:$0xff] %v17934_v48  ;;  %v2762_v48 = vadd.f32 %v17782_v12, %v17518_v6  ;;  %v17965_v12 = vld [vmem:[%s21923_s3] ss:$0 sm:$0xff] }
 0x1ab   : > { %v17936_v61 = vpop.f32.mrf.mxu0  ;;  %v15093_v38 = vpop.f32.mrf.mxu1 }
 0x1ac   : > { %22220 = vst [vmem:[#allocation59_spill] sm:$0xff] %v17936_v61 }
 0x1ad   : > { %v17938_v55 = vpop.f32.mrf.mxu0  ;;  %v3383_v63 = vpop.f32.mrf.mxu1 }
 0x1ae   : > { %22221 = vst [vmem:[#allocation60_spill] sm:$0xff] %v17938_v55  ;;  %v2761_v55 = vadd.f32 %v17791_v57, %v17525_v23  ;;  %v2763_v23 = vadd.f32 %v17803_v14, %v17649_v2  ;;  %v2765_v2 = vadd.f32 %v17815_v3, %v17661_v31 }
 0x1af   : > { %v17940_v25 = vpop.f32.mrf.mxu0  ;;  %v15096_v46 = vpop.f32.mrf.mxu1 }
 0x1b0   : > { %22222 = vst [vmem:[#allocation61_spill] sm:$0xff] %v17940_v25  ;;  %v3153_v25 = vadd.f32 %v17829_v19, %v2762_v48 }
 0x1b1   : > { %v17942_v30 = vpop.f32.mrf.mxu0  ;;  %v3393_v41 = vpop.f32.mrf.mxu1 }
 0x1b2   : > { %22223 = vst [vmem:[#allocation62_spill] sm:$0xff] %v17942_v30  ;;  %v3543_v34 = vadd.f32 %v15093_v38, %v3153_v25  ;;  %v3154_v38 = vadd.f32 %v17842_v39, %v2763_v23 }
 0x1b3   : > { %v17944_v27 = vpop.f32.mrf.mxu0  ;;  %v15099_v53 = vpop.f32.mrf.mxu1 }
 0x1b4   : > { %22224 = vst [vmem:[#allocation63_spill] sm:$0xff] %v17944_v27  ;;  %v2764_v27 = vadd.f32 %v17794_v24, %v17606_v4  ;;  %v2766_v4 = vadd.f32 %v17806_v42, %v17656_v29 }
 0x1b5   : > { %v17946_v16 = vpop.f32.mrf.mxu0  ;;  %v3403_v43 = vpop.f32.mrf.mxu1 }
 0x1b6   : > { %22225 = vst [vmem:[#allocation64_spill] sm:$0xff] %v17946_v16  ;;  %v3152_v16 = vadd.f32 %v17834_v51, %v2761_v55  ;;  %v3155_v48 = vadd.f32 %v17838_v8, %v2764_v27  ;;  %v3157_v27 = vadd.f32 %v17846_v33, %v2766_v4  ;;  %v3156_v8 = vadd.f32 %v17850_v49, %v2765_v2 }
 0x1b7   : > { %v17950_v61 = vpop.f32.mrf.mxu0  ;;  %v15102_v56 = vpop.f32.mrf.mxu1 }
 0x1b8   : > { %v3542_v57 = vadd.f32 %v3383_v63, %v3152_v16  ;;  %v3545_v24 = vadd.f32 %v15096_v46, %v3155_v48  ;;  %v2768_v46 = vadd.f32 %v17817_v18, %v17673_v10  ;;  %v3547_v3 = vadd.f32 %v15099_v53, %v3157_v27 }
 0x1b9   : > { %v17955_v11 = vpop.f32.mrf.mxu0  ;;  %v3413_v30 = vpop.f32.mrf.mxu1  ;;  %v3546_v23 = vadd.f32 %v3403_v43, %v3156_v8 }
 0x1ba   : > { %22226 = vst [vmem:[#allocation65_spill] sm:$0xff] %v17955_v11  ;;  %v3159_v10 = vadd.f32 %v17863_v37, %v2768_v46 }
 0x1bb   : > { %v17960_v28 = vpop.f32.mrf.mxu1  ;;  %v15143_v6 = vpop.f32.mrf.mxu0 }
 0x1bc   : > { %v3933_v19 = vadd.f32 %v15143_v6, %v3543_v34  ;;  %v3544_v34 = vadd.f32 %v3393_v41, %v3154_v38  ;;  %v2767_v6 = vadd.f32 %v17825_v45, %v17680_v21  ;;  %v3549_v4 = vadd.f32 %v15102_v56, %v3159_v10 }
 0x1bd   : > { %v17972_v55 = vpop.f32.mrf.mxu1  ;;  %v3773_v25 = vpop.f32.mrf.mxu0 }
 0x1be   : > { %v17976_v51 = vadd.f32 %v17965_v12, %v3933_v19  ;;  %v3932_v11 = vadd.f32 %v3773_v25, %v3542_v57  ;;  %v2770_v19 = vadd.f32 %v17827_v40, %v17687_v7  ;;  %v3158_v21 = vadd.f32 %v17870_v62, %v2767_v6  ;;  %v18026_v7 = vld [vmem:[%s21925_s5 + $0xc] sm:$0xf] }
 0x1bf   : > { %v17981_v16 = vpop.f32.mrf.mxu1  ;;  %v15146_v63 = vpop.f32.mrf.mxu0  ;;  %v2769_v62 = vadd.f32 %v17832_v52, %v17692_v5  ;;  %15539 = vmatprep.subr.msk.mxu0 %vm679_vm0, %v18026_v7  ;;  %v2772_v5 = vadd.f32 %v17836_v9, %v17703_v17  ;;  %v2771_v17 = vadd.f32 %v17840_v47, %v17711_v22 }
 0x1c0   : > { %22227 = vst [vmem:[#allocation66_spill] sm:$0xff] %v17976_v51  ;;  %v22005_v29 = vmax.f32 %v17976_v51, 0.0  ;;  %v17985_v14 = vadd.f32 %v17965_v12, %v3932_v11  ;;  %v3935_v42 = vadd.f32 %v15146_v63, %v3545_v24  ;;  %v3161_v56 = vadd.f32 %v17874_v26, %v2770_v19 }
 0x1c1   : > { %v17990_v39 = vpop.f32.mrf.mxu1  ;;  %v3783_v31 = vpop.f32.mrf.mxu0  ;;  %v3548_v2 = vadd.f32 %v3413_v30, %v3158_v21  ;;  %v3160_v26 = vadd.f32 %v17878_v54, %v2769_v62  ;;  %v3163_v54 = vadd.f32 %v17882_v58, %v2772_v5  ;;  %v2776_v5 = vadd.f32 %v17861_v59, %v17728_v20 }
 0x1c2   : > { %22228 = vst [vmem:[#allocation67_spill] sm:$0xff] %v17985_v14  ;;  %4092 = vst.msk [vmem:[#allocation2 + $0x21] sm:$0xff] %vm582_vm1, %v22005_v29  ;;  %v22006_v41 = vmax.f32 %v17985_v14, 0.0  ;;  %v17997_v33 = vadd.f32 %v17965_v12, %v3935_v42  ;;  %v3934_v11 = vadd.f32 %v3783_v31, %v3544_v34  ;;  %v3551_v30 = vadd.f32 %v17960_v28, %v3161_v56 }
 0x1c3   : > { %v18002_v49 = vpop.f32.mrf.mxu1  ;;  %v15149_v18 = vpop.f32.mrf.mxu0  ;;  %v3550_v10 = vadd.f32 %v17972_v55, %v3160_v26  ;;  %v3162_v55 = vadd.f32 %v17886_v13, %v2771_v17  ;;  %v3553_v21 = vadd.f32 %v17981_v16, %v3163_v54  ;;  %v2775_v59 = vadd.f32 %v17868_v60, %v17735_v0 }
 0x1c4   : > { %22229 = vst [vmem:[#allocation68_spill] sm:$0xff] %v17997_v33  ;;  %4091 = vst.msk [vmem:[#allocation2 + $0x19] sm:$0xff] %vm582_vm1, %v22006_v41  ;;  %v22001_v53 = vmax.f32 %v17997_v33, 0.0  ;;  %v18009_v48 = vadd.f32 %v17965_v12, %v3934_v11  ;;  %v3937_v57 = vadd.f32 %v15149_v18, %v3547_v3  ;;  %v3167_v17 = vadd.f32 %v17898_v35, %v2776_v5 }
 0x1c5   : > { %v18014_v37 = vpop.f32.mrf.mxu1  ;;  %v3793_v45 = vpop.f32.mrf.mxu0 }
 0x1c6   : > { %22230 = vst [vmem:[#allocation69_spill] sm:$0xff] %v18009_v48  ;;  %4094 = vst.msk [vmem:[#allocation2 + $0x39] sm:$0xff] %vm582_vm1, %v22001_v53  ;;  %v22004_v43 = vmax.f32 %v18009_v48, 0.0  ;;  %v18021_v25 = vadd.f32 %v17965_v12, %v3937_v57  ;;  %v3936_v38 = vadd.f32 %v3793_v45, %v3546_v23  ;;  %v2774_v23 = vadd.f32 %v17844_v15, %v17716_v44 }
 0x1c7   : > { %v18031_v40 = vpop.f32.mrf.mxu1  ;;  %v15152_v24 = vpop.f32.mrf.mxu0  ;;  %v2773_v15 = vadd.f32 %v17848_v32, %v17723_v1 }
 0x1c8   : > { %22231 = vst [vmem:[#allocation70_spill] sm:$0xff] %v18021_v25  ;;  %4093 = vst.msk [vmem:[#allocation2 + $0x31] sm:$0xff] %vm582_vm1, %v22004_v43  ;;  %v21999_v27 = vmax.f32 %v18021_v25, 0.0  ;;  %v18040_v63 = vadd.f32 %v17965_v12, %v3936_v38  ;;  %v3939_v34 = vadd.f32 %v15152_v24, %v3549_v4  ;;  %v3165_v4 = vadd.f32 %v17890_v50, %v2774_v23  ;;  %v22239_v23 = vld [vmem:[#allocation23_spill] sm:$0xff] }
 0x1c9   : > { %v18045_v52 = vpop.f32.mrf.mxu1  ;;  %v3803_v42 = vpop.f32.mrf.mxu0  ;;  %v4872_v47 = vld [vmem:[#allocation2 + $0x21] sm:$0xff] }
 0x1ca   : > { %22232 = vst [vmem:[#allocation71_spill] sm:$0xff] %v18040_v63  ;;  %4096 = vst.msk [vmem:[#allocation2 + $0x51] sm:$0xff] %vm582_vm1, %v21999_v27  ;;  %v22000_v46 = vmax.f32 %v18040_v63, 0.0  ;;  %v18053_v8 = vadd.f32 %v17965_v12, %v3939_v34  ;;  %v3938_v31 = vadd.f32 %v3803_v42, %v3548_v2  ;;  %v3552_v2 = vadd.f32 %v17990_v39, %v3162_v55  ;;  %v22240_v55 = vld [vmem:[#allocation34_spill] sm:$0xff] }
 0x1cb   : > { %v18058_v9 = vpop.f32.mrf.mxu1  ;;  %v15155_v3 = vpop.f32.mrf.mxu0  ;;  %v18060_v11 = vld [vmem:[#allocation2 + $0x18] sm:$0xff]  ;;  %v18062_v6 = vld [vmem:[#allocation2 + $0x20] sm:$0xff]  ;;  %v3164_v39 = vadd.f32 %v17894_v36, %v2773_v15 }
 0x1cc   : > { %22233 = vst [vmem:[#allocation72_spill] sm:$0xff] %v18053_v8  ;;  %v4871_v28 = vld [vmem:[#allocation2 + $0x19] sm:$0xff]  ;;  %4095 = vst.msk [vmem:[#allocation2 + $0x49] sm:$0xff] %vm582_vm1, %v22000_v46  ;;  %v21995_v18 = vmax.f32 %v18053_v8, 0.0  ;;  %v18070_v22 = vadd.f32 %v17965_v12, %v3938_v31  ;;  %v3941_v58 = vadd.f32 %v15155_v3, %v3551_v30  ;;  %15194 = vmatprep.mubr.msk.f32.mxu1 %vm582_vm1, %v18060_v11 }
 0x1cd   : > { %15344 = vmatprep.mubr.msk.f32.mxu0 %vm582_vm1, %v4871_v28  ;;  %v18078_v57 = vpop.f32.mrf.mxu1  ;;  %v3813_v19 = vpop.f32.mrf.mxu0  ;;  %15195 = vmatmul.mubr.msk.f32.gmra.mxu1 %vm582_vm1, %v18062_v6  ;;  %v4874_v32 = vld [vmem:[#allocation2 + $0x39] sm:$0xff]  ;;  %v3555_v30 = vadd.f32 %v18002_v49, %v3165_v4  ;;  %v3557_v4 = vadd.f32 %v18031_v40, %v3167_v17 }
 0x1ce   : > { %22234 = vst [vmem:[#allocation73_spill] sm:$0xff] %v18070_v22  ;;  %15345 = vmatmul.mubr.msk.f32.gmra.mxu0 %vm582_vm1, %v4872_v47  ;;  %4098 = vst.msk [vmem:[#allocation2 + $0x69] sm:$0xff] %vm582_vm1, %v21995_v18  ;;  %v21996_v45 = vmax.f32 %v18070_v22, 0.0  ;;  %v18089_v44 = vadd.f32 %v17965_v12, %v3941_v58  ;;  %v3940_v13 = vadd.f32 %v3813_v19, %v3550_v10  ;;  %v22325_v8 = vld [vmem:[#allocation33_spill] sm:$0xff]  ;;  %v4841_v22 = vld [vmem:[%s17482_s24 + $0x31] sm:$0xff] }
 0x1cf   : > { %v18094_v38 = vpop.f32.mrf.mxu1  ;;  %v15158_v62 = vpop.f32.mrf.mxu0  ;;  %v18096_v56 = vld [vmem:[#allocation2 + $0x30] sm:$0xff]  ;;  %v18098_v24 = vld [vmem:[#allocation2 + $0x38] sm:$0xff]  ;;  %v3554_v58 = vadd.f32 %v18014_v37, %v3164_v39  ;;  %v2778_v19 = vadd.f32 %v22240_v55, %v22239_v23  ;;  %v22241_v37 = vld [vmem:[#allocation42_spill] sm:$0xff] }
 0x1d0   : > { %22235 = vst [vmem:[#allocation74_spill] sm:$0xff] %v18089_v44  ;;  %v4873_v16 = vld [vmem:[#allocation2 + $0x31] sm:$0xff]  ;;  %4097 = vst.msk [vmem:[#allocation2 + $0x61] sm:$0xff] %vm582_vm1, %v21996_v45  ;;  %v21992_v34 = vmax.f32 %v18089_v44, 0.0  ;;  %v18106_v1 = vadd.f32 %v17965_v12, %v3940_v13  ;;  %v3943_v50 = vadd.f32 %v15158_v62, %v3553_v21  ;;  %15197 = vmatprep.mubr.msk.f32.mxu1 %vm582_vm1, %v18096_v56  ;;  %v18561_v44 = vld [vmem:[%s21924_s4 + $0xc] sm:$0xf] }
 0x1d1   : > { %15347 = vmatprep.mubr.msk.f32.mxu0 %vm582_vm1, %v4873_v16  ;;  %v18114_v26 = vpop.f32.mrf.mxu1  ;;  %v3823_v42 = vpop.f32.mrf.mxu0  ;;  %15198 = vmatmul.mubr.msk.f32.gmra.mxu1 %vm582_vm1, %v18098_v24  ;;  %v4876_v60 = vld [vmem:[#allocation2 + $0x51] sm:$0xff]  ;;  %v3166_v21 = vadd.f32 %v22241_v37, %v2775_v59  ;;  %v22249_v37 = vld [vmem:[#allocation26_spill] sm:$0xff] }
 0x1d2   : > { %22236 = vst [vmem:[#allocation75_spill] sm:$0xff] %v18106_v1  ;;  %15348 = vmatmul.mubr.msk.f32.gmra.mxu0 %vm582_vm1, %v4874_v32  ;;  %4100 = vst.msk [vmem:[#allocation2 + $0x81] sm:$0xff] %vm582_vm1, %v21992_v34  ;;  %v21994_v31 = vmax.f32 %v18106_v1, 0.0  ;;  %v18125_v20 = vadd.f32 %v17965_v12, %v3943_v50  ;;  %v3942_v36 = vadd.f32 %v3823_v42, %v3552_v2  ;;  %v22243_v50 = vld [vmem:[#allocation13_spill] sm:$0xff]  ;;  %v22244_v32 = vld [vmem:[#allocation20_spill] sm:$0xff] }
 0x1d3   : > { %v18130_v54 = vpop.f32.mrf.mxu1  ;;  %v15161_v3 = vpop.f32.mrf.mxu0  ;;  %v18132_v28 = vld [vmem:[#allocation2 + $0x48] sm:$0xff]  ;;  %v18134_v10 = vld [vmem:[#allocation2 + $0x50] sm:$0xff]  ;;  %v1999_v5 = vadd.f32 %v22244_v32, %v22243_v50  ;;  %v22245_v39 = vld [vmem:[#allocation28_spill] sm:$0xff] }
 0x1d4   : > { %22237 = vst [vmem:[#allocation76_spill] sm:$0xff] %v18125_v20  ;;  %v4875_v49 = vld [vmem:[#allocation2 + $0x49] sm:$0xff]  ;;  %4099 = vst.msk [vmem:[#allocation2 + $0x79] sm:$0xff] %vm582_vm1, %v21994_v31  ;;  %v21989_v47 = vmax.f32 %v18125_v20, 0.0  ;;  %v18142_v0 = vadd.f32 %v17965_v12, %v3942_v36  ;;  %v3945_v35 = vadd.f32 %v15161_v3, %v3555_v30  ;;  %15200 = vmatprep.mubr.msk.f32.mxu1 %vm582_vm1, %v18132_v28  ;;  %v22247_v36 = vld [vmem:[#allocation44_spill] sm:$0xff] }
 0x1d5   : > { %15350 = vmatprep.mubr.msk.f32.mxu0 %vm582_vm1, %v4875_v49  ;;  %v18150_v13 = vpop.f32.mrf.mxu1  ;;  %v3833_v15 = vpop.f32.mrf.mxu0  ;;  %15201 = vmatmul.mubr.msk.f32.gmra.mxu1 %vm582_vm1, %v18134_v10  ;;  %v22246_v42 = vld [vmem:[#allocation35_spill] sm:$0xff]  ;;  %v3169_v59 = vadd.f32 %v22247_v36, %v2778_v19  ;;  %v22250_v50 = vld [vmem:[#allocation29_spill] sm:$0xff]  ;;  %v22252_v32 = vld [vmem:[#allocation46_spill] sm:$0xff] }
 0x1d6   : > { %22238 = vst [vmem:[#allocation77_spill] sm:$0xff] %v18142_v0  ;;  %15351 = vmatmul.mubr.msk.f32.gmra.mxu0 %vm582_vm1, %v4876_v60  ;;  %4102 = vst.msk [vmem:[#allocation2 + $0x99] sm:$0xff] %vm582_vm1, %v21989_v47  ;;  %v21990_v62 = vmax.f32 %v18142_v0, 0.0  ;;  %v18161_v16 = vadd.f32 %v17965_v12, %v3945_v35  ;;  %v3944_v2 = vadd.f32 %v3833_v15, %v3554_v58  ;;  %v4878_v19 = vld [vmem:[#allocation2 + $0x69] sm:$0xff]  ;;  %v4839_v0 = vld [vmem:[%s17482_s24 + $0x19] sm:$0xff] }
 0x1d7   : > { %v2777_v30 = vadd.f32 %v22246_v42, %v22245_v39  ;;  %v18168_v3 = vpop.f32.mrf.mxu1  ;;  %v15164_v40 = vpop.f32.mrf.mxu0  ;;  %v18170_v17 = vld [vmem:[#allocation2 + $0x60] sm:$0xff]  ;;  %v18172_v60 = vld [vmem:[#allocation2 + $0x68] sm:$0xff]  ;;  %v3556_v35 = vadd.f32 %v18045_v52, %v3166_v21  ;;  %v2389_v15 = vadd.f32 %v22249_v37, %v1999_v5  ;;  %v22251_v52 = vld [vmem:[#allocation36_spill] sm:$0xff] }
 0x1d8   : > { %22242 = vst [vmem:[#allocation23_spill] sm:$0xff] %v18161_v16  ;;  %v4877_v49 = vld [vmem:[#allocation2 + $0x61] sm:$0xff]  ;;  %4101 = vst.msk [vmem:[#allocation2 + $0x91] sm:$0xff] %vm582_vm1, %v21990_v62  ;;  %v21991_v58 = vmax.f32 %v18161_v16, 0.0  ;;  %v18180_v23 = vadd.f32 %v17965_v12, %v3944_v2  ;;  %v3947_v55 = vadd.f32 %v15164_v40, %v3557_v4  ;;  %15203 = vmatprep.mubr.msk.f32.mxu1 %vm582_vm1, %v18170_v17  ;;  %v5658_v63 = vld [vmem:[#allocation2 + $0x6a] sm:$0xff] }
 0x1d9   : > { %15353 = vmatprep.mubr.msk.f32.mxu0 %vm582_vm1, %v4877_v49  ;;  %v2780_v21 = vadd.f32 %v22251_v52, %v22250_v50  ;;  %v3168_v39 = vadd.f32 %v22252_v32, %v2777_v30  ;;  %v18189_v42 = vpop.f32.mrf.mxu1  ;;  %v3843_v36 = vpop.f32.mrf.mxu0  ;;  %15204 = vmatmul.mubr.msk.f32.gmra.mxu1 %vm582_vm1, %v18172_v60  ;;  %v3559_v4 = vadd.f32 %v18058_v9, %v3169_v59  ;;  %v22254_v40 = vld [vmem:[#allocation14_spill] sm:$0xff]  ;;  %v22255_v49 = vld [vmem:[#allocation21_spill] sm:$0xff]  ;;  %v22257_v32 = vld [vmem:[#allocation48_spill] sm:$0xff] }
 0x1da   : > { %22248 = vst [vmem:[#allocation34_spill] sm:$0xff] %v18180_v23  ;;  %15354 = vmatmul.mubr.msk.f32.gmra.mxu0 %vm582_vm1, %v4878_v19  ;;  %4104 = vst.msk [vmem:[#allocation2 + $0xb1] sm:$0xff] %vm582_vm1, %v21991_v58  ;;  %v21993_v2 = vmax.f32 %v18180_v23, 0.0  ;;  %v18200_v5 = vadd.f32 %v17965_v12, %v3947_v55  ;;  %v3946_v30 = vadd.f32 %v3843_v36, %v3556_v35  ;;  %v22256_v50 = vld [vmem:[#allocation37_spill] sm:$0xff]  ;;  %v22259_v36 = vld [vmem:[#allocation7_spill] sm:$0xff] }
 0x1db   : > { %v2001_v37 = vadd.f32 %v22255_v49, %v22254_v40  ;;  %v2779_v52 = vadd.f32 %v22256_v50, %v2389_v15  ;;  %v3171_v47 = vadd.f32 %v22257_v32, %v2780_v21  ;;  %v18206_v19 = vpop.f32.mrf.mxu1  ;;  %v15167_v9 = vpop.f32.mrf.mxu0  ;;  %v18208_v59 = vld [vmem:[#allocation2 + $0x78] sm:$0xff]  ;;  %v18210_v58 = vld [vmem:[#allocation2 + $0x80] sm:$0xff]  ;;  %v3558_v34 = vadd.f32 %v18078_v57, %v3168_v39  ;;  %v22260_v49 = vld [vmem:[#allocation3_spill] sm:$0xff] }
 0x1dc   : > { %22253 = vst [vmem:[#allocation42_spill] sm:$0xff] %v18200_v5  ;;  %v4879_v62 = vld [vmem:[#allocation2 + $0x79] sm:$0xff]  ;;  %4103 = vst.msk [vmem:[#allocation2 + $0xa9] sm:$0xff] %vm582_vm1, %v21993_v2  ;;  %v21997_v35 = vmax.f32 %v18200_v5, 0.0  ;;  %v18218_v55 = vadd.f32 %v17965_v12, %v3946_v30  ;;  %v3949_v15 = vadd.f32 %v15167_v9, %v3559_v4  ;;  %15206 = vmatprep.mubr.msk.f32.mxu1 %vm582_vm1, %v18208_v59  ;;  %v4880_v21 = vld [vmem:[#allocation2 + $0x81] sm:$0xff] }
 0x1dd   : > { %15356 = vmatprep.mubr.msk.f32.mxu0 %vm582_vm1, %v4879_v62  ;;  %v2391_v40 = vadd.f32 %v22259_v36, %v2001_v37  ;;  %v22261_v57 = vld [vmem:[#allocation38_spill] sm:$0xff]  ;;  %v18227_v2 = vpop.f32.mrf.mxu1  ;;  %v3853_v31 = vpop.f32.mrf.mxu0  ;;  %15207 = vmatmul.mubr.msk.f32.gmra.mxu1 %vm582_vm1, %v18210_v58  ;;  %v3561_v4 = vadd.f32 %v18094_v38, %v3171_v47  ;;  %v5662_v48 = vld [vmem:[#allocation2 + $0x9a] sm:$0xff] }
 0x1de   : > { %22258 = vst [vmem:[#allocation13_spill] sm:$0xff] %v18218_v55  ;;  %v2782_v39 = vadd.f32 %v22261_v57, %v22260_v49  ;;  %v22262_v50 = vld [vmem:[#allocation50_spill] sm:$0xff]  ;;  %15357 = vmatmul.mubr.msk.f32.gmra.mxu0 %vm582_vm1, %v4880_v21  ;;  %4106 = vst.msk [vmem:[#allocation2 + $0xc9] sm:$0xff] %vm582_vm1, %v21997_v35  ;;  %v21998_v62 = vmax.f32 %v18218_v55, 0.0  ;;  %v18238_v30 = vadd.f32 %v17965_v12, %v3949_v15  ;;  %v22266_v49 = vld [vmem:[#allocation39_spill] sm:$0xff] }
 0x1df   : > { %v3170_v32 = vadd.f32 %v22262_v50, %v2779_v52  ;;  %v3948_v37 = vadd.f32 %v3853_v31, %v3558_v34  ;;  %v22264_v52 = vld [vmem:[#allocation15_spill] sm:$0xff]  ;;  %v22265_v9 = vld [vmem:[#allocation22_spill] sm:$0xff]  ;;  %v2781_v57 = vadd.f32 %v22266_v49, %v2391_v40  ;;  %v22267_v50 = vld [vmem:[#allocation52_spill] sm:$0xff]  ;;  %v15170_v21 = vpop.f32.mrf.mxu0 }
 0x1e0   : > { %22263 = vst [vmem:[#allocation20_spill] sm:$0xff] %v18238_v30  ;;  %v2003_v36 = vadd.f32 %v22265_v9, %v22264_v52  ;;  %v3173_v18 = vadd.f32 %v22267_v50, %v2782_v39  ;;  %v18244_v45 = vld [vmem:[#allocation2 + $0x90] sm:$0xff]  ;;  %v18246_v47 = vld [vmem:[#allocation2 + $0x98] sm:$0xff]  ;;  %4105 = vst.msk [vmem:[#allocation2 + $0xc1] sm:$0xff] %vm582_vm1, %v21998_v62  ;;  %v22002_v34 = vmax.f32 %v18238_v30, 0.0  ;;  %v3951_v15 = vadd.f32 %v15170_v21, %v3561_v4  ;;  %v18263_v62 = vpop.f32.mrf.mxu1 }
 0x1e1   : > { %v4881_v38 = vld [vmem:[#allocation2 + $0x91] sm:$0xff]  ;;  %v3560_v35 = vadd.f32 %v18114_v26, %v3170_v32  ;;  %v18254_v31 = vadd.f32 %v17965_v12, %v3948_v37  ;;  %15209 = vmatprep.mubr.msk.f32.mxu1 %vm582_vm1, %v18244_v45  ;;  %v4882_v40 = vld [vmem:[#allocation2 + $0x99] sm:$0xff]  ;;  %v22272_v49 = vld [vmem:[#allocation54_spill] sm:$0xff]  ;;  %v3863_v27 = vpop.f32.mrf.mxu0 }
 0x1e2   : > { %15359 = vmatprep.mubr.msk.f32.mxu0 %vm582_vm1, %v4881_v38  ;;  %v22269_v39 = vld [vmem:[#allocation5_spill] sm:$0xff]  ;;  %v22270_v9 = vld [vmem:[#allocation4_spill] sm:$0xff]  ;;  %v3172_v50 = vadd.f32 %v22272_v49, %v2781_v57  ;;  %15210 = vmatmul.mubr.msk.f32.gmra.mxu1 %vm582_vm1, %v18246_v47  ;;  %v3563_v4 = vadd.f32 %v18130_v54, %v3173_v18  ;;  %4108 = vst.msk [vmem:[#allocation2 + $0xe1] sm:$0xff] %vm582_vm1, %v22002_v34 }
 0x1e3   : > { %22268 = vst [vmem:[#allocation28_spill] sm:$0xff] %v18254_v31  ;;  %v2393_v52 = vadd.f32 %v22269_v39, %v2003_v36  ;;  %v22271_v26 = vld [vmem:[#allocation40_spill] sm:$0xff]  ;;  %15360 = vmatmul.mubr.msk.f32.gmra.mxu0 %vm582_vm1, %v4882_v40  ;;  %v22003_v37 = vmax.f32 %v18254_v31, 0.0  ;;  %v18274_v36 = vadd.f32 %v17965_v12, %v3951_v15  ;;  %v3950_v57 = vadd.f32 %v3863_v27, %v3560_v35  ;;  %v15173_v40 = vpop.f32.mrf.mxu0  ;;  %v18280_v53 = vld [vmem:[#allocation2 + $0xa8] sm:$0xff]  ;;  %v18282_v54 = vld [vmem:[#allocation2 + $0xb0] sm:$0xff] }
 0x1e4   : > { %v2784_v32 = vadd.f32 %v22271_v26, %v22270_v9  ;;  %v22274_v21 = vld [vmem:[#allocation16_spill] sm:$0xff]  ;;  %v22276_v9 = vld [vmem:[#allocation41_spill] sm:$0xff]  ;;  %v4883_v18 = vld [vmem:[#allocation2 + $0xa9] sm:$0xff]  ;;  %v3562_v34 = vadd.f32 %v18150_v13, %v3172_v50  ;;  %v3953_v15 = vadd.f32 %v15173_v40, %v3563_v4  ;;  %15212 = vmatprep.mubr.msk.f32.mxu1 %vm582_vm1, %v18280_v53 }
 0x1e5   : > { %22273 = vst [vmem:[#allocation35_spill] sm:$0xff] %v18274_v36  ;;  %v22275_v38 = vld [vmem:[#allocation24_spill] sm:$0xff]  ;;  %v2783_v26 = vadd.f32 %v22276_v9, %v2393_v52  ;;  %4107 = vst.msk [vmem:[#allocation2 + $0xd9] sm:$0xff] %vm582_vm1, %v22003_v37  ;;  %v22007_v27 = vmax.f32 %v18274_v36, 0.0  ;;  %v18290_v35 = vadd.f32 %v17965_v12, %v3950_v57  ;;  %15362 = vmatprep.mubr.msk.f32.mxu0 %vm582_vm1, %v4883_v18  ;;  %v22281_v13 = vld [vmem:[#allocation43_spill] sm:$0xff]  ;;  %v18299_v37 = vpop.f32.mrf.mxu1  ;;  %v3873_v43 = vpop.f32.mrf.mxu0 }
 0x1e6   : > { %v2005_v39 = vadd.f32 %v22275_v38, %v22274_v21  ;;  %v22277_v49 = vld [vmem:[#allocation56_spill] sm:$0xff]  ;;  %v22280_v38 = vld [vmem:[#allocation9_spill] sm:$0xff]  ;;  %v22282_v9 = vld [vmem:[#allocation58_spill] sm:$0xff]  ;;  %15213 = vmatmul.mubr.msk.f32.gmra.mxu1 %vm582_vm1, %v18282_v54 }
 0x1e7   : > { %v3175_v46 = vadd.f32 %v22277_v49, %v2784_v32  ;;  %22278 = vst [vmem:[#allocation44_spill] sm:$0xff] %v18290_v35  ;;  %v4884_v52 = vld [vmem:[#allocation2 + $0xb1] sm:$0xff]  ;;  %v22279_v32 = vld [vmem:[#allocation6_spill] sm:$0xff]  ;;  %v2786_v50 = vadd.f32 %v22281_v13, %v22280_v38  ;;  %v3174_v49 = vadd.f32 %v22282_v9, %v2783_v26  ;;  %4110 = vst.msk [vmem:[#allocation2 + $0xf9] sm:$0xff] %vm582_vm1, %v22007_v27  ;;  %v22008_v57 = vmax.f32 %v18290_v35, 0.0 }
 0x1e8   : > { %v2395_v21 = vadd.f32 %v22279_v32, %v2005_v39  ;;  %15363 = vmatmul.mubr.msk.f32.gmra.mxu0 %vm582_vm1, %v4884_v52  ;;  %v18310_v39 = vadd.f32 %v17965_v12, %v3953_v15  ;;  %v3952_v26 = vadd.f32 %v3873_v43, %v3562_v34  ;;  %v22284_v40 = vld [vmem:[#allocation17_spill] sm:$0xff]  ;;  %v22287_v9 = vld [vmem:[#allocation59_spill] sm:$0xff]  ;;  %v15176_v52 = vpop.f32.mrf.mxu0 }
 0x1e9   : > { %v3565_v4 = vadd.f32 %v18168_v3, %v3175_v46  ;;  %v22285_v18 = vld [vmem:[#allocation25_spill] sm:$0xff]  ;;  %v3177_v29 = vadd.f32 %v22287_v9, %v2786_v50  ;;  %v18320_v3 = vld [vmem:[#allocation2 + $0xc8] sm:$0xff]  ;;  %v3564_v27 = vadd.f32 %v18189_v42, %v3174_v49  ;;  %4109 = vst.msk [vmem:[#allocation2 + $0xf1] sm:$0xff] %vm582_vm1, %v22008_v57  ;;  %v22289_v50 = vld [vmem:[#allocation11_spill] sm:$0xff]  ;;  %v15135_v57 = vpop.f32.mrf.mxu1 }
 0x1ea   : > { %22283 = vst [vmem:[#allocation26_spill] sm:$0xff] %v18310_v39  ;;  %v2007_v32 = vadd.f32 %v22285_v18, %v22284_v40  ;;  %v22286_v38 = vld [vmem:[#allocation45_spill] sm:$0xff]  ;;  %v18328_v34 = vadd.f32 %v17965_v12, %v3952_v26  ;;  %v22290_v49 = vld [vmem:[#allocation10_spill] sm:$0xff]  ;;  %v22291_v40 = vld [vmem:[#allocation47_spill] sm:$0xff]  ;;  %v3883_v43 = vpop.f32.mrf.mxu0  ;;  %v22293_v26 = vmax.f32 %v18310_v39, 0.0 }
 0x1eb   : > { %v2785_v13 = vadd.f32 %v22286_v38, %v2395_v21  ;;  %v18316_v41 = vld [vmem:[#allocation2 + $0xc0] sm:$0xff]  ;;  %v3955_v15 = vadd.f32 %v15176_v52, %v3565_v4  ;;  %v18334_v21 = vld [vmem:[#allocation2 + $0xc9] sm:$0xff]  ;;  %v2788_v18 = vadd.f32 %v22291_v40, %v22290_v49  ;;  %v22292_v38 = vld [vmem:[#allocation60_spill] sm:$0xff]  ;;  %v3567_v4 = vadd.f32 %v18206_v19, %v3177_v29 }
 0x1ec   : > { %v18318_v46 = vld [vmem:[#allocation2 + $0xc1] sm:$0xff]  ;;  %22288 = vst [vmem:[#allocation29_spill] sm:$0xff] %v18328_v34  ;;  %15215 = vmatprep.mubr.msk.f32.mxu1 %vm582_vm1, %v18316_v41  ;;  %v2397_v42 = vadd.f32 %v22289_v50, %v2007_v32  ;;  %4112 = vst.msk [vmem:[#allocation2 + $0x111] sm:$0xff] %vm582_vm1, %v22293_v26  ;;  %v22014_v32 = vmax.f32 %v18328_v34, 0.0  ;;  %v22296_v49 = vld [vmem:[#allocation27_spill] sm:$0xff]  ;;  %v15179_v31 = vpop.f32.mrf.mxu0 }
 0x1ed   : > { %15365 = vmatprep.mubr.msk.f32.mxu0 %vm582_vm1, %v18318_v46  ;;  %v3176_v9 = vadd.f32 %v22292_v38, %v2785_v13  ;;  %15216 = vmatmul.mubr.msk.f32.gmra.mxu1 %vm582_vm1, %v18320_v3  ;;  %v18350_v52 = vadd.f32 %v17965_v12, %v3955_v15  ;;  %v3954_v13 = vadd.f32 %v3883_v43, %v3564_v27  ;;  %v22295_v50 = vld [vmem:[#allocation18_spill] sm:$0xff]  ;;  %v22297_v38 = vld [vmem:[#allocation49_spill] sm:$0xff]  ;;  %v18356_v5 = vld [vmem:[#allocation2 + $0xd8] sm:$0xff] }
 0x1ee   : > { %15366 = vmatmul.mubr.msk.f32.gmra.mxu0 %vm582_vm1, %v18334_v21  ;;  %v2009_v40 = vadd.f32 %v22296_v49, %v22295_v50  ;;  %v2787_v36 = vadd.f32 %v22297_v38, %v2397_v42  ;;  %v22298_v35 = vld [vmem:[#allocation61_spill] sm:$0xff]  ;;  %4111 = vst.msk [vmem:[#allocation2 + $0x109] sm:$0xff] %vm582_vm1, %v22014_v32  ;;  %v3957_v15 = vadd.f32 %v15179_v31, %v3567_v4  ;;  %v22300_v42 = vld [vmem:[#allocation30_spill] sm:$0xff]  ;;  %v3523_v32 = vpop.f32.mrf.mxu1  ;;  %v3893_v27 = vpop.f32.mrf.mxu0  ;;  %v22309_v34 = vld [vmem:[#allocation63_spill] sm:$0xff] }
 0x1ef   : > { %22294 = vst [vmem:[#allocation36_spill] sm:$0xff] %v18350_v52  ;;  %v3179_v30 = vadd.f32 %v22298_v35, %v2788_v18  ;;  %v18358_v29 = vld [vmem:[#allocation2 + $0xd9] sm:$0xff]  ;;  %v3566_v26 = vadd.f32 %v18227_v2, %v3176_v9  ;;  %v18368_v43 = vadd.f32 %v17965_v12, %v3954_v13  ;;  %15218 = vmatprep.mubr.msk.f32.mxu1 %vm582_vm1, %v18356_v5  ;;  %v18374_v35 = vld [vmem:[#allocation2 + $0xe1] sm:$0xff]  ;;  %v22302_v9 = vld [vmem:[#allocation51_spill] sm:$0xff]  ;;  %v22304_v4 = vmax.f32 %v18350_v52, 0.0 }
 0x1f0   : > { %v18360_v19 = vld [vmem:[#allocation2 + $0xe0] sm:$0xff]  ;;  %15368 = vmatprep.mubr.msk.f32.mxu0 %vm582_vm1, %v18358_v29  ;;  %v2399_v2 = vadd.f32 %v22300_v42, %v2009_v40  ;;  %v22301_v18 = vld [vmem:[#allocation12_spill] sm:$0xff]  ;;  %v22303_v49 = vld [vmem:[#allocation62_spill] sm:$0xff]  ;;  %v18390_v40 = vadd.f32 %v17965_v12, %v3957_v15  ;;  %v15182_v16 = vpop.f32.mrf.mxu0 }
 0x1f1   : > { %22299 = vst [vmem:[#allocation46_spill] sm:$0xff] %v18368_v43  ;;  %v2790_v50 = vadd.f32 %v22302_v9, %v22301_v18  ;;  %v3178_v38 = vadd.f32 %v22303_v49, %v2787_v36  ;;  %15219 = vmatmul.mubr.msk.f32.gmra.mxu1 %vm582_vm1, %v18360_v19  ;;  %v3569_v31 = vadd.f32 %v18263_v62, %v3179_v30  ;;  %4114 = vst.msk [vmem:[#allocation2 + $0x129] sm:$0xff] %vm582_vm1, %v22304_v4  ;;  %v22306_v42 = vld [vmem:[#allocation19_spill] sm:$0xff]  ;;  %v22307_v18 = vld [vmem:[#allocation8_spill] sm:$0xff] }
 0x1f2   : > { %15369 = vmatmul.mubr.msk.f32.gmra.mxu0 %vm582_vm1, %v18374_v35  ;;  %v22020_v13 = vmax.f32 %v18368_v43, 0.0  ;;  %22305 = vst [vmem:[#allocation14_spill] sm:$0xff] %v18390_v40  ;;  %v3956_v36 = vadd.f32 %v3893_v27, %v3566_v26  ;;  %v2011_v9 = vadd.f32 %v22307_v18, %v22306_v42  ;;  %v22308_v49 = vld [vmem:[#allocation53_spill] sm:$0xff]  ;;  %v18396_v23 = vld [vmem:[#allocation2 + $0xf0] sm:$0xff]  ;;  %v18400_v30 = vld [vmem:[#allocation2 + $0xf8] sm:$0xff]  ;;  %v3903_v26 = vpop.f32.mrf.mxu0 }
 0x1f3   : > { %v2789_v39 = vadd.f32 %v22308_v49, %v2399_v2  ;;  %v3181_v55 = vadd.f32 %v22309_v34, %v2790_v50  ;;  %v18398_v62 = vld [vmem:[#allocation2 + $0xf1] sm:$0xff]  ;;  %v3568_v4 = vadd.f32 %v18299_v37, %v3178_v38  ;;  %v3959_v15 = vadd.f32 %v15182_v16, %v3569_v31  ;;  %15221 = vmatprep.mubr.msk.f32.mxu1 %vm582_vm1, %v18396_v23  ;;  %v18414_v34 = vld [vmem:[#allocation2 + $0xf9] sm:$0xff]  ;;  %v5660_v33 = vld [vmem:[#allocation2 + $0x82] sm:$0xff] }
 0x1f4   : > { %4113 = vst.msk [vmem:[#allocation2 + $0x121] sm:$0xff] %vm582_vm1, %v22020_v13  ;;  %v18408_v27 = vadd.f32 %v17965_v12, %v3956_v36  ;;  %15371 = vmatprep.mubr.msk.f32.mxu0 %vm582_vm1, %v18398_v62  ;;  %v22311_v2 = vld [vmem:[#allocation32_spill] sm:$0xff]  ;;  %v22312_v50 = vld [vmem:[#allocation31_spill] sm:$0xff]  ;;  %v15138_v13 = vpop.f32.mrf.mxu1  ;;  %v22315_v31 = vmax.f32 %v18390_v40, 0.0 }
 0x1f5   : > { %v2401_v37 = vadd.f32 %v22311_v2, %v2011_v9  ;;  %v22313_v38 = vld [vmem:[#allocation55_spill] sm:$0xff]  ;;  %v22314_v18 = vld [vmem:[#allocation64_spill] sm:$0xff]  ;;  %15222 = vmatmul.mubr.msk.f32.gmra.mxu1 %vm582_vm1, %v18400_v30  ;;  %v3571_v16 = vadd.f32 %v15135_v57, %v3181_v55  ;;  %v18429_v9 = vadd.f32 %v17965_v12, %v3959_v15  ;;  %v3958_v2 = vadd.f32 %v3903_v26, %v3568_v4  ;;  %v18433_v52 = vld [vmem:[#allocation2 + $0x108] sm:$0xff] }
 0x1f6   : > { %22310 = vst [vmem:[#allocation21_spill] sm:$0xff] %v18408_v27  ;;  %v2792_v42 = vadd.f32 %v22313_v38, %v22312_v50  ;;  %v3180_v49 = vadd.f32 %v22314_v18, %v2789_v39  ;;  %15372 = vmatmul.mubr.msk.f32.gmra.mxu0 %vm582_vm1, %v18414_v34  ;;  %4116 = vst.msk [vmem:[#allocation2 + $0x141] sm:$0xff] %vm582_vm1, %v22315_v31  ;;  %v22023_v36 = vmax.f32 %v18408_v27, 0.0  ;;  %v22317_v39 = vld [vmem:[#allocation57_spill] sm:$0xff]  ;;  %v15185_v18 = vpop.f32.mrf.mxu0  ;;  %v18435_v43 = vld [vmem:[#allocation2 + $0x109] sm:$0xff]  ;;  %15224 = vmatprep.mubr.msk.f32.mxu1 %vm582_vm1, %v18433_v52 }
 0x1f7   : > { %22316 = vst [vmem:[#allocation37_spill] sm:$0xff] %v18429_v9  ;;  %v2791_v50 = vadd.f32 %v22317_v39, %v2401_v37  ;;  %v18437_v55 = vld [vmem:[#allocation2 + $0x110] sm:$0xff]  ;;  %v22025_v15 = vmax.f32 %v18429_v9, 0.0  ;;  %v18444_v4 = vadd.f32 %v17965_v12, %v3958_v2  ;;  %v3961_v26 = vadd.f32 %v15185_v18, %v3571_v16  ;;  %15374 = vmatprep.mubr.msk.f32.mxu0 %vm582_vm1, %v18435_v43  ;;  %v22319_v37 = vld [vmem:[#allocation65_spill] sm:$0xff] }
 0x1f8   : > { %v3183_v38 = vadd.f32 %v17950_v61, %v2792_v42  ;;  %v3570_v57 = vadd.f32 %v3523_v32, %v3180_v49  ;;  %4115 = vst.msk [vmem:[#allocation2 + $0x139] sm:$0xff] %vm582_vm1, %v22023_v36  ;;  %v18450_v61 = vld [vmem:[#allocation2 + $0x111] sm:$0xff]  ;;  %v3533_v42 = vpop.f32.mrf.mxu1  ;;  %v3913_v49 = vpop.f32.mrf.mxu0 }
 0x1f9   : > { %22318 = vst [vmem:[#allocation48_spill] sm:$0xff] %v18444_v4  ;;  %v3182_v32 = vadd.f32 %v22319_v37, %v2791_v50  ;;  %15225 = vmatmul.mubr.msk.f32.gmra.mxu1 %vm582_vm1, %v18437_v55  ;;  %4118 = vst.msk [vmem:[#allocation2 + $0x159] sm:$0xff] %vm582_vm1, %v22025_v15  ;;  %v22026_v16 = vmax.f32 %v18444_v4, 0.0  ;;  %v18462_v2 = vadd.f32 %v17965_v12, %v3961_v26  ;;  %v4838_v4 = vld [vmem:[%s17482_s24 + $0x9] sm:$0xff]  ;;  %v5664_v51 = vld [vmem:[#allocation2 + $0xb2] sm:$0xff] }
 0x1fa   : > { %15375 = vmatmul.mubr.msk.f32.gmra.mxu0 %vm582_vm1, %v18450_v61  ;;  %v3573_v31 = vadd.f32 %v15138_v13, %v3183_v38  ;;  %v3960_v39 = vadd.f32 %v3913_v49, %v3570_v57  ;;  %v15188_v50 = vpop.f32.mrf.mxu0  ;;  %v18481_v57 = vld [vmem:[#allocation2 + $0x129] sm:$0xff] }
 0x1fb   : > { %22320 = vst [vmem:[#allocation7_spill] sm:$0xff] %v18462_v2  ;;  %v18464_v18 = vld [vmem:[#allocation2 + $0x120] sm:$0xff]  ;;  %v18468_v36 = vld [vmem:[#allocation2 + $0x128] sm:$0xff]  ;;  %v3572_v40 = vadd.f32 %v3533_v42, %v3182_v32  ;;  %4117 = vst.msk [vmem:[#allocation2 + $0x151] sm:$0xff] %vm582_vm1, %v22026_v16  ;;  %v22027_v13 = vmax.f32 %v18462_v2, 0.0  ;;  %v15193_v20 = vpop.f32.mrf.mxu1 }
 0x1fc   : > { %v18466_v37 = vld [vmem:[#allocation2 + $0x121] sm:$0xff]  ;;  %v18475_v38 = vadd.f32 %v17965_v12, %v3960_v39  ;;  %v3963_v26 = vadd.f32 %v15188_v50, %v3573_v31  ;;  %15227 = vmatprep.mubr.msk.f32.mxu1 %vm582_vm1, %v18464_v18  ;;  %v3923_v49 = vpop.f32.mrf.mxu0  ;;  %v5650_v27 = vld [vmem:[#allocation2 + $0xa] sm:$0xff] }
 0x1fd   : > { %15377 = vmatprep.mubr.msk.f32.mxu0 %vm582_vm1, %v18466_v37  ;;  %15228 = vmatmul.mubr.msk.f32.gmra.mxu1 %vm582_vm1, %v18468_v36  ;;  %4120 = vst.msk [vmem:[#allocation2 + $0x171] sm:$0xff] %vm582_vm1, %v22027_v13  ;;  %v3962_v31 = vadd.f32 %v3923_v49, %v3572_v40  ;;  %v18511_v40 = vld [vmem:[#allocation2 + $0x141] sm:$0xff]  ;;  %v5666_v14 = vld [vmem:[#allocation2 + $0xca] sm:$0xff] }
 0x1fe   : > { %22321 = vst [vmem:[#allocation3_spill] sm:$0xff] %v18475_v38  ;;  %15378 = vmatmul.mubr.msk.f32.gmra.mxu0 %vm582_vm1, %v18481_v57  ;;  %v22028_v32 = vmax.f32 %v18475_v38, 0.0  ;;  %v18492_v42 = vadd.f32 %v17965_v12, %v3963_v26  ;;  %v15243_v9 = vpop.f32.mrf.mxu0 }
 0x1ff   : > { %v18494_v39 = vld [vmem:[#allocation2 + $0x138] sm:$0xff]  ;;  %v18498_v15 = vld [vmem:[#allocation2 + $0x140] sm:$0xff]  ;;  %v18505_v13 = vadd.f32 %v17965_v12, %v3962_v31  ;;  %v18563_v1 = vadd.f32 %v15243_v9, %v15193_v20 }
 0x200   : > { %22322 = vst [vmem:[#allocation38_spill] sm:$0xff] %v18492_v42  ;;  %v18496_v50 = vld [vmem:[#allocation2 + $0x139] sm:$0xff]  ;;  %4119 = vst.msk [vmem:[#allocation2 + $0x169] sm:$0xff] %vm582_vm1, %v22028_v32  ;;  %v22029_v16 = vmax.f32 %v18492_v42, 0.0  ;;  %15230 = vmatprep.mubr.msk.f32.mxu1 %vm582_vm1, %v18494_v39  ;;  %v5649_v42 = vld [vmem:[#allocation2 + $0x2] sm:$0xff] }
 0x201   : > { %22323 = vst [vmem:[#allocation50_spill] sm:$0xff] %v18505_v13  ;;  %15380 = vmatprep.mubr.msk.f32.mxu0 %vm582_vm1, %v18496_v50  ;;  %15231 = vmatmul.mubr.msk.f32.gmra.mxu1 %vm582_vm1, %v18498_v15  ;;  %v22032_v12 = vmax.f32 %v18505_v13, 0.0  ;;  %v18534_v32 = vld [vmem:[#allocation2 + $0x159] sm:$0xff]  ;;  %v5652_v20 = vld [vmem:[#allocation2 + $0x22] sm:$0xff] }
 0x202   : > { %15381 = vmatmul.mubr.msk.f32.gmra.mxu0 %vm582_vm1, %v18511_v40  ;;  %4122 = vst.msk [vmem:[#allocation2 + $0x189] sm:$0xff] %vm582_vm1, %v22029_v16  ;;  %v18521_v26 = vld [vmem:[#allocation2 + $0x150] sm:$0xff]  ;;  %v18525_v31 = vld [vmem:[#allocation2 + $0x158] sm:$0xff]  ;;  %v4837_v16 = vld [vmem:[%s17482_s24 + $0x1] sm:$0xff] }
 0x203   : > { %v18523_v49 = vld [vmem:[#allocation2 + $0x151] sm:$0xff]  ;;  %4121 = vst.msk [vmem:[#allocation2 + $0x181] sm:$0xff] %vm582_vm1, %v22032_v12  ;;  %15233 = vmatprep.mubr.msk.f32.mxu1 %vm582_vm1, %v18521_v26  ;;  %v4842_v9 = vld [vmem:[%s17482_s24 + $0x39] sm:$0xff] }
 0x204   : > { %15383 = vmatprep.mubr.msk.f32.mxu0 %vm582_vm1, %v18523_v49  ;;  %v4900_v38 = vld [vmem:[#allocation2 + $0x171] sm:$0xff] }
 0x205   : > { %15234 = vmatmul.mubr.msk.f32.gmra.mxu1 %vm582_vm1, %v18525_v31 }
 0x206   : > { %15384 = vmatmul.mubr.msk.f32.gmra.mxu0 %vm582_vm1, %v18534_v32 }
 0x207   : > { %v18541_v13 = vld [vmem:[#allocation2 + $0x168] sm:$0xff]  ;;  %v18545_v2 = vld [vmem:[#allocation2 + $0x170] sm:$0xff] }
 0x208   : > { %v18543_v12 = vld [vmem:[#allocation2 + $0x169] sm:$0xff]  ;;  %15236 = vmatprep.mubr.msk.f32.mxu1 %vm582_vm1, %v18541_v13 }
 0x209   : > { %15386 = vmatprep.mubr.msk.f32.mxu0 %vm582_vm1, %v18543_v12  ;;  %15237 = vmatmul.mubr.msk.f32.gmra.mxu1 %vm582_vm1, %v18545_v2 }
 0x20a   : > { %15387 = vmatmul.mubr.msk.f32.gmra.mxu0 %vm582_vm1, %v4900_v38  ;;  %15291 = vmatprep.mubr.msk.f32.mxu1 %vm582_vm1, %v4837_v16  ;;  %v5651_v38 = vld [vmem:[#allocation2 + $0x1a] sm:$0xff]  ;;  %v18567_v16 = vpop.f32.mrf.mxu0 }
 0x20b   : > { %15441 = vmatprep.mubr.msk.f32.mxu0 %vm582_vm1, %v5649_v42  ;;  %22324 = vst [vmem:[#allocation15_spill] sm:$0xff] %v18567_v16  ;;  %v4840_v42 = vld [vmem:[%s17482_s24 + $0x21] sm:$0xff] }
 0x20c   : > { %v5668_v16 = vld [vmem:[#allocation2 + $0xe2] sm:$0xff] }
 0x20d   : > { %15292 = vmatmul.mubr.msk.f32.vlgmr.msra.gmra.mxu1 %vm582_vm1, %v4838_v4  ;;  %v5654_v4 = vld [vmem:[#allocation2 + $0x3a] sm:$0xff] }
 0x20e   : > { %15442 = vmatmul.mubr.msk.f32.vlgmr.msra.gmra.mxu0 %vm582_vm1, %v5650_v27  ;;  %15390 = vmatpush3.msk.msra.mxu1 %vm679_vm0, %v22325_v8  ;;  %v18582_v27 = vld [vmem:[%s21925_s5 + $0x10] sm:$0xf] }
 0x20f   : > { %15444 = vmatprep.mubr.msk.f32.mxu0 %vm582_vm1, %v5651_v38  ;;  %15294 = vmatprep.mubr.msk.f32.mxu1 %vm582_vm1, %v4839_v0  ;;  %v5653_v8 = vld [vmem:[#allocation2 + $0x32] sm:$0xff]  ;;  %v18586_v0 = vpop.f32.mrf.mxu0  ;;  %v5655_v38 = vld [vmem:[#allocation2 + $0x4a] sm:$0xff] }
 0x210   : > { %15489 = vmatprep.subr.msk.mxu1 %vm679_vm0, %v18561_v44  ;;  %15540 = vmatpush3.msk.msra.mxu0 %vm679_vm0, %v18026_v7  ;;  %v4843_v7 = vld [vmem:[%s17482_s24 + $0x49] sm:$0xff] }
 0x211   : > { %15295 = vmatmul.mubr.msk.f32.gmra.mxu1 %vm582_vm1, %v4840_v42  ;;  %15639 = vmatprep.subr.msk.mxu0 %vm679_vm0, %v18582_v27  ;;  %v18596_v42 = vpop.f32.mrf.mxu0 }
 0x212   : > { %15445 = vmatmul.mubr.msk.f32.gmra.mxu0 %vm582_vm1, %v5652_v20  ;;  %15297 = vmatprep.mubr.msk.f32.mxu1 %vm582_vm1, %v4841_v22  ;;  %v4844_v22 = vld [vmem:[%s17482_s24 + $0x51] sm:$0xff]  ;;  %v4845_v20 = vld [vmem:[%s17482_s24 + $0x61] sm:$0xff] }
 0x213   : > { %15447 = vmatprep.mubr.msk.f32.mxu0 %vm582_vm1, %v5653_v8  ;;  %v5656_v8 = vld [vmem:[#allocation2 + $0x52] sm:$0xff]  ;;  %v18604_v25 = vpop.f32.mrf.mxu0 }
 0x215   : > { %15298 = vmatmul.mubr.msk.f32.gmra.mxu1 %vm582_vm1, %v4842_v9  ;;  %v5657_v9 = vld [vmem:[#allocation2 + $0x62] sm:$0xff] }
 0x216   : > { %15448 = vmatmul.mubr.msk.f32.gmra.mxu0 %vm582_vm1, %v5654_v4  ;;  %15300 = vmatprep.mubr.msk.f32.mxu1 %vm582_vm1, %v4843_v7  ;;  %v4846_v4 = vld [vmem:[%s17482_s24 + $0x69] sm:$0xff]  ;;  %v5659_v7 = vld [vmem:[#allocation2 + $0x7a] sm:$0xff] }
 0x217   : > { %15450 = vmatprep.mubr.msk.f32.mxu0 %vm582_vm1, %v5655_v38  ;;  %v4847_v38 = vld [vmem:[%s17482_s24 + $0x79] sm:$0xff] }
 0x219   : > { %15301 = vmatmul.mubr.msk.f32.gmra.mxu1 %vm582_vm1, %v4844_v22  ;;  %v18612_v22 = vpop.f32.mrf.mxu0 }
 0x21a   : > { %15451 = vmatmul.mubr.msk.f32.gmra.mxu0 %vm582_vm1, %v5656_v8  ;;  %15303 = vmatprep.mubr.msk.f32.mxu1 %vm582_vm1, %v4845_v20  ;;  %v4848_v8 = vld [vmem:[%s17482_s24 + $0x81] sm:$0xff]  ;;  %v5661_v20 = vld [vmem:[#allocation2 + $0x92] sm:$0xff] }
 0x21b   : > { %15453 = vmatprep.mubr.msk.f32.mxu0 %vm582_vm1, %v5657_v9  ;;  %v4849_v9 = vld [vmem:[%s17482_s24 + $0x91] sm:$0xff] }
 0x21d   : > { %15304 = vmatmul.mubr.msk.f32.gmra.mxu1 %vm582_vm1, %v4846_v4  ;;  %v18620_v4 = vpop.f32.mrf.mxu0 }
 0x21e   : > { %15454 = vmatmul.mubr.msk.f32.gmra.mxu0 %vm582_vm1, %v5658_v63  ;;  %15306 = vmatprep.mubr.msk.f32.mxu1 %vm582_vm1, %v4847_v38  ;;  %v4850_v63 = vld [vmem:[%s17482_s24 + $0x99] sm:$0xff]  ;;  %v5663_v38 = vld [vmem:[#allocation2 + $0xaa] sm:$0xff] }
 0x21f   : > { %15456 = vmatprep.mubr.msk.f32.mxu0 %vm582_vm1, %v5659_v7  ;;  %v4851_v7 = vld [vmem:[%s17482_s24 + $0xa9] sm:$0xff] }
 0x221   : > { %15307 = vmatmul.mubr.msk.f32.gmra.mxu1 %vm582_vm1, %v4848_v8  ;;  %v18628_v8 = vpop.f32.mrf.mxu0 }
 0x222   : > { %15457 = vmatmul.mubr.msk.f32.gmra.mxu0 %vm582_vm1, %v5660_v33  ;;  %15309 = vmatprep.mubr.msk.f32.mxu1 %vm582_vm1, %v4849_v9  ;;  %v4852_v33 = vld [vmem:[%s17482_s24 + $0xb1] sm:$0xff]  ;;  %v5665_v9 = vld [vmem:[#allocation2 + $0xc2] sm:$0xff] }
 0x223   : > { %15459 = vmatprep.mubr.msk.f32.mxu0 %vm582_vm1, %v5661_v20  ;;  %v4853_v20 = vld [vmem:[%s17482_s24 + $0xc1] sm:$0xff] }
 0x225   : > { %15310 = vmatmul.mubr.msk.f32.gmra.mxu1 %vm582_vm1, %v4850_v63  ;;  %v18636_v63 = vpop.f32.mrf.mxu0 }
 0x226   : > { %15460 = vmatmul.mubr.msk.f32.gmra.mxu0 %vm582_vm1, %v5662_v48  ;;  %15312 = vmatprep.mubr.msk.f32.mxu1 %vm582_vm1, %v4851_v7  ;;  %v4854_v48 = vld [vmem:[%s17482_s24 + $0xc9] sm:$0xff]  ;;  %v5667_v7 = vld [vmem:[#allocation2 + $0xda] sm:$0xff] }
 0x227   : > { %15462 = vmatprep.mubr.msk.f32.mxu0 %vm582_vm1, %v5663_v38  ;;  %v4855_v38 = vld [vmem:[%s17482_s24 + $0xd9] sm:$0xff] }
 0x229   : > { %15313 = vmatmul.mubr.msk.f32.gmra.mxu1 %vm582_vm1, %v4852_v33  ;;  %v18644_v33 = vpop.f32.mrf.mxu0 }
 0x22a   : > { %15463 = vmatmul.mubr.msk.f32.gmra.mxu0 %vm582_vm1, %v5664_v51  ;;  %15315 = vmatprep.mubr.msk.f32.mxu1 %vm582_vm1, %v4853_v20  ;;  %22326 = vst [vmem:[#allocation22_spill] sm:$0xff] %v18644_v33  ;;  %v4856_v51 = vld [vmem:[%s17482_s24 + $0xe1] sm:$0xff]  ;;  %v5669_v20 = vld [vmem:[#allocation2 + $0xf2] sm:$0xff] }
 0x22b   : > { %15465 = vmatprep.mubr.msk.f32.mxu0 %vm582_vm1, %v5665_v9  ;;  %v4857_v9 = vld [vmem:[%s17482_s24 + $0xf1] sm:$0xff]  ;;  %v5670_v33 = vld [vmem:[#allocation2 + $0xfa] sm:$0xff] }
 0x22d   : > { %15316 = vmatmul.mubr.msk.f32.gmra.mxu1 %vm582_vm1, %v4854_v48  ;;  %v18652_v48 = vpop.f32.mrf.mxu0 }
 0x22e   : > { %15466 = vmatmul.mubr.msk.f32.gmra.mxu0 %vm582_vm1, %v5666_v14  ;;  %15318 = vmatprep.mubr.msk.f32.mxu1 %vm582_vm1, %v4855_v38  ;;  %22327 = vst [vmem:[#allocation39_spill] sm:$0xff] %v18652_v48  ;;  %v4858_v14 = vld [vmem:[%s17482_s24 + $0xf9] sm:$0xff]  ;;  %v5671_v38 = vld [vmem:[#allocation2 + $0x10a] sm:$0xff] }
 0x22f   : > { %15468 = vmatprep.mubr.msk.f32.mxu0 %vm582_vm1, %v5667_v7  ;;  %v4859_v7 = vld [vmem:[%s17482_s24 + $0x109] sm:$0xff]  ;;  %v5672_v48 = vld [vmem:[#allocation2 + $0x112] sm:$0xff] }
 0x231   : > { %15319 = vmatmul.mubr.msk.f32.gmra.mxu1 %vm582_vm1, %v4856_v51  ;;  %v18660_v51 = vpop.f32.mrf.mxu0 }
 0x232   : > { %15469 = vmatmul.mubr.msk.f32.gmra.mxu0 %vm582_vm1, %v5668_v16  ;;  %15321 = vmatprep.mubr.msk.f32.mxu1 %vm582_vm1, %v4857_v9  ;;  %22328 = vst [vmem:[#allocation52_spill] sm:$0xff] %v18660_v51  ;;  %v4860_v16 = vld [vmem:[%s17482_s24 + $0x111] sm:$0xff]  ;;  %v5673_v9 = vld [vmem:[#allocation2 + $0x122] sm:$0xff] }
 0x233   : > { %15471 = vmatprep.mubr.msk.f32.mxu0 %vm582_vm1, %v5669_v20  ;;  %v4861_v20 = vld [vmem:[%s17482_s24 + $0x121] sm:$0xff]  ;;  %v5674_v51 = vld [vmem:[#allocation2 + $0x12a] sm:$0xff] }
 0x235   : > { %15322 = vmatmul.mubr.msk.f32.gmra.mxu1 %vm582_vm1, %v4858_v14  ;;  %v18668_v14 = vpop.f32.mrf.mxu0 }
 0x236   : > { %15472 = vmatmul.mubr.msk.f32.gmra.mxu0 %vm582_vm1, %v5670_v33  ;;  %15324 = vmatprep.mubr.msk.f32.mxu1 %vm582_vm1, %v4859_v7  ;;  %22329 = vst [vmem:[#allocation5_spill] sm:$0xff] %v18668_v14  ;;  %v4862_v33 = vld [vmem:[%s17482_s24 + $0x129] sm:$0xff]  ;;  %v5675_v7 = vld [vmem:[#allocation2 + $0x13a] sm:$0xff] }
 0x237   : > { %15474 = vmatprep.mubr.msk.f32.mxu0 %vm582_vm1, %v5671_v38  ;;  %v4863_v38 = vld [vmem:[%s17482_s24 + $0x139] sm:$0xff]  ;;  %v5676_v14 = vld [vmem:[#allocation2 + $0x142] sm:$0xff] }
 0x239   : > { %15325 = vmatmul.mubr.msk.f32.gmra.mxu1 %vm582_vm1, %v4860_v16  ;;  %v18676_v16 = vpop.f32.mrf.mxu0 }
 0x23a   : > { %15475 = vmatmul.mubr.msk.f32.gmra.mxu0 %vm582_vm1, %v5672_v48  ;;  %15327 = vmatprep.mubr.msk.f32.mxu1 %vm582_vm1, %v4861_v20  ;;  %22330 = vst [vmem:[#allocation4_spill] sm:$0xff] %v18676_v16  ;;  %v4864_v48 = vld [vmem:[%s17482_s24 + $0x141] sm:$0xff]  ;;  %v5677_v20 = vld [vmem:[#allocation2 + $0x152] sm:$0xff] }
 0x23b   : > { %15477 = vmatprep.mubr.msk.f32.mxu0 %vm582_vm1, %v5673_v9  ;;  %v4865_v9 = vld [vmem:[%s17482_s24 + $0x151] sm:$0xff] }
 0x23d   : > { %15328 = vmatmul.mubr.msk.f32.gmra.mxu1 %vm582_vm1, %v4862_v33  ;;  %v18684_v33 = vpop.f32.mrf.mxu0 }
 0x23e   : > { %15478 = vmatmul.mubr.msk.f32.gmra.mxu0 %vm582_vm1, %v5674_v51  ;;  %15330 = vmatprep.mubr.msk.f32.mxu1 %vm582_vm1, %v4863_v38  ;;  %22331 = vst [vmem:[#allocation40_spill] sm:$0xff] %v18684_v33  ;;  %v4866_v51 = vld [vmem:[%s17482_s24 + $0x159] sm:$0xff] }
 0x23f   : > { %15480 = vmatprep.mubr.msk.f32.mxu0 %vm582_vm1, %v5675_v7  ;;  %v4867_v7 = vld [vmem:[%s17482_s24 + $0x169] sm:$0xff]  ;;  %v5678_v38 = vld [vmem:[#allocation2 + $0x15a] sm:$0xff]  ;;  %v18692_v16 = vpop.f32.mrf.mxu0 }
 0x241   : > { %15331 = vmatmul.mubr.msk.f32.gmra.mxu1 %vm582_vm1, %v4864_v48  ;;  %v5679_v48 = vld [vmem:[#allocation2 + $0x16a] sm:$0xff]  ;;  %v18700_v33 = vpop.f32.mrf.mxu0 }
 0x242   : > { %15481 = vmatmul.mubr.msk.f32.gmra.mxu0 %vm582_vm1, %v5676_v14  ;;  %15333 = vmatprep.mubr.msk.f32.mxu1 %vm582_vm1, %v4865_v9  ;;  %v4868_v14 = vld [vmem:[%s17482_s24 + $0x171] sm:$0xff] }
 0x243   : > { %15483 = vmatprep.mubr.msk.f32.mxu0 %vm582_vm1, %v5677_v20  ;;  %v5617_v20 = vld [vmem:[%s17482_s24 + $0x2] sm:$0xff]  ;;  %v5680_v9 = vld [vmem:[#allocation2 + $0x172] sm:$0xff] }
 0x245   : > { %15334 = vmatmul.mubr.msk.f32.gmra.mxu1 %vm582_vm1, %v4866_v51  ;;  %v5618_v51 = vld [vmem:[%s17482_s24 + $0xa] sm:$0xff] }
 0x246   : > { %15484 = vmatmul.mubr.msk.f32.gmra.mxu0 %vm582_vm1, %v5678_v38  ;;  %15336 = vmatprep.mubr.msk.f32.mxu1 %vm582_vm1, %v4867_v7  ;;  %v5619_v38 = vld [vmem:[%s17482_s24 + $0x1a] sm:$0xff]  ;;  %v18710_v7 = vld [vmem:[%s21924_s4 + $0x10] sm:$0xf] }
 0x247   : > { %15486 = vmatprep.mubr.msk.f32.mxu0 %vm582_vm1, %v5679_v48  ;;  %v18715_v48 = vpop.f32.mrf.mxu0 }
 0x249   : > { %15337 = vmatmul.mubr.msk.f32.gmra.mxu1 %vm582_vm1, %v4868_v14  ;;  %v5621_v14 = vld [vmem:[%s17482_s24 + $0x32] sm:$0xff] }
 0x24a   : > { %15487 = vmatmul.mubr.msk.f32.gmra.mxu0 %vm582_vm1, %v5680_v9  ;;  %15391 = vmatprep.mubr.msk.f32.mxu1 %vm582_vm1, %v5617_v20  ;;  %v5625_v20 = vld [vmem:[%s17482_s24 + $0x62] sm:$0xff] }
 0x24b   : > { %15541 = vmatprep.mubr.msk.f32.mxu0 %vm582_vm1, %v18060_v11  ;;  %v5620_v11 = vld [vmem:[%s17482_s24 + $0x22] sm:$0xff] }
 0x24d   : > { %15392 = vmatmul.mubr.msk.f32.vlgmr.msra.gmra.mxu1 %vm582_vm1, %v5618_v51 }
 0x24e   : > { %15542 = vmatmul.mubr.msk.f32.vlgmr.msra.gmra.mxu0 %vm582_vm1, %v18062_v6  ;;  %15490 = vmatpush3.msk.msra.mxu1 %vm679_vm0, %v18561_v44  ;;  %v18731_v6 = vld [vmem:[%s21925_s5 + $0x14] sm:$0xf]  ;;  %v18736_v44 = vpop.f32.mrf.mxu0 }
 0x24f   : > { %15544 = vmatprep.mubr.msk.f32.mxu0 %vm582_vm1, %v18096_v56  ;;  %15394 = vmatprep.mubr.msk.f32.mxu1 %vm582_vm1, %v5619_v38  ;;  %v5622_v56 = vld [vmem:[%s17482_s24 + $0x3a] sm:$0xff] }
 0x250   : > { %15589 = vmatprep.subr.msk.mxu1 %vm679_vm0, %v18710_v7  ;;  %15640 = vmatpush3.msk.msra.mxu0 %vm679_vm0, %v18582_v27  ;;  %v5623_v27 = vld [vmem:[%s17482_s24 + $0x4a] sm:$0xff] }
 0x251   : > { %15395 = vmatmul.mubr.msk.f32.gmra.mxu1 %vm582_vm1, %v5620_v11  ;;  %15739 = vmatprep.subr.msk.mxu0 %vm679_vm0, %v18731_v6 }
 0x252   : > { %15545 = vmatmul.mubr.msk.f32.gmra.mxu0 %vm582_vm1, %v18098_v24  ;;  %15397 = vmatprep.mubr.msk.f32.mxu1 %vm582_vm1, %v5621_v14  ;;  %v18748_v24 = vpop.f32.mrf.mxu0 }
 0x253   : > { %15547 = vmatprep.mubr.msk.f32.mxu0 %vm582_vm1, %v18132_v28  ;;  %v5624_v28 = vld [vmem:[%s17482_s24 + $0x52] sm:$0xff] }
 0x254   : > { %v18758_v9 = vpop.f32.mrf.mxu0 }
 0x255   : > { %15398 = vmatmul.mubr.msk.f32.gmra.mxu1 %vm582_vm1, %v5622_v56 }
 0x256   : > { %15548 = vmatmul.mubr.msk.f32.gmra.mxu0 %vm582_vm1, %v18134_v10  ;;  %15400 = vmatprep.mubr.msk.f32.mxu1 %vm582_vm1, %v5623_v27  ;;  %v5626_v10 = vld [vmem:[%s17482_s24 + $0x6a] sm:$0xff]  ;;  %v18768_v51 = vpop.f32.mrf.mxu0 }
 0x257   : > { %15550 = vmatprep.mubr.msk.f32.mxu0 %vm582_vm1, %v18170_v17  ;;  %v5627_v17 = vld [vmem:[%s17482_s24 + $0x7a] sm:$0xff] }
 0x258   : > { %v18778_v38 = vpop.f32.mrf.mxu0 }
 0x259   : > { %15401 = vmatmul.mubr.msk.f32.gmra.mxu1 %vm582_vm1, %v5624_v28 }
 0x25a   : > { %15551 = vmatmul.mubr.msk.f32.gmra.mxu0 %vm582_vm1, %v18172_v60  ;;  %15403 = vmatprep.mubr.msk.f32.mxu1 %vm582_vm1, %v5625_v20  ;;  %v5628_v60 = vld [vmem:[%s17482_s24 + $0x82] sm:$0xff]  ;;  %v18788_v11 = vpop.f32.mrf.mxu0 }
 0x25b   : > { %15553 = vmatprep.mubr.msk.f32.mxu0 %vm582_vm1, %v18208_v59  ;;  %v5629_v59 = vld [vmem:[%s17482_s24 + $0x92] sm:$0xff] }
 0x25c   : > { %v18798_v14 = vpop.f32.mrf.mxu0 }
 0x25d   : > { %15404 = vmatmul.mubr.msk.f32.gmra.mxu1 %vm582_vm1, %v5626_v10 }
 0x25e   : > { %15554 = vmatmul.mubr.msk.f32.gmra.mxu0 %vm582_vm1, %v18210_v58  ;;  %15406 = vmatprep.mubr.msk.f32.mxu1 %vm582_vm1, %v5627_v17  ;;  %v5631_v58 = vld [vmem:[%s17482_s24 + $0xaa] sm:$0xff]  ;;  %v18808_v56 = vpop.f32.mrf.mxu0 }
 0x25f   : > { %15556 = vmatprep.mubr.msk.f32.mxu0 %vm582_vm1, %v18244_v45  ;;  %v5630_v45 = vld [vmem:[%s17482_s24 + $0x9a] sm:$0xff] }
 0x260   : > { %v18818_v27 = vpop.f32.mrf.mxu0 }
 0x261   : > { %15407 = vmatmul.mubr.msk.f32.gmra.mxu1 %vm582_vm1, %v5628_v60  ;;  %v6460_v60 = vld [vmem:[#allocation2 + $0x180] sm:$0xff] }
 0x262   : > { %15557 = vmatmul.mubr.msk.f32.gmra.mxu0 %vm582_vm1, %v18246_v47  ;;  %15409 = vmatprep.mubr.msk.f32.mxu1 %vm582_vm1, %v5629_v59  ;;  %v5633_v47 = vld [vmem:[%s17482_s24 + $0xc2] sm:$0xff]  ;;  %v18828_v28 = vpop.f32.mrf.mxu0 }
 0x263   : > { %15559 = vmatprep.mubr.msk.f32.mxu0 %vm582_vm1, %v18280_v53  ;;  %v5632_v53 = vld [vmem:[%s17482_s24 + $0xb2] sm:$0xff] }
 0x264   : > { %v18838_v20 = vpop.f32.mrf.mxu0 }
 0x265   : > { %15410 = vmatmul.mubr.msk.f32.gmra.mxu1 %vm582_vm1, %v5630_v45  ;;  %v6461_v45 = vld [vmem:[#allocation2 + $0x188] sm:$0xff] }
 0x266   : > { %15560 = vmatmul.mubr.msk.f32.gmra.mxu0 %vm582_vm1, %v18282_v54  ;;  %15412 = vmatprep.mubr.msk.f32.mxu1 %vm582_vm1, %v5631_v58  ;;  %v5635_v54 = vld [vmem:[%s17482_s24 + $0xda] sm:$0xff]  ;;  %v18848_v10 = vpop.f32.mrf.mxu0 }
 0x267   : > { %15562 = vmatprep.mubr.msk.f32.mxu0 %vm582_vm1, %v18316_v41  ;;  %v5634_v41 = vld [vmem:[%s17482_s24 + $0xca] sm:$0xff]  ;;  %v7210_v58 = vld [vmem:[#allocation2 + $0x19] sm:$0xff] }
 0x268   : > { %v18858_v17 = vpop.f32.mrf.mxu0 }
 0x269   : > { %15413 = vmatmul.mubr.msk.f32.gmra.mxu1 %vm582_vm1, %v5632_v53  ;;  %22332 = vst [vmem:[#allocation54_spill] sm:$0xff] %v18858_v17 }
 0x26a   : > { %15563 = vmatmul.mubr.msk.f32.gmra.mxu0 %vm582_vm1, %v18320_v3  ;;  %15415 = vmatprep.mubr.msk.f32.mxu1 %vm582_vm1, %v5633_v47  ;;  %v5637_v3 = vld [vmem:[%s17482_s24 + $0xf2] sm:$0xff]  ;;  %v18868_v59 = vpop.f32.mrf.mxu0  ;;  %v7211_v47 = vld [vmem:[#allocation2 + $0x21] sm:$0xff] }
 0x26b   : > { %15565 = vmatprep.mubr.msk.f32.mxu0 %vm582_vm1, %v18356_v5  ;;  %v5636_v5 = vld [vmem:[%s17482_s24 + $0xe2] sm:$0xff]  ;;  %22333 = vst [vmem:[#allocation16_spill] sm:$0xff] %v18868_v59 }
 0x26c   : > { %v18876_v53 = vpop.f32.mrf.mxu0  ;;  %v7241_v59 = vld [vmem:[#allocation2 + $0x189] sm:$0xff] }
 0x26d   : > { %15416 = vmatmul.mubr.msk.f32.gmra.mxu1 %vm582_vm1, %v5634_v41  ;;  %22334 = vst [vmem:[#allocation24_spill] sm:$0xff] %v18876_v53  ;;  %v13183_v41 = vld [vmem:[%s17482_s24 + $0x30] sm:$0xff]  ;;  %v13281_v53 = vld [vmem:[%s17482_s24 + $0x19] sm:$0xff] }
 0x26e   : > { %15566 = vmatmul.mubr.msk.f32.gmra.mxu0 %vm582_vm1, %v18360_v19  ;;  %15418 = vmatprep.mubr.msk.f32.mxu1 %vm582_vm1, %v5635_v54  ;;  %v5639_v19 = vld [vmem:[%s17482_s24 + $0x10a] sm:$0xff]  ;;  %v18885_v54 = vld [vmem:[%s21924_s4 + $0x14] sm:$0xf] }
 0x26f   : > { %15568 = vmatprep.mubr.msk.f32.mxu0 %vm582_vm1, %v18396_v23  ;;  %v5638_v23 = vld [vmem:[%s17482_s24 + $0xfa] sm:$0xff] }
 0x271   : > { %15419 = vmatmul.mubr.msk.f32.gmra.mxu1 %vm582_vm1, %v5636_v5  ;;  %v7212_v5 = vld [vmem:[#allocation2 + $0x31] sm:$0xff] }
 0x272   : > { %15569 = vmatmul.mubr.msk.f32.gmra.mxu0 %vm582_vm1, %v18400_v30  ;;  %15421 = vmatprep.mubr.msk.f32.mxu1 %vm582_vm1, %v5637_v3  ;;  %v5641_v30 = vld [vmem:[%s17482_s24 + $0x122] sm:$0xff]  ;;  %v18889_v3 = vpop.f32.mrf.mxu0 }
 0x273   : > { %15571 = vmatprep.mubr.msk.f32.mxu0 %vm582_vm1, %v18433_v52  ;;  %v5640_v52 = vld [vmem:[%s17482_s24 + $0x112] sm:$0xff]  ;;  %22335 = vst [vmem:[#allocation41_spill] sm:$0xff] %v18889_v3 }
 0x275   : > { %15422 = vmatmul.mubr.msk.f32.gmra.mxu1 %vm582_vm1, %v5638_v23  ;;  %v13184_v23 = vld [vmem:[%s17482_s24 + $0x38] sm:$0xff] }
 0x276   : > { %15572 = vmatmul.mubr.msk.f32.gmra.mxu0 %vm582_vm1, %v18437_v55  ;;  %15424 = vmatprep.mubr.msk.f32.mxu1 %vm582_vm1, %v5639_v19  ;;  %v5642_v55 = vld [vmem:[%s17482_s24 + $0x12a] sm:$0xff]  ;;  %v18895_v19 = vpop.f32.mrf.mxu1 }
 0x277   : > { %15574 = vmatprep.mubr.msk.f32.mxu0 %vm582_vm1, %v18464_v18  ;;  %v5643_v18 = vld [vmem:[%s17482_s24 + $0x13a] sm:$0xff]  ;;  %22336 = vst [vmem:[#allocation56_spill] sm:$0xff] %v18895_v19 }
 0x279   : > { %15425 = vmatmul.mubr.msk.f32.gmra.mxu1 %vm582_vm1, %v5640_v52  ;;  %v13185_v52 = vld [vmem:[%s17482_s24 + $0x48] sm:$0xff] }
 0x27a   : > { %15575 = vmatmul.mubr.msk.f32.gmra.mxu0 %vm582_vm1, %v18468_v36  ;;  %15427 = vmatprep.mubr.msk.f32.mxu1 %vm582_vm1, %v5641_v30  ;;  %v5644_v36 = vld [vmem:[%s17482_s24 + $0x142] sm:$0xff]  ;;  %v7213_v30 = vld [vmem:[#allocation2 + $0x39] sm:$0xff] }
 0x27b   : > { %15577 = vmatprep.mubr.msk.f32.mxu0 %vm582_vm1, %v18494_v39  ;;  %v5645_v39 = vld [vmem:[%s17482_s24 + $0x152] sm:$0xff] }
 0x27d   : > { %15428 = vmatmul.mubr.msk.f32.gmra.mxu1 %vm582_vm1, %v5642_v55 }
 0x27e   : > { %15578 = vmatmul.mubr.msk.f32.gmra.mxu0 %vm582_vm1, %v18498_v15  ;;  %15430 = vmatprep.mubr.msk.f32.mxu1 %vm582_vm1, %v5643_v18  ;;  %v5646_v15 = vld [vmem:[%s17482_s24 + $0x15a] sm:$0xff] }
 0x27f   : > { %15580 = vmatprep.mubr.msk.f32.mxu0 %vm582_vm1, %v18521_v26  ;;  %v5647_v26 = vld [vmem:[%s17482_s24 + $0x16a] sm:$0xff] }
 0x281   : > { %15431 = vmatmul.mubr.msk.f32.gmra.mxu1 %vm582_vm1, %v5644_v36  ;;  %v7214_v36 = vld [vmem:[#allocation2 + $0x49] sm:$0xff] }
 0x282   : > { %15581 = vmatmul.mubr.msk.f32.gmra.mxu0 %vm582_vm1, %v18525_v31  ;;  %15433 = vmatprep.mubr.msk.f32.mxu1 %vm582_vm1, %v5645_v39  ;;  %v5648_v31 = vld [vmem:[%s17482_s24 + $0x172] sm:$0xff] }
 0x283   : > { %15583 = vmatprep.mubr.msk.f32.mxu0 %vm582_vm1, %v18541_v13  ;;  %v13181_v13 = vld [vmem:[%s17482_s24 + $0x18] sm:$0xff] }
 0x285   : > { %15434 = vmatmul.mubr.msk.f32.gmra.mxu1 %vm582_vm1, %v5646_v15 }
 0x286   : > { %15584 = vmatmul.mubr.msk.f32.gmra.mxu0 %vm582_vm1, %v18545_v2  ;;  %15436 = vmatprep.mubr.msk.f32.mxu1 %vm582_vm1, %v5647_v26  ;;  %v13182_v2 = vld [vmem:[%s17482_s24 + $0x20] sm:$0xff] }
 0x287   : > { %15586 = vmatprep.mubr.msk.f32.mxu0 %vm582_vm1, %v6460_v60  ;;  %v13187_v26 = vld [vmem:[%s17482_s24 + $0x60] sm:$0xff]  ;;  %v7215_v60 = vld [vmem:[#allocation2 + $0x51] sm:$0xff] }
 0x289   : > { %15437 = vmatmul.mubr.msk.f32.gmra.mxu1 %vm582_vm1, %v5648_v31 }
 0x28a   : > { %15587 = vmatmul.mubr.msk.f32.gmra.mxu0 %vm582_vm1, %v6461_v45  ;;  %15491 = vmatprep.mubr.msk.f32.mxu1 %vm582_vm1, %v13181_v13  ;;  %v7216_v45 = vld [vmem:[#allocation2 + $0x61] sm:$0xff] }
 0x28b   : > { %15641 = vmatprep.mubr.msk.f32.mxu0 %vm582_vm1, %v7210_v58  ;;  %v13188_v58 = vld [vmem:[%s17482_s24 + $0x68] sm:$0xff] }
 0x28d   : > { %15492 = vmatmul.mubr.msk.f32.vlgmr.msra.gmra.mxu1 %vm582_vm1, %v13182_v2  ;;  %v18908_v55 = vpop.f32.mrf.mxu1 }
 0x28e   : > { %15642 = vmatmul.mubr.msk.f32.vlgmr.msra.gmra.mxu0 %vm582_vm1, %v7211_v47  ;;  %15590 = vmatpush3.msk.msra.mxu1 %vm679_vm0, %v18710_v7  ;;  %v18906_v7 = vld [vmem:[%s21925_s5 + $0x18] sm:$0xf]  ;;  %v18910_v18 = vpop.f32.mrf.mxu0 }
 0x28f   : > { %15644 = vmatprep.mubr.msk.f32.mxu0 %vm582_vm1, %v7212_v5  ;;  %15494 = vmatprep.mubr.msk.f32.mxu1 %vm582_vm1, %v13183_v41  ;;  %22337 = vst [vmem:[#allocation6_spill] sm:$0xff] %v18910_v18  ;;  %v18917_v39 = vpop.f32.mrf.mxu1  ;;  %v13189_v41 = vld [vmem:[%s17482_s24 + $0x78] sm:$0xff]  ;;  %v7217_v5 = vld [vmem:[#allocation2 + $0x69] sm:$0xff] }
 0x290   : > { %15689 = vmatprep.subr.msk.mxu1 %vm679_vm0, %v18885_v54  ;;  %15740 = vmatpush3.msk.msra.mxu0 %vm679_vm0, %v18731_v6  ;;  %v13186_v6 = vld [vmem:[%s17482_s24 + $0x50] sm:$0xff]  ;;  %v18919_v15 = vpop.f32.mrf.mxu0 }
 0x291   : > { %15495 = vmatmul.mubr.msk.f32.gmra.mxu1 %vm582_vm1, %v13184_v23  ;;  %22338 = vst [vmem:[#allocation9_spill] sm:$0xff] %v18919_v15  ;;  %15839 = vmatprep.subr.msk.mxu0 %vm679_vm0, %v18906_v7  ;;  %v18924_v31 = vpop.f32.mrf.mxu1  ;;  %v7223_v18 = vld [vmem:[#allocation2 + $0xb1] sm:$0xff] }
 0x292   : > { %15645 = vmatmul.mubr.msk.f32.gmra.mxu0 %vm582_vm1, %v7213_v30  ;;  %15497 = vmatprep.mubr.msk.f32.mxu1 %vm582_vm1, %v13185_v52  ;;  %v18926_v13 = vpop.f32.mrf.mxu0  ;;  %v7218_v30 = vld [vmem:[#allocation2 + $0x79] sm:$0xff] }
 0x293   : > { %15647 = vmatprep.mubr.msk.f32.mxu0 %vm582_vm1, %v7214_v36  ;;  %22339 = vst [vmem:[#allocation43_spill] sm:$0xff] %v18926_v13  ;;  %v18933_v2 = vpop.f32.mrf.mxu1  ;;  %v13190_v36 = vld [vmem:[%s17482_s24 + $0x80] sm:$0xff] }
 0x294   : > { %v18935_v47 = vpop.f32.mrf.mxu0  ;;  %v7221_v13 = vld [vmem:[#allocation2 + $0x99] sm:$0xff] }
 0x295   : > { %15498 = vmatmul.mubr.msk.f32.gmra.mxu1 %vm582_vm1, %v13186_v6  ;;  %22340 = vst [vmem:[#allocation58_spill] sm:$0xff] %v18935_v47  ;;  %v18938_v23 = vpop.f32.mrf.mxu1 }
 0x296   : > { %15648 = vmatmul.mubr.msk.f32.gmra.mxu0 %vm582_vm1, %v7215_v60  ;;  %15500 = vmatprep.mubr.msk.f32.mxu1 %vm582_vm1, %v13187_v26  ;;  %v18940_v52 = vpop.f32.mrf.mxu0  ;;  %v13191_v60 = vld [vmem:[%s17482_s24 + $0x90] sm:$0xff] }
 0x297   : > { %15650 = vmatprep.mubr.msk.f32.mxu0 %vm582_vm1, %v7216_v45  ;;  %22341 = vst [vmem:[#allocation17_spill] sm:$0xff] %v18940_v52  ;;  %v18947_v6 = vpop.f32.mrf.mxu1  ;;  %v7219_v45 = vld [vmem:[#allocation2 + $0x81] sm:$0xff] }
 0x298   : > { %v18949_v26 = vpop.f32.mrf.mxu0 }
 0x299   : > { %15501 = vmatmul.mubr.msk.f32.gmra.mxu1 %vm582_vm1, %v13188_v58  ;;  %22342 = vst [vmem:[#allocation25_spill] sm:$0xff] %v18949_v26  ;;  %v18952_v47 = vpop.f32.mrf.mxu1  ;;  %v7220_v58 = vld [vmem:[#allocation2 + $0x91] sm:$0xff]  ;;  %v13193_v26 = vld [vmem:[%s17482_s24 + $0xa8] sm:$0xff] }
 0x29a   : > { %15651 = vmatmul.mubr.msk.f32.gmra.mxu0 %vm582_vm1, %v7217_v5  ;;  %15503 = vmatprep.mubr.msk.f32.mxu1 %vm582_vm1, %v13189_v41  ;;  %v18954_v52 = vpop.f32.mrf.mxu0  ;;  %v13192_v41 = vld [vmem:[%s17482_s24 + $0x98] sm:$0xff] }
 0x29b   : > { %15653 = vmatprep.mubr.msk.f32.mxu0 %vm582_vm1, %v7218_v30  ;;  %22343 = vst [vmem:[#allocation45_spill] sm:$0xff] %v18954_v52  ;;  %v18961_v5 = vpop.f32.mrf.mxu1 }
 0x29c   : > { %v18963_v30 = vpop.f32.mrf.mxu0 }
 0x29d   : > { %15504 = vmatmul.mubr.msk.f32.gmra.mxu1 %vm582_vm1, %v13190_v36  ;;  %22344 = vst [vmem:[#allocation59_spill] sm:$0xff] %v18963_v30  ;;  %v18966_v15 = vpop.f32.mrf.mxu1  ;;  %v7222_v36 = vld [vmem:[#allocation2 + $0xa9] sm:$0xff]  ;;  %v13195_v30 = vld [vmem:[%s17482_s24 + $0xc0] sm:$0xff] }
 0x29e   : > { %15654 = vmatmul.mubr.msk.f32.gmra.mxu0 %vm582_vm1, %v7219_v45  ;;  %15506 = vmatprep.mubr.msk.f32.mxu1 %vm582_vm1, %v13191_v60  ;;  %v18968_v52 = vpop.f32.mrf.mxu0  ;;  %v13194_v60 = vld [vmem:[%s17482_s24 + $0xb0] sm:$0xff] }
 0x29f   : > { %15656 = vmatprep.mubr.msk.f32.mxu0 %vm582_vm1, %v7220_v58  ;;  %22345 = vst [vmem:[#allocation11_spill] sm:$0xff] %v18968_v52  ;;  %v18975_v45 = vpop.f32.mrf.mxu1 }
 0x2a0   : > { %v18977_v58 = vpop.f32.mrf.mxu0 }
 0x2a1   : > { %15507 = vmatmul.mubr.msk.f32.gmra.mxu1 %vm582_vm1, %v13192_v41  ;;  %22346 = vst [vmem:[#allocation10_spill] sm:$0xff] %v18977_v58  ;;  %v13197_v58 = vld [vmem:[%s17482_s24 + $0xd8] sm:$0xff] }
 0x2a2   : > { %15657 = vmatmul.mubr.msk.f32.gmra.mxu0 %vm582_vm1, %v7221_v13  ;;  %15509 = vmatprep.mubr.msk.f32.mxu1 %vm582_vm1, %v13193_v26  ;;  %v18980_v3 = vpop.f32.mrf.mxu1  ;;  %v13196_v13 = vld [vmem:[%s17482_s24 + $0xc8] sm:$0xff] }
 0x2a3   : > { %15659 = vmatprep.mubr.msk.f32.mxu0 %vm582_vm1, %v7222_v36  ;;  %v18982_v41 = vpop.f32.mrf.mxu0 }
 0x2a4   : > { %22347 = vst [vmem:[#allocation47_spill] sm:$0xff] %v18982_v41  ;;  %v18990_v26 = vpop.f32.mrf.mxu1 }
 0x2a5   : > { %15510 = vmatmul.mubr.msk.f32.gmra.mxu1 %vm582_vm1, %v13194_v60  ;;  %v18992_v36 = vpop.f32.mrf.mxu0  ;;  %v13199_v60 = vld [vmem:[%s17482_s24 + $0xf0] sm:$0xff] }
 0x2a6   : > { %15660 = vmatmul.mubr.msk.f32.gmra.mxu0 %vm582_vm1, %v7223_v18  ;;  %15512 = vmatprep.mubr.msk.f32.mxu1 %vm582_vm1, %v13195_v30  ;;  %22348 = vst [vmem:[#allocation60_spill] sm:$0xff] %v18992_v36  ;;  %v18995_v52 = vpop.f32.mrf.mxu1 }
 0x2a7   : > { %15662 = vmatprep.mubr.msk.f32.mxu0 %vm582_vm1, %v18318_v46  ;;  %v13198_v46 = vld [vmem:[%s17482_s24 + $0xe0] sm:$0xff] }
 0x2a8   : > { %v18997_v41 = vpop.f32.mrf.mxu0  ;;  %v19006_v18 = vpop.f32.mrf.mxu1 }
 0x2a9   : > { %22349 = vst [vmem:[#allocation18_spill] sm:$0xff] %v18997_v41  ;;  %15513 = vmatmul.mubr.msk.f32.gmra.mxu1 %vm582_vm1, %v13196_v13  ;;  %v13201_v13 = vld [vmem:[%s17482_s24 + $0x108] sm:$0xff] }
 0x2aa   : > { %15663 = vmatmul.mubr.msk.f32.gmra.mxu0 %vm582_vm1, %v18334_v21  ;;  %15515 = vmatprep.mubr.msk.f32.mxu1 %vm582_vm1, %v13197_v58  ;;  %v19008_v30 = vpop.f32.mrf.mxu0  ;;  %v13200_v21 = vld [vmem:[%s17482_s24 + $0xf8] sm:$0xff] }
 0x2ab   : > { %15665 = vmatprep.mubr.msk.f32.mxu0 %vm582_vm1, %v18358_v29  ;;  %22350 = vst [vmem:[#allocation27_spill] sm:$0xff] %v19008_v30 }
 0x2ad   : > { %v19011_v36 = vpop.f32.mrf.mxu1  ;;  %15516 = vmatmul.mubr.msk.f32.gmra.mxu1 %vm582_vm1, %v13198_v46 }
 0x2ae   : > { %v19013_v41 = vpop.f32.mrf.mxu0  ;;  %15666 = vmatmul.mubr.msk.f32.gmra.mxu0 %vm582_vm1, %v18374_v35  ;;  %15518 = vmatprep.mubr.msk.f32.mxu1 %vm582_vm1, %v13199_v60  ;;  %v13202_v35 = vld [vmem:[%s17482_s24 + $0x110] sm:$0xff]  ;;  %v13203_v60 = vld [vmem:[%s17482_s24 + $0x120] sm:$0xff] }
 0x2af   : > { %22351 = vst [vmem:[#allocation49_spill] sm:$0xff] %v19013_v41  ;;  %15668 = vmatprep.mubr.msk.f32.mxu0 %vm582_vm1, %v18398_v62  ;;  %v19022_v29 = vpop.f32.mrf.mxu1 }
 0x2b0   : > { %v19024_v58 = vpop.f32.mrf.mxu0 }
 0x2b1   : > { %22352 = vst [vmem:[#allocation61_spill] sm:$0xff] %v19024_v58  ;;  %v19027_v30 = vpop.f32.mrf.mxu1  ;;  %15519 = vmatmul.mubr.msk.f32.gmra.mxu1 %vm582_vm1, %v13200_v21 }
 0x2b2   : > { %v19029_v41 = vpop.f32.mrf.mxu0  ;;  %15669 = vmatmul.mubr.msk.f32.gmra.mxu0 %vm582_vm1, %v18414_v34  ;;  %15521 = vmatprep.mubr.msk.f32.mxu1 %vm582_vm1, %v13201_v13  ;;  %v13205_v13 = vld [vmem:[%s17482_s24 + $0x138] sm:$0xff] }
 0x2b3   : > { %22353 = vst [vmem:[#allocation30_spill] sm:$0xff] %v19029_v41  ;;  %15671 = vmatprep.mubr.msk.f32.mxu0 %vm582_vm1, %v18435_v43  ;;  %v19038_v62 = vpop.f32.mrf.mxu1  ;;  %v13204_v43 = vld [vmem:[%s17482_s24 + $0x128] sm:$0xff] }
 0x2b4   : > { %v19040_v46 = vpop.f32.mrf.mxu0 }
 0x2b5   : > { %22354 = vst [vmem:[#allocation12_spill] sm:$0xff] %v19040_v46  ;;  %v19043_v58 = vpop.f32.mrf.mxu1  ;;  %15522 = vmatmul.mubr.msk.f32.gmra.mxu1 %vm582_vm1, %v13202_v35 }
 0x2b6   : > { %v19045_v41 = vpop.f32.mrf.mxu0  ;;  %15672 = vmatmul.mubr.msk.f32.gmra.mxu0 %vm582_vm1, %v18450_v61  ;;  %15524 = vmatprep.mubr.msk.f32.mxu1 %vm582_vm1, %v13203_v60  ;;  %v13206_v61 = vld [vmem:[%s17482_s24 + $0x140] sm:$0xff]  ;;  %v13207_v60 = vld [vmem:[%s17482_s24 + $0x150] sm:$0xff] }
 0x2b7   : > { %22355 = vst [vmem:[#allocation51_spill] sm:$0xff] %v19045_v41  ;;  %15674 = vmatprep.mubr.msk.f32.mxu0 %vm582_vm1, %v18466_v37  ;;  %v19054_v34 = vpop.f32.mrf.mxu1 }
 0x2b8   : > { %v19056_v21 = vpop.f32.mrf.mxu0 }
 0x2b9   : > { %22356 = vst [vmem:[#allocation62_spill] sm:$0xff] %v19056_v21  ;;  %v19059_v46 = vpop.f32.mrf.mxu1  ;;  %15525 = vmatmul.mubr.msk.f32.gmra.mxu1 %vm582_vm1, %v13204_v43 }
 0x2ba   : > { %v19061_v41 = vpop.f32.mrf.mxu0  ;;  %15675 = vmatmul.mubr.msk.f32.gmra.mxu0 %vm582_vm1, %v18481_v57  ;;  %15527 = vmatprep.mubr.msk.f32.mxu1 %vm582_vm1, %v13205_v13  ;;  %v13208_v57 = vld [vmem:[%s17482_s24 + $0x158] sm:$0xff]  ;;  %v13209_v13 = vld [vmem:[%s17482_s24 + $0x168] sm:$0xff] }
 0x2bb   : > { %22357 = vst [vmem:[#allocation19_spill] sm:$0xff] %v19061_v41  ;;  %15677 = vmatprep.mubr.msk.f32.mxu0 %vm582_vm1, %v18496_v50  ;;  %v19070_v37 = vpop.f32.mrf.mxu1 }
 0x2bc   : > { %v19072_v35 = vpop.f32.mrf.mxu0 }
 0x2bd   : > { %22358 = vst [vmem:[#allocation8_spill] sm:$0xff] %v19072_v35  ;;  %v19075_v21 = vpop.f32.mrf.mxu1  ;;  %15528 = vmatmul.mubr.msk.f32.gmra.mxu1 %vm582_vm1, %v13206_v61 }
 0x2be   : > { %v19077_v41 = vpop.f32.mrf.mxu0  ;;  %15678 = vmatmul.mubr.msk.f32.gmra.mxu0 %vm582_vm1, %v18511_v40  ;;  %15530 = vmatprep.mubr.msk.f32.mxu1 %vm582_vm1, %v13207_v60  ;;  %v13210_v40 = vld [vmem:[%s17482_s24 + $0x170] sm:$0xff]  ;;  %v13211_v60 = vld [vmem:[%s17482_s24 + $0x180] sm:$0xff] }
 0x2bf   : > { %22359 = vst [vmem:[#allocation53_spill] sm:$0xff] %v19077_v41  ;;  %15680 = vmatprep.mubr.msk.f32.mxu0 %vm582_vm1, %v18523_v49  ;;  %v19086_v50 = vpop.f32.mrf.mxu1 }
 0x2c0   : > { %v19088_v43 = vpop.f32.mrf.mxu0 }
 0x2c1   : > { %22360 = vst [vmem:[#allocation63_spill] sm:$0xff] %v19088_v43  ;;  %v19091_v35 = vpop.f32.mrf.mxu1  ;;  %15531 = vmatmul.mubr.msk.f32.gmra.mxu1 %vm582_vm1, %v13208_v57  ;;  %v7239_v43 = vld [vmem:[#allocation2 + $0x171] sm:$0xff] }
 0x2c2   : > { %v19093_v41 = vpop.f32.mrf.mxu0  ;;  %15681 = vmatmul.mubr.msk.f32.gmra.mxu0 %vm582_vm1, %v18534_v32  ;;  %15533 = vmatprep.mubr.msk.f32.mxu1 %vm582_vm1, %v13209_v13  ;;  %v7240_v32 = vld [vmem:[#allocation2 + $0x181] sm:$0xff] }
 0x2c3   : > { %22361 = vst [vmem:[#allocation32_spill] sm:$0xff] %v19093_v41  ;;  %15683 = vmatprep.mubr.msk.f32.mxu0 %vm582_vm1, %v18543_v12  ;;  %v19102_v49 = vpop.f32.mrf.mxu1  ;;  %v13212_v12 = vld [vmem:[%s17482_s24 + $0x188] sm:$0xff] }
 0x2c4   : > { %v19104_v61 = vpop.f32.mrf.mxu0 }
 0x2c5   : > { %22362 = vst [vmem:[#allocation31_spill] sm:$0xff] %v19104_v61  ;;  %v19107_v41 = vpop.f32.mrf.mxu1  ;;  %15534 = vmatmul.mubr.msk.f32.gmra.mxu1 %vm582_vm1, %v13210_v40  ;;  %v13282_v40 = vld [vmem:[%s17482_s24 + $0x21] sm:$0xff] }
 0x2c6   : > { %v19109_v57 = vpop.f32.mrf.mxu0  ;;  %15684 = vmatmul.mubr.msk.f32.gmra.mxu0 %vm582_vm1, %v7239_v43  ;;  %15536 = vmatprep.mubr.msk.f32.mxu1 %vm582_vm1, %v13211_v60  ;;  %v7990_v43 = vld [vmem:[#allocation2 + $0x1a] sm:$0xff] }
 0x2c7   : > { %22363 = vst [vmem:[#allocation55_spill] sm:$0xff] %v19109_v57  ;;  %15686 = vmatprep.mubr.msk.f32.mxu0 %vm582_vm1, %v7240_v32  ;;  %v19116_v13 = vpop.f32.mrf.mxu1 }
 0x2c8   : > { %v19118_v61 = vpop.f32.mrf.mxu0 }
 0x2c9   : > { %22364 = vst [vmem:[#allocation64_spill] sm:$0xff] %v19118_v61  ;;  %v19121_v17 = vpop.f32.mrf.mxu1  ;;  %15537 = vmatmul.mubr.msk.f32.gmra.mxu1 %vm582_vm1, %v13212_v12  ;;  %v7991_v61 = vld [vmem:[#allocation2 + $0x22] sm:$0xff]  ;;  %v19138_v12 = vld [vmem:[%s21924_s4 + $0x18] sm:$0xf] }
 0x2ca   : > { %22365 = vst [vmem:[#allocation57_spill] sm:$0xff] %v19121_v17  ;;  %v19123_v57 = vpop.f32.mrf.mxu0  ;;  %15687 = vmatmul.mubr.msk.f32.gmra.mxu0 %vm582_vm1, %v7241_v59  ;;  %15591 = vmatprep.mubr.msk.f32.mxu1 %vm582_vm1, %v13281_v53  ;;  %v13283_v17 = vld [vmem:[%s17482_s24 + $0x31] sm:$0xff] }
 0x2cb   : > { %22366 = vst [vmem:[#allocation65_spill] sm:$0xff] %v19123_v57  ;;  %15741 = vmatprep.mubr.msk.f32.mxu0 %vm582_vm1, %v7990_v43  ;;  %v19130_v60 = vpop.f32.mrf.mxu1  ;;  %v7992_v53 = vld [vmem:[#allocation2 + $0x32] sm:$0xff] }
 0x2cc   : > { %22367 = vst [vmem:[#allocation33_spill] sm:$0xff] %v19130_v60  ;;  %v19132_v32 = vpop.f32.mrf.mxu0 }
 0x2cd   : > { %22368 = vst [vmem:[#allocation78_spill] sm:$0xff] %v19132_v32  ;;  %v15293_v59 = vpop.f32.mrf.mxu1  ;;  %15592 = vmatmul.mubr.msk.f32.vlgmr.msra.gmra.mxu1 %vm582_vm1, %v13282_v40  ;;  %v13284_v32 = vld [vmem:[%s17482_s24 + $0x39] sm:$0xff]  ;;  %v13285_v40 = vld [vmem:[%s17482_s24 + $0x49] sm:$0xff] }
 0x2ce   : > { %v19140_v57 = vpop.f32.mrf.mxu0  ;;  %15742 = vmatmul.mubr.msk.f32.vlgmr.msra.gmra.mxu0 %vm582_vm1, %v7991_v61  ;;  %v19145_v43 = vadd.f32 %v15293_v59, %v18563_v1  ;;  %15690 = vmatpush3.msk.msra.mxu1 %vm679_vm0, %v18885_v54  ;;  %v4694_v1 = vadd.f32 %v18586_v0, %v18908_v55  ;;  %v7993_v61 = vld [vmem:[#allocation2 + $0x3a] sm:$0xff]  ;;  %v4689_v0 = vadd.f32 %v18596_v42, %v18917_v39  ;;  %v7995_v39 = vld [vmem:[#allocation2 + $0x52] sm:$0xff] }
 0x2cf   : > { %22369 = vst [vmem:[#allocation79_spill] sm:$0xff] %v19140_v57  ;;  %15744 = vmatprep.mubr.msk.f32.mxu0 %vm582_vm1, %v7992_v53  ;;  %v19151_v60 = vpop.f32.mrf.mxu1  ;;  %15594 = vmatprep.mubr.msk.f32.mxu1 %vm582_vm1, %v13283_v17  ;;  %v19166_v54 = vld [vmem:[%s21925_s5 + $0x1c] sm:$0xf]  ;;  %v7994_v53 = vld [vmem:[#allocation2 + $0x4a] sm:$0xff] }
 0x2d0   : > { %v19153_v19 = vpop.f32.mrf.mxu0  ;;  %15789 = vmatprep.subr.msk.mxu1 %vm679_vm0, %v19138_v12  ;;  %15840 = vmatpush3.msk.msra.mxu0 %vm679_vm0, %v18906_v7  ;;  %v13286_v7 = vld [vmem:[%s17482_s24 + $0x51] sm:$0xff] }
 0x2d1   : > { %22370 = vst [vmem:[#allocation80_spill] sm:$0xff] %v19153_v19  ;;  %v15296_v59 = vpop.f32.mrf.mxu1  ;;  %15595 = vmatmul.mubr.msk.f32.gmra.mxu1 %vm582_vm1, %v13284_v32  ;;  %15939 = vmatprep.subr.msk.mxu0 %vm679_vm0, %v19166_v54  ;;  %v4704_v32 = vadd.f32 %v18604_v25, %v18924_v31  ;;  %v13288_v25 = vld [vmem:[%s17482_s24 + $0x69] sm:$0xff] }
 0x2d2   : > { %v19168_v17 = vpop.f32.mrf.mxu0  ;;  %15745 = vmatmul.mubr.msk.f32.gmra.mxu0 %vm582_vm1, %v7993_v61  ;;  %v19174_v55 = vadd.f32 %v15296_v59, %v4694_v1  ;;  %15597 = vmatprep.mubr.msk.f32.mxu1 %vm582_vm1, %v13285_v40  ;;  %v7996_v40 = vld [vmem:[#allocation2 + $0x62] sm:$0xff]  ;;  %v4699_v59 = vadd.f32 %v18612_v22, %v18933_v2 }
 0x2d3   : > { %22371 = vst [vmem:[#allocation81_spill] sm:$0xff] %v19168_v17  ;;  %15747 = vmatprep.mubr.msk.f32.mxu0 %vm582_vm1, %v7994_v53  ;;  %v5078_v19 = vpop.f32.mrf.mxu1  ;;  %v13287_v17 = vld [vmem:[%s17482_s24 + $0x61] sm:$0xff] }
 0x2d4   : > { %v19179_v57 = vpop.f32.mrf.mxu0  ;;  %v19186_v42 = vadd.f32 %v5078_v19, %v4689_v0  ;;  %v13289_v0 = vld [vmem:[%s17482_s24 + $0x79] sm:$0xff] }
 0x2d5   : > { %v15299_v1 = vpop.f32.mrf.mxu1  ;;  %15598 = vmatmul.mubr.msk.f32.gmra.mxu1 %vm582_vm1, %v13286_v7  ;;  %v4714_v7 = vadd.f32 %v18620_v4, %v18938_v23  ;;  %v13290_v4 = vld [vmem:[%s17482_s24 + $0x81] sm:$0xff] }
 0x2d6   : > { %v19188_v61 = vpop.f32.mrf.mxu0  ;;  %15748 = vmatmul.mubr.msk.f32.gmra.mxu0 %vm582_vm1, %v7995_v39  ;;  %v19194_v53 = vadd.f32 %v15299_v1, %v4704_v32  ;;  %15600 = vmatprep.mubr.msk.f32.mxu1 %vm582_vm1, %v13287_v17  ;;  %v7998_v17 = vld [vmem:[#allocation2 + $0x7a] sm:$0xff]  ;;  %v4709_v32 = vadd.f32 %v18628_v8, %v18947_v6 }
 0x2d7   : > { %22372 = vst [vmem:[#allocation82_spill] sm:$0xff] %v19188_v61  ;;  %15750 = vmatprep.mubr.msk.f32.mxu0 %vm582_vm1, %v7996_v40  ;;  %v5088_v19 = vpop.f32.mrf.mxu1  ;;  %v7997_v61 = vld [vmem:[#allocation2 + $0x6a] sm:$0xff] }
 0x2d8   : > { %v19199_v31 = vpop.f32.mrf.mxu0  ;;  %v19204_v39 = vadd.f32 %v5088_v19, %v4699_v59  ;;  %v13291_v59 = vld [vmem:[%s17482_s24 + $0x91] sm:$0xff]  ;;  %v7999_v19 = vld [vmem:[#allocation2 + $0x82] sm:$0xff] }
 0x2d9   : > { %v15302_v22 = vpop.f32.mrf.mxu1  ;;  %15601 = vmatmul.mubr.msk.f32.gmra.mxu1 %vm582_vm1, %v13288_v25 }
 0x2da   : > { %v19206_v2 = vpop.f32.mrf.mxu0  ;;  %15751 = vmatmul.mubr.msk.f32.gmra.mxu0 %vm582_vm1, %v7997_v61  ;;  %v19212_v1 = vadd.f32 %v15302_v22, %v4714_v7  ;;  %15603 = vmatprep.mubr.msk.f32.mxu1 %vm582_vm1, %v13289_v0  ;;  %v4724_v61 = vadd.f32 %v18636_v63, %v18952_v47  ;;  %v8000_v0 = vld [vmem:[#allocation2 + $0x92] sm:$0xff]  ;;  %v22375_v7 = vld [vmem:[#allocation22_spill] sm:$0xff] }
 0x2db   : > { %15753 = vmatprep.mubr.msk.f32.mxu0 %vm582_vm1, %v7998_v17  ;;  %v5098_v23 = vpop.f32.mrf.mxu1  ;;  %v4719_v22 = vadd.f32 %v22375_v7, %v18961_v5  ;;  %v13292_v63 = vld [vmem:[%s17482_s24 + $0x99] sm:$0xff] }
 0x2dc   : > { %v19217_v40 = vpop.f32.mrf.mxu0  ;;  %v19222_v25 = vadd.f32 %v5098_v23, %v4709_v32  ;;  %v13293_v23 = vld [vmem:[%s17482_s24 + $0xa9] sm:$0xff] }
 0x2dd   : > { %22373 = vst [vmem:[#allocation83_spill] sm:$0xff] %v19217_v40  ;;  %v15305_v8 = vpop.f32.mrf.mxu1  ;;  %15604 = vmatmul.mubr.msk.f32.gmra.mxu1 %vm582_vm1, %v13290_v4  ;;  %v22377_v4 = vld [vmem:[#allocation39_spill] sm:$0xff]  ;;  %v8001_v40 = vld [vmem:[#allocation2 + $0x9a] sm:$0xff] }
 0x2de   : > { %v19224_v6 = vpop.f32.mrf.mxu0  ;;  %15754 = vmatmul.mubr.msk.f32.gmra.mxu0 %vm582_vm1, %v7999_v19  ;;  %v19230_v17 = vadd.f32 %v15305_v8, %v4724_v61  ;;  %15606 = vmatprep.mubr.msk.f32.mxu1 %vm582_vm1, %v13291_v59  ;;  %v4734_v19 = vadd.f32 %v22377_v4, %v18966_v15  ;;  %v8002_v59 = vld [vmem:[#allocation2 + $0xaa] sm:$0xff]  ;;  %v22379_v8 = vld [vmem:[#allocation52_spill] sm:$0xff]  ;;  %v13295_v4 = vld [vmem:[%s17482_s24 + $0xc1] sm:$0xff] }
 0x2df   : > { %22374 = vst [vmem:[#allocation84_spill] sm:$0xff] %v19224_v6  ;;  %15756 = vmatprep.mubr.msk.f32.mxu0 %vm582_vm1, %v8000_v0  ;;  %v5108_v47 = vpop.f32.mrf.mxu1  ;;  %v4729_v0 = vadd.f32 %v22379_v8, %v18975_v45  ;;  %v13294_v15 = vld [vmem:[%s17482_s24 + $0xb1] sm:$0xff] }
 0x2e0   : > { %v19235_v32 = vpop.f32.mrf.mxu0  ;;  %v19240_v6 = vadd.f32 %v5108_v47, %v4719_v22 }
 0x2e1   : > { %22376 = vst [vmem:[#allocation22_spill] sm:$0xff] %v19235_v32  ;;  %v15308_v5 = vpop.f32.mrf.mxu1  ;;  %15607 = vmatmul.mubr.msk.f32.gmra.mxu1 %vm582_vm1, %v13292_v63  ;;  %v22381_v63 = vld [vmem:[#allocation5_spill] sm:$0xff]  ;;  %v8003_v32 = vld [vmem:[#allocation2 + $0xb2] sm:$0xff] }
 0x2e2   : > { %v19242_v61 = vpop.f32.mrf.mxu0  ;;  %15757 = vmatmul.mubr.msk.f32.gmra.mxu0 %vm582_vm1, %v8001_v40  ;;  %v19248_v7 = vadd.f32 %v15308_v5, %v4734_v19  ;;  %15609 = vmatprep.mubr.msk.f32.mxu1 %vm582_vm1, %v13293_v23  ;;  %v4744_v40 = vadd.f32 %v22381_v63, %v18980_v3  ;;  %v8004_v23 = vld [vmem:[#allocation2 + $0xc2] sm:$0xff]  ;;  %v22383_v5 = vld [vmem:[#allocation4_spill] sm:$0xff] }
 0x2e3   : > { %22378 = vst [vmem:[#allocation39_spill] sm:$0xff] %v19242_v61  ;;  %15759 = vmatprep.mubr.msk.f32.mxu0 %vm582_vm1, %v8002_v59  ;;  %v5118_v22 = vpop.f32.mrf.mxu1  ;;  %v4739_v59 = vadd.f32 %v22383_v5, %v18990_v26  ;;  %v13296_v3 = vld [vmem:[%s17482_s24 + $0xc9] sm:$0xff]  ;;  %v13297_v63 = vld [vmem:[%s17482_s24 + $0xd9] sm:$0xff] }
 0x2e4   : > { %v19253_v47 = vpop.f32.mrf.mxu0  ;;  %v19258_v61 = vadd.f32 %v5118_v22, %v4729_v0 }
 0x2e5   : > { %22380 = vst [vmem:[#allocation52_spill] sm:$0xff] %v19253_v47  ;;  %v15311_v45 = vpop.f32.mrf.mxu1  ;;  %15610 = vmatmul.mubr.msk.f32.gmra.mxu1 %vm582_vm1, %v13294_v15  ;;  %v22384_v15 = vld [vmem:[#allocation40_spill] sm:$0xff]  ;;  %v8005_v47 = vld [vmem:[#allocation2 + $0xca] sm:$0xff] }
 0x2e6   : > { %v19260_v19 = vpop.f32.mrf.mxu0  ;;  %15760 = vmatmul.mubr.msk.f32.gmra.mxu0 %vm582_vm1, %v8003_v32  ;;  %v19266_v8 = vadd.f32 %v15311_v45, %v4744_v40  ;;  %15612 = vmatprep.mubr.msk.f32.mxu1 %vm582_vm1, %v13295_v4  ;;  %v4754_v32 = vadd.f32 %v22384_v15, %v18995_v52  ;;  %v8006_v4 = vld [vmem:[#allocation2 + $0xda] sm:$0xff]  ;;  %v4749_v45 = vadd.f32 %v18692_v16, %v19006_v18  ;;  %v8007_v15 = vld [vmem:[#allocation2 + $0xe2] sm:$0xff] }
 0x2e7   : > { %22382 = vst [vmem:[#allocation5_spill] sm:$0xff] %v19260_v19  ;;  %15762 = vmatprep.mubr.msk.f32.mxu0 %vm582_vm1, %v8004_v23  ;;  %v5128_v0 = vpop.f32.mrf.mxu1  ;;  %v13298_v52 = vld [vmem:[%s17482_s24 + $0xe1] sm:$0xff] }
 0x2e8   : > { %v19271_v22 = vpop.f32.mrf.mxu0  ;;  %v19276_v19 = vadd.f32 %v5128_v0, %v4739_v59  ;;  %v13299_v0 = vld [vmem:[%s17482_s24 + $0xf1] sm:$0xff] }
 0x2e9   : > { %v15314_v26 = vpop.f32.mrf.mxu1  ;;  %15613 = vmatmul.mubr.msk.f32.gmra.mxu1 %vm582_vm1, %v13296_v3 }
 0x2ea   : > { %v19278_v40 = vpop.f32.mrf.mxu0  ;;  %15763 = vmatmul.mubr.msk.f32.gmra.mxu0 %vm582_vm1, %v8005_v47  ;;  %v19284_v23 = vadd.f32 %v15314_v26, %v4754_v32  ;;  %15615 = vmatprep.mubr.msk.f32.mxu1 %vm582_vm1, %v13297_v63  ;;  %v4764_v47 = vadd.f32 %v18700_v33, %v19011_v36  ;;  %v8008_v63 = vld [vmem:[#allocation2 + $0xf2] sm:$0xff]  ;;  %v4759_v32 = vadd.f32 %v18715_v48, %v19022_v29 }
 0x2eb   : > { %15765 = vmatprep.mubr.msk.f32.mxu0 %vm582_vm1, %v8006_v4  ;;  %v5138_v5 = vpop.f32.mrf.mxu1  ;;  %v13300_v33 = vld [vmem:[%s17482_s24 + $0xf9] sm:$0xff] }
 0x2ec   : > { %v19289_v59 = vpop.f32.mrf.mxu0  ;;  %v19294_v3 = vadd.f32 %v5138_v5, %v4749_v45  ;;  %v13301_v45 = vld [vmem:[%s17482_s24 + $0x109] sm:$0xff] }
 0x2ed   : > { %v15317_v16 = vpop.f32.mrf.mxu1  ;;  %15616 = vmatmul.mubr.msk.f32.gmra.mxu1 %vm582_vm1, %v13298_v52  ;;  %v4774_v52 = vadd.f32 %v18736_v44, %v19027_v30  ;;  %v13302_v44 = vld [vmem:[%s17482_s24 + $0x111] sm:$0xff] }
 0x2ee   : > { %v19296_v18 = vpop.f32.mrf.mxu0  ;;  %15766 = vmatmul.mubr.msk.f32.gmra.mxu0 %vm582_vm1, %v8007_v15  ;;  %v19302_v26 = vadd.f32 %v15317_v16, %v4764_v47  ;;  %15618 = vmatprep.mubr.msk.f32.mxu1 %vm582_vm1, %v13299_v0  ;;  %v8009_v15 = vld [vmem:[#allocation2 + $0xfa] sm:$0xff]  ;;  %v8010_v0 = vld [vmem:[#allocation2 + $0x10a] sm:$0xff]  ;;  %v4769_v47 = vadd.f32 %v18748_v24, %v19038_v62 }
 0x2ef   : > { %15768 = vmatprep.mubr.msk.f32.mxu0 %vm582_vm1, %v8008_v63  ;;  %v5148_v36 = vpop.f32.mrf.mxu1 }
 0x2f0   : > { %v19307_v4 = vpop.f32.mrf.mxu0  ;;  %v19312_v5 = vadd.f32 %v5148_v36, %v4759_v32  ;;  %v13303_v32 = vld [vmem:[%s17482_s24 + $0x121] sm:$0xff] }
 0x2f1   : > { %v15320_v48 = vpop.f32.mrf.mxu1  ;;  %15619 = vmatmul.mubr.msk.f32.gmra.mxu1 %vm582_vm1, %v13300_v33  ;;  %v4784_v33 = vadd.f32 %v18758_v9, %v19043_v58  ;;  %v13304_v9 = vld [vmem:[%s17482_s24 + $0x129] sm:$0xff] }
 0x2f2   : > { %v19314_v29 = vpop.f32.mrf.mxu0  ;;  %15769 = vmatmul.mubr.msk.f32.gmra.mxu0 %vm582_vm1, %v8009_v15  ;;  %v19320_v16 = vadd.f32 %v15320_v48, %v4774_v52  ;;  %15621 = vmatprep.mubr.msk.f32.mxu1 %vm582_vm1, %v13301_v45  ;;  %v8011_v15 = vld [vmem:[#allocation2 + $0x112] sm:$0xff]  ;;  %v8012_v45 = vld [vmem:[#allocation2 + $0x122] sm:$0xff]  ;;  %v4779_v52 = vadd.f32 %v18768_v51, %v19054_v34 }
 0x2f3   : > { %15771 = vmatprep.mubr.msk.f32.mxu0 %vm582_vm1, %v8010_v0  ;;  %v5158_v30 = vpop.f32.mrf.mxu1 }
 0x2f4   : > { %v19325_v63 = vpop.f32.mrf.mxu0  ;;  %v19330_v36 = vadd.f32 %v5158_v30, %v4769_v47  ;;  %v13305_v47 = vld [vmem:[%s17482_s24 + $0x139] sm:$0xff] }
 0x2f5   : > { %v15323_v24 = vpop.f32.mrf.mxu1  ;;  %15622 = vmatmul.mubr.msk.f32.gmra.mxu1 %vm582_vm1, %v13302_v44  ;;  %v4794_v44 = vadd.f32 %v18778_v38, %v19059_v46  ;;  %v13306_v38 = vld [vmem:[%s17482_s24 + $0x141] sm:$0xff] }
 0x2f6   : > { %v19332_v62 = vpop.f32.mrf.mxu0  ;;  %15772 = vmatmul.mubr.msk.f32.gmra.mxu0 %vm582_vm1, %v8011_v15  ;;  %v19338_v48 = vadd.f32 %v15323_v24, %v4784_v33  ;;  %15624 = vmatprep.mubr.msk.f32.mxu1 %vm582_vm1, %v13303_v32  ;;  %v8013_v15 = vld [vmem:[#allocation2 + $0x12a] sm:$0xff]  ;;  %v8014_v32 = vld [vmem:[#allocation2 + $0x13a] sm:$0xff]  ;;  %v4789_v33 = vadd.f32 %v18788_v11, %v19070_v37 }
 0x2f7   : > { %15774 = vmatprep.mubr.msk.f32.mxu0 %vm582_vm1, %v8012_v45  ;;  %v5168_v58 = vpop.f32.mrf.mxu1 }
 0x2f8   : > { %v19343_v0 = vpop.f32.mrf.mxu0  ;;  %v19348_v30 = vadd.f32 %v5168_v58, %v4779_v52  ;;  %v13307_v52 = vld [vmem:[%s17482_s24 + $0x151] sm:$0xff] }
 0x2f9   : > { %v15326_v51 = vpop.f32.mrf.mxu1  ;;  %15625 = vmatmul.mubr.msk.f32.gmra.mxu1 %vm582_vm1, %v13304_v9  ;;  %v4804_v9 = vadd.f32 %v18798_v14, %v19075_v21  ;;  %v13308_v14 = vld [vmem:[%s17482_s24 + $0x159] sm:$0xff] }
 0x2fa   : > { %v19350_v34 = vpop.f32.mrf.mxu0  ;;  %15775 = vmatmul.mubr.msk.f32.gmra.mxu0 %vm582_vm1, %v8013_v15  ;;  %v19356_v24 = vadd.f32 %v15326_v51, %v4794_v44  ;;  %15627 = vmatprep.mubr.msk.f32.mxu1 %vm582_vm1, %v13305_v47  ;;  %v8015_v15 = vld [vmem:[#allocation2 + $0x142] sm:$0xff]  ;;  %v8016_v47 = vld [vmem:[#allocation2 + $0x152] sm:$0xff]  ;;  %v4799_v44 = vadd.f32 %v18808_v56, %v19086_v50 }
 0x2fb   : > { %15777 = vmatprep.mubr.msk.f32.mxu0 %vm582_vm1, %v8014_v32  ;;  %v5178_v46 = vpop.f32.mrf.mxu1 }
 0x2fc   : > { %v19361_v45 = vpop.f32.mrf.mxu0  ;;  %v19366_v58 = vadd.f32 %v5178_v46, %v4789_v33  ;;  %v13309_v33 = vld [vmem:[%s17482_s24 + $0x169] sm:$0xff] }
 0x2fd   : > { %v15329_v11 = vpop.f32.mrf.mxu1  ;;  %15628 = vmatmul.mubr.msk.f32.gmra.mxu1 %vm582_vm1, %v13306_v38  ;;  %v4814_v38 = vadd.f32 %v18818_v27, %v19091_v35  ;;  %v13310_v27 = vld [vmem:[%s17482_s24 + $0x171] sm:$0xff] }
 0x2fe   : > { %v19368_v37 = vpop.f32.mrf.mxu0  ;;  %15778 = vmatmul.mubr.msk.f32.gmra.mxu0 %vm582_vm1, %v8015_v15  ;;  %v19374_v51 = vadd.f32 %v15329_v11, %v4804_v9  ;;  %15630 = vmatprep.mubr.msk.f32.mxu1 %vm582_vm1, %v13307_v52  ;;  %v8017_v15 = vld [vmem:[#allocation2 + $0x15a] sm:$0xff]  ;;  %v8018_v52 = vld [vmem:[#allocation2 + $0x16a] sm:$0xff]  ;;  %v4809_v9 = vadd.f32 %v18828_v28, %v19102_v49 }
 0x2ff   : > { %15780 = vmatprep.mubr.msk.f32.mxu0 %vm582_vm1, %v8016_v47  ;;  %v5188_v21 = vpop.f32.mrf.mxu1 }
 0x300   : > { %v19379_v32 = vpop.f32.mrf.mxu0  ;;  %v19384_v46 = vadd.f32 %v5188_v21, %v4799_v44  ;;  %v13311_v44 = vld [vmem:[%s17482_s24 + $0x181] sm:$0xff] }
 0x301   : > { %22385 = vst [vmem:[#allocation4_spill] sm:$0xff] %v19379_v32  ;;  %v15332_v56 = vpop.f32.mrf.mxu1  ;;  %15631 = vmatmul.mubr.msk.f32.gmra.mxu1 %vm582_vm1, %v13308_v14  ;;  %v4824_v14 = vadd.f32 %v18838_v20, %v19107_v41  ;;  %v13312_v20 = vld [vmem:[%s17482_s24 + $0x189] sm:$0xff] }
 0x302   : > { %v19386_v50 = vpop.f32.mrf.mxu0  ;;  %15781 = vmatmul.mubr.msk.f32.gmra.mxu0 %vm582_vm1, %v8017_v15  ;;  %v19392_v11 = vadd.f32 %v15332_v56, %v4814_v38  ;;  %15633 = vmatprep.mubr.msk.f32.mxu1 %vm582_vm1, %v13309_v33  ;;  %v8019_v15 = vld [vmem:[#allocation2 + $0x172] sm:$0xff]  ;;  %v8020_v33 = vld [vmem:[#allocation2 + $0x182] sm:$0xff]  ;;  %v4819_v38 = vadd.f32 %v18848_v10, %v19116_v13  ;;  %v8021_v10 = vld [vmem:[#allocation2 + $0x18a] sm:$0xff] }
 0x303   : > { %22386 = vst [vmem:[#allocation40_spill] sm:$0xff] %v19386_v50  ;;  %15783 = vmatprep.mubr.msk.f32.mxu0 %vm582_vm1, %v8018_v52  ;;  %v5198_v35 = vpop.f32.mrf.mxu1 }
 0x304   : > { %v19397_v47 = vpop.f32.mrf.mxu0  ;;  %v19402_v21 = vadd.f32 %v5198_v35, %v4809_v9  ;;  %v13381_v9 = vld [vmem:[%s17482_s24 + $0x1a] sm:$0xff] }
 0x305   : > { %22387 = vst [vmem:[#allocation85_spill] sm:$0xff] %v19397_v47  ;;  %v15335_v28 = vpop.f32.mrf.mxu1  ;;  %15634 = vmatmul.mubr.msk.f32.gmra.mxu1 %vm582_vm1, %v13310_v27  ;;  %v22390_v35 = vld [vmem:[#allocation56_spill] sm:$0xff]  ;;  %v22391_v27 = vld [vmem:[#allocation15_spill] sm:$0xff]  ;;  %v22393_v47 = vld [vmem:[#allocation54_spill] sm:$0xff] }
 0x306   : > { %v19404_v49 = vpop.f32.mrf.mxu0  ;;  %15784 = vmatmul.mubr.msk.f32.gmra.mxu0 %vm582_vm1, %v8019_v15  ;;  %v19410_v56 = vadd.f32 %v15335_v28, %v4824_v14  ;;  %15636 = vmatprep.mubr.msk.f32.mxu1 %vm582_vm1, %v13311_v44  ;;  %v22392_v15 = vld [vmem:[#allocation57_spill] sm:$0xff]  ;;  %v8772_v44 = vld [vmem:[#allocation2 + $0x30] sm:$0xff] }
 0x307   : > { %22388 = vst [vmem:[#allocation86_spill] sm:$0xff] %v19404_v49  ;;  %15786 = vmatprep.mubr.msk.f32.mxu0 %vm582_vm1, %v8020_v33  ;;  %v5208_v41 = vpop.f32.mrf.mxu1  ;;  %v4679_v49 = vadd.f32 %v22391_v27, %v22390_v35  ;;  %v4834_v50 = vadd.f32 %v22393_v47, %v22392_v15  ;;  %v22395_v28 = vld [vmem:[#allocation33_spill] sm:$0xff]  ;;  %v22396_v33 = vld [vmem:[#allocation16_spill] sm:$0xff] }
 0x308   : > { %v19415_v52 = vpop.f32.mrf.mxu0  ;;  %v19422_v32 = vadd.f32 %v5208_v41, %v4819_v38  ;;  %v13382_v47 = vld [vmem:[%s17482_s24 + $0x22] sm:$0xff]  ;;  %v22397_v15 = vld [vmem:[#allocation24_spill] sm:$0xff] }
 0x309   : > { %22389 = vst [vmem:[#allocation87_spill] sm:$0xff] %v19415_v52  ;;  %v15338_v13 = vpop.f32.mrf.mxu1  ;;  %15637 = vmatmul.mubr.msk.f32.gmra.mxu1 %vm582_vm1, %v13312_v20  ;;  %v4829_v52 = vadd.f32 %v22396_v33, %v22395_v28  ;;  %v5227_v35 = vadd.f32 %v19151_v60, %v4679_v49  ;;  %v13383_v28 = vld [vmem:[%s17482_s24 + $0x32] sm:$0xff]  ;;  %v19446_v60 = vld [vmem:[%s21924_s4 + $0x1c] sm:$0xf] }
 0x30a   : > { %v19424_v14 = vpop.f32.mrf.mxu0  ;;  %15787 = vmatmul.mubr.msk.f32.gmra.mxu0 %vm582_vm1, %v8021_v10  ;;  %v19431_v27 = vadd.f32 %v15338_v13, %v4834_v50  ;;  %15691 = vmatprep.mubr.msk.f32.mxu1 %vm582_vm1, %v13381_v9  ;;  %v5586_v10 = vadd.f32 %v22397_v15, %v19145_v43  ;;  %v22399_v43 = vld [vmem:[#allocation41_spill] sm:$0xff]  ;;  %v13385_v15 = vld [vmem:[%s17482_s24 + $0x4a] sm:$0xff] }
 0x30b   : > { %22394 = vst [vmem:[#allocation56_spill] sm:$0xff] %v19424_v14  ;;  %15841 = vmatprep.mubr.msk.f32.mxu0 %vm582_vm1, %v8772_v44  ;;  %v5218_v38 = vpop.f32.mrf.mxu1  ;;  %v8773_v14 = vld [vmem:[#allocation2 + $0x38] sm:$0xff]  ;;  %v5585_v13 = vadd.f32 %v22399_v43, %v5227_v35  ;;  %v19474_v35 = vld [vmem:[%s21925_s5 + $0x20] sm:$0xf] }
 0x30c   : > { %v19436_v41 = vpop.f32.mrf.mxu0  ;;  %v19438_v20 = vadd.f32 %v5218_v38, %v4829_v52  ;;  %v8774_v52 = vld [vmem:[#allocation2 + $0x48] sm:$0xff]  ;;  %v13384_v44 = vld [vmem:[%s17482_s24 + $0x3a] sm:$0xff] }
 0x30d   : > { %v15393_v50 = vpop.f32.mrf.mxu1  ;;  %15692 = vmatmul.mubr.msk.f32.vlgmr.msra.gmra.mxu1 %vm582_vm1, %v13382_v47  ;;  %v22401_v47 = vld [vmem:[#allocation6_spill] sm:$0xff] }
 0x30e   : > { %v19448_v49 = vpop.f32.mrf.mxu0  ;;  %15842 = vmatmul.mubr.msk.f32.vlgmr.msra.gmra.mxu0 %vm582_vm1, %v8773_v14  ;;  %v19452_v9 = vadd.f32 %v15393_v50, %v5586_v10  ;;  %15790 = vmatpush3.msk.msra.mxu1 %vm679_vm0, %v19138_v12  ;;  %v5588_v12 = vadd.f32 %v22401_v47, %v19174_v55  ;;  %v8775_v10 = vld [vmem:[#allocation2 + $0x50] sm:$0xff]  ;;  %v22403_v55 = vld [vmem:[#allocation9_spill] sm:$0xff] }
 0x30f   : > { %22398 = vst [vmem:[#allocation15_spill] sm:$0xff] %v19448_v49  ;;  %15844 = vmatprep.mubr.msk.f32.mxu0 %vm582_vm1, %v8774_v52  ;;  %v5848_v33 = vpop.f32.mrf.mxu1  ;;  %15694 = vmatprep.mubr.msk.f32.mxu1 %vm582_vm1, %v13383_v28  ;;  %v8776_v52 = vld [vmem:[#allocation2 + $0x60] sm:$0xff] }
 0x310   : > { %v19459_v38 = vpop.f32.mrf.mxu0  ;;  %15889 = vmatprep.subr.msk.mxu1 %vm679_vm0, %v19446_v60  ;;  %v19465_v14 = vadd.f32 %v5848_v33, %v5585_v13  ;;  %15940 = vmatpush3.msk.msra.mxu0 %vm679_vm0, %v19166_v54  ;;  %v5587_v54 = vadd.f32 %v22403_v55, %v19186_v42  ;;  %v13386_v13 = vld [vmem:[%s17482_s24 + $0x52] sm:$0xff] }
 0x311   : > { %22400 = vst [vmem:[#allocation57_spill] sm:$0xff] %v19459_v38  ;;  %v15396_v28 = vpop.f32.mrf.mxu1  ;;  %15695 = vmatmul.mubr.msk.f32.gmra.mxu1 %vm582_vm1, %v13384_v44  ;;  %16039 = vmatprep.subr.msk.mxu0 %vm679_vm0, %v19474_v35 }
 0x312   : > { %v19476_v50 = vpop.f32.mrf.mxu0  ;;  %15845 = vmatmul.mubr.msk.f32.gmra.mxu0 %vm582_vm1, %v8775_v10  ;;  %v19480_v43 = vadd.f32 %v15396_v28, %v5588_v12  ;;  %15697 = vmatprep.mubr.msk.f32.mxu1 %vm582_vm1, %v13385_v15  ;;  %v22405_v12 = vld [vmem:[#allocation43_spill] sm:$0xff]  ;;  %v8777_v28 = vld [vmem:[#allocation2 + $0x68] sm:$0xff]  ;;  %v8778_v15 = vld [vmem:[#allocation2 + $0x78] sm:$0xff] }
 0x313   : > { %22402 = vst [vmem:[#allocation54_spill] sm:$0xff] %v19476_v50  ;;  %15847 = vmatprep.mubr.msk.f32.mxu0 %vm582_vm1, %v8776_v52  ;;  %v5858_v33 = vpop.f32.mrf.mxu1  ;;  %v13387_v50 = vld [vmem:[%s17482_s24 + $0x62] sm:$0xff]  ;;  %v5590_v10 = vadd.f32 %v22405_v12, %v19194_v53 }
 0x314   : > { %v19487_v47 = vpop.f32.mrf.mxu0  ;;  %v19492_v44 = vadd.f32 %v5858_v33, %v5587_v54  ;;  %v13388_v33 = vld [vmem:[%s17482_s24 + $0x6a] sm:$0xff] }
 0x315   : > { %22404 = vst [vmem:[#allocation33_spill] sm:$0xff] %v19487_v47  ;;  %v15399_v52 = vpop.f32.mrf.mxu1  ;;  %15698 = vmatmul.mubr.msk.f32.gmra.mxu1 %vm582_vm1, %v13386_v13  ;;  %v22407_v47 = vld [vmem:[#allocation58_spill] sm:$0xff] }
 0x316   : > { %v19496_v42 = vpop.f32.mrf.mxu0  ;;  %15848 = vmatmul.mubr.msk.f32.gmra.mxu0 %vm582_vm1, %v8777_v28  ;;  %v19500_v55 = vadd.f32 %v15399_v52, %v5590_v10  ;;  %v5589_v54 = vadd.f32 %v22407_v47, %v19204_v39  ;;  %15700 = vmatprep.mubr.msk.f32.mxu1 %vm582_vm1, %v13387_v50  ;;  %v22409_v28 = vld [vmem:[#allocation17_spill] sm:$0xff]  ;;  %v8780_v39 = vld [vmem:[#allocation2 + $0x90] sm:$0xff] }
 0x317   : > { %22406 = vst [vmem:[#allocation16_spill] sm:$0xff] %v19496_v42  ;;  %15850 = vmatprep.mubr.msk.f32.mxu0 %vm582_vm1, %v8778_v15  ;;  %v5868_v53 = vpop.f32.mrf.mxu1  ;;  %v13389_v42 = vld [vmem:[%s17482_s24 + $0x7a] sm:$0xff]  ;;  %v5592_v10 = vadd.f32 %v22409_v28, %v19212_v1 }
 0x318   : > { %v19507_v12 = vpop.f32.mrf.mxu0  ;;  %v19510_v13 = vadd.f32 %v5868_v53, %v5589_v54  ;;  %v8779_v52 = vld [vmem:[#allocation2 + $0x80] sm:$0xff] }
 0x319   : > { %22408 = vst [vmem:[#allocation24_spill] sm:$0xff] %v19507_v12  ;;  %v15402_v38 = vpop.f32.mrf.mxu1  ;;  %15701 = vmatmul.mubr.msk.f32.gmra.mxu1 %vm582_vm1, %v13388_v33  ;;  %v22411_v47 = vld [vmem:[#allocation25_spill] sm:$0xff] }
 0x31a   : > { %v19514_v15 = vpop.f32.mrf.mxu0  ;;  %15851 = vmatmul.mubr.msk.f32.gmra.mxu0 %vm582_vm1, %v8779_v52  ;;  %v19518_v50 = vadd.f32 %v15402_v38, %v5592_v10  ;;  %v5591_v54 = vadd.f32 %v22411_v47, %v19222_v25  ;;  %15703 = vmatprep.mubr.msk.f32.mxu1 %vm582_vm1, %v13389_v42  ;;  %v13390_v53 = vld [vmem:[%s17482_s24 + $0x82] sm:$0xff]  ;;  %v8781_v10 = vld [vmem:[#allocation2 + $0x98] sm:$0xff]  ;;  %v22415_v47 = vld [vmem:[#allocation59_spill] sm:$0xff] }
 0x31b   : > { %22410 = vst [vmem:[#allocation41_spill] sm:$0xff] %v19514_v15  ;;  %15853 = vmatprep.mubr.msk.f32.mxu0 %vm582_vm1, %v8780_v39  ;;  %v5878_v1 = vpop.f32.mrf.mxu1  ;;  %v13391_v15 = vld [vmem:[%s17482_s24 + $0x92] sm:$0xff]  ;;  %v22413_v52 = vld [vmem:[#allocation45_spill] sm:$0xff]  ;;  %v8782_v25 = vld [vmem:[#allocation2 + $0xa8] sm:$0xff] }
 0x31c   : > { %v19525_v28 = vpop.f32.mrf.mxu0  ;;  %v19528_v33 = vadd.f32 %v5878_v1, %v5591_v54  ;;  %v5594_v38 = vadd.f32 %v22413_v52, %v19230_v17  ;;  %v5593_v54 = vadd.f32 %v22415_v47, %v19240_v6  ;;  %v13392_v1 = vld [vmem:[%s17482_s24 + $0x9a] sm:$0xff]  ;;  %v22419_v47 = vld [vmem:[#allocation10_spill] sm:$0xff] }
 0x31d   : > { %22412 = vst [vmem:[#allocation6_spill] sm:$0xff] %v19525_v28  ;;  %v15405_v12 = vpop.f32.mrf.mxu1  ;;  %15704 = vmatmul.mubr.msk.f32.gmra.mxu1 %vm582_vm1, %v13390_v53  ;;  %v8784_v6 = vld [vmem:[#allocation2 + $0xc0] sm:$0xff] }
 0x31e   : > { %v19532_v39 = vpop.f32.mrf.mxu0  ;;  %15854 = vmatmul.mubr.msk.f32.gmra.mxu0 %vm582_vm1, %v8781_v10  ;;  %v19536_v42 = vadd.f32 %v15405_v12, %v5594_v38  ;;  %15706 = vmatprep.mubr.msk.f32.mxu1 %vm582_vm1, %v13391_v15  ;;  %v22417_v10 = vld [vmem:[#allocation11_spill] sm:$0xff] }
 0x31f   : > { %22414 = vst [vmem:[#allocation9_spill] sm:$0xff] %v19532_v39  ;;  %15856 = vmatprep.mubr.msk.f32.mxu0 %vm582_vm1, %v8782_v25  ;;  %v5888_v17 = vpop.f32.mrf.mxu1  ;;  %v13393_v39 = vld [vmem:[%s17482_s24 + $0xaa] sm:$0xff]  ;;  %v5596_v12 = vadd.f32 %v22417_v10, %v19248_v7 }
 0x320   : > { %v19543_v52 = vpop.f32.mrf.mxu0  ;;  %v19546_v53 = vadd.f32 %v5888_v17, %v5593_v54  ;;  %v8783_v38 = vld [vmem:[#allocation2 + $0xb0] sm:$0xff]  ;;  %v5595_v54 = vadd.f32 %v22419_v47, %v19258_v61  ;;  %v8786_v61 = vld [vmem:[#allocation2 + $0xd8] sm:$0xff] }
 0x321   : > { %22416 = vst [vmem:[#allocation43_spill] sm:$0xff] %v19543_v52  ;;  %v15408_v28 = vpop.f32.mrf.mxu1  ;;  %15707 = vmatmul.mubr.msk.f32.gmra.mxu1 %vm582_vm1, %v13392_v1  ;;  %v13394_v17 = vld [vmem:[%s17482_s24 + $0xb2] sm:$0xff] }
 0x322   : > { %v19550_v25 = vpop.f32.mrf.mxu0  ;;  %15857 = vmatmul.mubr.msk.f32.gmra.mxu0 %vm582_vm1, %v8783_v38  ;;  %v19554_v15 = vadd.f32 %v15408_v28, %v5596_v12  ;;  %15709 = vmatprep.mubr.msk.f32.mxu1 %vm582_vm1, %v13393_v39  ;;  %v22421_v38 = vld [vmem:[#allocation47_spill] sm:$0xff]  ;;  %v8785_v12 = vld [vmem:[#allocation2 + $0xc8] sm:$0xff]  ;;  %v22423_v47 = vld [vmem:[#allocation60_spill] sm:$0xff] }
 0x323   : > { %22418 = vst [vmem:[#allocation58_spill] sm:$0xff] %v19550_v25  ;;  %15859 = vmatprep.mubr.msk.f32.mxu0 %vm582_vm1, %v8784_v6  ;;  %v5898_v7 = vpop.f32.mrf.mxu1  ;;  %v13395_v25 = vld [vmem:[%s17482_s24 + $0xc2] sm:$0xff]  ;;  %v5598_v28 = vadd.f32 %v22421_v38, %v19266_v8 }
 0x324   : > { %v19561_v10 = vpop.f32.mrf.mxu0  ;;  %v19564_v1 = vadd.f32 %v5898_v7, %v5595_v54  ;;  %v5597_v54 = vadd.f32 %v22423_v47, %v19276_v19  ;;  %v13396_v7 = vld [vmem:[%s17482_s24 + $0xca] sm:$0xff] }
 0x325   : > { %22420 = vst [vmem:[#allocation17_spill] sm:$0xff] %v19561_v10  ;;  %v15411_v52 = vpop.f32.mrf.mxu1  ;;  %15710 = vmatmul.mubr.msk.f32.gmra.mxu1 %vm582_vm1, %v13394_v17  ;;  %v8788_v19 = vld [vmem:[#allocation2 + $0xf0] sm:$0xff] }
 0x326   : > { %v19568_v6 = vpop.f32.mrf.mxu0  ;;  %15860 = vmatmul.mubr.msk.f32.gmra.mxu0 %vm582_vm1, %v8785_v12  ;;  %v19572_v39 = vadd.f32 %v15411_v52, %v5598_v28  ;;  %15712 = vmatprep.mubr.msk.f32.mxu1 %vm582_vm1, %v13395_v25  ;;  %v22425_v12 = vld [vmem:[#allocation18_spill] sm:$0xff]  ;;  %v8787_v28 = vld [vmem:[#allocation2 + $0xe0] sm:$0xff]  ;;  %v22427_v47 = vld [vmem:[#allocation27_spill] sm:$0xff] }
 0x327   : > { %22422 = vst [vmem:[#allocation25_spill] sm:$0xff] %v19568_v6  ;;  %15862 = vmatprep.mubr.msk.f32.mxu0 %vm582_vm1, %v8786_v61  ;;  %v5908_v8 = vpop.f32.mrf.mxu1  ;;  %v13397_v6 = vld [vmem:[%s17482_s24 + $0xda] sm:$0xff]  ;;  %v5600_v52 = vadd.f32 %v22425_v12, %v19284_v23 }
 0x328   : > { %v19579_v38 = vpop.f32.mrf.mxu0  ;;  %v19582_v17 = vadd.f32 %v5908_v8, %v5597_v54  ;;  %v5599_v54 = vadd.f32 %v22427_v47, %v19294_v3  ;;  %v13398_v8 = vld [vmem:[%s17482_s24 + $0xe2] sm:$0xff] }
 0x329   : > { %22424 = vst [vmem:[#allocation45_spill] sm:$0xff] %v19579_v38  ;;  %v15414_v10 = vpop.f32.mrf.mxu1  ;;  %15713 = vmatmul.mubr.msk.f32.gmra.mxu1 %vm582_vm1, %v13396_v7  ;;  %v8790_v3 = vld [vmem:[#allocation2 + $0x108] sm:$0xff]  ;;  %v22431_v47 = vld [vmem:[#allocation61_spill] sm:$0xff] }
 0x32a   : > { %v19586_v61 = vpop.f32.mrf.mxu0  ;;  %15863 = vmatmul.mubr.msk.f32.gmra.mxu0 %vm582_vm1, %v8787_v28  ;;  %v19590_v25 = vadd.f32 %v15414_v10, %v5600_v52  ;;  %15715 = vmatprep.mubr.msk.f32.mxu1 %vm582_vm1, %v13397_v6  ;;  %v22429_v28 = vld [vmem:[#allocation49_spill] sm:$0xff]  ;;  %v8789_v52 = vld [vmem:[#allocation2 + $0xf8] sm:$0xff] }
 0x32b   : > { %22426 = vst [vmem:[#allocation59_spill] sm:$0xff] %v19586_v61  ;;  %15865 = vmatprep.mubr.msk.f32.mxu0 %vm582_vm1, %v8788_v19  ;;  %v5918_v23 = vpop.f32.mrf.mxu1  ;;  %v13399_v61 = vld [vmem:[%s17482_s24 + $0xf2] sm:$0xff]  ;;  %v5602_v10 = vadd.f32 %v22429_v28, %v19302_v26 }
 0x32c   : > { %v19597_v12 = vpop.f32.mrf.mxu0  ;;  %v19600_v7 = vadd.f32 %v5918_v23, %v5599_v54  ;;  %v5601_v54 = vadd.f32 %v22431_v47, %v19312_v5  ;;  %v13400_v23 = vld [vmem:[%s17482_s24 + $0xfa] sm:$0xff] }
 0x32d   : > { %22428 = vst [vmem:[#allocation11_spill] sm:$0xff] %v19597_v12  ;;  %v15417_v38 = vpop.f32.mrf.mxu1  ;;  %15716 = vmatmul.mubr.msk.f32.gmra.mxu1 %vm582_vm1, %v13398_v8  ;;  %v8792_v5 = vld [vmem:[#allocation2 + $0x120] sm:$0xff]  ;;  %v22435_v47 = vld [vmem:[#allocation12_spill] sm:$0xff] }
 0x32e   : > { %v19604_v19 = vpop.f32.mrf.mxu0  ;;  %15866 = vmatmul.mubr.msk.f32.gmra.mxu0 %vm582_vm1, %v8789_v52  ;;  %v19608_v6 = vadd.f32 %v15417_v38, %v5602_v10  ;;  %15718 = vmatprep.mubr.msk.f32.mxu1 %vm582_vm1, %v13399_v61  ;;  %v22433_v52 = vld [vmem:[#allocation30_spill] sm:$0xff]  ;;  %v8791_v10 = vld [vmem:[#allocation2 + $0x110] sm:$0xff] }
 0x32f   : > { %22430 = vst [vmem:[#allocation10_spill] sm:$0xff] %v19604_v19  ;;  %15868 = vmatprep.mubr.msk.f32.mxu0 %vm582_vm1, %v8790_v3  ;;  %v5928_v26 = vpop.f32.mrf.mxu1  ;;  %v13401_v19 = vld [vmem:[%s17482_s24 + $0x10a] sm:$0xff]  ;;  %v5604_v38 = vadd.f32 %v22433_v52, %v19320_v16 }
 0x330   : > { %v19615_v28 = vpop.f32.mrf.mxu0  ;;  %v19618_v8 = vadd.f32 %v5928_v26, %v5601_v54  ;;  %v5603_v54 = vadd.f32 %v22435_v47, %v19330_v36  ;;  %v13402_v26 = vld [vmem:[%s17482_s24 + $0x112] sm:$0xff]  ;;  %v22439_v47 = vld [vmem:[#allocation62_spill] sm:$0xff] }
 0x331   : > { %22432 = vst [vmem:[#allocation47_spill] sm:$0xff] %v19615_v28  ;;  %v15420_v12 = vpop.f32.mrf.mxu1  ;;  %15719 = vmatmul.mubr.msk.f32.gmra.mxu1 %vm582_vm1, %v13400_v23  ;;  %v8794_v36 = vld [vmem:[#allocation2 + $0x138] sm:$0xff] }
 0x332   : > { %v19622_v3 = vpop.f32.mrf.mxu0  ;;  %15869 = vmatmul.mubr.msk.f32.gmra.mxu0 %vm582_vm1, %v8791_v10  ;;  %v19626_v61 = vadd.f32 %v15420_v12, %v5604_v38  ;;  %15721 = vmatprep.mubr.msk.f32.mxu1 %vm582_vm1, %v13401_v19  ;;  %v22437_v10 = vld [vmem:[#allocation51_spill] sm:$0xff]  ;;  %v8793_v38 = vld [vmem:[#allocation2 + $0x128] sm:$0xff] }
 0x333   : > { %22434 = vst [vmem:[#allocation60_spill] sm:$0xff] %v19622_v3  ;;  %15871 = vmatprep.mubr.msk.f32.mxu0 %vm582_vm1, %v8792_v5  ;;  %v5938_v16 = vpop.f32.mrf.mxu1  ;;  %v13403_v3 = vld [vmem:[%s17482_s24 + $0x122] sm:$0xff]  ;;  %v5606_v12 = vadd.f32 %v22437_v10, %v19338_v48 }
 0x334   : > { %v19633_v52 = vpop.f32.mrf.mxu0  ;;  %v19636_v23 = vadd.f32 %v5938_v16, %v5603_v54  ;;  %v5605_v54 = vadd.f32 %v22439_v47, %v19348_v30  ;;  %v13404_v16 = vld [vmem:[%s17482_s24 + $0x12a] sm:$0xff]  ;;  %v22443_v47 = vld [vmem:[#allocation8_spill] sm:$0xff] }
 0x335   : > { %22436 = vst [vmem:[#allocation18_spill] sm:$0xff] %v19633_v52  ;;  %v15423_v28 = vpop.f32.mrf.mxu1  ;;  %15722 = vmatmul.mubr.msk.f32.gmra.mxu1 %vm582_vm1, %v13402_v26  ;;  %v8796_v30 = vld [vmem:[#allocation2 + $0x150] sm:$0xff] }
 0x336   : > { %v19640_v5 = vpop.f32.mrf.mxu0  ;;  %15872 = vmatmul.mubr.msk.f32.gmra.mxu0 %vm582_vm1, %v8793_v38  ;;  %v19644_v19 = vadd.f32 %v15423_v28, %v5606_v12  ;;  %15724 = vmatprep.mubr.msk.f32.mxu1 %vm582_vm1, %v13403_v3  ;;  %v22441_v38 = vld [vmem:[#allocation19_spill] sm:$0xff]  ;;  %v8795_v12 = vld [vmem:[#allocation2 + $0x140] sm:$0xff] }
 0x337   : > { %22438 = vst [vmem:[#allocation27_spill] sm:$0xff] %v19640_v5  ;;  %15874 = vmatprep.mubr.msk.f32.mxu0 %vm582_vm1, %v8794_v36  ;;  %v5948_v48 = vpop.f32.mrf.mxu1  ;;  %v13405_v5 = vld [vmem:[%s17482_s24 + $0x13a] sm:$0xff]  ;;  %v5608_v28 = vadd.f32 %v22441_v38, %v19356_v24 }
 0x338   : > { %v19651_v10 = vpop.f32.mrf.mxu0  ;;  %v19654_v26 = vadd.f32 %v5948_v48, %v5605_v54  ;;  %v5607_v54 = vadd.f32 %v22443_v47, %v19366_v58  ;;  %v13406_v48 = vld [vmem:[%s17482_s24 + $0x142] sm:$0xff]  ;;  %v22447_v47 = vld [vmem:[#allocation63_spill] sm:$0xff] }
 0x339   : > { %22440 = vst [vmem:[#allocation49_spill] sm:$0xff] %v19651_v10  ;;  %v15426_v52 = vpop.f32.mrf.mxu1  ;;  %15725 = vmatmul.mubr.msk.f32.gmra.mxu1 %vm582_vm1, %v13404_v16  ;;  %v8798_v58 = vld [vmem:[#allocation2 + $0x168] sm:$0xff] }
 0x33a   : > { %v19658_v36 = vpop.f32.mrf.mxu0  ;;  %15875 = vmatmul.mubr.msk.f32.gmra.mxu0 %vm582_vm1, %v8795_v12  ;;  %v19662_v3 = vadd.f32 %v15426_v52, %v5608_v28  ;;  %15727 = vmatprep.mubr.msk.f32.mxu1 %vm582_vm1, %v13405_v5  ;;  %v22445_v12 = vld [vmem:[#allocation53_spill] sm:$0xff]  ;;  %v8797_v28 = vld [vmem:[#allocation2 + $0x158] sm:$0xff] }
 0x33b   : > { %22442 = vst [vmem:[#allocation61_spill] sm:$0xff] %v19658_v36  ;;  %15877 = vmatprep.mubr.msk.f32.mxu0 %vm582_vm1, %v8796_v30  ;;  %v5958_v24 = vpop.f32.mrf.mxu1  ;;  %v13407_v36 = vld [vmem:[%s17482_s24 + $0x152] sm:$0xff]  ;;  %v5610_v52 = vadd.f32 %v22445_v12, %v19374_v51 }
 0x33c   : > { %v19669_v38 = vpop.f32.mrf.mxu0  ;;  %v19672_v16 = vadd.f32 %v5958_v24, %v5607_v54  ;;  %v5609_v54 = vadd.f32 %v22447_v47, %v19384_v46  ;;  %v13408_v24 = vld [vmem:[%s17482_s24 + $0x15a] sm:$0xff]  ;;  %v22451_v47 = vld [vmem:[#allocation31_spill] sm:$0xff] }
 0x33d   : > { %22444 = vst [vmem:[#allocation30_spill] sm:$0xff] %v19669_v38  ;;  %v15429_v10 = vpop.f32.mrf.mxu1  ;;  %15728 = vmatmul.mubr.msk.f32.gmra.mxu1 %vm582_vm1, %v13406_v48  ;;  %v8800_v46 = vld [vmem:[#allocation2 + $0x180] sm:$0xff] }
 0x33e   : > { %v19676_v30 = vpop.f32.mrf.mxu0  ;;  %15878 = vmatmul.mubr.msk.f32.gmra.mxu0 %vm582_vm1, %v8797_v28  ;;  %v19680_v5 = vadd.f32 %v15429_v10, %v5610_v52  ;;  %15730 = vmatprep.mubr.msk.f32.mxu1 %vm582_vm1, %v13407_v36  ;;  %v22449_v28 = vld [vmem:[#allocation32_spill] sm:$0xff]  ;;  %v8799_v52 = vld [vmem:[#allocation2 + $0x170] sm:$0xff] }
 0x33f   : > { %22446 = vst [vmem:[#allocation12_spill] sm:$0xff] %v19676_v30  ;;  %15880 = vmatprep.mubr.msk.f32.mxu0 %vm582_vm1, %v8798_v58  ;;  %v5968_v51 = vpop.f32.mrf.mxu1  ;;  %v13409_v30 = vld [vmem:[%s17482_s24 + $0x16a] sm:$0xff]  ;;  %v5612_v10 = vadd.f32 %v22449_v28, %v19392_v11 }
 0x340   : > { %v19687_v12 = vpop.f32.mrf.mxu0  ;;  %v19690_v48 = vadd.f32 %v5968_v51, %v5609_v54  ;;  %v5611_v54 = vadd.f32 %v22451_v47, %v19402_v21  ;;  %v13410_v51 = vld [vmem:[%s17482_s24 + $0x172] sm:$0xff] }
 0x341   : > { %22448 = vst [vmem:[#allocation51_spill] sm:$0xff] %v19687_v12  ;;  %v15432_v38 = vpop.f32.mrf.mxu1  ;;  %15731 = vmatmul.mubr.msk.f32.gmra.mxu1 %vm582_vm1, %v13408_v24  ;;  %v8802_v12 = vld [vmem:[#allocation2 + $0x198] sm:$0xff] }
 0x342   : > { %v19694_v58 = vpop.f32.mrf.mxu0  ;;  %15881 = vmatmul.mubr.msk.f32.gmra.mxu0 %vm582_vm1, %v8799_v52  ;;  %v19698_v36 = vadd.f32 %v15432_v38, %v5612_v10  ;;  %15733 = vmatprep.mubr.msk.f32.mxu1 %vm582_vm1, %v13409_v30  ;;  %v22453_v38 = vld [vmem:[#allocation55_spill] sm:$0xff]  ;;  %v8801_v52 = vld [vmem:[#allocation2 + $0x188] sm:$0xff]  ;;  %v22455_v30 = vld [vmem:[#allocation64_spill] sm:$0xff] }
 0x343   : > { %22450 = vst [vmem:[#allocation62_spill] sm:$0xff] %v19694_v58  ;;  %15883 = vmatprep.mubr.msk.f32.mxu0 %vm582_vm1, %v8800_v46  ;;  %v5978_v11 = vpop.f32.mrf.mxu1  ;;  %v13411_v58 = vld [vmem:[%s17482_s24 + $0x182] sm:$0xff]  ;;  %v5614_v10 = vadd.f32 %v22453_v38, %v19410_v56  ;;  %v5613_v47 = vadd.f32 %v22455_v30, %v19422_v32  ;;  %v9552_v32 = vld [vmem:[#allocation2 + $0x31] sm:$0xff] }
 0x344   : > { %v19705_v28 = vpop.f32.mrf.mxu0  ;;  %v19708_v24 = vadd.f32 %v5978_v11, %v5611_v54  ;;  %v13412_v54 = vld [vmem:[%s17482_s24 + $0x18a] sm:$0xff]  ;;  %v8803_v56 = vld [vmem:[#allocation2 + $0x1a0] sm:$0xff] }
 0x345   : > { %22452 = vst [vmem:[#allocation19_spill] sm:$0xff] %v19705_v28  ;;  %v15435_v46 = vpop.f32.mrf.mxu1  ;;  %15734 = vmatmul.mubr.msk.f32.gmra.mxu1 %vm582_vm1, %v13410_v51  ;;  %v22456_v51 = vld [vmem:[#allocation65_spill] sm:$0xff] }
 0x346   : > { %v19712_v49 = vpop.f32.mrf.mxu0  ;;  %15884 = vmatmul.mubr.msk.f32.gmra.mxu0 %vm582_vm1, %v8801_v52  ;;  %v19716_v21 = vadd.f32 %v15435_v46, %v5614_v10  ;;  %15736 = vmatprep.mubr.msk.f32.mxu1 %vm582_vm1, %v13411_v58  ;;  %v5616_v10 = vadd.f32 %v22456_v51, %v19431_v27  ;;  %v22458_v58 = vld [vmem:[#allocation78_spill] sm:$0xff] }
 0x347   : > { %22454 = vst [vmem:[#allocation8_spill] sm:$0xff] %v19712_v49  ;;  %15886 = vmatprep.mubr.msk.f32.mxu0 %vm582_vm1, %v8802_v12  ;;  %v5988_v11 = vpop.f32.mrf.mxu1  ;;  %v13481_v49 = vld [vmem:[%s17482_s24 + $0x30] sm:$0xff]  ;;  %v5615_v30 = vadd.f32 %v22458_v58, %v19438_v20 }
 0x348   : > { %v19723_v38 = vpop.f32.mrf.mxu0  ;;  %v19726_v28 = vadd.f32 %v5988_v11, %v5613_v47  ;;  %v13482_v47 = vld [vmem:[%s17482_s24 + $0x38] sm:$0xff] }
 0x349   : > { %v15438_v52 = vpop.f32.mrf.mxu1  ;;  %15737 = vmatmul.mubr.msk.f32.gmra.mxu1 %vm582_vm1, %v13412_v54  ;;  %v22460_v54 = vld [vmem:[#allocation79_spill] sm:$0xff] }
 0x34a   : > { %v19730_v46 = vpop.f32.mrf.mxu0  ;;  %15887 = vmatmul.mubr.msk.f32.gmra.mxu0 %vm582_vm1, %v8803_v56  ;;  %v19734_v12 = vadd.f32 %v15438_v52, %v5616_v10  ;;  %15791 = vmatprep.mubr.msk.f32.mxu1 %vm582_vm1, %v13481_v49  ;;  %v6366_v56 = vadd.f32 %v22460_v54, %v19452_v9  ;;  %v13483_v10 = vld [vmem:[%s17482_s24 + $0x48] sm:$0xff]  ;;  %v19751_v52 = vld [vmem:[%s21924_s4 + $0x20] sm:$0xf]  ;;  %v22461_v9 = vld [vmem:[#allocation80_spill] sm:$0xff] }
 0x34b   : > { %22457 = vst [vmem:[#allocation53_spill] sm:$0xff] %v19730_v46  ;;  %15941 = vmatprep.mubr.msk.f32.mxu0 %vm582_vm1, %v9552_v32  ;;  %v5998_v27 = vpop.f32.mrf.mxu1  ;;  %v9553_v46 = vld [vmem:[#allocation2 + $0x39] sm:$0xff]  ;;  %v9554_v32 = vld [vmem:[#allocation2 + $0x49] sm:$0xff] }
 0x34c   : > { %v19741_v11 = vpop.f32.mrf.mxu0  ;;  %v19743_v51 = vadd.f32 %v5998_v27, %v5615_v30  ;;  %v6365_v30 = vadd.f32 %v22461_v9, %v19465_v14  ;;  %v13484_v27 = vld [vmem:[%s17482_s24 + $0x50] sm:$0xff] }
 0x34d   : > { %22459 = vst [vmem:[#allocation63_spill] sm:$0xff] %v19741_v11  ;;  %v15493_v20 = vpop.f32.mrf.mxu1  ;;  %15792 = vmatmul.mubr.msk.f32.vlgmr.msra.gmra.mxu1 %vm582_vm1, %v13482_v47  ;;  %v13485_v47 = vld [vmem:[%s17482_s24 + $0x60] sm:$0xff] }
 0x34e   : > { %v19753_v49 = vpop.f32.mrf.mxu0  ;;  %15942 = vmatmul.mubr.msk.f32.vlgmr.msra.gmra.mxu0 %vm582_vm1, %v9553_v46  ;;  %v19757_v58 = vadd.f32 %v15493_v20, %v6366_v56  ;;  %15890 = vmatpush3.msk.msra.mxu1 %vm679_vm0, %v19446_v60  ;;  %v22462_v60 = vld [vmem:[#allocation81_spill] sm:$0xff]  ;;  %v9555_v20 = vld [vmem:[#allocation2 + $0x51] sm:$0xff] }
 0x34f   : > { %15944 = vmatprep.mubr.msk.f32.mxu0 %vm582_vm1, %v9554_v32  ;;  %v6629_v54 = vpop.f32.mrf.mxu1  ;;  %15794 = vmatprep.mubr.msk.f32.mxu1 %vm582_vm1, %v13483_v10  ;;  %v6368_v56 = vadd.f32 %v22462_v60, %v19480_v43  ;;  %v9556_v10 = vld [vmem:[#allocation2 + $0x61] sm:$0xff]  ;;  %v13487_v60 = vld [vmem:[%s17482_s24 + $0x78] sm:$0xff] }
 0x350   : > { %v19765_v11 = vpop.f32.mrf.mxu0  ;;  %15989 = vmatprep.subr.msk.mxu1 %vm679_vm0, %v19751_v52  ;;  %v19771_v46 = vadd.f32 %v6629_v54, %v6365_v30  ;;  %16040 = vmatpush3.msk.msra.mxu0 %vm679_vm0, %v19474_v35  ;;  %v6367_v30 = vadd.f32 %v19179_v57, %v19492_v44  ;;  %v13486_v43 = vld [vmem:[%s17482_s24 + $0x68] sm:$0xff]  ;;  %v9558_v57 = vld [vmem:[#allocation2 + $0x79] sm:$0xff] }
 0x351   : > { %v15496_v14 = vpop.f32.mrf.mxu1  ;;  %15795 = vmatmul.mubr.msk.f32.gmra.mxu1 %vm582_vm1, %v13484_v27 }
 0x352   : > { %v19777_v32 = vpop.f32.mrf.mxu0  ;;  %15945 = vmatmul.mubr.msk.f32.gmra.mxu0 %vm582_vm1, %v9555_v20  ;;  %v19781_v9 = vadd.f32 %v15496_v14, %v6368_v56  ;;  %15797 = vmatprep.mubr.msk.f32.mxu1 %vm582_vm1, %v13485_v47  ;;  %v22464_v20 = vld [vmem:[#allocation82_spill] sm:$0xff]  ;;  %v6369_v47 = vadd.f32 %v19199_v31, %v19510_v13  ;;  %v9560_v31 = vld [vmem:[#allocation2 + $0x91] sm:$0xff] }
 0x353   : > { %22463 = vst [vmem:[#allocation32_spill] sm:$0xff] %v19777_v32  ;;  %15947 = vmatprep.mubr.msk.f32.mxu0 %vm582_vm1, %v9556_v10  ;;  %v6639_v35 = vpop.f32.mrf.mxu1  ;;  %v6370_v56 = vadd.f32 %v22464_v20, %v19500_v55  ;;  %v9557_v14 = vld [vmem:[#allocation2 + $0x69] sm:$0xff] }
 0x354   : > { %v19788_v54 = vpop.f32.mrf.mxu0  ;;  %v19791_v27 = vadd.f32 %v6639_v35, %v6367_v30  ;;  %v13488_v30 = vld [vmem:[%s17482_s24 + $0x80] sm:$0xff]  ;;  %v13489_v20 = vld [vmem:[%s17482_s24 + $0x90] sm:$0xff] }
 0x355   : > { %v15499_v32 = vpop.f32.mrf.mxu1  ;;  %15798 = vmatmul.mubr.msk.f32.gmra.mxu1 %vm582_vm1, %v13486_v43 }
 0x356   : > { %v19795_v10 = vpop.f32.mrf.mxu0  ;;  %15948 = vmatmul.mubr.msk.f32.gmra.mxu0 %vm582_vm1, %v9557_v14  ;;  %v19799_v44 = vadd.f32 %v15499_v32, %v6370_v56  ;;  %15800 = vmatprep.mubr.msk.f32.mxu1 %vm582_vm1, %v13487_v60  ;;  %v6372_v32 = vadd.f32 %v19206_v2, %v19518_v50  ;;  %v9559_v56 = vld [vmem:[#allocation2 + $0x81] sm:$0xff]  ;;  %v22467_v60 = vld [vmem:[#allocation83_spill] sm:$0xff] }
 0x357   : > { %15950 = vmatprep.mubr.msk.f32.mxu0 %vm582_vm1, %v9558_v57  ;;  %v6649_v55 = vpop.f32.mrf.mxu1 }
 0x358   : > { %v19806_v35 = vpop.f32.mrf.mxu0  ;;  %v19809_v43 = vadd.f32 %v6649_v55, %v6369_v47  ;;  %v6371_v47 = vadd.f32 %v22467_v60, %v19528_v33  ;;  %v13490_v55 = vld [vmem:[%s17482_s24 + $0x98] sm:$0xff]  ;;  %v9562_v33 = vld [vmem:[#allocation2 + $0xa9] sm:$0xff] }
 0x359   : > { %22465 = vst [vmem:[#allocation31_spill] sm:$0xff] %v19806_v35  ;;  %v15502_v14 = vpop.f32.mrf.mxu1  ;;  %15801 = vmatmul.mubr.msk.f32.gmra.mxu1 %vm582_vm1, %v13488_v30  ;;  %v22471_v60 = vld [vmem:[#allocation22_spill] sm:$0xff] }
 0x35a   : > { %v19813_v57 = vpop.f32.mrf.mxu0  ;;  %15951 = vmatmul.mubr.msk.f32.gmra.mxu0 %vm582_vm1, %v9559_v56  ;;  %v19817_v13 = vadd.f32 %v15502_v14, %v6372_v32  ;;  %15803 = vmatprep.mubr.msk.f32.mxu1 %vm582_vm1, %v13489_v20  ;;  %v22469_v56 = vld [vmem:[#allocation84_spill] sm:$0xff] }
 0x35b   : > { %22466 = vst [vmem:[#allocation55_spill] sm:$0xff] %v19813_v57  ;;  %15953 = vmatprep.mubr.msk.f32.mxu0 %vm582_vm1, %v9560_v31  ;;  %v6659_v2 = vpop.f32.mrf.mxu1  ;;  %v13491_v57 = vld [vmem:[%s17482_s24 + $0xa8] sm:$0xff]  ;;  %v6374_v32 = vadd.f32 %v22469_v56, %v19536_v42  ;;  %v9561_v14 = vld [vmem:[#allocation2 + $0x99] sm:$0xff] }
 0x35c   : > { %v19824_v50 = vpop.f32.mrf.mxu0  ;;  %v19827_v30 = vadd.f32 %v6659_v2, %v6371_v47  ;;  %v6373_v47 = vadd.f32 %v22471_v60, %v19546_v53  ;;  %v13492_v2 = vld [vmem:[%s17482_s24 + $0xb0] sm:$0xff]  ;;  %v9564_v53 = vld [vmem:[#allocation2 + $0xc1] sm:$0xff]  ;;  %v22475_v60 = vld [vmem:[#allocation52_spill] sm:$0xff] }
 0x35d   : > { %22468 = vst [vmem:[#allocation64_spill] sm:$0xff] %v19824_v50  ;;  %v15505_v35 = vpop.f32.mrf.mxu1  ;;  %15804 = vmatmul.mubr.msk.f32.gmra.mxu1 %vm582_vm1, %v13490_v55 }
 0x35e   : > { %v19831_v31 = vpop.f32.mrf.mxu0  ;;  %15954 = vmatmul.mubr.msk.f32.gmra.mxu0 %vm582_vm1, %v9561_v14  ;;  %v19835_v20 = vadd.f32 %v15505_v35, %v6374_v32  ;;  %15806 = vmatprep.mubr.msk.f32.mxu1 %vm582_vm1, %v13491_v57  ;;  %v22473_v14 = vld [vmem:[#allocation39_spill] sm:$0xff] }
 0x35f   : > { %22470 = vst [vmem:[#allocation65_spill] sm:$0xff] %v19831_v31  ;;  %15956 = vmatprep.mubr.msk.f32.mxu0 %vm582_vm1, %v9562_v33  ;;  %v6669_v42 = vpop.f32.mrf.mxu1  ;;  %v13493_v31 = vld [vmem:[%s17482_s24 + $0xc0] sm:$0xff]  ;;  %v6376_v35 = vadd.f32 %v22473_v14, %v19554_v15  ;;  %v9563_v32 = vld [vmem:[#allocation2 + $0xb1] sm:$0xff] }
 0x360   : > { %v19842_v56 = vpop.f32.mrf.mxu0  ;;  %v19845_v55 = vadd.f32 %v6669_v42, %v6373_v47  ;;  %v6375_v47 = vadd.f32 %v22475_v60, %v19564_v1  ;;  %v13494_v42 = vld [vmem:[%s17482_s24 + $0xc8] sm:$0xff]  ;;  %v9566_v1 = vld [vmem:[#allocation2 + $0xd9] sm:$0xff]  ;;  %v6377_v60 = vadd.f32 %v19271_v22, %v19582_v17  ;;  %v9568_v22 = vld [vmem:[#allocation2 + $0xf1] sm:$0xff] }
 0x361   : > { %22472 = vst [vmem:[#allocation78_spill] sm:$0xff] %v19842_v56  ;;  %v15508_v50 = vpop.f32.mrf.mxu1  ;;  %15807 = vmatmul.mubr.msk.f32.gmra.mxu1 %vm582_vm1, %v13492_v2 }
 0x362   : > { %v19849_v33 = vpop.f32.mrf.mxu0  ;;  %15957 = vmatmul.mubr.msk.f32.gmra.mxu0 %vm582_vm1, %v9563_v32  ;;  %v19853_v57 = vadd.f32 %v15508_v50, %v6376_v35  ;;  %15809 = vmatprep.mubr.msk.f32.mxu1 %vm582_vm1, %v13493_v31  ;;  %v22476_v32 = vld [vmem:[#allocation5_spill] sm:$0xff]  ;;  %v9565_v35 = vld [vmem:[#allocation2 + $0xc9] sm:$0xff] }
 0x363   : > { %22474 = vst [vmem:[#allocation79_spill] sm:$0xff] %v19849_v33  ;;  %15959 = vmatprep.mubr.msk.f32.mxu0 %vm582_vm1, %v9564_v53  ;;  %v6679_v15 = vpop.f32.mrf.mxu1  ;;  %v13495_v33 = vld [vmem:[%s17482_s24 + $0xd8] sm:$0xff]  ;;  %v6378_v50 = vadd.f32 %v22476_v32, %v19572_v39  ;;  %v13497_v32 = vld [vmem:[%s17482_s24 + $0xf0] sm:$0xff] }
 0x364   : > { %v19860_v14 = vpop.f32.mrf.mxu0  ;;  %v19863_v2 = vadd.f32 %v6679_v15, %v6375_v47  ;;  %v13496_v47 = vld [vmem:[%s17482_s24 + $0xe0] sm:$0xff] }
 0x365   : > { %v15511_v56 = vpop.f32.mrf.mxu1  ;;  %15810 = vmatmul.mubr.msk.f32.gmra.mxu1 %vm582_vm1, %v13494_v42 }
 0x366   : > { %v19867_v53 = vpop.f32.mrf.mxu0  ;;  %15960 = vmatmul.mubr.msk.f32.gmra.mxu0 %vm582_vm1, %v9565_v35  ;;  %v19871_v31 = vadd.f32 %v15511_v56, %v6378_v50  ;;  %15812 = vmatprep.mubr.msk.f32.mxu1 %vm582_vm1, %v13495_v33  ;;  %v6380_v56 = vadd.f32 %v19278_v40, %v19590_v25  ;;  %v9567_v50 = vld [vmem:[#allocation2 + $0xe1] sm:$0xff]  ;;  %v6379_v33 = vadd.f32 %v19289_v59, %v19600_v7  ;;  %v9570_v59 = vld [vmem:[#allocation2 + $0x109] sm:$0xff] }
 0x367   : > { %15962 = vmatprep.mubr.msk.f32.mxu0 %vm582_vm1, %v9566_v1  ;;  %v6689_v39 = vpop.f32.mrf.mxu1 }
 0x368   : > { %v19878_v15 = vpop.f32.mrf.mxu0  ;;  %v19881_v42 = vadd.f32 %v6689_v39, %v6377_v60  ;;  %v13498_v60 = vld [vmem:[%s17482_s24 + $0xf8] sm:$0xff]  ;;  %v13499_v39 = vld [vmem:[%s17482_s24 + $0x108] sm:$0xff] }
 0x369   : > { %v15514_v35 = vpop.f32.mrf.mxu1  ;;  %15813 = vmatmul.mubr.msk.f32.gmra.mxu1 %vm582_vm1, %v13496_v47 }
 0x36a   : > { %v19885_v1 = vpop.f32.mrf.mxu0  ;;  %15963 = vmatmul.mubr.msk.f32.gmra.mxu0 %vm582_vm1, %v9567_v50  ;;  %v19889_v17 = vadd.f32 %v15514_v35, %v6380_v56  ;;  %15815 = vmatprep.mubr.msk.f32.mxu1 %vm582_vm1, %v13497_v32  ;;  %v6382_v56 = vadd.f32 %v19296_v18, %v19608_v6  ;;  %v9569_v50 = vld [vmem:[#allocation2 + $0xf9] sm:$0xff]  ;;  %v6381_v32 = vadd.f32 %v19307_v4, %v19618_v8  ;;  %v9572_v4 = vld [vmem:[#allocation2 + $0x121] sm:$0xff] }
 0x36b   : > { %15965 = vmatprep.mubr.msk.f32.mxu0 %vm582_vm1, %v9568_v22  ;;  %v6699_v40 = vpop.f32.mrf.mxu1 }
 0x36c   : > { %v19896_v25 = vpop.f32.mrf.mxu0  ;;  %v19899_v47 = vadd.f32 %v6699_v40, %v6379_v33  ;;  %v13500_v33 = vld [vmem:[%s17482_s24 + $0x110] sm:$0xff]  ;;  %v13501_v40 = vld [vmem:[%s17482_s24 + $0x120] sm:$0xff] }
 0x36d   : > { %v15517_v35 = vpop.f32.mrf.mxu1  ;;  %15816 = vmatmul.mubr.msk.f32.gmra.mxu1 %vm582_vm1, %v13498_v60 }
 0x36e   : > { %v19903_v22 = vpop.f32.mrf.mxu0  ;;  %15966 = vmatmul.mubr.msk.f32.gmra.mxu0 %vm582_vm1, %v9569_v50  ;;  %v19907_v7 = vadd.f32 %v15517_v35, %v6382_v56  ;;  %15818 = vmatprep.mubr.msk.f32.mxu1 %vm582_vm1, %v13499_v39  ;;  %v6384_v56 = vadd.f32 %v19314_v29, %v19626_v61  ;;  %v9571_v50 = vld [vmem:[#allocation2 + $0x111] sm:$0xff]  ;;  %v6383_v39 = vadd.f32 %v19325_v63, %v19636_v23  ;;  %v9574_v63 = vld [vmem:[#allocation2 + $0x139] sm:$0xff] }
 0x36f   : > { %15968 = vmatprep.mubr.msk.f32.mxu0 %vm582_vm1, %v9570_v59  ;;  %v6709_v18 = vpop.f32.mrf.mxu1 }
 0x370   : > { %v19914_v6 = vpop.f32.mrf.mxu0  ;;  %v19917_v60 = vadd.f32 %v6709_v18, %v6381_v32  ;;  %v13502_v32 = vld [vmem:[%s17482_s24 + $0x128] sm:$0xff]  ;;  %v13503_v18 = vld [vmem:[%s17482_s24 + $0x138] sm:$0xff] }
 0x371   : > { %22477 = vst [vmem:[#allocation80_spill] sm:$0xff] %v19914_v6  ;;  %v15520_v35 = vpop.f32.mrf.mxu1  ;;  %15819 = vmatmul.mubr.msk.f32.gmra.mxu1 %vm582_vm1, %v13500_v33  ;;  %v9582_v6 = vld [vmem:[#allocation2 + $0x199] sm:$0xff] }
 0x372   : > { %v19921_v59 = vpop.f32.mrf.mxu0  ;;  %15969 = vmatmul.mubr.msk.f32.gmra.mxu0 %vm582_vm1, %v9571_v50  ;;  %v19925_v8 = vadd.f32 %v15520_v35, %v6384_v56  ;;  %15821 = vmatprep.mubr.msk.f32.mxu1 %vm582_vm1, %v13501_v40  ;;  %v6386_v56 = vadd.f32 %v19332_v62, %v19644_v19  ;;  %v9573_v50 = vld [vmem:[#allocation2 + $0x129] sm:$0xff]  ;;  %v6385_v40 = vadd.f32 %v19343_v0, %v19654_v26  ;;  %v9576_v0 = vld [vmem:[#allocation2 + $0x151] sm:$0xff] }
 0x373   : > { %15971 = vmatprep.mubr.msk.f32.mxu0 %vm582_vm1, %v9572_v4  ;;  %v6719_v29 = vpop.f32.mrf.mxu1 }
 0x374   : > { %v19932_v61 = vpop.f32.mrf.mxu0  ;;  %v19935_v33 = vadd.f32 %v6719_v29, %v6383_v39  ;;  %v13504_v39 = vld [vmem:[%s17482_s24 + $0x140] sm:$0xff]  ;;  %v13505_v29 = vld [vmem:[%s17482_s24 + $0x150] sm:$0xff] }
 0x375   : > { %22478 = vst [vmem:[#allocation81_spill] sm:$0xff] %v19932_v61  ;;  %v15523_v35 = vpop.f32.mrf.mxu1  ;;  %15822 = vmatmul.mubr.msk.f32.gmra.mxu1 %vm582_vm1, %v13502_v32  ;;  %v13511_v61 = vld [vmem:[%s17482_s24 + $0x198] sm:$0xff] }
 0x376   : > { %v19939_v4 = vpop.f32.mrf.mxu0  ;;  %15972 = vmatmul.mubr.msk.f32.gmra.mxu0 %vm582_vm1, %v9573_v50  ;;  %v19943_v23 = vadd.f32 %v15523_v35, %v6386_v56  ;;  %15824 = vmatprep.mubr.msk.f32.mxu1 %vm582_vm1, %v13503_v18  ;;  %v6388_v56 = vadd.f32 %v19350_v34, %v19662_v3  ;;  %v9575_v50 = vld [vmem:[#allocation2 + $0x141] sm:$0xff]  ;;  %v6387_v18 = vadd.f32 %v19361_v45, %v19672_v16  ;;  %v9578_v45 = vld [vmem:[#allocation2 + $0x169] sm:$0xff] }
 0x377   : > { %15974 = vmatprep.mubr.msk.f32.mxu0 %vm582_vm1, %v9574_v63  ;;  %v6729_v62 = vpop.f32.mrf.mxu1 }
 0x378   : > { %v19950_v19 = vpop.f32.mrf.mxu0  ;;  %v19953_v32 = vadd.f32 %v6729_v62, %v6385_v40  ;;  %v13506_v40 = vld [vmem:[%s17482_s24 + $0x158] sm:$0xff]  ;;  %v13507_v62 = vld [vmem:[%s17482_s24 + $0x168] sm:$0xff] }
 0x379   : > { %22479 = vst [vmem:[#allocation82_spill] sm:$0xff] %v19950_v19  ;;  %v15526_v35 = vpop.f32.mrf.mxu1  ;;  %15825 = vmatmul.mubr.msk.f32.gmra.mxu1 %vm582_vm1, %v13504_v39 }
 0x37a   : > { %v19957_v63 = vpop.f32.mrf.mxu0  ;;  %15975 = vmatmul.mubr.msk.f32.gmra.mxu0 %vm582_vm1, %v9575_v50  ;;  %v19961_v26 = vadd.f32 %v15526_v35, %v6388_v56  ;;  %15827 = vmatprep.mubr.msk.f32.mxu1 %vm582_vm1, %v13505_v29  ;;  %v6390_v56 = vadd.f32 %v19368_v37, %v19680_v5  ;;  %v9577_v50 = vld [vmem:[#allocation2 + $0x159] sm:$0xff] }
 0x37b   : > { %15977 = vmatprep.mubr.msk.f32.mxu0 %vm582_vm1, %v9576_v0  ;;  %v6739_v34 = vpop.f32.mrf.mxu1  ;;  %v22481_v29 = vld [vmem:[#allocation4_spill] sm:$0xff] }
 0x37c   : > { %v19968_v3 = vpop.f32.mrf.mxu0  ;;  %v19971_v39 = vadd.f32 %v6739_v34, %v6387_v18  ;;  %v6389_v18 = vadd.f32 %v22481_v29, %v19690_v48  ;;  %v13508_v34 = vld [vmem:[%s17482_s24 + $0x170] sm:$0xff]  ;;  %v9580_v48 = vld [vmem:[#allocation2 + $0x181] sm:$0xff] }
 0x37d   : > { %22480 = vst [vmem:[#allocation83_spill] sm:$0xff] %v19968_v3  ;;  %v15529_v35 = vpop.f32.mrf.mxu1  ;;  %15828 = vmatmul.mubr.msk.f32.gmra.mxu1 %vm582_vm1, %v13506_v40  ;;  %v13509_v3 = vld [vmem:[%s17482_s24 + $0x180] sm:$0xff] }
 0x37e   : > { %v19975_v0 = vpop.f32.mrf.mxu0  ;;  %15978 = vmatmul.mubr.msk.f32.gmra.mxu0 %vm582_vm1, %v9577_v50  ;;  %v19979_v16 = vadd.f32 %v15529_v35, %v6390_v56  ;;  %15830 = vmatprep.mubr.msk.f32.mxu1 %vm582_vm1, %v13507_v62  ;;  %v22482_v50 = vld [vmem:[#allocation40_spill] sm:$0xff]  ;;  %v22484_v29 = vld [vmem:[#allocation85_spill] sm:$0xff] }
 0x37f   : > { %15980 = vmatprep.mubr.msk.f32.mxu0 %vm582_vm1, %v9578_v45  ;;  %v6749_v37 = vpop.f32.mrf.mxu1  ;;  %v6392_v56 = vadd.f32 %v22482_v50, %v19698_v36  ;;  %v9579_v35 = vld [vmem:[#allocation2 + $0x171] sm:$0xff] }
 0x380   : > { %v19986_v5 = vpop.f32.mrf.mxu0  ;;  %v19989_v40 = vadd.f32 %v6749_v37, %v6389_v18  ;;  %v6391_v18 = vadd.f32 %v22484_v29, %v19708_v24  ;;  %v13510_v37 = vld [vmem:[%s17482_s24 + $0x188] sm:$0xff] }
 0x381   : > { %v15532_v19 = vpop.f32.mrf.mxu1  ;;  %15831 = vmatmul.mubr.msk.f32.gmra.mxu1 %vm582_vm1, %v13508_v34 }
 0x382   : > { %v19993_v45 = vpop.f32.mrf.mxu0  ;;  %15981 = vmatmul.mubr.msk.f32.gmra.mxu0 %vm582_vm1, %v9579_v35  ;;  %v19997_v62 = vadd.f32 %v15532_v19, %v6392_v56  ;;  %15833 = vmatprep.mubr.msk.f32.mxu1 %vm582_vm1, %v13509_v3  ;;  %v22486_v19 = vld [vmem:[#allocation86_spill] sm:$0xff]  ;;  %v22488_v3 = vld [vmem:[#allocation87_spill] sm:$0xff] }
 0x383   : > { %22483 = vst [vmem:[#allocation84_spill] sm:$0xff] %v19993_v45  ;;  %15983 = vmatprep.mubr.msk.f32.mxu0 %vm582_vm1, %v9580_v48  ;;  %v6759_v36 = vpop.f32.mrf.mxu1  ;;  %v6394_v56 = vadd.f32 %v22486_v19, %v19716_v21  ;;  %v9581_v35 = vld [vmem:[#allocation2 + $0x189] sm:$0xff]  ;;  %v6393_v29 = vadd.f32 %v22488_v3, %v19726_v28  ;;  %v9583_v21 = vld [vmem:[#allocation2 + $0x1a1] sm:$0xff]  ;;  %v10332_v28 = vld [vmem:[#allocation2 + $0x32] sm:$0xff] }
 0x384   : > { %v20004_v50 = vpop.f32.mrf.mxu0  ;;  %v20007_v34 = vadd.f32 %v6759_v36, %v6391_v18  ;;  %v13512_v18 = vld [vmem:[%s17482_s24 + $0x1a0] sm:$0xff] }
 0x385   : > { %22485 = vst [vmem:[#allocation22_spill] sm:$0xff] %v20004_v50  ;;  %v15535_v48 = vpop.f32.mrf.mxu1  ;;  %15834 = vmatmul.mubr.msk.f32.gmra.mxu1 %vm582_vm1, %v13510_v37  ;;  %v22489_v37 = vld [vmem:[#allocation56_spill] sm:$0xff] }
 0x386   : > { %v20011_v45 = vpop.f32.mrf.mxu0  ;;  %15984 = vmatmul.mubr.msk.f32.gmra.mxu0 %vm582_vm1, %v9581_v35  ;;  %v20015_v24 = vadd.f32 %v15535_v48, %v6394_v56  ;;  %15836 = vmatprep.mubr.msk.f32.mxu1 %vm582_vm1, %v13511_v61  ;;  %v6396_v56 = vadd.f32 %v22489_v37, %v19734_v12  ;;  %v6395_v61 = vadd.f32 %v19436_v41, %v19743_v51  ;;  %v13582_v3 = vld [vmem:[%s17482_s24 + $0x39] sm:$0xff]  ;;  %v10334_v41 = vld [vmem:[#allocation2 + $0x4a] sm:$0xff] }
 0x387   : > { %22487 = vst [vmem:[#allocation39_spill] sm:$0xff] %v20011_v45  ;;  %15986 = vmatprep.mubr.msk.f32.mxu0 %vm582_vm1, %v9582_v6  ;;  %v6769_v36 = vpop.f32.mrf.mxu1  ;;  %v13581_v45 = vld [vmem:[%s17482_s24 + $0x31] sm:$0xff]  ;;  %v10333_v37 = vld [vmem:[#allocation2 + $0x3a] sm:$0xff] }
 0x388   : > { %v20022_v19 = vpop.f32.mrf.mxu0  ;;  %v20025_v50 = vadd.f32 %v6769_v36, %v6393_v29 }
 0x389   : > { %v15538_v35 = vpop.f32.mrf.mxu1  ;;  %15837 = vmatmul.mubr.msk.f32.gmra.mxu1 %vm582_vm1, %v13512_v18  ;;  %v22490_v18 = vld [vmem:[#allocation15_spill] sm:$0xff] }
 0x38a   : > { %v20029_v48 = vpop.f32.mrf.mxu0  ;;  %15987 = vmatmul.mubr.msk.f32.gmra.mxu0 %vm582_vm1, %v9583_v21  ;;  %v20033_v6 = vadd.f32 %v15538_v35, %v6396_v56  ;;  %15891 = vmatprep.mubr.msk.f32.mxu1 %vm582_vm1, %v13581_v45  ;;  %v7147_v21 = vadd.f32 %v22490_v18, %v19757_v58  ;;  %v13583_v56 = vld [vmem:[%s17482_s24 + $0x49] sm:$0xff]  ;;  %v22492_v58 = vld [vmem:[#allocation57_spill] sm:$0xff] }
 0x38b   : > { %16041 = vmatprep.mubr.msk.f32.mxu0 %vm582_vm1, %v10332_v28  ;;  %v6779_v12 = vpop.f32.mrf.mxu1  ;;  %v7146_v45 = vadd.f32 %v22492_v58, %v19771_v46  ;;  %v10336_v46 = vld [vmem:[#allocation2 + $0x62] sm:$0xff] }
 0x38c   : > { %v20040_v29 = vpop.f32.mrf.mxu0  ;;  %v20042_v36 = vadd.f32 %v6779_v12, %v6395_v61  ;;  %v13584_v61 = vld [vmem:[%s17482_s24 + $0x51] sm:$0xff] }
 0x38d   : > { %v15593_v35 = vpop.f32.mrf.mxu1  ;;  %15892 = vmatmul.mubr.msk.f32.vlgmr.msra.gmra.mxu1 %vm582_vm1, %v13582_v3  ;;  %v13585_v3 = vld [vmem:[%s17482_s24 + $0x61] sm:$0xff] }
 0x38e   : > { %v20047_v28 = vpop.f32.mrf.mxu0  ;;  %16042 = vmatmul.mubr.msk.f32.vlgmr.msra.gmra.mxu0 %vm582_vm1, %v10333_v37  ;;  %v20051_v51 = vadd.f32 %v15593_v35, %v7147_v21  ;;  %15990 = vmatpush3.msk.msra.mxu1 %vm679_vm0, %v19751_v52  ;;  %v22494_v21 = vld [vmem:[#allocation54_spill] sm:$0xff]  ;;  %v10335_v52 = vld [vmem:[#allocation2 + $0x52] sm:$0xff] }
 0x38f   : > { %22491 = vst [vmem:[#allocation52_spill] sm:$0xff] %v20047_v28  ;;  %16044 = vmatprep.mubr.msk.f32.mxu0 %vm582_vm1, %v10334_v41  ;;  %v7409_v12 = vpop.f32.mrf.mxu1  ;;  %15894 = vmatprep.mubr.msk.f32.mxu1 %vm582_vm1, %v13583_v56  ;;  %v7149_v35 = vadd.f32 %v22494_v21, %v19781_v9  ;;  %v22496_v56 = vld [vmem:[#allocation33_spill] sm:$0xff] }
 0x390   : > { %v20059_v18 = vpop.f32.mrf.mxu0  ;;  %v20063_v37 = vadd.f32 %v7409_v12, %v7146_v45  ;;  %v7148_v45 = vadd.f32 %v22496_v56, %v19791_v27  ;;  %v13586_v12 = vld [vmem:[%s17482_s24 + $0x69] sm:$0xff]  ;;  %v10338_v27 = vld [vmem:[#allocation2 + $0x7a] sm:$0xff] }
 0x391   : > { %22493 = vst [vmem:[#allocation5_spill] sm:$0xff] %v20059_v18  ;;  %v15596_v28 = vpop.f32.mrf.mxu1  ;;  %15895 = vmatmul.mubr.msk.f32.gmra.mxu1 %vm582_vm1, %v13584_v61  ;;  %v22500_v56 = vld [vmem:[#allocation24_spill] sm:$0xff] }
 0x392   : > { %v20067_v41 = vpop.f32.mrf.mxu0  ;;  %16045 = vmatmul.mubr.msk.f32.gmra.mxu0 %vm582_vm1, %v10335_v52  ;;  %v20071_v58 = vadd.f32 %v15596_v28, %v7149_v35  ;;  %15897 = vmatprep.mubr.msk.f32.mxu1 %vm582_vm1, %v13585_v3  ;;  %v22498_v52 = vld [vmem:[#allocation16_spill] sm:$0xff]  ;;  %v10337_v35 = vld [vmem:[#allocation2 + $0x6a] sm:$0xff] }
 0x393   : > { %22495 = vst [vmem:[#allocation4_spill] sm:$0xff] %v20067_v41  ;;  %16047 = vmatprep.mubr.msk.f32.mxu0 %vm582_vm1, %v10336_v46  ;;  %v7419_v9 = vpop.f32.mrf.mxu1  ;;  %v13587_v41 = vld [vmem:[%s17482_s24 + $0x79] sm:$0xff]  ;;  %v7151_v28 = vadd.f32 %v22498_v52, %v19799_v44 }
 0x394   : > { %v20078_v21 = vpop.f32.mrf.mxu0  ;;  %v20081_v61 = vadd.f32 %v7419_v9, %v7148_v45  ;;  %v7150_v45 = vadd.f32 %v22500_v56, %v19809_v43  ;;  %v13588_v9 = vld [vmem:[%s17482_s24 + $0x81] sm:$0xff]  ;;  %v10340_v43 = vld [vmem:[#allocation2 + $0x92] sm:$0xff] }
 0x395   : > { %22497 = vst [vmem:[#allocation40_spill] sm:$0xff] %v20078_v21  ;;  %v15599_v18 = vpop.f32.mrf.mxu1  ;;  %15898 = vmatmul.mubr.msk.f32.gmra.mxu1 %vm582_vm1, %v13586_v12  ;;  %v22504_v56 = vld [vmem:[#allocation6_spill] sm:$0xff] }
 0x396   : > { %v20085_v46 = vpop.f32.mrf.mxu0  ;;  %16048 = vmatmul.mubr.msk.f32.gmra.mxu0 %vm582_vm1, %v10337_v35  ;;  %v20089_v3 = vadd.f32 %v15599_v18, %v7151_v28  ;;  %15900 = vmatprep.mubr.msk.f32.mxu1 %vm582_vm1, %v13587_v41  ;;  %v22502_v35 = vld [vmem:[#allocation41_spill] sm:$0xff] }
 0x397   : > { %22499 = vst [vmem:[#allocation85_spill] sm:$0xff] %v20085_v46  ;;  %16050 = vmatprep.mubr.msk.f32.mxu0 %vm582_vm1, %v10338_v27  ;;  %v7429_v44 = vpop.f32.mrf.mxu1  ;;  %v13589_v46 = vld [vmem:[%s17482_s24 + $0x91] sm:$0xff]  ;;  %v7153_v18 = vadd.f32 %v22502_v35, %v19817_v13  ;;  %v10339_v28 = vld [vmem:[#allocation2 + $0x82] sm:$0xff] }
 0x398   : > { %v20096_v52 = vpop.f32.mrf.mxu0  ;;  %v20099_v12 = vadd.f32 %v7429_v44, %v7150_v45  ;;  %v7152_v45 = vadd.f32 %v22504_v56, %v19827_v30  ;;  %v13590_v44 = vld [vmem:[%s17482_s24 + $0x99] sm:$0xff]  ;;  %v10342_v30 = vld [vmem:[#allocation2 + $0xaa] sm:$0xff] }
 0x399   : > { %22501 = vst [vmem:[#allocation86_spill] sm:$0xff] %v20096_v52  ;;  %v15602_v21 = vpop.f32.mrf.mxu1  ;;  %15901 = vmatmul.mubr.msk.f32.gmra.mxu1 %vm582_vm1, %v13588_v9  ;;  %v22508_v56 = vld [vmem:[#allocation43_spill] sm:$0xff] }
 0x39a   : > { %v20103_v27 = vpop.f32.mrf.mxu0  ;;  %16051 = vmatmul.mubr.msk.f32.gmra.mxu0 %vm582_vm1, %v10339_v28  ;;  %v20107_v41 = vadd.f32 %v15602_v21, %v7153_v18  ;;  %15903 = vmatprep.mubr.msk.f32.mxu1 %vm582_vm1, %v13589_v46  ;;  %v22506_v28 = vld [vmem:[#allocation9_spill] sm:$0xff] }
 0x39b   : > { %22503 = vst [vmem:[#allocation87_spill] sm:$0xff] %v20103_v27  ;;  %16053 = vmatprep.mubr.msk.f32.mxu0 %vm582_vm1, %v10340_v43  ;;  %v7439_v13 = vpop.f32.mrf.mxu1  ;;  %v13591_v27 = vld [vmem:[%s17482_s24 + $0xa9] sm:$0xff]  ;;  %v7155_v21 = vadd.f32 %v22506_v28, %v19835_v20  ;;  %v10341_v18 = vld [vmem:[#allocation2 + $0x9a] sm:$0xff] }
 0x39c   : > { %v20114_v35 = vpop.f32.mrf.mxu0  ;;  %v20117_v9 = vadd.f32 %v7439_v13, %v7152_v45  ;;  %v7154_v45 = vadd.f32 %v22508_v56, %v19845_v55  ;;  %v13592_v13 = vld [vmem:[%s17482_s24 + $0xb1] sm:$0xff]  ;;  %v10344_v55 = vld [vmem:[#allocation2 + $0xc2] sm:$0xff] }
 0x39d   : > { %22505 = vst [vmem:[#allocation56_spill] sm:$0xff] %v20114_v35  ;;  %v15605_v52 = vpop.f32.mrf.mxu1  ;;  %15904 = vmatmul.mubr.msk.f32.gmra.mxu1 %vm582_vm1, %v13590_v44  ;;  %v22512_v56 = vld [vmem:[#allocation17_spill] sm:$0xff] }
 0x39e   : > { %v20121_v43 = vpop.f32.mrf.mxu0  ;;  %16054 = vmatmul.mubr.msk.f32.gmra.mxu0 %vm582_vm1, %v10341_v18  ;;  %v20125_v46 = vadd.f32 %v15605_v52, %v7155_v21  ;;  %15906 = vmatprep.mubr.msk.f32.mxu1 %vm582_vm1, %v13591_v27  ;;  %v22510_v18 = vld [vmem:[#allocation58_spill] sm:$0xff]  ;;  %v10343_v21 = vld [vmem:[#allocation2 + $0xb2] sm:$0xff] }
 0x39f   : > { %22507 = vst [vmem:[#allocation15_spill] sm:$0xff] %v20121_v43  ;;  %16056 = vmatprep.mubr.msk.f32.mxu0 %vm582_vm1, %v10342_v30  ;;  %v7449_v20 = vpop.f32.mrf.mxu1  ;;  %v13593_v43 = vld [vmem:[%s17482_s24 + $0xc1] sm:$0xff]  ;;  %v7157_v52 = vadd.f32 %v22510_v18, %v19853_v57 }
 0x3a0   : > { %v20132_v28 = vpop.f32.mrf.mxu0  ;;  %v20135_v44 = vadd.f32 %v7449_v20, %v7154_v45  ;;  %v7156_v45 = vadd.f32 %v22512_v56, %v19863_v2  ;;  %v13594_v20 = vld [vmem:[%s17482_s24 + $0xc9] sm:$0xff]  ;;  %v10346_v2 = vld [vmem:[#allocation2 + $0xda] sm:$0xff] }
 0x3a1   : > { %22509 = vst [vmem:[#allocation57_spill] sm:$0xff] %v20132_v28  ;;  %v15608_v35 = vpop.f32.mrf.mxu1  ;;  %15907 = vmatmul.mubr.msk.f32.gmra.mxu1 %vm582_vm1, %v13592_v13  ;;  %v22516_v56 = vld [vmem:[#allocation45_spill] sm:$0xff] }
 0x3a2   : > { %v20139_v30 = vpop.f32.mrf.mxu0  ;;  %16057 = vmatmul.mubr.msk.f32.gmra.mxu0 %vm582_vm1, %v10343_v21  ;;  %v20143_v27 = vadd.f32 %v15608_v35, %v7157_v52  ;;  %15909 = vmatprep.mubr.msk.f32.mxu1 %vm582_vm1, %v13593_v43  ;;  %v22514_v21 = vld [vmem:[#allocation25_spill] sm:$0xff]  ;;  %v10345_v52 = vld [vmem:[#allocation2 + $0xca] sm:$0xff] }
 0x3a3   : > { %22511 = vst [vmem:[#allocation54_spill] sm:$0xff] %v20139_v30  ;;  %16059 = vmatprep.mubr.msk.f32.mxu0 %vm582_vm1, %v10344_v55  ;;  %v7459_v57 = vpop.f32.mrf.mxu1  ;;  %v13595_v30 = vld [vmem:[%s17482_s24 + $0xd9] sm:$0xff]  ;;  %v7159_v35 = vadd.f32 %v22514_v21, %v19871_v31 }
 0x3a4   : > { %v20150_v18 = vpop.f32.mrf.mxu0  ;;  %v20153_v13 = vadd.f32 %v7459_v57, %v7156_v45  ;;  %v7158_v45 = vadd.f32 %v22516_v56, %v19881_v42  ;;  %v13596_v57 = vld [vmem:[%s17482_s24 + $0xe1] sm:$0xff]  ;;  %v10348_v42 = vld [vmem:[#allocation2 + $0xf2] sm:$0xff] }
 0x3a5   : > { %22513 = vst [vmem:[#allocation33_spill] sm:$0xff] %v20150_v18  ;;  %v15611_v28 = vpop.f32.mrf.mxu1  ;;  %15910 = vmatmul.mubr.msk.f32.gmra.mxu1 %vm582_vm1, %v13594_v20  ;;  %v22520_v56 = vld [vmem:[#allocation11_spill] sm:$0xff] }
 0x3a6   : > { %v20157_v55 = vpop.f32.mrf.mxu0  ;;  %16060 = vmatmul.mubr.msk.f32.gmra.mxu0 %vm582_vm1, %v10345_v52  ;;  %v20161_v43 = vadd.f32 %v15611_v28, %v7159_v35  ;;  %15912 = vmatprep.mubr.msk.f32.mxu1 %vm582_vm1, %v13595_v30  ;;  %v22518_v52 = vld [vmem:[#allocation59_spill] sm:$0xff]  ;;  %v10347_v35 = vld [vmem:[#allocation2 + $0xe2] sm:$0xff] }
 0x3a7   : > { %22515 = vst [vmem:[#allocation16_spill] sm:$0xff] %v20157_v55  ;;  %16062 = vmatprep.mubr.msk.f32.mxu0 %vm582_vm1, %v10346_v2  ;;  %v7469_v31 = vpop.f32.mrf.mxu1  ;;  %v13597_v55 = vld [vmem:[%s17482_s24 + $0xf1] sm:$0xff]  ;;  %v7161_v28 = vadd.f32 %v22518_v52, %v19889_v17 }
 0x3a8   : > { %v20168_v21 = vpop.f32.mrf.mxu0  ;;  %v20171_v20 = vadd.f32 %v7469_v31, %v7158_v45  ;;  %v7160_v45 = vadd.f32 %v22520_v56, %v19899_v47  ;;  %v13598_v31 = vld [vmem:[%s17482_s24 + $0xf9] sm:$0xff]  ;;  %v10350_v47 = vld [vmem:[#allocation2 + $0x10a] sm:$0xff] }
 0x3a9   : > { %22517 = vst [vmem:[#allocation24_spill] sm:$0xff] %v20168_v21  ;;  %v15614_v18 = vpop.f32.mrf.mxu1  ;;  %15913 = vmatmul.mubr.msk.f32.gmra.mxu1 %vm582_vm1, %v13596_v57  ;;  %v22524_v56 = vld [vmem:[#allocation47_spill] sm:$0xff] }
 0x3aa   : > { %v20175_v2 = vpop.f32.mrf.mxu0  ;;  %16063 = vmatmul.mubr.msk.f32.gmra.mxu0 %vm582_vm1, %v10347_v35  ;;  %v20179_v30 = vadd.f32 %v15614_v18, %v7161_v28  ;;  %15915 = vmatprep.mubr.msk.f32.mxu1 %vm582_vm1, %v13597_v55  ;;  %v22522_v35 = vld [vmem:[#allocation10_spill] sm:$0xff]  ;;  %v10349_v28 = vld [vmem:[#allocation2 + $0xfa] sm:$0xff] }
 0x3ab   : > { %22519 = vst [vmem:[#allocation41_spill] sm:$0xff] %v20175_v2  ;;  %16065 = vmatprep.mubr.msk.f32.mxu0 %vm582_vm1, %v10348_v42  ;;  %v7479_v17 = vpop.f32.mrf.mxu1  ;;  %v13599_v2 = vld [vmem:[%s17482_s24 + $0x109] sm:$0xff]  ;;  %v7163_v18 = vadd.f32 %v22522_v35, %v19907_v7 }
 0x3ac   : > { %v20186_v52 = vpop.f32.mrf.mxu0  ;;  %v20189_v57 = vadd.f32 %v7479_v17, %v7160_v45  ;;  %v7162_v45 = vadd.f32 %v22524_v56, %v19917_v60  ;;  %v13600_v17 = vld [vmem:[%s17482_s24 + $0x111] sm:$0xff]  ;;  %v10352_v60 = vld [vmem:[#allocation2 + $0x122] sm:$0xff] }
 0x3ad   : > { %22521 = vst [vmem:[#allocation6_spill] sm:$0xff] %v20186_v52  ;;  %v15617_v21 = vpop.f32.mrf.mxu1  ;;  %15916 = vmatmul.mubr.msk.f32.gmra.mxu1 %vm582_vm1, %v13598_v31  ;;  %v22528_v56 = vld [vmem:[#allocation18_spill] sm:$0xff] }
 0x3ae   : > { %v20193_v42 = vpop.f32.mrf.mxu0  ;;  %16066 = vmatmul.mubr.msk.f32.gmra.mxu0 %vm582_vm1, %v10349_v28  ;;  %v20197_v55 = vadd.f32 %v15617_v21, %v7163_v18  ;;  %15918 = vmatprep.mubr.msk.f32.mxu1 %vm582_vm1, %v13599_v2  ;;  %v22526_v28 = vld [vmem:[#allocation60_spill] sm:$0xff] }
 0x3af   : > { %22523 = vst [vmem:[#allocation9_spill] sm:$0xff] %v20193_v42  ;;  %16068 = vmatprep.mubr.msk.f32.mxu0 %vm582_vm1, %v10350_v47  ;;  %v7489_v7 = vpop.f32.mrf.mxu1  ;;  %v13601_v42 = vld [vmem:[%s17482_s24 + $0x121] sm:$0xff]  ;;  %v7165_v21 = vadd.f32 %v22526_v28, %v19925_v8  ;;  %v10351_v18 = vld [vmem:[#allocation2 + $0x112] sm:$0xff] }
 0x3b0   : > { %v20204_v35 = vpop.f32.mrf.mxu0  ;;  %v20207_v31 = vadd.f32 %v7489_v7, %v7162_v45  ;;  %v7164_v45 = vadd.f32 %v22528_v56, %v19935_v33  ;;  %v13602_v7 = vld [vmem:[%s17482_s24 + $0x129] sm:$0xff]  ;;  %v10354_v33 = vld [vmem:[#allocation2 + $0x13a] sm:$0xff] }
 0x3b1   : > { %22525 = vst [vmem:[#allocation43_spill] sm:$0xff] %v20204_v35  ;;  %v15620_v52 = vpop.f32.mrf.mxu1  ;;  %15919 = vmatmul.mubr.msk.f32.gmra.mxu1 %vm582_vm1, %v13600_v17  ;;  %v22532_v56 = vld [vmem:[#allocation49_spill] sm:$0xff] }
 0x3b2   : > { %v20211_v47 = vpop.f32.mrf.mxu0  ;;  %16069 = vmatmul.mubr.msk.f32.gmra.mxu0 %vm582_vm1, %v10351_v18  ;;  %v20215_v2 = vadd.f32 %v15620_v52, %v7165_v21  ;;  %15921 = vmatprep.mubr.msk.f32.mxu1 %vm582_vm1, %v13601_v42  ;;  %v22530_v18 = vld [vmem:[#allocation27_spill] sm:$0xff] }
 0x3b3   : > { %22527 = vst [vmem:[#allocation58_spill] sm:$0xff] %v20211_v47  ;;  %16071 = vmatprep.mubr.msk.f32.mxu0 %vm582_vm1, %v10352_v60  ;;  %v7499_v8 = vpop.f32.mrf.mxu1  ;;  %v13603_v47 = vld [vmem:[%s17482_s24 + $0x139] sm:$0xff]  ;;  %v7167_v52 = vadd.f32 %v22530_v18, %v19943_v23  ;;  %v10353_v21 = vld [vmem:[#allocation2 + $0x12a] sm:$0xff] }
 0x3b4   : > { %v20222_v28 = vpop.f32.mrf.mxu0  ;;  %v20225_v17 = vadd.f32 %v7499_v8, %v7164_v45  ;;  %v7166_v45 = vadd.f32 %v22532_v56, %v19953_v32  ;;  %v13604_v8 = vld [vmem:[%s17482_s24 + $0x141] sm:$0xff]  ;;  %v10356_v32 = vld [vmem:[#allocation2 + $0x152] sm:$0xff] }
 0x3b5   : > { %22529 = vst [vmem:[#allocation17_spill] sm:$0xff] %v20222_v28  ;;  %v15623_v35 = vpop.f32.mrf.mxu1  ;;  %15922 = vmatmul.mubr.msk.f32.gmra.mxu1 %vm582_vm1, %v13602_v7  ;;  %v22536_v56 = vld [vmem:[#allocation30_spill] sm:$0xff] }
 0x3b6   : > { %v20229_v60 = vpop.f32.mrf.mxu0  ;;  %16072 = vmatmul.mubr.msk.f32.gmra.mxu0 %vm582_vm1, %v10353_v21  ;;  %v20233_v42 = vadd.f32 %v15623_v35, %v7167_v52  ;;  %15924 = vmatprep.mubr.msk.f32.mxu1 %vm582_vm1, %v13603_v47  ;;  %v22534_v21 = vld [vmem:[#allocation61_spill] sm:$0xff] }
 0x3b7   : > { %22531 = vst [vmem:[#allocation25_spill] sm:$0xff] %v20229_v60  ;;  %16074 = vmatprep.mubr.msk.f32.mxu0 %vm582_vm1, %v10354_v33  ;;  %v7509_v23 = vpop.f32.mrf.mxu1  ;;  %v13605_v60 = vld [vmem:[%s17482_s24 + $0x151] sm:$0xff]  ;;  %v7169_v35 = vadd.f32 %v22534_v21, %v19961_v26  ;;  %v10355_v52 = vld [vmem:[#allocation2 + $0x142] sm:$0xff] }
 0x3b8   : > { %v20240_v18 = vpop.f32.mrf.mxu0  ;;  %v20243_v7 = vadd.f32 %v7509_v23, %v7166_v45  ;;  %v7168_v45 = vadd.f32 %v22536_v56, %v19971_v39  ;;  %v13606_v23 = vld [vmem:[%s17482_s24 + $0x159] sm:$0xff]  ;;  %v10358_v39 = vld [vmem:[#allocation2 + $0x16a] sm:$0xff] }
 0x3b9   : > { %22533 = vst [vmem:[#allocation45_spill] sm:$0xff] %v20240_v18  ;;  %v15626_v28 = vpop.f32.mrf.mxu1  ;;  %15925 = vmatmul.mubr.msk.f32.gmra.mxu1 %vm582_vm1, %v13604_v8  ;;  %v22541_v56 = vld [vmem:[#allocation51_spill] sm:$0xff] }
 0x3ba   : > { %v20247_v33 = vpop.f32.mrf.mxu0  ;;  %16075 = vmatmul.mubr.msk.f32.gmra.mxu0 %vm582_vm1, %v10355_v52  ;;  %v20251_v47 = vadd.f32 %v15626_v28, %v7169_v35  ;;  %15927 = vmatprep.mubr.msk.f32.mxu1 %vm582_vm1, %v13605_v60  ;;  %v22539_v52 = vld [vmem:[#allocation12_spill] sm:$0xff] }
 0x3bb   : > { %22535 = vst [vmem:[#allocation59_spill] sm:$0xff] %v20247_v33  ;;  %16077 = vmatprep.mubr.msk.f32.mxu0 %vm582_vm1, %v10356_v32  ;;  %v7519_v26 = vpop.f32.mrf.mxu1  ;;  %v13607_v33 = vld [vmem:[%s17482_s24 + $0x169] sm:$0xff]  ;;  %v7171_v28 = vadd.f32 %v22539_v52, %v19979_v16  ;;  %v10357_v35 = vld [vmem:[#allocation2 + $0x15a] sm:$0xff] }
 0x3bc   : > { %v20258_v21 = vpop.f32.mrf.mxu0  ;;  %v20261_v8 = vadd.f32 %v7519_v26, %v7168_v45  ;;  %v7170_v45 = vadd.f32 %v22541_v56, %v19989_v40  ;;  %v13608_v26 = vld [vmem:[%s17482_s24 + $0x171] sm:$0xff]  ;;  %v10360_v40 = vld [vmem:[#allocation2 + $0x182] sm:$0xff] }
 0x3bd   : > { %22537 = vst [vmem:[#allocation11_spill] sm:$0xff] %v20258_v21  ;;  %v15629_v18 = vpop.f32.mrf.mxu1  ;;  %15928 = vmatmul.mubr.msk.f32.gmra.mxu1 %vm582_vm1, %v13606_v23  ;;  %v22545_v56 = vld [vmem:[#allocation19_spill] sm:$0xff] }
 0x3be   : > { %22538 = vst [vmem:[#allocation10_spill] sm:$0xff] %v20261_v8  ;;  %v20265_v32 = vpop.f32.mrf.mxu0  ;;  %16078 = vmatmul.mubr.msk.f32.gmra.mxu0 %vm582_vm1, %v10357_v35  ;;  %v20269_v60 = vadd.f32 %v15629_v18, %v7171_v28  ;;  %15930 = vmatprep.mubr.msk.f32.mxu1 %vm582_vm1, %v13607_v33  ;;  %v22543_v35 = vld [vmem:[#allocation62_spill] sm:$0xff]  ;;  %v10359_v28 = vld [vmem:[#allocation2 + $0x172] sm:$0xff] }
 0x3bf   : > { %22540 = vst [vmem:[#allocation47_spill] sm:$0xff] %v20265_v32  ;;  %16080 = vmatprep.mubr.msk.f32.mxu0 %vm582_vm1, %v10358_v39  ;;  %v7529_v16 = vpop.f32.mrf.mxu1  ;;  %v13609_v32 = vld [vmem:[%s17482_s24 + $0x181] sm:$0xff]  ;;  %v7173_v18 = vadd.f32 %v22543_v35, %v19997_v62  ;;  %v13610_v62 = vld [vmem:[%s17482_s24 + $0x189] sm:$0xff] }
 0x3c0   : > { %v20276_v52 = vpop.f32.mrf.mxu0  ;;  %v20279_v23 = vadd.f32 %v7529_v16, %v7170_v45  ;;  %v7172_v45 = vadd.f32 %v22545_v56, %v20007_v34  ;;  %v13612_v56 = vld [vmem:[%s17482_s24 + $0x1a1] sm:$0xff] }
 0x3c1   : > { %22542 = vst [vmem:[#allocation60_spill] sm:$0xff] %v20276_v52  ;;  %v15632_v21 = vpop.f32.mrf.mxu1  ;;  %15931 = vmatmul.mubr.msk.f32.gmra.mxu1 %vm582_vm1, %v13608_v26  ;;  %v10362_v52 = vld [vmem:[#allocation2 + $0x19a] sm:$0xff] }
 0x3c2   : > { %v20283_v39 = vpop.f32.mrf.mxu0  ;;  %16081 = vmatmul.mubr.msk.f32.gmra.mxu0 %vm582_vm1, %v10359_v28  ;;  %v20287_v33 = vadd.f32 %v15632_v21, %v7173_v18  ;;  %15933 = vmatprep.mubr.msk.f32.mxu1 %vm582_vm1, %v13609_v32  ;;  %v22546_v21 = vld [vmem:[#allocation8_spill] sm:$0xff]  ;;  %v10361_v28 = vld [vmem:[#allocation2 + $0x18a] sm:$0xff]  ;;  %v7174_v32 = vadd.f32 %v19723_v38, %v20025_v50 }
 0x3c3   : > { %22544 = vst [vmem:[#allocation18_spill] sm:$0xff] %v20283_v39  ;;  %16083 = vmatprep.mubr.msk.f32.mxu0 %vm582_vm1, %v10360_v40  ;;  %v7539_v16 = vpop.f32.mrf.mxu1  ;;  %v13611_v39 = vld [vmem:[%s17482_s24 + $0x199] sm:$0xff]  ;;  %v7175_v18 = vadd.f32 %v22546_v21, %v20015_v24  ;;  %v10363_v24 = vld [vmem:[#allocation2 + $0x1a2] sm:$0xff]  ;;  %v22550_v50 = vld [vmem:[#allocation63_spill] sm:$0xff] }
 0x3c4   : > { %v20294_v35 = vpop.f32.mrf.mxu0  ;;  %v20297_v26 = vadd.f32 %v7539_v16, %v7172_v45  ;;  %v13681_v21 = vld [vmem:[%s17482_s24 + $0x32] sm:$0xff] }
 0x3c5   : > { %v15635_v40 = vpop.f32.mrf.mxu1  ;;  %15934 = vmatmul.mubr.msk.f32.gmra.mxu1 %vm582_vm1, %v13610_v62 }
 0x3c6   : > { %v20301_v8 = vpop.f32.mrf.mxu0  ;;  %16084 = vmatmul.mubr.msk.f32.gmra.mxu0 %vm582_vm1, %v10361_v28  ;;  %v20305_v34 = vadd.f32 %v15635_v40, %v7175_v18  ;;  %15936 = vmatprep.mubr.msk.f32.mxu1 %vm582_vm1, %v13611_v39  ;;  %v22548_v18 = vld [vmem:[#allocation53_spill] sm:$0xff] }
 0x3c7   : > { %22547 = vst [vmem:[#allocation27_spill] sm:$0xff] %v20301_v8  ;;  %16086 = vmatprep.mubr.msk.f32.mxu0 %vm582_vm1, %v10362_v52  ;;  %v7549_v45 = vpop.f32.mrf.mxu1  ;;  %v7177_v28 = vadd.f32 %v22548_v18, %v20033_v6  ;;  %v7176_v52 = vadd.f32 %v22550_v50, %v20042_v36  ;;  %v13682_v39 = vld [vmem:[%s17482_s24 + $0x3a] sm:$0xff]  ;;  %v13683_v6 = vld [vmem:[%s17482_s24 + $0x4a] sm:$0xff] }
 0x3c8   : > { %v20312_v16 = vpop.f32.mrf.mxu0  ;;  %v20315_v62 = vadd.f32 %v7549_v45, %v7174_v32 }
 0x3c9   : > { %v15638_v40 = vpop.f32.mrf.mxu1  ;;  %15937 = vmatmul.mubr.msk.f32.gmra.mxu1 %vm582_vm1, %v13612_v56  ;;  %v7927_v56 = vadd.f32 %v19753_v49, %v20051_v51  ;;  %v22553_v51 = vld [vmem:[#allocation32_spill] sm:$0xff] }
 0x3ca   : > { %v20319_v8 = vpop.f32.mrf.mxu0  ;;  %16087 = vmatmul.mubr.msk.f32.gmra.mxu0 %vm582_vm1, %v10363_v24  ;;  %v20323_v38 = vadd.f32 %v15638_v40, %v7177_v28  ;;  %15991 = vmatprep.mubr.msk.f32.mxu1 %vm582_vm1, %v13681_v21  ;;  %v7926_v21 = vadd.f32 %v19765_v11, %v20063_v37  ;;  %v13684_v28 = vld [vmem:[%s17482_s24 + $0x52] sm:$0xff]  ;;  %v7928_v37 = vadd.f32 %v19788_v54, %v20081_v61 }
 0x3cb   : > { %22549 = vst [vmem:[#allocation49_spill] sm:$0xff] %v20319_v8  ;;  %v7559_v32 = vpop.f32.mrf.mxu1  ;;  %v22555_v61 = vld [vmem:[#allocation31_spill] sm:$0xff] }
 0x3cc   : > { %v20329_v45 = vpop.f32.mrf.mxu0  ;;  %v20332_v18 = vadd.f32 %v7559_v32, %v7176_v52  ;;  %v13685_v52 = vld [vmem:[%s17482_s24 + $0x62] sm:$0xff]  ;;  %v7929_v32 = vadd.f32 %v22553_v51, %v20071_v58 }
 0x3cd   : > { %v15693_v24 = vpop.f32.mrf.mxu1  ;;  %15992 = vmatmul.mubr.msk.f32.vlgmr.msra.gmra.mxu1 %vm582_vm1, %v13682_v39 }
 0x3ce   : > { %v20336_v8 = vpop.f32.mrf.mxu0  ;;  %v20339_v36 = vadd.f32 %v15693_v24, %v7927_v56  ;;  %15994 = vmatprep.mubr.msk.f32.mxu1 %vm582_vm1, %v13683_v6  ;;  %v13686_v6 = vld [vmem:[%s17482_s24 + $0x6a] sm:$0xff] }
 0x3cf   : > { %22551 = vst [vmem:[#allocation61_spill] sm:$0xff] %v20336_v8  ;;  %v8189_v40 = vpop.f32.mrf.mxu1 }
 0x3d0   : > { %v20345_v50 = vpop.f32.mrf.mxu0  ;;  %v20348_v49 = vadd.f32 %v8189_v40, %v7926_v21  ;;  %v13687_v21 = vld [vmem:[%s17482_s24 + $0x7a] sm:$0xff]  ;;  %v7931_v40 = vadd.f32 %v19795_v10, %v20089_v3  ;;  %v22557_v3 = vld [vmem:[#allocation55_spill] sm:$0xff] }
 0x3d1   : > { %22552 = vst [vmem:[#allocation30_spill] sm:$0xff] %v20345_v50  ;;  %v15696_v39 = vpop.f32.mrf.mxu1  ;;  %15995 = vmatmul.mubr.msk.f32.gmra.mxu1 %vm582_vm1, %v13684_v28 }
 0x3d2   : > { %v20352_v8 = vpop.f32.mrf.mxu0  ;;  %v20355_v11 = vadd.f32 %v15696_v39, %v7929_v32  ;;  %15997 = vmatprep.mubr.msk.f32.mxu1 %vm582_vm1, %v13685_v52  ;;  %v7930_v52 = vadd.f32 %v22555_v61, %v20099_v12  ;;  %v13688_v32 = vld [vmem:[%s17482_s24 + $0x82] sm:$0xff] }
 0x3d3   : > { %v8199_v56 = vpop.f32.mrf.mxu1 }
 0x3d4   : > { %v20361_v24 = vpop.f32.mrf.mxu0  ;;  %v20364_v58 = vadd.f32 %v8199_v56, %v7928_v37  ;;  %v13689_v56 = vld [vmem:[%s17482_s24 + $0x92] sm:$0xff] }
 0x3d5   : > { %22554 = vst [vmem:[#allocation12_spill] sm:$0xff] %v20361_v24  ;;  %v15699_v28 = vpop.f32.mrf.mxu1  ;;  %15998 = vmatmul.mubr.msk.f32.gmra.mxu1 %vm582_vm1, %v13686_v6  ;;  %v7933_v24 = vadd.f32 %v22557_v3, %v20107_v41  ;;  %v22561_v3 = vld [vmem:[#allocation65_spill] sm:$0xff] }
 0x3d6   : > { %v20368_v51 = vpop.f32.mrf.mxu0  ;;  %v20371_v54 = vadd.f32 %v15699_v28, %v7931_v40  ;;  %16000 = vmatprep.mubr.msk.f32.mxu1 %vm582_vm1, %v13687_v21  ;;  %v22559_v21 = vld [vmem:[#allocation64_spill] sm:$0xff] }
 0x3d7   : > { %v8209_v39 = vpop.f32.mrf.mxu1  ;;  %v7932_v40 = vadd.f32 %v22559_v21, %v20117_v9  ;;  %v13690_v28 = vld [vmem:[%s17482_s24 + $0x9a] sm:$0xff] }
 0x3d8   : > { %v20377_v37 = vpop.f32.mrf.mxu0  ;;  %v20380_v10 = vadd.f32 %v8209_v39, %v7930_v52  ;;  %v13691_v39 = vld [vmem:[%s17482_s24 + $0xaa] sm:$0xff] }
 0x3d9   : > { %22556 = vst [vmem:[#allocation51_spill] sm:$0xff] %v20377_v37  ;;  %v15702_v6 = vpop.f32.mrf.mxu1  ;;  %16001 = vmatmul.mubr.msk.f32.gmra.mxu1 %vm582_vm1, %v13688_v32  ;;  %v7935_v37 = vadd.f32 %v22561_v3, %v20125_v46  ;;  %v22565_v3 = vld [vmem:[#allocation79_spill] sm:$0xff] }
 0x3da   : > { %v20384_v50 = vpop.f32.mrf.mxu0  ;;  %v20387_v12 = vadd.f32 %v15702_v6, %v7933_v24  ;;  %16003 = vmatprep.mubr.msk.f32.mxu1 %vm582_vm1, %v13689_v56  ;;  %v22563_v24 = vld [vmem:[#allocation78_spill] sm:$0xff]  ;;  %v13692_v6 = vld [vmem:[%s17482_s24 + $0xb2] sm:$0xff] }
 0x3db   : > { %22558 = vst [vmem:[#allocation62_spill] sm:$0xff] %v20384_v50  ;;  %v8219_v61 = vpop.f32.mrf.mxu1  ;;  %v7934_v56 = vadd.f32 %v22563_v24, %v20135_v44 }
 0x3dc   : > { %v20393_v52 = vpop.f32.mrf.mxu0  ;;  %v20396_v41 = vadd.f32 %v8219_v61, %v7932_v40  ;;  %v13693_v61 = vld [vmem:[%s17482_s24 + $0xc2] sm:$0xff] }
 0x3dd   : > { %22560 = vst [vmem:[#allocation19_spill] sm:$0xff] %v20393_v52  ;;  %v15705_v32 = vpop.f32.mrf.mxu1  ;;  %16004 = vmatmul.mubr.msk.f32.gmra.mxu1 %vm582_vm1, %v13690_v28  ;;  %v7937_v52 = vadd.f32 %v22565_v3, %v20143_v27 }
 0x3de   : > { %v20400_v50 = vpop.f32.mrf.mxu0  ;;  %v20403_v9 = vadd.f32 %v15705_v32, %v7935_v37  ;;  %16006 = vmatprep.mubr.msk.f32.mxu1 %vm582_vm1, %v13691_v39  ;;  %v7936_v37 = vadd.f32 %v19860_v14, %v20153_v13  ;;  %v13694_v39 = vld [vmem:[%s17482_s24 + $0xca] sm:$0xff]  ;;  %v7938_v13 = vadd.f32 %v19878_v15, %v20171_v20  ;;  %v7940_v20 = vadd.f32 %v19896_v25, %v20189_v57  ;;  %v13700_v57 = vld [vmem:[%s17482_s24 + $0x112] sm:$0xff] }
 0x3df   : > { %22562 = vst [vmem:[#allocation8_spill] sm:$0xff] %v20400_v50  ;;  %v8229_v21 = vpop.f32.mrf.mxu1 }
 0x3e0   : > { %v20409_v40 = vpop.f32.mrf.mxu0  ;;  %v20412_v46 = vadd.f32 %v8229_v21, %v7934_v56  ;;  %v13695_v56 = vld [vmem:[%s17482_s24 + $0xda] sm:$0xff]  ;;  %v7939_v21 = vadd.f32 %v19867_v53, %v20161_v43  ;;  %v7941_v43 = vadd.f32 %v19885_v1, %v20179_v30  ;;  %v7943_v30 = vadd.f32 %v19903_v22, %v20197_v55 }
 0x3e1   : > { %22564 = vst [vmem:[#allocation53_spill] sm:$0xff] %v20409_v40  ;;  %v15708_v28 = vpop.f32.mrf.mxu1  ;;  %16007 = vmatmul.mubr.msk.f32.gmra.mxu1 %vm582_vm1, %v13692_v6  ;;  %v7945_v22 = vadd.f32 %v19921_v59, %v20215_v2  ;;  %v7947_v59 = vadd.f32 %v19939_v4, %v20233_v42  ;;  %v7949_v4 = vadd.f32 %v19957_v63, %v20251_v47 }
 0x3e2   : > { %v20416_v50 = vpop.f32.mrf.mxu0  ;;  %v20419_v44 = vadd.f32 %v15708_v28, %v7937_v52  ;;  %16009 = vmatprep.mubr.msk.f32.mxu1 %vm582_vm1, %v13693_v61  ;;  %v13696_v52 = vld [vmem:[%s17482_s24 + $0xe2] sm:$0xff]  ;;  %v7951_v63 = vadd.f32 %v19975_v0, %v20269_v60  ;;  %v22575_v60 = vld [vmem:[#allocation84_spill] sm:$0xff] }
 0x3e3   : > { %v8239_v32 = vpop.f32.mrf.mxu1  ;;  %v7953_v40 = vadd.f32 %v22575_v60, %v20287_v33  ;;  %v22579_v33 = vld [vmem:[#allocation39_spill] sm:$0xff] }
 0x3e4   : > { %v20425_v24 = vpop.f32.mrf.mxu0  ;;  %v20428_v27 = vadd.f32 %v8239_v32, %v7936_v37  ;;  %v13697_v37 = vld [vmem:[%s17482_s24 + $0xf2] sm:$0xff]  ;;  %v7955_v60 = vadd.f32 %v22579_v33, %v20305_v34  ;;  %v7957_v34 = vadd.f32 %v20029_v48, %v20323_v38 }
 0x3e5   : > { %22566 = vst [vmem:[#allocation63_spill] sm:$0xff] %v20425_v24  ;;  %v15711_v6 = vpop.f32.mrf.mxu1  ;;  %16010 = vmatmul.mubr.msk.f32.gmra.mxu1 %vm582_vm1, %v13694_v39  ;;  %v13709_v24 = vld [vmem:[%s17482_s24 + $0x182] sm:$0xff] }
 0x3e6   : > { %v20432_v3 = vpop.f32.mrf.mxu0  ;;  %v20435_v14 = vadd.f32 %v15711_v6, %v7939_v21  ;;  %16012 = vmatprep.mubr.msk.f32.mxu1 %vm582_vm1, %v13695_v56  ;;  %v13698_v56 = vld [vmem:[%s17482_s24 + $0xfa] sm:$0xff] }
 0x3e7   : > { %v8249_v61 = vpop.f32.mrf.mxu1 }
 0x3e8   : > { %v20441_v28 = vpop.f32.mrf.mxu0  ;;  %v20444_v53 = vadd.f32 %v8249_v61, %v7938_v13  ;;  %v13699_v13 = vld [vmem:[%s17482_s24 + $0x10a] sm:$0xff] }
 0x3e9   : > { %22567 = vst [vmem:[#allocation32_spill] sm:$0xff] %v20441_v28  ;;  %v15714_v39 = vpop.f32.mrf.mxu1  ;;  %16013 = vmatmul.mubr.msk.f32.gmra.mxu1 %vm582_vm1, %v13696_v52 }
 0x3ea   : > { %v20448_v32 = vpop.f32.mrf.mxu0  ;;  %v20451_v15 = vadd.f32 %v15714_v39, %v7941_v43  ;;  %16015 = vmatprep.mubr.msk.f32.mxu1 %vm582_vm1, %v13697_v37  ;;  %v13701_v39 = vld [vmem:[%s17482_s24 + $0x122] sm:$0xff] }
 0x3eb   : > { %v8259_v21 = vpop.f32.mrf.mxu1 }
 0x3ec   : > { %v20457_v6 = vpop.f32.mrf.mxu0  ;;  %v20460_v1 = vadd.f32 %v8259_v21, %v7940_v20  ;;  %v13702_v21 = vld [vmem:[%s17482_s24 + $0x12a] sm:$0xff] }
 0x3ed   : > { %22568 = vst [vmem:[#allocation31_spill] sm:$0xff] %v20457_v6  ;;  %v15717_v52 = vpop.f32.mrf.mxu1  ;;  %16016 = vmatmul.mubr.msk.f32.gmra.mxu1 %vm582_vm1, %v13698_v56 }
 0x3ee   : > { %v20464_v61 = vpop.f32.mrf.mxu0  ;;  %v20467_v25 = vadd.f32 %v15717_v52, %v7943_v30  ;;  %16018 = vmatprep.mubr.msk.f32.mxu1 %vm582_vm1, %v13699_v13  ;;  %v13703_v52 = vld [vmem:[%s17482_s24 + $0x13a] sm:$0xff] }
 0x3ef   : > { %v20471_v37 = vpop.f32.mrf.mxu1 }
 0x3f0   : > { %v20473_v43 = vpop.f32.mrf.mxu0 }
 0x3f1   : > { %22569 = vst [vmem:[#allocation55_spill] sm:$0xff] %v20473_v43  ;;  %v15720_v55 = vpop.f32.mrf.mxu1  ;;  %16019 = vmatmul.mubr.msk.f32.gmra.mxu1 %vm582_vm1, %v13700_v57 }
 0x3f2   : > { %v20478_v20 = vpop.f32.mrf.mxu0  ;;  %v20481_v56 = vadd.f32 %v15720_v55, %v7945_v22  ;;  %16021 = vmatprep.mubr.msk.f32.mxu1 %vm582_vm1, %v13701_v39  ;;  %v13704_v39 = vld [vmem:[%s17482_s24 + $0x142] sm:$0xff] }
 0x3f3   : > { %v20485_v13 = vpop.f32.mrf.mxu1 }
 0x3f4   : > { %v20487_v30 = vpop.f32.mrf.mxu0 }
 0x3f5   : > { %22570 = vst [vmem:[#allocation64_spill] sm:$0xff] %v20487_v30  ;;  %v15723_v2 = vpop.f32.mrf.mxu1  ;;  %16022 = vmatmul.mubr.msk.f32.gmra.mxu1 %vm582_vm1, %v13702_v21  ;;  %v13705_v30 = vld [vmem:[%s17482_s24 + $0x152] sm:$0xff] }
 0x3f6   : > { %v20492_v43 = vpop.f32.mrf.mxu0  ;;  %v20495_v57 = vadd.f32 %v15723_v2, %v7947_v59  ;;  %16024 = vmatprep.mubr.msk.f32.mxu1 %vm582_vm1, %v13703_v52  ;;  %v13706_v52 = vld [vmem:[%s17482_s24 + $0x15a] sm:$0xff] }
 0x3f7   : > { %v20499_v22 = vpop.f32.mrf.mxu1 }
 0x3f8   : > { %v20501_v55 = vpop.f32.mrf.mxu0 }
 0x3f9   : > { %22571 = vst [vmem:[#allocation65_spill] sm:$0xff] %v20501_v55  ;;  %v15726_v42 = vpop.f32.mrf.mxu1  ;;  %16025 = vmatmul.mubr.msk.f32.gmra.mxu1 %vm582_vm1, %v13704_v39  ;;  %v13707_v55 = vld [vmem:[%s17482_s24 + $0x16a] sm:$0xff] }
 0x3fa   : > { %v20506_v6 = vpop.f32.mrf.mxu0  ;;  %v20509_v21 = vadd.f32 %v15726_v42, %v7949_v4  ;;  %16027 = vmatprep.mubr.msk.f32.mxu1 %vm582_vm1, %v13705_v30  ;;  %v7950_v30 = vadd.f32 %v19986_v5, %v20279_v23  ;;  %v13708_v4 = vld [vmem:[%s17482_s24 + $0x172] sm:$0xff]  ;;  %v22577_v23 = vld [vmem:[#allocation22_spill] sm:$0xff] }
 0x3fb   : > { %v20513_v59 = vpop.f32.mrf.mxu1 }
 0x3fc   : > { %v20515_v2 = vpop.f32.mrf.mxu0 }
 0x3fd   : > { %22572 = vst [vmem:[#allocation78_spill] sm:$0xff] %v20515_v2  ;;  %v15729_v47 = vpop.f32.mrf.mxu1  ;;  %16028 = vmatmul.mubr.msk.f32.gmra.mxu1 %vm582_vm1, %v13706_v52 }
 0x3fe   : > { %v20520_v28 = vpop.f32.mrf.mxu0  ;;  %v20523_v39 = vadd.f32 %v15729_v47, %v7951_v63  ;;  %16030 = vmatprep.mubr.msk.f32.mxu1 %vm582_vm1, %v13707_v55  ;;  %v7952_v55 = vadd.f32 %v22577_v23, %v20297_v26  ;;  %v13710_v63 = vld [vmem:[%s17482_s24 + $0x18a] sm:$0xff]  ;;  %v7954_v26 = vadd.f32 %v20022_v19, %v20315_v62  ;;  %v7956_v19 = vadd.f32 %v20040_v29, %v20332_v18  ;;  %v22586_v18 = vld [vmem:[#allocation4_spill] sm:$0xff] }
 0x3ff   : > { %22573 = vst [vmem:[#allocation79_spill] sm:$0xff] %v20520_v28  ;;  %v8309_v42 = vpop.f32.mrf.mxu1 }
 0x400   : > { %v20529_v2 = vpop.f32.mrf.mxu0  ;;  %v20532_v0 = vadd.f32 %v8309_v42, %v7950_v30  ;;  %v13711_v42 = vld [vmem:[%s17482_s24 + $0x19a] sm:$0xff] }
 0x401   : > { %22574 = vst [vmem:[#allocation88_spill] sm:$0xff] %v20529_v2  ;;  %v15732_v52 = vpop.f32.mrf.mxu1  ;;  %16031 = vmatmul.mubr.msk.f32.gmra.mxu1 %vm582_vm1, %v13708_v4 }
 0x402   : > { %v20536_v28 = vpop.f32.mrf.mxu0  ;;  %v20539_v5 = vadd.f32 %v15732_v52, %v7953_v40  ;;  %16033 = vmatprep.mubr.msk.f32.mxu1 %vm582_vm1, %v13709_v24  ;;  %v13712_v24 = vld [vmem:[%s17482_s24 + $0x1a2] sm:$0xff] }
 0x403   : > { %22576 = vst [vmem:[#allocation84_spill] sm:$0xff] %v20536_v28  ;;  %v8319_v47 = vpop.f32.mrf.mxu1 }
 0x404   : > { %v20545_v30 = vpop.f32.mrf.mxu0  ;;  %v20548_v2 = vadd.f32 %v8319_v47, %v7952_v55 }
 0x405   : > { %22578 = vst [vmem:[#allocation22_spill] sm:$0xff] %v20545_v30  ;;  %v15735_v28 = vpop.f32.mrf.mxu1  ;;  %16034 = vmatmul.mubr.msk.f32.gmra.mxu1 %vm582_vm1, %v13710_v63 }
 0x406   : > { %v20552_v4 = vpop.f32.mrf.mxu0  ;;  %v20555_v40 = vadd.f32 %v15735_v28, %v7955_v60  ;;  %16036 = vmatprep.mubr.msk.f32.mxu1 %vm582_vm1, %v13711_v42  ;;  %v22583_v60 = vld [vmem:[#allocation52_spill] sm:$0xff] }
 0x407   : > { %v8329_v52 = vpop.f32.mrf.mxu1 }
 0x408   : > { %v20561_v23 = vpop.f32.mrf.mxu0  ;;  %v20563_v55 = vadd.f32 %v8329_v52, %v7954_v26  ;;  %v8707_v26 = vadd.f32 %v22583_v60, %v20339_v36  ;;  %v22587_v60 = vld [vmem:[#allocation40_spill] sm:$0xff] }
 0x409   : > { %22580 = vst [vmem:[#allocation39_spill] sm:$0xff] %v20561_v23  ;;  %v15738_v47 = vpop.f32.mrf.mxu1  ;;  %16037 = vmatmul.mubr.msk.f32.gmra.mxu1 %vm582_vm1, %v13712_v24  ;;  %v22584_v24 = vld [vmem:[#allocation5_spill] sm:$0xff] }
 0x40a   : > { %v20567_v33 = vpop.f32.mrf.mxu0  ;;  %v20570_v28 = vadd.f32 %v15738_v47, %v7957_v34  ;;  %v8706_v34 = vadd.f32 %v22584_v24, %v20348_v49  ;;  %v22590_v24 = vld [vmem:[#allocation85_spill] sm:$0xff] }
 0x40b   : > { %22581 = vst [vmem:[#allocation89_spill] sm:$0xff] %v20567_v33  ;;  %v8339_v62 = vpop.f32.mrf.mxu1 }
 0x40c   : > { %v20574_v63 = vpop.f32.mrf.mxu0  ;;  %v20576_v42 = vadd.f32 %v8339_v62, %v7956_v19  ;;  %v8709_v19 = vadd.f32 %v22586_v18, %v20355_v11  ;;  %v22591_v18 = vld [vmem:[#allocation86_spill] sm:$0xff] }
 0x40d   : > { %22582 = vst [vmem:[#allocation90_spill] sm:$0xff] %v20574_v63  ;;  %v15793_v52 = vpop.f32.mrf.mxu1 }
 0x40e   : > { %v20580_v48 = vpop.f32.mrf.mxu0  ;;  %v20582_v38 = vadd.f32 %v15793_v52, %v8707_v26  ;;  %v8708_v26 = vadd.f32 %v22587_v60, %v20364_v58  ;;  %v22594_v60 = vld [vmem:[#allocation87_spill] sm:$0xff] }
 0x40f   : > { %v8971_v47 = vpop.f32.mrf.mxu1 }
 0x410   : > { %v20586_v23 = vpop.f32.mrf.mxu0  ;;  %v20588_v29 = vadd.f32 %v8971_v47, %v8706_v34  ;;  %v8711_v34 = vadd.f32 %v22590_v24, %v20371_v54  ;;  %v22595_v24 = vld [vmem:[#allocation56_spill] sm:$0xff] }
 0x411   : > { %22585 = vst [vmem:[#allocation52_spill] sm:$0xff] %v20586_v23  ;;  %v15796_v62 = vpop.f32.mrf.mxu1 }
 0x412   : > { %v20592_v63 = vpop.f32.mrf.mxu0  ;;  %v20594_v36 = vadd.f32 %v15796_v62, %v8709_v19  ;;  %v8710_v19 = vadd.f32 %v22591_v18, %v20380_v10  ;;  %v22598_v18 = vld [vmem:[#allocation15_spill] sm:$0xff] }
 0x413   : > { %v8981_v52 = vpop.f32.mrf.mxu1 }
 0x414   : > { %v20598_v30 = vpop.f32.mrf.mxu0  ;;  %v20600_v49 = vadd.f32 %v8981_v52, %v8708_v26  ;;  %v8713_v26 = vadd.f32 %v22594_v60, %v20387_v12  ;;  %v22599_v60 = vld [vmem:[#allocation57_spill] sm:$0xff] }
 0x415   : > { %22588 = vst [vmem:[#allocation5_spill] sm:$0xff] %v20598_v30  ;;  %v15799_v47 = vpop.f32.mrf.mxu1 }
 0x416   : > { %22589 = vst [vmem:[#allocation4_spill] sm:$0xff] %v20600_v49  ;;  %v20604_v23 = vpop.f32.mrf.mxu0  ;;  %v20606_v11 = vadd.f32 %v15799_v47, %v8711_v34  ;;  %v8712_v34 = vadd.f32 %v22595_v24, %v20396_v41  ;;  %v22602_v24 = vld [vmem:[#allocation54_spill] sm:$0xff] }
 0x417   : > { %v8991_v62 = vpop.f32.mrf.mxu1 }
 0x418   : > { %v20610_v33 = vpop.f32.mrf.mxu0  ;;  %v20612_v58 = vadd.f32 %v8991_v62, %v8710_v19  ;;  %v8715_v19 = vadd.f32 %v22598_v18, %v20403_v9  ;;  %v22603_v18 = vld [vmem:[#allocation33_spill] sm:$0xff] }
 0x419   : > { %22592 = vst [vmem:[#allocation40_spill] sm:$0xff] %v20610_v33  ;;  %v15802_v52 = vpop.f32.mrf.mxu1 }
 0x41a   : > { %22593 = vst [vmem:[#allocation85_spill] sm:$0xff] %v20612_v58  ;;  %v20616_v30 = vpop.f32.mrf.mxu0  ;;  %v20618_v54 = vadd.f32 %v15802_v52, %v8713_v26  ;;  %v8714_v26 = vadd.f32 %v22599_v60, %v20412_v46  ;;  %v22606_v60 = vld [vmem:[#allocation16_spill] sm:$0xff] }
 0x41b   : > { %v9001_v47 = vpop.f32.mrf.mxu1 }
 0x41c   : > { %v20622_v49 = vpop.f32.mrf.mxu0  ;;  %v20624_v10 = vadd.f32 %v9001_v47, %v8712_v34  ;;  %v8717_v34 = vadd.f32 %v22602_v24, %v20419_v44  ;;  %v22607_v24 = vld [vmem:[#allocation24_spill] sm:$0xff] }
 0x41d   : > { %22596 = vst [vmem:[#allocation86_spill] sm:$0xff] %v20622_v49  ;;  %v15805_v62 = vpop.f32.mrf.mxu1 }
 0x41e   : > { %22597 = vst [vmem:[#allocation87_spill] sm:$0xff] %v20624_v10  ;;  %v20628_v33 = vpop.f32.mrf.mxu0  ;;  %v20630_v12 = vadd.f32 %v15805_v62, %v8715_v19  ;;  %v8716_v19 = vadd.f32 %v22603_v18, %v20428_v27  ;;  %v22609_v27 = vld [vmem:[#allocation80_spill] sm:$0xff] }
 0x41f   : > { %v9011_v52 = vpop.f32.mrf.mxu1  ;;  %v7942_v18 = vadd.f32 %v22609_v27, %v20207_v31  ;;  %v22614_v31 = vld [vmem:[#allocation81_spill] sm:$0xff] }
 0x420   : > { %v20634_v58 = vpop.f32.mrf.mxu0  ;;  %v20636_v41 = vadd.f32 %v9011_v52, %v8714_v26  ;;  %v8719_v26 = vadd.f32 %v22606_v60, %v20435_v14 }
 0x421   : > { %22600 = vst [vmem:[#allocation56_spill] sm:$0xff] %v20634_v58  ;;  %v15808_v47 = vpop.f32.mrf.mxu1 }
 0x422   : > { %22601 = vst [vmem:[#allocation15_spill] sm:$0xff] %v20636_v41  ;;  %v20640_v49 = vpop.f32.mrf.mxu0  ;;  %v20642_v9 = vadd.f32 %v15808_v47, %v8717_v34  ;;  %v8718_v34 = vadd.f32 %v22607_v24, %v20444_v53  ;;  %v22612_v53 = vld [vmem:[#allocation6_spill] sm:$0xff] }
 0x423   : > { %v9021_v62 = vpop.f32.mrf.mxu1  ;;  %v8720_v24 = vadd.f32 %v22612_v53, %v20460_v1 }
 0x424   : > { %v20646_v10 = vpop.f32.mrf.mxu0  ;;  %v20648_v46 = vadd.f32 %v9021_v62, %v8716_v19  ;;  %v22611_v19 = vld [vmem:[#allocation41_spill] sm:$0xff] }
 0x425   : > { %22604 = vst [vmem:[#allocation57_spill] sm:$0xff] %v20646_v10  ;;  %v15811_v52 = vpop.f32.mrf.mxu1  ;;  %v8721_v62 = vadd.f32 %v22611_v19, %v20451_v15  ;;  %v22616_v15 = vld [vmem:[#allocation9_spill] sm:$0xff] }
 0x426   : > { %22605 = vst [vmem:[#allocation54_spill] sm:$0xff] %v20648_v46  ;;  %v20652_v58 = vpop.f32.mrf.mxu0  ;;  %v20654_v44 = vadd.f32 %v15811_v52, %v8719_v26  ;;  %v8364_v26 = vadd.f32 %v20471_v37, %v7942_v18  ;;  %v8723_v27 = vadd.f32 %v22616_v15, %v20467_v25 }
 0x427   : > { %v9031_v47 = vpop.f32.mrf.mxu1 }
 0x428   : > { %v20658_v41 = vpop.f32.mrf.mxu0  ;;  %v20662_v10 = vadd.f32 %v9031_v47, %v8718_v34  ;;  %v7944_v34 = vadd.f32 %v22614_v31, %v20225_v17 }
 0x429   : > { %22608 = vst [vmem:[#allocation33_spill] sm:$0xff] %v20658_v41  ;;  %v15814_v14 = vpop.f32.mrf.mxu1 }
 0x42a   : > { %22610 = vst [vmem:[#allocation16_spill] sm:$0xff] %v20662_v10  ;;  %v20666_v60 = vpop.f32.mrf.mxu0  ;;  %v20669_v52 = vadd.f32 %v15814_v14, %v8721_v62  ;;  %v8366_v37 = vadd.f32 %v20485_v13, %v7944_v34  ;;  %v22617_v62 = vld [vmem:[#allocation43_spill] sm:$0xff] }
 0x42b   : > { %v9041_v46 = vpop.f32.mrf.mxu1  ;;  %v8722_v1 = vadd.f32 %v22617_v62, %v8364_v26 }
 0x42c   : > { %v20673_v41 = vpop.f32.mrf.mxu0  ;;  %v20677_v47 = vadd.f32 %v9041_v46, %v8720_v24  ;;  %v22620_v24 = vld [vmem:[#allocation58_spill] sm:$0xff] }
 0x42d   : > { %22613 = vst [vmem:[#allocation24_spill] sm:$0xff] %v20673_v41  ;;  %v15817_v19 = vpop.f32.mrf.mxu1  ;;  %v22619_v41 = vld [vmem:[#allocation82_spill] sm:$0xff]  ;;  %v8725_v25 = vadd.f32 %v22620_v24, %v20481_v56 }
 0x42e   : > { %22615 = vst [vmem:[#allocation80_spill] sm:$0xff] %v20677_v47  ;;  %v20681_v10 = vpop.f32.mrf.mxu0  ;;  %v20684_v18 = vadd.f32 %v15817_v19, %v8723_v27  ;;  %v7946_v17 = vadd.f32 %v22619_v41, %v20243_v7  ;;  %v22621_v27 = vld [vmem:[#allocation17_spill] sm:$0xff]  ;;  %v22624_v47 = vld [vmem:[#allocation83_spill] sm:$0xff] }
 0x42f   : > { %v9051_v14 = vpop.f32.mrf.mxu1  ;;  %v8724_v26 = vadd.f32 %v22621_v27, %v8366_v37 }
 0x430   : > { %v20687_v53 = vpop.f32.mrf.mxu0  ;;  %v20691_v46 = vadd.f32 %v9051_v14, %v8722_v1  ;;  %v8368_v13 = vadd.f32 %v20499_v22, %v7946_v17  ;;  %v22626_v1 = vld [vmem:[#allocation25_spill] sm:$0xff] }
 0x431   : > { %22618 = vst [vmem:[#allocation41_spill] sm:$0xff] %v20687_v53  ;;  %v15820_v31 = vpop.f32.mrf.mxu1  ;;  %v22623_v53 = vld [vmem:[#allocation10_spill] sm:$0xff]  ;;  %v8727_v56 = vadd.f32 %v22626_v1, %v20495_v57  ;;  %v22630_v1 = vld [vmem:[#allocation11_spill] sm:$0xff] }
 0x432   : > { %v20695_v15 = vpop.f32.mrf.mxu0  ;;  %v20698_v34 = vadd.f32 %v15820_v31, %v8725_v25  ;;  %v7948_v7 = vadd.f32 %v22624_v47, %v22623_v53  ;;  %v22627_v25 = vld [vmem:[#allocation45_spill] sm:$0xff]  ;;  %v22629_v47 = vld [vmem:[#allocation59_spill] sm:$0xff] }
 0x433   : > { %v9061_v19 = vpop.f32.mrf.mxu1  ;;  %v8726_v37 = vadd.f32 %v22627_v25, %v8368_v13  ;;  %v8729_v53 = vadd.f32 %v22629_v47, %v20509_v21  ;;  %v22632_v13 = vld [vmem:[#allocation47_spill] sm:$0xff]  ;;  %v22633_v21 = vld [vmem:[#allocation60_spill] sm:$0xff] }
 0x434   : > { %v20701_v62 = vpop.f32.mrf.mxu0  ;;  %v20705_v41 = vadd.f32 %v9061_v19, %v8724_v26  ;;  %v8370_v22 = vadd.f32 %v20513_v59, %v7948_v7  ;;  %v8730_v47 = vadd.f32 %v22633_v21, %v20532_v0  ;;  %v22637_v21 = vld [vmem:[#allocation27_spill] sm:$0xff] }
 0x435   : > { %22622 = vst [vmem:[#allocation6_spill] sm:$0xff] %v20701_v62  ;;  %v15823_v14 = vpop.f32.mrf.mxu1 }
 0x436   : > { %22625 = vst [vmem:[#allocation81_spill] sm:$0xff] %v20705_v41  ;;  %v20709_v24 = vpop.f32.mrf.mxu0  ;;  %v20712_v17 = vadd.f32 %v15823_v14, %v8727_v56  ;;  %v8728_v41 = vadd.f32 %v22630_v1, %v8370_v22  ;;  %v8731_v14 = vadd.f32 %v22632_v13, %v20523_v39  ;;  %v22635_v1 = vld [vmem:[#allocation18_spill] sm:$0xff]  ;;  %v8732_v13 = vadd.f32 %v20294_v35, %v20548_v2  ;;  %v22638_v35 = vld [vmem:[#allocation49_spill] sm:$0xff] }
 0x437   : > { %v9071_v31 = vpop.f32.mrf.mxu1  ;;  %v8737_v2 = vadd.f32 %v22638_v35, %v20570_v28  ;;  %v9491_v28 = vadd.f32 %v20352_v8, %v20594_v36 }
 0x438   : > { %v20715_v27 = vpop.f32.mrf.mxu0  ;;  %v20717_v62 = vadd.f32 %v9071_v31, %v8726_v37 }
 0x439   : > { %22628 = vst [vmem:[#allocation9_spill] sm:$0xff] %v20715_v27  ;;  %v15826_v26 = vpop.f32.mrf.mxu1 }
 0x43a   : > { %v20721_v19 = vpop.f32.mrf.mxu0  ;;  %v20723_v57 = vadd.f32 %v15826_v26, %v8729_v53 }
 0x43b   : > { %v9081_v59 = vpop.f32.mrf.mxu1 }
 0x43c   : > { %v20726_v7 = vpop.f32.mrf.mxu0  ;;  %v20728_v56 = vadd.f32 %v9081_v59, %v8728_v41  ;;  %v8733_v41 = vadd.f32 %v22635_v1, %v20539_v5  ;;  %v8734_v5 = vadd.f32 %v20312_v16, %v20563_v55  ;;  %v22640_v16 = vld [vmem:[#allocation61_spill] sm:$0xff] }
 0x43d   : > { %22631 = vst [vmem:[#allocation43_spill] sm:$0xff] %v20726_v7  ;;  %v15829_v25 = vpop.f32.mrf.mxu1  ;;  %v9489_v55 = vadd.f32 %v22640_v16, %v20582_v38  ;;  %v9493_v38 = vadd.f32 %v20368_v51, %v20606_v11 }
 0x43e   : > { %v20732_v37 = vpop.f32.mrf.mxu0  ;;  %v20734_v31 = vadd.f32 %v15829_v25, %v8731_v14 }
 0x43f   : > { %v9091_v53 = vpop.f32.mrf.mxu1 }
 0x440   : > { %v20738_v26 = vpop.f32.mrf.mxu0  ;;  %v20740_v22 = vadd.f32 %v9091_v53, %v8730_v47  ;;  %v8735_v47 = vadd.f32 %v22637_v21, %v20555_v40  ;;  %v8736_v40 = vadd.f32 %v20329_v45, %v20576_v42 }
 0x441   : > { %22634 = vst [vmem:[#allocation82_spill] sm:$0xff] %v20738_v26  ;;  %v15832_v59 = vpop.f32.mrf.mxu1 }
 0x442   : > { %v20744_v7 = vpop.f32.mrf.mxu0  ;;  %v20746_v39 = vadd.f32 %v15832_v59, %v8733_v41 }
 0x443   : > { %v9101_v14 = vpop.f32.mrf.mxu1 }
 0x444   : > { %v20750_v25 = vpop.f32.mrf.mxu0  ;;  %v20752_v0 = vadd.f32 %v9101_v14, %v8732_v13 }
 0x445   : > { %22636 = vst [vmem:[#allocation58_spill] sm:$0xff] %v20750_v25  ;;  %v15835_v53 = vpop.f32.mrf.mxu1 }
 0x446   : > { %v20756_v26 = vadd.f32 %v15835_v53, %v8735_v47  ;;  %v20760_v1 = vpop.f32.mrf.mxu0 }
 0x447   : > { %v9111_v41 = vpop.f32.mrf.mxu1 }
 0x448   : > { %v20762_v59 = vadd.f32 %v9111_v41, %v8734_v5  ;;  %v20770_v14 = vpop.f32.mrf.mxu0 }
 0x449   : > { %v15838_v25 = vpop.f32.mrf.mxu1  ;;  %22639 = vst [vmem:[#allocation17_spill] sm:$0xff] %v20770_v14 }
 0x44a   : > { %v20766_v13 = vadd.f32 %v15838_v25, %v8737_v2  ;;  %v20776_v41 = vpop.f32.mrf.mxu0 }
 0x44b   : > { %v9121_v21 = vpop.f32.mrf.mxu1 }
 0x44c   : > { %v20772_v47 = vadd.f32 %v9121_v21, %v8736_v40  ;;  %v20785_v35 = vpop.f32.mrf.mxu0 }
 0x44d   : > { %v15893_v53 = vpop.f32.mrf.mxu1  ;;  %22641 = vst [vmem:[#allocation10_spill] sm:$0xff] %v20785_v35 }
 0x44e   : > { %v9911_v5 = vadd.f32 %v15893_v53, %v9489_v55  ;;  %v20794_v55 = vpop.f32.mrf.mxu0 }
 0x44f   : > { %v20778_v27 = vpop.f32.mrf.mxu1 }
 0x450   : > { %v20783_v25 = vadd.f32 %v20580_v48, %v9911_v5  ;;  %v22642_v48 = vld [vmem:[#allocation62_spill] sm:$0xff] }
 0x451   : > { %v15896_v45 = vpop.f32.mrf.mxu1  ;;  %v9495_v36 = vadd.f32 %v22642_v48, %v20618_v54 }
 0x452   : > { %v9913_v42 = vadd.f32 %v15896_v45, %v9491_v28  ;;  %v20803_v45 = vpop.f32.mrf.mxu0 }
 0x453   : > { %v20787_v2 = vpop.f32.mrf.mxu1 }
 0x454   : > { %v20792_v40 = vadd.f32 %v20592_v63, %v9913_v42  ;;  %v22643_v63 = vld [vmem:[#allocation8_spill] sm:$0xff]  ;;  %v20812_v35 = vpop.f32.mrf.mxu0 }
 0x455   : > { %v15899_v21 = vpop.f32.mrf.mxu1  ;;  %v9497_v11 = vadd.f32 %v22643_v63, %v20630_v12 }
 0x456   : > { %v9915_v16 = vadd.f32 %v15899_v21, %v9493_v38 }
 0x457   : > { %v20796_v8 = vpop.f32.mrf.mxu1 }
 0x458   : > { %v20801_v53 = vadd.f32 %v20604_v23, %v9915_v16  ;;  %v9499_v23 = vadd.f32 %v20416_v50, %v20642_v9 }
 0x459   : > { %v15902_v5 = vpop.f32.mrf.mxu1 }
 0x45a   : > { %v9917_v28 = vadd.f32 %v15902_v5, %v9495_v36  ;;  %v20821_v5 = vpop.f32.mrf.mxu0 }
 0x45b   : > { %v20805_v51 = vpop.f32.mrf.mxu1 }
 0x45c   : > { %v20810_v42 = vadd.f32 %v20616_v30, %v9917_v28  ;;  %v9501_v30 = vadd.f32 %v20432_v3, %v20654_v44 }
 0x45d   : > { %v15905_v38 = vpop.f32.mrf.mxu1 }
 0x45e   : > { %v9919_v21 = vadd.f32 %v15905_v38, %v9497_v11  ;;  %v20830_v38 = vpop.f32.mrf.mxu0 }
 0x45f   : > { %v20814_v54 = vpop.f32.mrf.mxu1 }
 0x460   : > { %v20819_v16 = vadd.f32 %v20628_v33, %v9919_v21  ;;  %v9503_v33 = vadd.f32 %v20448_v32, %v20669_v52 }
 0x461   : > { %v15908_v48 = vpop.f32.mrf.mxu1 }
 0x462   : > { %v9921_v36 = vadd.f32 %v15908_v48, %v9499_v23  ;;  %v20839_v48 = vpop.f32.mrf.mxu0 }
 0x463   : > { %v20823_v12 = vpop.f32.mrf.mxu1 }
 0x464   : > { %v20828_v28 = vadd.f32 %v20640_v49, %v9921_v36  ;;  %v9505_v49 = vadd.f32 %v20464_v61, %v20684_v18 }
 0x465   : > { %v15911_v63 = vpop.f32.mrf.mxu1 }
 0x466   : > { %v9923_v11 = vadd.f32 %v15911_v63, %v9501_v30  ;;  %v20848_v63 = vpop.f32.mrf.mxu0 }
 0x467   : > { %v20832_v50 = vpop.f32.mrf.mxu1 }
 0x468   : > { %v20837_v9 = vadd.f32 %v20652_v58, %v9923_v11  ;;  %v9507_v58 = vadd.f32 %v20478_v20, %v20698_v34 }
 0x469   : > { %v15914_v21 = vpop.f32.mrf.mxu1 }
 0x46a   : > { %v9925_v23 = vadd.f32 %v15914_v21, %v9503_v33  ;;  %v20857_v21 = vpop.f32.mrf.mxu0 }
 0x46b   : > { %v20841_v3 = vpop.f32.mrf.mxu1 }
 0x46c   : > { %v20846_v44 = vadd.f32 %v20666_v60, %v9925_v23  ;;  %v9509_v60 = vadd.f32 %v20492_v43, %v20712_v17 }
 0x46d   : > { %v15917_v36 = vpop.f32.mrf.mxu1 }
 0x46e   : > { %v9927_v30 = vadd.f32 %v15917_v36, %v9505_v49  ;;  %v20866_v36 = vpop.f32.mrf.mxu0 }
 0x46f   : > { %v20850_v32 = vpop.f32.mrf.mxu1 }
 0x470   : > { %v20855_v52 = vadd.f32 %v20681_v10, %v9927_v30  ;;  %v9511_v10 = vadd.f32 %v20506_v6, %v20723_v57 }
 0x471   : > { %v15920_v11 = vpop.f32.mrf.mxu1 }
 0x472   : > { %22644 = vst [vmem:[#allocation83_spill] sm:$0xff] %v20855_v52  ;;  %v9929_v33 = vadd.f32 %v15920_v11, %v9507_v58  ;;  %v20875_v11 = vpop.f32.mrf.mxu0  ;;  %v22668_v52 = vld [vmem:[#allocation54_spill] sm:$0xff] }
 0x473   : > { %v20859_v61 = vpop.f32.mrf.mxu1 }
 0x474   : > { %v20864_v18 = vadd.f32 %v20695_v15, %v9929_v33  ;;  %v22647_v15 = vld [vmem:[#allocation79_spill] sm:$0xff] }
 0x475   : > { %v15923_v23 = vpop.f32.mrf.mxu1  ;;  %v9513_v17 = vadd.f32 %v22647_v15, %v20734_v31 }
 0x476   : > { %22645 = vst [vmem:[#allocation25_spill] sm:$0xff] %v20864_v18  ;;  %v9931_v49 = vadd.f32 %v15923_v23, %v9509_v60  ;;  %v20884_v18 = vpop.f32.mrf.mxu0 }
 0x477   : > { %v20868_v20 = vpop.f32.mrf.mxu1 }
 0x478   : > { %v20873_v34 = vadd.f32 %v20709_v24, %v9931_v49  ;;  %v22649_v24 = vld [vmem:[#allocation84_spill] sm:$0xff] }
 0x479   : > { %v15926_v30 = vpop.f32.mrf.mxu1  ;;  %v9515_v57 = vadd.f32 %v22649_v24, %v20746_v39  ;;  %v22654_v24 = vld [vmem:[#allocation89_spill] sm:$0xff] }
 0x47a   : > { %22646 = vst [vmem:[#allocation45_spill] sm:$0xff] %v20873_v34  ;;  %v9933_v58 = vadd.f32 %v15926_v30, %v9511_v10  ;;  %v20893_v34 = vpop.f32.mrf.mxu0 }
 0x47b   : > { %v20877_v43 = vpop.f32.mrf.mxu1 }
 0x47c   : > { %v20882_v33 = vadd.f32 %v20721_v19, %v9933_v58  ;;  %v9517_v19 = vadd.f32 %v20552_v4, %v20756_v26 }
 0x47d   : > { %v15929_v60 = vpop.f32.mrf.mxu1 }
 0x47e   : > { %22648 = vst [vmem:[#allocation59_spill] sm:$0xff] %v20882_v33  ;;  %v9935_v23 = vadd.f32 %v15929_v60, %v9513_v17  ;;  %v20902_v60 = vpop.f32.mrf.mxu0 }
 0x47f   : > { %v20886_v6 = vpop.f32.mrf.mxu1 }
 0x480   : > { %v20891_v49 = vadd.f32 %v20732_v37, %v9935_v23  ;;  %v22653_v37 = vld [vmem:[#allocation30_spill] sm:$0xff]  ;;  %v20914_v26 = vpop.f32.mrf.mxu0 }
 0x481   : > { %v15932_v10 = vpop.f32.mrf.mxu1  ;;  %v9488_v23 = vadd.f32 %v22653_v37, %v20588_v29 }
 0x482   : > { %22650 = vst [vmem:[#allocation11_spill] sm:$0xff] %v20891_v49  ;;  %v9937_v30 = vadd.f32 %v15932_v10, %v9515_v57  ;;  %v9519_v57 = vadd.f32 %v22654_v24, %v20766_v13  ;;  %v22661_v24 = vld [vmem:[#allocation85_spill] sm:$0xff] }
 0x483   : > { %v20895_v31 = vpop.f32.mrf.mxu1  ;;  %v9910_v4 = vadd.f32 %v20778_v27, %v9488_v23  ;;  %v22662_v27 = vld [vmem:[#allocation51_spill] sm:$0xff]  ;;  %v20928_v23 = vpop.f32.mrf.mxu0 }
 0x484   : > { %v20900_v58 = vadd.f32 %v20744_v7, %v9937_v30 }
 0x485   : > { %v15935_v15 = vpop.f32.mrf.mxu1 }
 0x486   : > { %22651 = vst [vmem:[#allocation47_spill] sm:$0xff] %v20900_v58  ;;  %v9939_v17 = vadd.f32 %v15935_v15, %v9517_v19  ;;  %v22657_v19 = vld [vmem:[#allocation4_spill] sm:$0xff] }
 0x487   : > { %v20904_v39 = vpop.f32.mrf.mxu1  ;;  %v22658_v15 = vld [vmem:[#allocation12_spill] sm:$0xff] }
 0x488   : > { %22652 = vst [vmem:[#allocation60_spill] sm:$0xff] %v20904_v39  ;;  %v20911_v10 = vadd.f32 %v20760_v1, %v9939_v17  ;;  %v9490_v58 = vadd.f32 %v22658_v15, %v22657_v19  ;;  %v22660_v17 = vld [vmem:[#allocation52_spill] sm:$0xff]  ;;  %v20951_v39 = vpop.f32.mrf.mxu0 }
 0x489   : > { %v15938_v49 = vpop.f32.mrf.mxu1  ;;  %v10268_v37 = vadd.f32 %v22660_v17, %v9910_v4  ;;  %22674 = vst [vmem:[#allocation61_spill] sm:$0xff] %v20951_v39 }
 0x48a   : > { %22655 = vst [vmem:[#allocation18_spill] sm:$0xff] %v20911_v10  ;;  %v9941_v7 = vadd.f32 %v15938_v49, %v9519_v57  ;;  %v9912_v13 = vadd.f32 %v20787_v2, %v9490_v58  ;;  %v9492_v49 = vadd.f32 %v22662_v27, %v22661_v24  ;;  %v20933_v57 = vld [vmem:[%s21926_s6] ss:$0 sm:$0xff]  ;;  %v22663_v58 = vld [vmem:[#allocation87_spill] sm:$0xff]  ;;  %v20963_v39 = vpop.f32.mrf.mxu0 }
 0x48b   : > { %v20916_v30 = vpop.f32.mrf.mxu1  ;;  %v22665_v27 = vld [vmem:[#allocation5_spill] sm:$0xff]  ;;  %v22666_v10 = vld [vmem:[#allocation15_spill] sm:$0xff] }
 0x48c   : > { %22656 = vst [vmem:[#allocation27_spill] sm:$0xff] %v20916_v30  ;;  %v20921_v33 = vadd.f32 %v20776_v41, %v9941_v7  ;;  %v9914_v2 = vadd.f32 %v20796_v8, %v9492_v49  ;;  %v22667_v30 = vld [vmem:[#allocation53_spill] sm:$0xff]  ;;  %v22671_v8 = vld [vmem:[#allocation32_spill] sm:$0xff] }
 0x48d   : > { %v15993_v29 = vpop.f32.mrf.mxu1  ;;  %v9496_v14 = vadd.f32 %v22667_v30, %v22666_v10  ;;  %v22675_v30 = vld [vmem:[#allocation55_spill] sm:$0xff] }
 0x48e   : > { %22659 = vst [vmem:[#allocation49_spill] sm:$0xff] %v20921_v33  ;;  %v10691_v1 = vadd.f32 %v15993_v29, %v20783_v25  ;;  %v22664_v25 = vld [vmem:[#allocation19_spill] sm:$0xff]  ;;  %v10270_v33 = vadd.f32 %v22665_v27, %v9912_v13  ;;  %v22677_v27 = vld [vmem:[#allocation64_spill] sm:$0xff] }
 0x48f   : > { %v10531_v19 = vpop.f32.mrf.mxu1  ;;  %v9494_v15 = vadd.f32 %v22664_v25, %v22663_v58  ;;  %v22673_v58 = vld [vmem:[#allocation31_spill] sm:$0xff] }
 0x490   : > { %v11049_v41 = vadd.f32 %v20794_v55, %v10691_v1  ;;  %v10690_v7 = vadd.f32 %v10531_v19, %v10268_v37  ;;  %v22669_v55 = vld [vmem:[#allocation63_spill] sm:$0xff]  ;;  %v22670_v37 = vld [vmem:[#allocation16_spill] sm:$0xff] }
 0x491   : > { %v15996_v4 = vpop.f32.mrf.mxu1  ;;  %v9498_v1 = vadd.f32 %v22669_v55, %v22668_v52  ;;  %v9500_v49 = vadd.f32 %v22671_v8, %v22670_v37  ;;  %v22672_v19 = vld [vmem:[#allocation80_spill] sm:$0xff]  ;;  %v9916_v10 = vadd.f32 %v20805_v51, %v9494_v15  ;;  %v9504_v52 = vadd.f32 %v22675_v30, %v20691_v46 }
 0x492   : > { %v11088_v29 = vadd.f32 %v20933_v57, %v11049_v41  ;;  %v11048_v17 = vadd.f32 %v20803_v45, %v10690_v7  ;;  %v10693_v24 = vadd.f32 %v15996_v4, %v20792_v40  ;;  %v9502_v25 = vadd.f32 %v22673_v58, %v22672_v19  ;;  %v22676_v4 = vld [vmem:[#allocation81_spill] sm:$0xff]  ;;  %v22678_v8 = vld [vmem:[#allocation40_spill] sm:$0xff] }
 0x493   : > { %v10541_v41 = vpop.f32.mrf.mxu1  ;;  %v9506_v55 = vadd.f32 %v22677_v27, %v22676_v4  ;;  %v10272_v19 = vadd.f32 %v22678_v8, %v9914_v2  ;;  %v22681_v15 = vld [vmem:[#allocation88_spill] sm:$0xff]  ;;  %v22683_v4 = vld [vmem:[#allocation86_spill] sm:$0xff]  ;;  %v9920_v8 = vadd.f32 %v20823_v12, %v9498_v1  ;;  %v9922_v12 = vadd.f32 %v20832_v50, %v9500_v49 }
 0x494   : > { %v13783_v45 = vmul.f32 -1.442695, %v11088_v29  ;;  %v11087_v40 = vadd.f32 %v20933_v57, %v11048_v17  ;;  %v11051_v13 = vadd.f32 %v20812_v35, %v10693_v24  ;;  %v10692_v7 = vadd.f32 %v10541_v41, %v10270_v33  ;;  %v22679_v35 = vld [vmem:[#allocation65_spill] sm:$0xff]  ;;  %v22680_v33 = vld [vmem:[#allocation78_spill] sm:$0xff] }
 0x495   : > { %v15999_v37 = vpop.f32.mrf.mxu1  ;;  %v9508_v51 = vadd.f32 %v22679_v35, %v20717_v62  ;;  %v9510_v46 = vadd.f32 %v22680_v33, %v20728_v56  ;;  %v20971_v24 = vadd.f32 %v22681_v15, %v20740_v22  ;;  %v10274_v22 = vadd.f32 %v22683_v4, %v9916_v10  ;;  %v22686_v35 = vld [vmem:[#allocation56_spill] sm:$0xff] }
 0x496   : > { %16127 = vpow2.f32 %v13783_v45  ;;  %v13782_v58 = vmul.f32 -1.442695, %v11087_v40  ;;  %v11090_v29 = vadd.f32 %v20933_v57, %v11051_v13  ;;  %v11050_v17 = vadd.f32 %v20821_v5, %v10692_v7  ;;  %v22682_v7 = vld [vmem:[#allocation22_spill] sm:$0xff] }
 0x497   : > { %v10695_v2 = vadd.f32 %v15999_v37, %v20801_v53  ;;  %v10551_v41 = vpop.f32.mrf.mxu1  ;;  %v9918_v13 = vadd.f32 %v20814_v54, %v9496_v14  ;;  %v20978_v62 = vadd.f32 %v22682_v7, %v20752_v0  ;;  %v22684_v14 = vld [vmem:[#allocation39_spill] sm:$0xff]  ;;  %v22685_v0 = vld [vmem:[#allocation90_spill] sm:$0xff]  ;;  %v9924_v1 = vadd.f32 %v20841_v3, %v9502_v25  ;;  %v22687_v3 = vld [vmem:[#allocation57_spill] sm:$0xff] }
 0x498   : > { %16129 = vpow2.f32 %v13782_v58  ;;  %v13785_v45 = vmul.f32 -1.442695, %v11090_v29  ;;  %v11089_v40 = vadd.f32 %v20933_v57, %v11050_v17  ;;  %v10694_v5 = vadd.f32 %v10551_v41, %v10272_v19  ;;  %v20985_v19 = vpop.f32.mrf.mxu0 }
 0x499   : > { %v11053_v56 = vadd.f32 %v20830_v38, %v10695_v2  ;;  %v16002_v30 = vpop.f32.mrf.mxu1  ;;  %v20989_v54 = vadd.f32 %v22684_v14, %v20762_v59  ;;  %v20993_v38 = vadd.f32 %v22685_v0, %v20772_v47  ;;  %v10276_v33 = vadd.f32 %v22686_v35, %v9918_v13 }
 0x49a   : > { %16131 = vpow2.f32 %v13785_v45  ;;  %v13784_v27 = vmul.f32 -1.442695, %v11089_v40  ;;  %v11052_v53 = vadd.f32 %v20839_v48, %v10694_v5  ;;  %v10697_v37 = vadd.f32 %v16002_v30, %v20810_v42  ;;  %v21005_v40 = vpop.f32.mrf.mxu0 }
 0x49b   : > { %v11092_v10 = vadd.f32 %v20933_v57, %v11053_v56  ;;  %v10561_v58 = vpop.f32.mrf.mxu1  ;;  %v9926_v45 = vadd.f32 %v20850_v32, %v9504_v52  ;;  %v10278_v49 = vadd.f32 %v22687_v3, %v9920_v8  ;;  %v22688_v56 = vld [vmem:[#allocation33_spill] sm:$0xff]  ;;  %v22689_v52 = vld [vmem:[#allocation24_spill] sm:$0xff]  ;;  %v22691_v8 = vld [vmem:[#allocation6_spill] sm:$0xff] }
 0x49c   : > { %16133 = vpow2.f32 %v13784_v27  ;;  %v11091_v48 = vadd.f32 %v20933_v57, %v11052_v53  ;;  %v11055_v42 = vadd.f32 %v20848_v63, %v10697_v37  ;;  %v10696_v29 = vadd.f32 %v10561_v58, %v10274_v22  ;;  %v21016_v27 = vpop.f32.mrf.mxu0  ;;  %v22694_v3 = vld [vmem:[#allocation82_spill] sm:$0xff] }
 0x49d   : > { %v13787_v17 = vmul.f32 -1.442695, %v11092_v10  ;;  %v16005_v59 = vpop.f32.mrf.mxu1  ;;  %v9928_v63 = vadd.f32 %v20859_v61, %v9506_v55  ;;  %v10280_v32 = vadd.f32 %v22688_v56, %v9922_v12  ;;  %v10282_v30 = vadd.f32 %v22689_v52, %v9924_v1 }
 0x49e   : > { %v13786_v15 = vmul.f32 -1.442695, %v11091_v48  ;;  %v11094_v47 = vadd.f32 %v20933_v57, %v11055_v42  ;;  %v11054_v2 = vadd.f32 %v20857_v21, %v10696_v29  ;;  %v10699_v41 = vadd.f32 %v16005_v59, %v20819_v16  ;;  %v22692_v42 = vld [vmem:[#allocation9_spill] sm:$0xff]  ;;  %v21035_v35 = vpop.f32.mrf.mxu0 }
 0x49f   : > { %16135 = vpow2.f32 %v13787_v17  ;;  %v10571_v50 = vpop.f32.mrf.mxu1  ;;  %v9930_v21 = vadd.f32 %v20868_v20, %v9508_v51  ;;  %v9932_v53 = vadd.f32 %v20877_v43, %v9510_v46  ;;  %v22690_v51 = vld [vmem:[#allocation41_spill] sm:$0xff]  ;;  %v21024_v14 = vadd.f32 %v22691_v8, %v9928_v63 }
 0x4a0   : > { %16137 = vpow2.f32 %v13786_v15  ;;  %v13789_v25 = vmul.f32 -1.442695, %v11094_v47  ;;  %v11093_v5 = vadd.f32 %v20933_v57, %v11054_v2  ;;  %v11057_v13 = vadd.f32 %v20866_v36, %v10699_v41 }
 0x4a1   : > { %v10698_v7 = vadd.f32 %v10571_v50, %v10276_v33  ;;  %v16008_v16 = vpop.f32.mrf.mxu1  ;;  %v21021_v37 = vadd.f32 %v22690_v51, %v9926_v45  ;;  %v9934_v48 = vadd.f32 %v20886_v6, %v20971_v24  ;;  %v21031_v29 = vadd.f32 %v22692_v42, %v9930_v21  ;;  %v22693_v33 = vld [vmem:[#allocation43_spill] sm:$0xff] }
 0x4a2   : > { %16139 = vpow2.f32 %v13789_v25  ;;  %v13788_v61 = vmul.f32 -1.442695, %v11093_v5  ;;  %v11096_v55 = vadd.f32 %v20933_v57, %v11057_v13  ;;  %v10701_v4 = vadd.f32 %v16008_v16, %v20828_v28  ;;  %v21048_v13 = vpop.f32.mrf.mxu0 }
 0x4a3   : > { %v16128_v22 = vpop.eup %16127  ;;  %v11056_v36 = vadd.f32 %v20875_v11, %v10698_v7  ;;  %v10581_v20 = vpop.f32.mrf.mxu1  ;;  %v21039_v15 = vadd.f32 %v22693_v33, %v9932_v53 }
 0x4a4   : > { %v11216_v0 = vadd.f32 1.0, %v16128_v22  ;;  %16141 = vpow2.f32 %v13788_v61  ;;  %v13791_v10 = vmul.f32 -1.442695, %v11096_v55  ;;  %v11059_v58 = vadd.f32 %v20884_v18, %v10701_v4  ;;  %v22695_v4 = vld [vmem:[#allocation60_spill] sm:$0xff]  ;;  %v21059_v8 = vpop.f32.mrf.mxu0 }
 0x4a5   : > { %v16130_v28 = vpop.eup %16129  ;;  %v11095_v43 = vadd.f32 %v20933_v57, %v11056_v36  ;;  %v10700_v46 = vadd.f32 %v10581_v20, %v10278_v49  ;;  %v16011_v11 = vpop.f32.mrf.mxu1  ;;  %v21044_v49 = vadd.f32 %v22694_v3, %v9934_v48  ;;  %v22696_v36 = vld [vmem:[#allocation61_spill] sm:$0xff] }
 0x4a6   : > { %16143 = vrcp.f32 %v11216_v0  ;;  %v11215_v12 = vadd.f32 1.0, %v16130_v28  ;;  %v11098_v1 = vadd.f32 %v20933_v57, %v11059_v58  ;;  %v10703_v17 = vadd.f32 %v16011_v11, %v20837_v9 }
 0x4a7   : > { %v16132_v59 = vpop.eup %16131  ;;  %16145 = vpow2.f32 %v13791_v10  ;;  %v13790_v18 = vmul.f32 -1.442695, %v11095_v43  ;;  %v11058_v6 = vadd.f32 %v20893_v34, %v10700_v46  ;;  %v10591_v24 = vpop.f32.mrf.mxu1 }
 0x4a8   : > { %16147 = vrcp.f32 %v11215_v12  ;;  %v11218_v47 = vadd.f32 1.0, %v16132_v59  ;;  %v13793_v2 = vmul.f32 -1.442695, %v11098_v1  ;;  %v11061_v41 = vadd.f32 %v20902_v60, %v10703_v17  ;;  %v22699_v1 = vld [vmem:[#allocation17_spill] sm:$0xff] }
 0x4a9   : > { %v16134_v45 = vpop.eup %16133  ;;  %16149 = vpow2.f32 %v13790_v18  ;;  %v11097_v9 = vadd.f32 %v20933_v57, %v11058_v6  ;;  %v10702_v63 = vadd.f32 %v10591_v24, %v10280_v32  ;;  %v16014_v50 = vpop.f32.mrf.mxu1  ;;  %v9936_v60 = vadd.f32 %v20895_v31, %v20978_v62  ;;  %v22700_v6 = vld [vmem:[#allocation25_spill] sm:$0xff] }
 0x4aa   : > { %16151 = vrcp.f32 %v11218_v47  ;;  %v11217_v34 = vadd.f32 1.0, %v16134_v45  ;;  %v11100_v25 = vadd.f32 %v20933_v57, %v11061_v41  ;;  %v10705_v5 = vadd.f32 %v16014_v50, %v20846_v44  ;;  %v21072_v47 = vpop.f32.mrf.mxu0 }
 0x4ab   : > { %16153 = vpow2.f32 %v13793_v2  ;;  %v13792_v21 = vmul.f32 -1.442695, %v11097_v9  ;;  %v11060_v7 = vadd.f32 %v20914_v26, %v10702_v63  ;;  %v10601_v16 = vpop.f32.mrf.mxu1  ;;  %v9938_v44 = vadd.f32 %v22695_v4, %v20989_v54  ;;  %v22698_v54 = vld [vmem:[#allocation58_spill] sm:$0xff]  ;;  %v22701_v2 = vld [vmem:[#allocation27_spill] sm:$0xff] }
 0x4ac   : > { %v16136_v56 = vpop.eup %16135  ;;  %16155 = vrcp.f32 %v11217_v34  ;;  %v13795_v32 = vmul.f32 -1.442695, %v11100_v25  ;;  %v11063_v52 = vadd.f32 %v20928_v23, %v10705_v5  ;;  %v10704_v61 = vadd.f32 %v10601_v16, %v10282_v30  ;;  %v22697_v30 = vld [vmem:[#allocation83_spill] sm:$0xff] }
 0x4ad   : > { %v16138_v55 = vpop.eup %16137  ;;  %v11220_v22 = vadd.f32 1.0, %v16136_v56  ;;  %16157 = vpow2.f32 %v13792_v21  ;;  %v11099_v53 = vadd.f32 %v20933_v57, %v11060_v7  ;;  %v16017_v31 = vpop.f32.mrf.mxu1  ;;  %v21063_v58 = vadd.f32 %v22698_v54, %v9936_v60  ;;  %v22702_v56 = vld [vmem:[#allocation45_spill] sm:$0xff] }
 0x4ae   : > { %v11219_v62 = vadd.f32 1.0, %v16138_v55  ;;  %16159 = vpow2.f32 %v13795_v32  ;;  %v11102_v26 = vadd.f32 %v20933_v57, %v11063_v52  ;;  %v11062_v20 = vadd.f32 %v22696_v36, %v10704_v61 }
 0x4af   : > { %v16140_v51 = vpop.eup %16139  ;;  %16161 = vrcp.f32 %v11220_v22  ;;  %v13794_v23 = vmul.f32 -1.442695, %v11099_v53  ;;  %v10707_v0 = vadd.f32 %v16017_v31, %v22697_v30  ;;  %v10611_v10 = vpop.f32.mrf.mxu1  ;;  %v21069_v17 = vadd.f32 %v22699_v1, %v9938_v44 }
 0x4b0   : > { %16163 = vrcp.f32 %v11219_v62  ;;  %v11222_v28 = vadd.f32 1.0, %v16140_v51  ;;  %v13797_v48 = vmul.f32 -1.442695, %v11102_v26  ;;  %v11101_v43 = vadd.f32 %v20933_v57, %v11062_v20 }
 0x4b1   : > { %v16142_v46 = vpop.eup %16141  ;;  %16165 = vpow2.f32 %v13794_v23  ;;  %v11065_v11 = vadd.f32 %v20963_v39, %v10707_v0  ;;  %v10706_v42 = vadd.f32 %v10611_v10, %v21021_v37  ;;  %v16020_v12 = vpop.f32.mrf.mxu1  ;;  %v21076_v41 = vadd.f32 %v22701_v2, %v20993_v38  ;;  %v22703_v0 = vld [vmem:[#allocation59_spill] sm:$0xff] }
 0x4b2   : > { %16167 = vrcp.f32 %v11222_v28  ;;  %v11221_v59 = vadd.f32 1.0, %v16142_v46  ;;  %v13796_v18 = vmul.f32 -1.442695, %v11101_v43  ;;  %v10709_v24 = vadd.f32 %v16020_v12, %v22700_v6 }
 0x4b3   : > { %v16144_v33 = vpop.eup %16143  ;;  %16169 = vpow2.f32 %v13797_v48  ;;  %v11104_v39 = vadd.f32 %v20933_v57, %v11065_v11  ;;  %v11064_v37 = vadd.f32 %v20985_v19, %v10706_v42  ;;  %v10621_v45 = vpop.f32.mrf.mxu1 }
 0x4b4   : > { %v16146_v9 = vpop.eup %16145  ;;  %v11313_v63 = vsel %vm11311_vm3, %v16144_v33, 0.0  ;;  %16171 = vrcp.f32 %v11221_v59  ;;  %v11067_v50 = vadd.f32 %v21005_v40, %v10709_v24  ;;  %v10708_v3 = vadd.f32 %v10621_v45, %v21024_v14  ;;  %v21088_v40 = vpop.f32.mrf.mxu0 }
 0x4b5   : > { %v16148_v34 = vpop.eup %16147  ;;  %v11224_v25 = vadd.f32 1.0, %v16146_v9  ;;  %16173 = vpow2.f32 %v13796_v18  ;;  %v13799_v5 = vmul.f32 -1.442695, %v11104_v39  ;;  %v11103_v38 = vadd.f32 %v20933_v57, %v11064_v37  ;;  %v16023_v60 = vpop.f32.mrf.mxu1 }
 0x4b6   : > { %v16150_v21 = vpop.eup %16149  ;;  %v11312_v7 = vsel %vm11311_vm3, %v16148_v34, 0.0  ;;  %v11106_v19 = vadd.f32 %v20933_v57, %v11067_v50  ;;  %v11066_v16 = vadd.f32 %v21016_v27, %v10708_v3  ;;  %v10711_v32 = vadd.f32 %v16023_v60, %v22702_v56  ;;  %v11009_v28 = vpop.f32.mrf.mxu0 }
 0x4b7   : > { %v16152_v52 = vpop.eup %16151  ;;  %v11314_v14 = vadd.f32 %v11313_v63, %v11312_v7  ;;  %16175 = vrcp.f32 %v11224_v25  ;;  %v11223_v61 = vadd.f32 1.0, %v16150_v21  ;;  %v13798_v55 = vmul.f32 -1.442695, %v11103_v38  ;;  %v10631_v4 = vpop.f32.mrf.mxu1 }
 0x4b8   : > { %v16154_v44 = vpop.eup %16153  ;;  %v11317_v22 = vsel %vm11311_vm3, %v16152_v52, 0.0  ;;  %16177 = vpow2.f32 %v13799_v5  ;;  %v13801_v53 = vmul.f32 -1.442695, %v11106_v19  ;;  %v11105_v31 = vadd.f32 %v20933_v57, %v11066_v16  ;;  %v16082_v9 = vpop.f32.mrf.mxu0 }
 0x4b9   : > { %v16156_v62 = vpop.eup %16155  ;;  %16179 = vrcp.f32 %v11223_v61  ;;  %v11226_v27 = vadd.f32 1.0, %v16154_v44  ;;  %v11069_v26 = vadd.f32 %v21035_v35, %v10711_v32  ;;  %v10710_v36 = vadd.f32 %v10631_v4, %v21031_v29  ;;  %v16026_v20 = vpop.f32.mrf.mxu1  ;;  %v22704_v32 = vld [vmem:[#allocation11_spill] sm:$0xff] }
 0x4ba   : > { %v16158_v51 = vpop.eup %16157  ;;  %v11315_v23 = vsel %vm11311_vm3, %v16156_v62, 0.0  ;;  %16181 = vpow2.f32 %v13798_v55  ;;  %v13800_v30 = vmul.f32 -1.442695, %v11105_v31  ;;  %v10713_v10 = vadd.f32 %v16026_v20, %v22703_v0  ;;  %v22705_v31 = vld [vmem:[#allocation47_spill] sm:$0xff] }
 0x4bb   : > { %v16160_v54 = vpop.eup %16159  ;;  %v11316_v48 = vadd.f32 %v11315_v23, %v11314_v14  ;;  %16183 = vrcp.f32 %v11226_v27  ;;  %v11225_v43 = vadd.f32 1.0, %v16158_v51  ;;  %v11108_v46 = vadd.f32 %v20933_v57, %v11069_v26  ;;  %v10641_v11 = vpop.f32.mrf.mxu1 }
 0x4bc   : > { %v16162_v42 = vpop.eup %16161  ;;  %v11228_v35 = vadd.f32 1.0, %v16160_v54  ;;  %16185 = vpow2.f32 %v13801_v53  ;;  %v11068_v29 = vadd.f32 %v21048_v13, %v10710_v36  ;;  %v11071_v12 = vadd.f32 %v21059_v8, %v10713_v10  ;;  %v11019_v14 = vpop.f32.mrf.mxu0 }
 0x4bd   : > { %v16164_v1 = vpop.eup %16163  ;;  %v11321_v59 = vsel %vm11311_vm3, %v16162_v42, 0.0  ;;  %v11318_v18 = vadd.f32 %v11317_v22, %v11316_v48  ;;  %16187 = vrcp.f32 %v11225_v43  ;;  %v13803_v6 = vmul.f32 -1.442695, %v11108_v46  ;;  %v16029_v24 = vpop.f32.mrf.mxu1  ;;  %v22707_v46 = vld [vmem:[#allocation18_spill] sm:$0xff] }
 0x4be   : > { %v16166_v33 = vpop.eup %16165  ;;  %v11319_v2 = vsel %vm11311_vm3, %v16164_v1, 0.0  ;;  %16189 = vrcp.f32 %v11228_v35  ;;  %v11107_v39 = vadd.f32 %v20933_v57, %v11068_v29  ;;  %v11110_v37 = vadd.f32 %v20933_v57, %v11071_v12 }
 0x4bf   : > { %v16168_v45 = vpop.eup %16167  ;;  %v11320_v13 = vadd.f32 %v11319_v2, %v11318_v18  ;;  %v11227_v63 = vadd.f32 1.0, %v16166_v33  ;;  %16191 = vpow2.f32 %v13800_v30  ;;  %v10712_v8 = vadd.f32 %v10641_v11, %v21039_v15  ;;  %v10651_v50 = vpop.f32.mrf.mxu1 }
 0x4c0   : > { %v16170_v3 = vpop.eup %16169  ;;  %v11325_v34 = vsel %vm11311_vm3, %v16168_v45, 0.0  ;;  %16193 = vpow2.f32 %v13803_v6  ;;  %v13802_v25 = vmul.f32 -1.442695, %v11107_v39  ;;  %v13805_v5 = vmul.f32 -1.442695, %v11110_v37 }
 0x4c1   : > { %v16172_v38 = vpop.eup %16171  ;;  %v11322_v60 = vadd.f32 %v11321_v59, %v11320_v13  ;;  %16195 = vrcp.f32 %v11227_v63  ;;  %v11230_v21 = vadd.f32 1.0, %v16170_v3  ;;  %v11070_v7 = vadd.f32 %v21072_v47, %v10712_v8  ;;  %v16032_v19 = vpop.f32.mrf.mxu1 }
 0x4c2   : > { %v16174_v16 = vpop.eup %16173  ;;  %v11323_v56 = vsel %vm11311_vm3, %v16172_v38, 0.0  ;;  %16197 = vpow2.f32 %v13802_v25  ;;  %v10715_v15 = vadd.f32 %v16029_v24, %v22704_v32  ;;  %v10714_v52 = vadd.f32 %v10651_v50, %v21044_v49  ;;  %v22706_v49 = vld [vmem:[#allocation10_spill] sm:$0xff] }
 0x4c3   : > { %v11324_v61 = vadd.f32 %v11323_v56, %v11322_v60  ;;  %16199 = vrcp.f32 %v11230_v21  ;;  %v11229_v55 = vadd.f32 1.0, %v16174_v16  ;;  %v11109_v4 = vadd.f32 %v20933_v57, %v11070_v7  ;;  %v10661_v44 = vpop.f32.mrf.mxu1 }
 0x4c4   : > { %v16176_v22 = vpop.eup %16175  ;;  %16201 = vpow2.f32 %v13805_v5  ;;  %v11073_v47 = vadd.f32 %v21088_v40, %v10715_v15  ;;  %v11072_v53 = vadd.f32 %v11009_v28, %v10714_v52  ;;  %v10717_v62 = vadd.f32 %v16032_v19, %v22705_v31  ;;  %v16085_v40 = vpop.f32.mrf.mxu0 }
 0x4c5   : > { %v16178_v27 = vpop.eup %16177  ;;  %v11326_v26 = vadd.f32 %v11325_v34, %v11324_v61  ;;  %16203 = vrcp.f32 %v11229_v55  ;;  %v13804_v36 = vmul.f32 -1.442695, %v11109_v4  ;;  %v16035_v20 = vpop.f32.mrf.mxu1  ;;  %v10298_v51 = vadd.f32 %v22706_v49, %v21076_v41  ;;  %v22708_v55 = vld [vmem:[#allocation49_spill] sm:$0xff] }
 0x4c6   : > { %v16180_v23 = vpop.eup %16179  ;;  %v11232_v30 = vadd.f32 1.0, %v16178_v27  ;;  %v11112_v0 = vadd.f32 %v20933_v57, %v11073_v47  ;;  %v11111_v10 = vadd.f32 %v20933_v57, %v11072_v53  ;;  %v11075_v54 = vadd.f32 %v16082_v9, %v10717_v62  ;;  %v11029_v9 = vpop.f32.mrf.mxu0 }
 0x4c7   : > { %v16182_v48 = vpop.eup %16181  ;;  %v11327_v28 = vsel %vm11311_vm3, %v16180_v23, 0.0  ;;  %16205 = vpow2.f32 %v13804_v36  ;;  %v10716_v43 = vadd.f32 %v10661_v44, %v21063_v58  ;;  %v10719_v11 = vadd.f32 %v16035_v20, %v22707_v46  ;;  %v10671_v42 = vpop.f32.mrf.mxu1 }
 0x4c8   : > { %v16184_v35 = vpop.eup %16183  ;;  %v11329_v41 = vsel %vm11311_vm3, %v16176_v22, 0.0  ;;  %v11328_v29 = vadd.f32 %v11327_v28, %v11326_v26  ;;  %v11231_v12 = vadd.f32 1.0, %v16182_v48  ;;  %v13807_v1 = vmul.f32 -1.442695, %v11112_v0  ;;  %v16088_v7 = vpop.f32.mrf.mxu0 }
 0x4c9   : > { %v16186_v59 = vpop.eup %16185  ;;  %16207 = vrcp.f32 %v11232_v30  ;;  %v13806_v18 = vmul.f32 -1.442695, %v11111_v10  ;;  %v11114_v6 = vadd.f32 %v20933_v57, %v11075_v54  ;;  %v11074_v24 = vadd.f32 %v11019_v14, %v10716_v43  ;;  %v16038_v33 = vpop.f32.mrf.mxu1 }
 0x4ca   : > { %v16188_v2 = vpop.eup %16187  ;;  %v11330_v39 = vadd.f32 %v11329_v41, %v11328_v29  ;;  %16209 = vrcp.f32 %v11231_v12  ;;  %v11234_v58 = vadd.f32 1.0, %v16186_v59  ;;  %v11077_v37 = vadd.f32 %v16085_v40, %v10719_v11  ;;  %v11039_v26 = vpop.f32.mrf.mxu0 }
 0x4cb   : > { %v16190_v45 = vpop.eup %16189  ;;  %v11331_v13 = vsel %vm11311_vm3, %v16188_v2, 0.0  ;;  %16211 = vpow2.f32 %v13807_v1  ;;  %v13809_v63 = vmul.f32 -1.442695, %v11114_v6  ;;  %v11113_v8 = vadd.f32 %v20933_v57, %v11074_v24  ;;  %v10681_v19 = vpop.f32.mrf.mxu1 }
 0x4cc   : > { %v16192_v50 = vpop.eup %16191  ;;  %v11333_v3 = vsel %vm11311_vm3, %v16184_v35, 0.0  ;;  %v11332_v34 = vadd.f32 %v11331_v13, %v11330_v39  ;;  %16213 = vrcp.f32 %v11234_v58  ;;  %v11116_v25 = vadd.f32 %v20933_v57, %v11077_v37 }
 0x4cd   : > { %v16194_v5 = vpop.eup %16193  ;;  %v11233_v38 = vadd.f32 1.0, %v16192_v50  ;;  %16215 = vpow2.f32 %v13806_v18  ;;  %v13808_v60 = vmul.f32 -1.442695, %v11113_v8  ;;  %v10718_v21 = vadd.f32 %v10671_v42, %v21069_v17 }
 0x4ce   : > { %v16196_v16 = vpop.eup %16195  ;;  %v11334_v56 = vadd.f32 %v11333_v3, %v11332_v34  ;;  %v11236_v32 = vadd.f32 1.0, %v16194_v5  ;;  %16217 = vpow2.f32 %v13809_v63  ;;  %v13811_v15 = vmul.f32 -1.442695, %v11116_v25 }
 0x4cf   : > { %v16198_v52 = vpop.eup %16197  ;;  %v11335_v14 = vsel %vm11311_vm3, %v16196_v16, 0.0  ;;  %16219 = vrcp.f32 %v11233_v38  ;;  %v11076_v61 = vadd.f32 %v11029_v9, %v10718_v21  ;;  %v10721_v4 = vadd.f32 %v16038_v33, %v22708_v55 }
 0x4d0   : > { %v16200_v44 = vpop.eup %16199  ;;  %v11336_v22 = vadd.f32 %v11335_v14, %v11334_v56  ;;  %16221 = vrcp.f32 %v11236_v32  ;;  %v11235_v47 = vadd.f32 1.0, %v16198_v52  ;;  %v10720_v53 = vadd.f32 %v10681_v19, %v10298_v51 }
 0x4d1   : > { %v16202_v17 = vpop.eup %16201  ;;  %v11337_v31 = vsel %vm11311_vm3, %v16190_v45, 0.0  ;;  %16223 = vpow2.f32 %v13808_v60  ;;  %v11115_v62 = vadd.f32 %v20933_v57, %v11076_v61  ;;  %v11079_v27 = vadd.f32 %v16088_v7, %v10721_v4 }
 0x4d2   : > { %v16204_v36 = vpop.eup %16203  ;;  %v11338_v20 = vadd.f32 %v11337_v31, %v11336_v22  ;;  %16225 = vrcp.f32 %v11235_v47  ;;  %v11238_v49 = vadd.f32 1.0, %v16202_v17  ;;  %v11078_v23 = vadd.f32 %v11039_v26, %v10720_v53 }
 0x4d3   : > { %v11339_v30 = vsel %vm11311_vm3, %v16204_v36, 0.0  ;;  %16227 = vpow2.f32 %v13811_v15  ;;  %v13810_v0 = vmul.f32 -1.442695, %v11115_v62  ;;  %v11118_v10 = vadd.f32 %v20933_v57, %v11079_v27 }
 0x4d4   : > { %v16206_v51 = vpop.eup %16205  ;;  %v11340_v54 = vadd.f32 %v11339_v30, %v11338_v20  ;;  %v11117_v48 = vadd.f32 %v20933_v57, %v11078_v23  ;;  %v11341_v40 = vsel %vm11311_vm3, %v16200_v44, 0.0 }
 0x4d5   : > { %v11237_v28 = vadd.f32 1.0, %v16206_v51  ;;  %16229 = vpow2.f32 %v13810_v0  ;;  %v13813_v43 = vmul.f32 -1.442695, %v11118_v10 }
 0x4d6   : > { %v16208_v46 = vpop.eup %16207  ;;  %v11342_v11 = vadd.f32 %v11341_v40, %v11340_v54  ;;  %16231 = vrcp.f32 %v11238_v49  ;;  %v13812_v42 = vmul.f32 -1.442695, %v11117_v48 }
 0x4d7   : > { %v16210_v35 = vpop.eup %16209  ;;  %16233 = vrcp.f32 %v11237_v28  ;;  %v11345_v18 = vsel %vm11311_vm3, %v16208_v46, 0.0 }
 0x4d8   : > { %v16212_v41 = vpop.eup %16211  ;;  %v11343_v29 = vsel %vm11311_vm3, %v16210_v35, 0.0  ;;  %16235 = vpow2.f32 %v13813_v43  ;;  %v21153_v35 = vld [vmem:[%s21927_s7] sm:$0xf] }
 0x4d9   : > { %v16214_v12 = vpop.eup %16213  ;;  %v11344_v1 = vadd.f32 %v11343_v29, %v11342_v11  ;;  %v11240_v59 = vadd.f32 1.0, %v16212_v41  ;;  %16237 = vpow2.f32 %v13812_v42  ;;  %22709 = vst [vmem:[#allocation62_spill] sm:$0xff] %v21153_v35  ;;  %16089 = vmatprep.subr.msk.mxu1 %vm679_vm0, %v21153_v35 }
 0x4da   : > { %v16216_v57 = vpop.eup %16215  ;;  %v11349_v63 = vsel %vm11311_vm3, %v16214_v12, 0.0  ;;  %16090 = vmatpush3.msk.msra.mxu1 %vm679_vm0, %v21153_v35 }
 0x4db   : > { %v16218_v6 = vpop.eup %16217  ;;  %v11346_v24 = vadd.f32 %v11345_v18, %v11344_v1  ;;  %v11239_v33 = vadd.f32 1.0, %v16216_v57  ;;  %16239 = vrcp.f32 %v11240_v59 }
 0x4dc   : > { %v16220_v2 = vpop.eup %16219  ;;  %v11242_v39 = vadd.f32 1.0, %v16218_v6 }
 0x4dd   : > { %v16222_v58 = vpop.eup %16221  ;;  %v11347_v37 = vsel %vm11311_vm3, %v16220_v2, 0.0  ;;  %16241 = vrcp.f32 %v11239_v33 }
 0x4de   : > { %v16224_v45 = vpop.eup %16223  ;;  %v11348_v9 = vadd.f32 %v11347_v37, %v11346_v24  ;;  %16243 = vrcp.f32 %v11242_v39  ;;  %v11353_v21 = vsel %vm11311_vm3, %v16222_v58, 0.0  ;;  %v22710_v24 = vld [vmem:[#allocation67_spill] sm:$0xff]  ;;  %v22713_v39 = vld [vmem:[#allocation66_spill] sm:$0xff] }
 0x4df   : > { %v16226_v13 = vpop.eup %16225  ;;  %v11241_v8 = vadd.f32 1.0, %v16224_v45  ;;  %v22711_v33 = vmax.f32 %v22710_v24, 0.0  ;;  %v22714_v58 = vmax.f32 %v22713_v39, 0.0  ;;  %v22716_v45 = vld [vmem:[#allocation69_spill] sm:$0xff] }
 0x4e0   : > { %v16228_v50 = vpop.eup %16227  ;;  %v11350_v3 = vadd.f32 %v11349_v63, %v11348_v9  ;;  %v11351_v34 = vsel %vm11311_vm3, %v16226_v13, 0.0  ;;  %v22717_v9 = vmax.f32 %v22716_v45, 0.0  ;;  %v22719_v63 = vld [vmem:[#allocation68_spill] sm:$0xff]  ;;  %v22776_v45 = vld [vmem:[#allocation46_spill] sm:$0xff] }
 0x4e1   : > { %16245 = vrcp.f32 %v11241_v8  ;;  %v11244_v25 = vadd.f32 1.0, %v16228_v50  ;;  %v22720_v8 = vmax.f32 %v22719_v63, 0.0 }
 0x4e2   : > { %v16230_v5 = vpop.eup %16229  ;;  %v11352_v38 = vadd.f32 %v11351_v34, %v11350_v3  ;;  %v22722_v3 = vld [vmem:[#allocation71_spill] sm:$0xff] }
 0x4e3   : > { %v16232_v60 = vpop.eup %16231  ;;  %v11243_v7 = vadd.f32 1.0, %v16230_v5  ;;  %16247 = vrcp.f32 %v11244_v25  ;;  %v22723_v34 = vmax.f32 %v22722_v3, 0.0  ;;  %v22725_v5 = vld [vmem:[#allocation70_spill] sm:$0xff] }
 0x4e4   : > { %v16234_v19 = vpop.eup %16233  ;;  %v11354_v16 = vadd.f32 %v11353_v21, %v11352_v38  ;;  %v11357_v61 = vsel %vm11311_vm3, %v16232_v60, 0.0  ;;  %v22726_v38 = vmax.f32 %v22725_v5, 0.0  ;;  %v22728_v21 = vld [vmem:[#allocation73_spill] sm:$0xff] }
 0x4e5   : > { %v16236_v56 = vpop.eup %16235  ;;  %v11355_v32 = vsel %vm11311_vm3, %v16234_v19, 0.0  ;;  %16249 = vrcp.f32 %v11243_v7  ;;  %v22729_v7 = vmax.f32 %v22728_v21, 0.0  ;;  %v22782_v5 = vld [vmem:[#allocation21_spill] sm:$0xff] }
 0x4e6   : > { %v16238_v15 = vpop.eup %16237  ;;  %v11356_v52 = vadd.f32 %v11355_v32, %v11354_v16  ;;  %v11246_v14 = vadd.f32 1.0, %v16236_v56  ;;  %v22731_v16 = vld [vmem:[#allocation72_spill] sm:$0xff] }
 0x4e7   : > { %v11245_v55 = vadd.f32 1.0, %v16238_v15  ;;  %v22732_v56 = vmax.f32 %v22731_v16, 0.0  ;;  %v22734_v15 = vld [vmem:[#allocation75_spill] sm:$0xff] }
 0x4e8   : > { %16251 = vrcp.f32 %v11246_v14  ;;  %v11358_v4 = vadd.f32 %v11357_v61, %v11356_v52  ;;  %v16240_v44 = vpop.eup %16239  ;;  %v22735_v52 = vmax.f32 %v22734_v15, 0.0  ;;  %v22737_v61 = vld [vmem:[#allocation74_spill] sm:$0xff]  ;;  %v22788_v15 = vld [vmem:[#allocation48_spill] sm:$0xff] }
 0x4e9   : > { %16253 = vrcp.f32 %v11245_v55  ;;  %v11361_v31 = vsel %vm11311_vm3, %v16240_v44, 0.0  ;;  %v22738_v55 = vmax.f32 %v22737_v61, 0.0  ;;  %v22740_v44 = vld [vmem:[#allocation77_spill] sm:$0xff] }
 0x4ea   : > { %v16242_v22 = vpop.eup %16241 }
 0x4eb   : > { %v11359_v47 = vsel %vm11311_vm3, %v16242_v22, 0.0  ;;  %v16244_v17 = vpop.eup %16243  ;;  %v22741_v22 = vmax.f32 %v22740_v44, 0.0 }
 0x4ec   : > { %v11360_v53 = vadd.f32 %v11359_v47, %v11358_v4  ;;  %v11365_v49 = vsel %vm11311_vm3, %v16244_v17, 0.0 }
 0x4ee   : > { %v16246_v62 = vpop.eup %16245  ;;  %v11362_v27 = vadd.f32 %v11361_v31, %v11360_v53  ;;  %v22743_v53 = vld [vmem:[#allocation76_spill] sm:$0xff] }
 0x4ef   : > { %v11363_v26 = vsel %vm11311_vm3, %v16246_v62, 0.0  ;;  %v22744_v17 = vmax.f32 %v22743_v53, 0.0  ;;  %v22746_v62 = vld [vmem:[#allocation34_spill] sm:$0xff]  ;;  %v22794_v53 = vld [vmem:[#allocation3_spill] sm:$0xff] }
 0x4f0   : > { %v11364_v36 = vadd.f32 %v11363_v26, %v11362_v27  ;;  %v16248_v20 = vpop.eup %16247  ;;  %v22747_v27 = vmax.f32 %v22746_v62, 0.0 }
 0x4f1   : > { %v11369_v54 = vsel %vm11311_vm3, %v16248_v20, 0.0 }
 0x4f2   : > { %v16250_v23 = vpop.eup %16249  ;;  %v11366_v30 = vadd.f32 %v11365_v49, %v11364_v36  ;;  %v22749_v36 = vld [vmem:[#allocation23_spill] sm:$0xff] }
 0x4f3   : > { %v11367_v0 = vsel %vm11311_vm3, %v16250_v23, 0.0  ;;  %v22750_v20 = vmax.f32 %v22749_v36, 0.0  ;;  %v22752_v23 = vld [vmem:[#allocation13_spill] sm:$0xff] }
 0x4f4   : > { %v11368_v10 = vadd.f32 %v11367_v0, %v11366_v30  ;;  %v22753_v30 = vmax.f32 %v22752_v23, 0.0 }
 0x4f5   : > { %v16252_v51 = vpop.eup %16251 }
 0x4f6   : > { %v16254_v48 = vpop.eup %16253  ;;  %v11370_v40 = vadd.f32 %v11369_v54, %v11368_v10  ;;  %v11373_v46 = vsel %vm11311_vm3, %v16252_v51, 0.0  ;;  %v22755_v10 = vld [vmem:[#allocation42_spill] sm:$0xff] }
 0x4f7   : > { %v11371_v28 = vsel %vm11311_vm3, %v16254_v48, 0.0  ;;  %v22756_v51 = vmax.f32 %v22755_v10, 0.0  ;;  %v22758_v48 = vld [vmem:[#allocation28_spill] sm:$0xff] }
 0x4f8   : > { %v11372_v43 = vadd.f32 %v11371_v28, %v11370_v40  ;;  %v22759_v40 = vmax.f32 %v22758_v48, 0.0 }
 0x4fa   : > { %v11374_v11 = vadd.f32 %v11373_v46, %v11372_v43  ;;  %v22761_v43 = vld [vmem:[#allocation20_spill] sm:$0xff] }
 0x4fb   : > { %v22762_v46 = vmax.f32 %v22761_v43, 0.0 }
 0x4fc   : > { %v11375_v42 = vrot.slane %v11374_v11, 4 }
 0x4fe   : > { %v11376_v41 = vadd.f32 %v11375_v42, %v11374_v11  ;;  %v22764_v42 = vld [vmem:[#allocation44_spill] sm:$0xff] }
 0x500   : > { %v11377_v29 = vrot.slane %v11376_v41, 2 }
 0x502   : > { %v11378_v12 = vadd.f32 %v11377_v29, %v11376_v41  ;;  %v22765_v41 = vmax.f32 %v22764_v42, 0.0 }
 0x504   : > { %v11379_v1 = vrot.slane %v11378_v12, 1 }
 0x506   : > { %v11380_v59 = vadd.f32 %v11379_v1, %v11378_v12  ;;  %v22767_v12 = vld [vmem:[#allocation35_spill] sm:$0xff] }
 0x507   : > { %v22768_v1 = vmax.f32 %v22767_v12, 0.0 }
 0x508   : > { %v11381_v57 = vmul.f32 0.00390625, %v11380_v59 }
 0x50a   : > { %16112 = vpush %v11381_v57  ;;  %11383 = vrot.lane.b32.xlu0 %v11381_v57, %s16312_s25  ;;  %v22770_v57 = vld [vmem:[#allocation29_spill] sm:$0xff] }
 0x53b   : > { %s21159_s27 = spop %16112 }
 0x57c   : > { %v11384_v18 = vpop.permute.xlu0 %11383 }
 0x57d   : > { %16114 = vpush %v11384_v18  ;;  %v22771_v18 = vmax.f32 %v22770_v57, 0.0 }
 0x5ae   : > { %s16115_s28 = spop %16114 }
 0x5af   : > { %v21161_v6 = vstv %s16115_s28 }
 0x5b0   : > { %v21166_v2 = vmul.f32 %v21161_v6, %v22711_v33  ;;  %v21171_v37 = vmul.f32 %v21161_v6, %v22714_v58  ;;  %v21176_v13 = vmul.f32 %v21161_v6, %v22717_v9  ;;  %v21181_v50 = vmul.f32 %v21161_v6, %v22720_v8  ;;  %v22773_v33 = vld [vmem:[#allocation26_spill] sm:$0xff]  ;;  %v22779_v8 = vld [vmem:[#allocation36_spill] sm:$0xff] }
 0x5b1   : > { %v21186_v25 = vmul.f32 %v21161_v6, %v22723_v34  ;;  %v21191_v60 = vmul.f32 %v21161_v6, %v22726_v38  ;;  %v21196_v19 = vmul.f32 %v21161_v6, %v22729_v7  ;;  %v21201_v32 = vmul.f32 %v21161_v6, %v22732_v56  ;;  %v22785_v7 = vld [vmem:[#allocation14_spill] sm:$0xff] }
 0x5b2   : > { %22712 = vst [vmem:[#allocation8_spill] sm:$0xff] %v21166_v2  ;;  %22715 = vst [vmem:[#allocation79_spill] sm:$0xff] %v21171_v37  ;;  %v21206_v14 = vmul.f32 %v21161_v6, %v22735_v52  ;;  %v21211_v4 = vmul.f32 %v21161_v6, %v22738_v55  ;;  %v21216_v47 = vmul.f32 %v21161_v6, %v22741_v22  ;;  %v22774_v39 = vmax.f32 %v22773_v33, 0.0  ;;  %v22791_v55 = vld [vmem:[#allocation37_spill] sm:$0xff] }
 0x5b3   : > { %22718 = vst [vmem:[#allocation84_spill] sm:$0xff] %v21176_v13  ;;  %22721 = vst [vmem:[#allocation30_spill] sm:$0xff] %v21181_v50  ;;  %v21221_v31 = vmul.f32 %v21161_v6, %v22744_v17  ;;  %v21226_v26 = vmul.f32 %v21161_v6, %v22747_v27  ;;  %v21231_v49 = vmul.f32 %v21161_v6, %v22750_v20  ;;  %v22777_v9 = vmax.f32 %v22776_v45, 0.0  ;;  %v22797_v27 = vld [vmem:[#allocation7_spill] sm:$0xff] }
 0x5b4   : > { %22724 = vst [vmem:[#allocation89_spill] sm:$0xff] %v21186_v25  ;;  %22727 = vst [vmem:[#allocation4_spill] sm:$0xff] %v21191_v60  ;;  %v21236_v0 = vmul.f32 %v21161_v6, %v22753_v30  ;;  %v21241_v54 = vmul.f32 %v21161_v6, %v22756_v51  ;;  %v21246_v28 = vmul.f32 %v21161_v6, %v22759_v40  ;;  %v22780_v3 = vmax.f32 %v22779_v8, 0.0 }
 0x5b5   : > { %22730 = vst [vmem:[#allocation12_spill] sm:$0xff] %v21196_v19  ;;  %22733 = vst [vmem:[#allocation52_spill] sm:$0xff] %v21201_v32  ;;  %v21251_v11 = vmul.f32 %v21161_v6, %v22762_v46  ;;  %v21256_v29 = vmul.f32 %v21161_v6, %v22765_v41  ;;  %v21261_v59 = vmul.f32 %v21161_v6, %v22768_v1  ;;  %v22783_v38 = vmax.f32 %v22782_v5, 0.0 }
 0x5b6   : > { %22736 = vst [vmem:[#allocation85_spill] sm:$0xff] %v21206_v14  ;;  %22739 = vst [vmem:[#allocation51_spill] sm:$0xff] %v21211_v4  ;;  %v21266_v24 = vmul.f32 %v21161_v6, %v22771_v18  ;;  %v21271_v58 = vmul.f32 %v21161_v6, %v22774_v39  ;;  %v21276_v63 = vmul.f32 %v21161_v6, %v22777_v9  ;;  %v22786_v16 = vmax.f32 %v22785_v7, 0.0 }
 0x5b7   : > { %22742 = vst [vmem:[#allocation87_spill] sm:$0xff] %v21216_v47  ;;  %22745 = vst [vmem:[#allocation19_spill] sm:$0xff] %v21221_v31  ;;  %v21281_v34 = vmul.f32 %v21161_v6, %v22780_v3  ;;  %v21286_v21 = vmul.f32 %v21161_v6, %v22783_v38  ;;  %v22789_v52 = vmax.f32 %v22788_v15, 0.0  ;;  %v22792_v44 = vmax.f32 %v22791_v55, 0.0 }
 0x5b8   : > { %22748 = vst [vmem:[#allocation5_spill] sm:$0xff] %v21226_v26  ;;  %22751 = vst [vmem:[#allocation15_spill] sm:$0xff] %v21231_v49  ;;  %v21291_v56 = vmul.f32 %v21161_v6, %v22786_v16  ;;  %v22795_v17 = vmax.f32 %v22794_v53, 0.0  ;;  %v22798_v36 = vmax.f32 %v22797_v27, 0.0  ;;  %v21315_v23 = vsel %vm582_vm1, %v21166_v2, 0.0 }
 0x5b9   : > { %22754 = vst [vmem:[#allocation53_spill] sm:$0xff] %v21236_v0  ;;  %22757 = vst [vmem:[#allocation54_spill] sm:$0xff] %v21241_v54  ;;  %v21296_v61 = vmul.f32 %v21161_v6, %v22789_v52  ;;  %v21301_v22 = vmul.f32 %v21161_v6, %v22792_v44  ;;  %v21319_v30 = vsel %vm582_vm1, %v21171_v37, 0.0  ;;  %v21323_v10 = vsel %vm582_vm1, %v21176_v13, 0.0 }
 0x5ba   : > { %22760 = vst [vmem:[#allocation63_spill] sm:$0xff] %v21246_v28  ;;  %22763 = vst [vmem:[#allocation16_spill] sm:$0xff] %v21251_v11  ;;  %v21306_v62 = vmul.f32 %v21161_v6, %v22795_v17  ;;  %v21311_v20 = vmul.f32 %v21161_v6, %v22798_v36  ;;  %v21327_v51 = vsel %vm582_vm1, %v21181_v50, 0.0  ;;  %v11454_v48 = vadd.f32 %v21319_v30, %v21315_v23 }
 0x5bb   : > { %22766 = vst [vmem:[#allocation32_spill] sm:$0xff] %v21256_v29  ;;  %22769 = vst [vmem:[#allocation80_spill] sm:$0xff] %v21261_v59  ;;  %v11463_v40 = vadd.f32 %v21327_v51, %v21323_v10  ;;  %v21335_v43 = vsel %vm582_vm1, %v21186_v25, 0.0  ;;  %v21339_v46 = vsel %vm582_vm1, %v21191_v60, 0.0  ;;  %v21345_v41 = vsel %vm582_vm1, %v21196_v19, 0.0 }
 0x5bc   : > { %22772 = vst [vmem:[#allocation31_spill] sm:$0xff] %v21266_v24  ;;  %22775 = vst [vmem:[#allocation55_spill] sm:$0xff] %v21271_v58  ;;  %v11472_v42 = vadd.f32 %v21339_v46, %v21335_v43  ;;  %v21349_v12 = vsel %vm582_vm1, %v21201_v32, 0.0  ;;  %v21353_v1 = vsel %vm582_vm1, %v21206_v14, 0.0  ;;  %v11455_v57 = vrot.slane %v11454_v48, 4 }
 0x5bd   : > { %22778 = vst [vmem:[#allocation81_spill] sm:$0xff] %v21276_v63  ;;  %22781 = vst [vmem:[#allocation64_spill] sm:$0xff] %v21281_v34  ;;  %v11464_v18 = vrot.slane %v11463_v40, 4  ;;  %v11481_v33 = vadd.f32 %v21349_v12, %v21345_v41  ;;  %v21359_v39 = vsel %vm582_vm1, %v21211_v4, 0.0  ;;  %v21365_v8 = vsel %vm582_vm1, %v21216_v47, 0.0 }
 0x5be   : > { %22784 = vst [vmem:[#allocation40_spill] sm:$0xff] %v21286_v21  ;;  %22787 = vst [vmem:[#allocation65_spill] sm:$0xff] %v21291_v56  ;;  %v11473_v45 = vrot.slane %v11472_v42, 4  ;;  %v11490_v9 = vadd.f32 %v21359_v39, %v21353_v1  ;;  %v21369_v3 = vsel %vm582_vm1, %v21221_v31, 0.0  ;;  %v11456_v5 = vadd.f32 %v11455_v57, %v11454_v48 }
 0x5bf   : > { %22790 = vst [vmem:[#allocation78_spill] sm:$0xff] %v21296_v61  ;;  %22793 = vst [vmem:[#allocation88_spill] sm:$0xff] %v21301_v22  ;;  %v11465_v38 = vadd.f32 %v11464_v18, %v11463_v40  ;;  %v11482_v7 = vrot.slane %v11481_v33, 4  ;;  %v11499_v16 = vadd.f32 %v21369_v3, %v21365_v8  ;;  %v21375_v55 = vsel %vm582_vm1, %v21226_v26, 0.0 }
 0x5c0   : > { %22796 = vst [vmem:[#allocation22_spill] sm:$0xff] %v21306_v62  ;;  %22799 = vst [vmem:[#allocation86_spill] sm:$0xff] %v21311_v20  ;;  %v11474_v15 = vadd.f32 %v11473_v45, %v11472_v42  ;;  %v11491_v52 = vrot.slane %v11490_v9, 4  ;;  %v21379_v44 = vsel %vm582_vm1, %v21231_v49, 0.0  ;;  %v11457_v53 = vrot.slane %v11456_v5, 2 }
 0x5c1   : > { %v11466_v17 = vrot.slane %v11465_v38, 2  ;;  %v11483_v27 = vadd.f32 %v11482_v7, %v11481_v33  ;;  %v11500_v36 = vrot.slane %v11499_v16, 4  ;;  %v11508_v57 = vadd.f32 %v21379_v44, %v21375_v55 }
 0x5c2   : > { %v11475_v48 = vrot.slane %v11474_v15, 2  ;;  %v11492_v40 = vadd.f32 %v11491_v52, %v11490_v9  ;;  %v21385_v42 = vsel %vm582_vm1, %v21236_v0, 0.0  ;;  %v11458_v18 = vadd.f32 %v11457_v53, %v11456_v5 }
 0x5c3   : > { %v11467_v45 = vadd.f32 %v11466_v17, %v11465_v38  ;;  %v11484_v26 = vrot.slane %v11483_v27, 2  ;;  %v11501_v31 = vadd.f32 %v11500_v36, %v11499_v16  ;;  %v11509_v4 = vrot.slane %v11508_v57, 4  ;;  %v22800_v38 = vld [vmem:[#allocation50_spill] sm:$0xff] }
 0x5c4   : > { %v11476_v47 = vadd.f32 %v11475_v48, %v11474_v15  ;;  %v11493_v49 = vrot.slane %v11492_v40, 2  ;;  %v21389_v33 = vsel %vm582_vm1, %v21241_v54, 0.0  ;;  %v11459_v7 = vrot.slane %v11458_v18, 1  ;;  %v22803_v15 = vld [vmem:[#allocation38_spill] sm:$0xff] }
 0x5c5   : > { %v11468_v9 = vrot.slane %v11467_v45, 1  ;;  %v11485_v52 = vadd.f32 %v11484_v26, %v11483_v27  ;;  %v11502_v14 = vrot.slane %v11501_v31, 2  ;;  %v11510_v60 = vadd.f32 %v11509_v4, %v11508_v57 }
 0x5c6   : > { %v11477_v32 = vrot.slane %v11476_v47, 1  ;;  %v11494_v19 = vadd.f32 %v11493_v49, %v11492_v40  ;;  %v11517_v5 = vadd.f32 %v21389_v33, %v21385_v42  ;;  %v22801_v53 = vmax.f32 %v22800_v38, 0.0 }
 0x5c7   : > { %v22804_v17 = vmax.f32 %v22803_v15, 0.0  ;;  %v11486_v48 = vrot.slane %v11485_v52, 1  ;;  %v11503_v54 = vadd.f32 %v11502_v14, %v11501_v31  ;;  %v21403_v26 = vadd.f32 %v11459_v7, %v11458_v18 }
 0x5c8   : > { %v21396_v16 = vmul.f32 %v21161_v6, %v22801_v53  ;;  %v11495_v27 = vrot.slane %v11494_v19, 1  ;;  %v11511_v49 = vrot.slane %v11510_v60, 2  ;;  %v11518_v4 = vrot.slane %v11517_v5, 4 }
 0x5c9   : > { %v21401_v36 = vmul.f32 %v21161_v6, %v22804_v17  ;;  %v21405_v40 = vadd.f32 %v11468_v9, %v11467_v45  ;;  %v21407_v57 = vadd.f32 %v11477_v32, %v11476_v47  ;;  %v21411_v38 = vsel %vm582_vm1, %v21246_v28, 0.0 }
 0x5ca   : > { %22802 = vst [vmem:[#allocation39_spill] sm:$0xff] %v21396_v16  ;;  %v21415_v53 = vsel %vm582_vm1, %v21251_v11, 0.0  ;;  %v21417_v6 = vadd.f32 %v11486_v48, %v11485_v52  ;;  %v11504_v14 = vrot.slane %v11503_v54, 1  ;;  %v11519_v31 = vadd.f32 %v11518_v4, %v11517_v5 }
 0x5cb   : > { %22805 = vst [vmem:[#allocation90_spill] sm:$0xff] %v21401_v36  ;;  %v11526_v18 = vadd.f32 %v21415_v53, %v21411_v38  ;;  %v21421_v7 = vadd.f32 %v11495_v27, %v11494_v19  ;;  %v11512_v45 = vadd.f32 %v11511_v49, %v11510_v60  ;;  %v21425_v32 = vsel %vm582_vm1, %v21256_v29, 0.0 }
 0x5cc   : > { %v21429_v47 = vsel %vm582_vm1, %v21261_v59, 0.0  ;;  %v11520_v9 = vrot.slane %v11519_v31, 2  ;;  %v21435_v5 = vsel %vm582_vm1, %v21266_v24, 0.0  ;;  %v21439_v60 = vsel %vm582_vm1, %v21271_v58, 0.0 }
 0x5cd   : > { %v11527_v15 = vrot.slane %v11526_v18, 4  ;;  %v11535_v52 = vadd.f32 %v21429_v47, %v21425_v32  ;;  %v21443_v19 = vsel %vm582_vm1, %v21276_v63, 0.0  ;;  %v21447_v17 = vsel %vm582_vm1, %v21281_v34, 0.0 }
 0x5ce   : > { %v21451_v48 = vsel %vm582_vm1, %v21286_v21, 0.0  ;;  %v21453_v27 = vadd.f32 %v11504_v14, %v11503_v54  ;;  %v11521_v49 = vadd.f32 %v11520_v9, %v11519_v31  ;;  %v11513_v25 = vrot.slane %v11512_v45, 1 }
 0x5cf   : > { %v11528_v4 = vadd.f32 %v11527_v15, %v11526_v18  ;;  %v11536_v0 = vrot.slane %v11535_v52, 4  ;;  %v11544_v50 = vadd.f32 %v21439_v60, %v21435_v5  ;;  %v11553_v13 = vadd.f32 %v21447_v17, %v21443_v19 }
 0x5d0   : > { %v21461_v37 = vsel %vm582_vm1, %v21291_v56, 0.0  ;;  %v21467_v14 = vsel %vm582_vm1, %v21296_v61, 0.0  ;;  %v21471_v9 = vsel %vm582_vm1, %v21301_v22, 0.0  ;;  %v21475_v15 = vsel %vm582_vm1, %v21306_v62, 0.0 }
 0x5d1   : > { %v11529_v2 = vrot.slane %v11528_v4, 2  ;;  %v11537_v34 = vadd.f32 %v11536_v0, %v11535_v52  ;;  %v11562_v54 = vadd.f32 %v21461_v37, %v21451_v48  ;;  %v11545_v31 = vrot.slane %v11544_v50, 4  ;;  %22806 = vst [vmem:[#allocation56_spill] sm:$0xff] %v21471_v9  ;;  %22807 = vst [vmem:[#allocation57_spill] sm:$0xff] %v21475_v15 }
 0x5d2   : > { %v11554_v18 = vrot.slane %v11553_v13, 4  ;;  %v11522_v56 = vrot.slane %v11521_v49, 1  ;;  %v11571_v61 = vadd.f32 %v21471_v9, %v21467_v14  ;;  %v21481_v24 = vsel %vm582_vm1, %v21311_v20, 0.0 }
 0x5d3   : > { %v11530_v21 = vadd.f32 %v11529_v2, %v11528_v4  ;;  %v11538_v0 = vrot.slane %v11537_v34, 2  ;;  %v11563_v52 = vrot.slane %v11562_v54, 4  ;;  %v11546_v63 = vadd.f32 %v11545_v31, %v11544_v50  ;;  %22808 = vst [vmem:[#allocation33_spill] sm:$0xff] %v21481_v24 }
 0x5d4   : > { %v11555_v58 = vadd.f32 %v11554_v18, %v11553_v13  ;;  %v11580_v62 = vadd.f32 %v21481_v24, %v21475_v15  ;;  %v11572_v2 = vrot.slane %v11571_v61, 4  ;;  %v21487_v50 = vsel %vm582_vm1, %v21396_v16, 0.0 }
 0x5d5   : > { %v11531_v59 = vrot.slane %v11530_v21, 1  ;;  %v11539_v22 = vadd.f32 %v11538_v0, %v11537_v34  ;;  %v11564_v29 = vadd.f32 %v11563_v52, %v11562_v54  ;;  %v11547_v11 = vrot.slane %v11546_v63, 2 }
 0x5d6   : > { %v11556_v28 = vrot.slane %v11555_v58, 2  ;;  %v11514_v13 = vadd.f32 %v11513_v25, %v11512_v45  ;;  %v11581_v18 = vrot.slane %v11580_v62, 4  ;;  %v11573_v9 = vadd.f32 %v11572_v2, %v11571_v61 }
 0x5d7   : > { %v11540_v4 = vrot.slane %v11539_v22, 1  ;;  %v11565_v31 = vrot.slane %v11564_v29, 2  ;;  %v11548_v20 = vadd.f32 %v11547_v11, %v11546_v63  ;;  %v21491_v34 = vsel %vm582_vm1, %v21401_v36, 0.0 }
 0x5d8   : > { %v11557_v35 = vadd.f32 %v11556_v28, %v11555_v58  ;;  %v11523_v54 = vadd.f32 %v11522_v56, %v11521_v49  ;;  %v11582_v52 = vadd.f32 %v11581_v18, %v11580_v62  ;;  %v11589_v16 = vadd.f32 %v21491_v34, %v21487_v50 }
 0x5d9   : > { %v11566_v0 = vadd.f32 %v11565_v31, %v11564_v29  ;;  %v11532_v25 = vadd.f32 %v11531_v59, %v11530_v21  ;;  %v11549_v45 = vrot.slane %v11548_v20, 1  ;;  %v11574_v15 = vrot.slane %v11573_v9, 2 }
 0x5da   : > { %v11558_v24 = vrot.slane %v11557_v35, 1  ;;  %v11541_v11 = vadd.f32 %v11540_v4, %v11539_v22  ;;  %v11583_v58 = vrot.slane %v11582_v52, 2  ;;  %v11590_v63 = vrot.slane %v11589_v16, 4 }
 0x5db   : > { %v11567_v28 = vrot.slane %v11566_v0, 1  ;;  %v11550_v61 = vadd.f32 %v11549_v45, %v11548_v20  ;;  %v11575_v2 = vadd.f32 %v11574_v15, %v11573_v9  ;;  %v11596_v56 = vmul.f32 0.0625, %v21403_v26 }
 0x5dc   : > { %v11597_v29 = vmul.f32 0.0625, %v21405_v40  ;;  %v11559_v62 = vadd.f32 %v11558_v24, %v11557_v35  ;;  %v11584_v49 = vadd.f32 %v11583_v58, %v11582_v52  ;;  %v11591_v31 = vadd.f32 %v11590_v63, %v11589_v16 }
 0x5dd   : > { %v11598_v59 = vmul.f32 0.0625, %v21407_v57  ;;  %v11568_v21 = vadd.f32 %v11567_v28, %v11566_v0  ;;  %v11576_v18 = vrot.slane %v11575_v2, 1  ;;  %v11599_v22 = vmul.f32 0.0625, %v21417_v6 }
 0x5de   : > { %v11600_v4 = vmul.f32 0.0625, %v21421_v7  ;;  %v11585_v36 = vrot.slane %v11584_v49, 1  ;;  %v11592_v20 = vrot.slane %v11591_v31, 2  ;;  %v11601_v9 = vmul.f32 0.0625, %v21453_v27 }
 0x5df   : > { %v11604_v26 = vmul.f32 0.0625, %v11532_v25  ;;  %v11577_v15 = vadd.f32 %v11576_v18, %v11575_v2  ;;  %v11602_v40 = vmul.f32 0.0625, %v11514_v13  ;;  %v11605_v45 = vmul.f32 0.0625, %v11541_v11 }
 0x5e0   : > { %v11606_v35 = vmul.f32 0.0625, %v11550_v61  ;;  %v11593_v24 = vadd.f32 %v11592_v20, %v11591_v31  ;;  %v11603_v16 = vmul.f32 0.0625, %v11523_v54  ;;  %v11607_v52 = vmul.f32 0.0625, %v11559_v62 }
 0x5e1   : > { %v11612_v57 = vadd.f32 %v21323_v10, %v21315_v23  ;;  %v11586_v0 = vadd.f32 %v11585_v36, %v11584_v49  ;;  %v11627_v6 = vadd.f32 %v21327_v51, %v21319_v30  ;;  %v11669_v7 = vsel %vm11668_vm4, %v11597_v29, %v11596_v56 }
 0x5e2   : > { %v11682_v28 = vsel %vm11668_vm4, %v11605_v45, %v11604_v26  ;;  %v11594_v27 = vrot.slane %v11593_v24, 1  ;;  %v11608_v25 = vmul.f32 0.0625, %v11568_v21  ;;  %v11671_v11 = vsel %vm11670_vm5, %v11598_v59, %v11669_v7  ;;  %v22810_v45 = vld [vmem:[#allocation57_spill] sm:$0xff] }
 0x5e3   : > { %v11613_v13 = vadd.f32 %v11612_v57, %v21335_v43  ;;  %v11609_v58 = vmul.f32 0.0625, %v11577_v15  ;;  %v11628_v54 = vadd.f32 %v11627_v6, %v21339_v46  ;;  %v11673_v63 = vsel %vm11672_vm6, %v11599_v22, %v11671_v11 }
 0x5e4   : > { %v11683_v23 = vsel %vm11670_vm5, %v11606_v35, %v11682_v28  ;;  %v11595_v10 = vadd.f32 %v11594_v27, %v11593_v24  ;;  %v11675_v51 = vsel %vm11674_vm7, %v11600_v4, %v11673_v63  ;;  %v11610_v61 = vmul.f32 0.0625, %v11586_v0  ;;  %v22811_v35 = vld [vmem:[#allocation33_spill] sm:$0xff] }
 0x5e5   : > { %v11614_v30 = vadd.f32 %v11613_v13, %v21345_v41  ;;  %v11684_v36 = vsel %vm11672_vm6, %v11607_v52, %v11683_v23  ;;  %v11629_v2 = vadd.f32 %v11628_v54, %v21349_v12  ;;  %v11677_v43 = vsel %vm11676_vm8, %v11601_v9, %v11675_v51  ;;  %v11996_v51 = vld [vmem:[%s21933_s13] sm:$0xff] }
 0x5e6   : > { %v11685_v56 = vsel %vm11674_vm7, %v11608_v25, %v11684_v36  ;;  %v11611_v29 = vmul.f32 0.0625, %v11595_v10  ;;  %v11679_v62 = vsel %vm11678_vm9, %v11602_v40, %v11677_v43  ;;  %v22809_v40 = vld [vmem:[#allocation56_spill] sm:$0xff] }
 0x5e7   : > { %v11615_v46 = vadd.f32 %v11614_v30, %v21353_v1  ;;  %v11686_v49 = vsel %vm11676_vm8, %v11609_v58, %v11685_v56  ;;  %v11630_v41 = vadd.f32 %v11629_v2, %v21359_v39  ;;  %v11681_v31 = vsel %vm11680_vm10, %v11603_v16, %v11679_v62 }
 0x5e8   : > { %v11687_v59 = vsel %vm11678_vm9, %v11610_v61, %v11686_v49  ;;  %16091 = vmatprep.mubr.msk.f32.mxu1 %vm582_vm1, %v11681_v31 }
 0x5e9   : > { %v11616_v21 = vadd.f32 %v11615_v46, %v21365_v8  ;;  %v11688_v12 = vsel %vm11680_vm10, %v11611_v29, %v11687_v59  ;;  %v11631_v18 = vadd.f32 %v11630_v41, %v21369_v3 }
 0x5ea   : > { %16092 = vmatmul.mubr.msk.f32.vlgmr.msra.gmra.mxu1 %vm582_vm1, %v11688_v12 }
 0x5eb   : > { %v11617_v1 = vadd.f32 %v11616_v21, %v21375_v55  ;;  %v11632_v22 = vadd.f32 %v11631_v18, %v21379_v44 }
 0x5ed   : > { %v11618_v39 = vadd.f32 %v11617_v1, %v21385_v42  ;;  %v11633_v4 = vadd.f32 %v11632_v22, %v21389_v33 }
 0x5ef   : > { %v11619_v20 = vadd.f32 %v11618_v39, %v21411_v38  ;;  %v11634_v8 = vadd.f32 %v11633_v4, %v21415_v53 }
 0x5f1   : > { %v11620_v9 = vadd.f32 %v11619_v20, %v21425_v32  ;;  %v11635_v26 = vadd.f32 %v11634_v8, %v21429_v47  ;;  %v13820_v8 = vld [vmem:[%s21932_s12] ss:$0 sm:$0xff] }
 0x5f3   : > { %v11621_v3 = vadd.f32 %v11620_v9, %v21435_v5  ;;  %v11636_v15 = vadd.f32 %v11635_v26, %v21439_v60 }
 0x5f5   : > { %v11622_v55 = vadd.f32 %v11621_v3, %v21443_v19  ;;  %v11637_v44 = vadd.f32 %v11636_v15, %v21447_v17  ;;  %v11799_v19 = vld [vmem:[%s21931_s11] sm:$0xff]  ;;  %v22812_v17 = vld [vmem:[#allocation62_spill] sm:$0xff] }
 0x5f6   : > { %16094 = vmatprep.subr.mxu1 %v11799_v19 }
 0x5f7   : > { %v11623_v42 = vadd.f32 %v11622_v55, %v21451_v48  ;;  %v11638_v33 = vadd.f32 %v11637_v44, %v21461_v37  ;;  %16095 = vmatpush3.msra.mxu1 %v11799_v19  ;;  %v13814_v37 = vld [vmem:[%s21928_s8] ss:$0 sm:$0xff] }
 0x5f8   : > { %16099 = vmatprep.subr.msk.mxu1 %vm679_vm0, %v22812_v17 }
 0x5f9   : > { %v11624_v38 = vadd.f32 %v11623_v42, %v21467_v14  ;;  %v11639_v53 = vadd.f32 %v11638_v33, %v22809_v40  ;;  %v13818_v14 = vld [vmem:[%s21929_s9] ss:$0 sm:$0xff] }
 0x5fb   : > { %v11625_v32 = vadd.f32 %v11624_v38, %v22810_v45  ;;  %v11640_v47 = vadd.f32 %v11639_v53, %v22811_v35  ;;  %v16313_v38 = vmov 1966171168   ;;  %v12103_v53 = vlaneseq  ;;  %v13828_v35 = vld [vmem:[%s21934_s14] ss:$0 sm:$0xff] }
 0x5fc   : > { %v12101_v40 = vunpack.c.l.s4 %v16313_v38 }
 0x5fd   : > { %v11626_v5 = vadd.f32 %v11625_v32, %v21487_v50  ;;  %v11641_v60 = vadd.f32 %v11640_v47, %v21491_v34  ;;  %v13819_v34 = vld [vmem:[%s21930_s10] ss:$0 sm:$0xff]  ;;  %v21577_v32 = vshrl.u32 %v12103_v53, 7 }
 0x5fe   : > { %v12102_v45 = vunpack.c.0.s8 %v12101_v40 }
 0x5ff   : > { %v11642_v10 = vmul.f32 0.0625, %v11626_v5  ;;  %v11643_v30 = vmul.f32 0.0625, %v11641_v60  ;;  %v21674_v40 = vsub.s32 0, %v21577_v32 }
 0x600   : > { %v21583_v5 = vsub.s32 %v12102_v45, %v21577_v32  ;;  %v16291_v45 = vld [vmem:[%s17482_s24 + $0x109] sm:$0xff] }
 0x601   : > { %v16294_v32 = vld [vmem:[%s17482_s24 + $0x129] sm:$0xff] }
 0x6aa   : > { %v16093_v48 = vpop.f32.mrf.mxu1 }
 0x6ab   : > { %v11768_v50 = vadd.f32 %v16093_v48, %v13814_v37 }
 0x6ac   : > { %v11762_v24 = vpop.f32.mrf.mxu1 }
 0x6ad   : > { %v11779_v16 = vmul.f32 %v13818_v14, %v11768_v50  ;;  %v11763_v52 = vadd.f32 %v13814_v37, %v11762_v24 }
 0x6af   : > { %v11788_v57 = vadd.f32 %v13819_v34, %v11779_v16  ;;  %v11778_v0 = vmul.f32 %v13818_v14, %v11763_v52  ;;  %v16271_v52 = vld [vmem:[%s17482_s24 + $0x19] sm:$0xff] }
 0x6b1   : > { %v11790_v6 = vadd.f32 3.0, %v11788_v57  ;;  %v11787_v7 = vadd.f32 %v13819_v34, %v11778_v0  ;;  %v16272_v0 = vld [vmem:[%s17482_s24 + $0x21] sm:$0xff] }
 0x6b3   : > { %v11792_v28 = vmax.f32 %v11790_v6, 0.0  ;;  %v11789_v27 = vadd.f32 3.0, %v11787_v7 }
 0x6b5   : > { %v11794_v25 = vmin.f32 %v11792_v28, 6.0  ;;  %v11791_v13 = vmax.f32 %v11789_v27, 0.0  ;;  %v16274_v27 = vld [vmem:[%s17482_s24 + $0x39] sm:$0xff] }
 0x6b7   : > { %v11793_v11 = vmin.f32 %v11791_v13, 6.0  ;;  %v11796_v58 = vmul.f32 %v11794_v25, %v11788_v57  ;;  %v16275_v13 = vld [vmem:[%s17482_s24 + $0x49] sm:$0xff] }
 0x6b9   : > { %v11795_v54 = vmul.f32 %v11793_v11, %v11787_v7  ;;  %v11798_v23 = vmul.f32 0.16666667, %v11796_v58  ;;  %v16273_v7 = vld [vmem:[%s17482_s24 + $0x31] sm:$0xff] }
 0x6ba   : > { %v16276_v58 = vld [vmem:[%s17482_s24 + $0x51] sm:$0xff] }
 0x6bb   : > { %v11797_v63 = vmul.f32 0.16666667, %v11795_v54 }
 0x6bd   : > { %16096 = vmatprep.mubr.msk.f32.mxu1 %vm11807_vm11, %v11797_v63  ;;  %v16277_v63 = vld [vmem:[%s17482_s24 + $0x61] sm:$0xff] }
 0x6be   : > { %16097 = vmatmul.mubr.msk.f32.vlgmr.msra.gmra.mxu1 %vm11807_vm11, %v11798_v23 }
 0x6bf   : > { %16100 = vmatpush3.msk.msra.mxu1 %vm679_vm0, %v22812_v17  ;;  %16101 = vmatprep.mubr.msk.f32.mxu1 %vm582_vm1, %v11642_v10 }
 0x6c0   : > { %16104 = vmatprep.subr.mxu1 %v11996_v51 }
 0x6c2   : > { %16102 = vmatmul.mubr.msk.f32.vlgmr.msra.gmra.mxu1 %vm582_vm1, %v11643_v30 }
 0x6c3   : > { %16105 = vmatpush3.msra.mxu1 %v11996_v51  ;;  %v16278_v51 = vld [vmem:[%s17482_s24 + $0x69] sm:$0xff] }
 0x77e   : > { %v16098_v36 = vpop.f32.mrf.mxu1 }
 0x77f   : > { %v11886_v9 = vadd.f32 %v16098_v36, %v13820_v8 }
 0x780   : > { %v11880_v61 = vpop.f32.mrf.mxu1 }
 0x781   : > { %v13824_v26 = vmul.f32 -1.442695, %v11886_v9  ;;  %v11881_v3 = vadd.f32 %v13820_v8, %v11880_v61  ;;  %v16279_v61 = vld [vmem:[%s17482_s24 + $0x79] sm:$0xff]  ;;  %v16288_v9 = vld [vmem:[%s17482_s24 + $0xe1] sm:$0xff] }
 0x782   : > { %v16103_v2 = vpop.f32.mrf.mxu1 }
 0x783   : > { %v11979_v43 = vadd.f32 %v16103_v2, %v13814_v37  ;;  %16255 = vpow2.f32 %v13824_v26  ;;  %v13823_v15 = vmul.f32 -1.442695, %v11881_v3 }
 0x784   : > { %v11973_v56 = vpop.f32.mrf.mxu1 }
 0x785   : > { %v11983_v29 = vmul.f32 %v13818_v14, %v11979_v43  ;;  %v11974_v46 = vadd.f32 %v13814_v37, %v11973_v56  ;;  %16257 = vpow2.f32 %v13823_v15  ;;  %v16280_v43 = vld [vmem:[%s17482_s24 + $0x81] sm:$0xff] }
 0x787   : > { %v11985_v62 = vadd.f32 %v13819_v34, %v11983_v29  ;;  %v11982_v49 = vmul.f32 %v13818_v14, %v11974_v46  ;;  %v21586_v14 = vstv %s21159_s27  ;;  %v16281_v46 = vld [vmem:[%s17482_s24 + $0x91] sm:$0xff] }
 0x788   : > { %v21591_v57 = vmul.f32 %v16271_v52, %v21586_v14  ;;  %v21595_v6 = vmul.f32 %v16272_v0, %v21586_v14  ;;  %v21599_v28 = vmul.f32 %v16273_v7, %v21586_v14  ;;  %v21603_v25 = vmul.f32 %v16274_v27, %v21586_v14  ;;  %v16297_v0 = vld [vmem:[%s17482_s24 + $0x151] sm:$0xff] }
 0x789   : > { %v11987_v41 = vadd.f32 3.0, %v11985_v62  ;;  %v11984_v31 = vadd.f32 %v13819_v34, %v11982_v49  ;;  %v21607_v11 = vmul.f32 %v16275_v13, %v21586_v14  ;;  %v21611_v54 = vmul.f32 %v16276_v58, %v21586_v14  ;;  %v16282_v49 = vld [vmem:[%s17482_s24 + $0x99] sm:$0xff] }
 0x78a   : > { %22813 = vst [vmem:[#allocation24_spill] sm:$0xff] %v21591_v57  ;;  %22814 = vst [vmem:[#allocation41_spill] sm:$0xff] %v21599_v28  ;;  %v21615_v23 = vmul.f32 %v16277_v63, %v21586_v14  ;;  %v21620_v36 = vmul.f32 %v16278_v51, %v21586_v14  ;;  %v21624_v2 = vmul.f32 %v16279_v61, %v21586_v14  ;;  %v16299_v51 = vld [vmem:[%s17482_s24 + $0x169] sm:$0xff] }
 0x78b   : > { %v11989_v59 = vmax.f32 %v11987_v41, 0.0  ;;  %v11986_v21 = vadd.f32 3.0, %v11984_v31  ;;  %22815 = vst [vmem:[#allocation6_spill] sm:$0xff] %v21607_v11  ;;  %v21628_v56 = vmul.f32 %v16280_v43, %v21586_v14  ;;  %v21636_v41 = vmul.f32 %v16282_v49, %v21586_v14 }
 0x78c   : > { %22816 = vst [vmem:[#allocation9_spill] sm:$0xff] %v21615_v23  ;;  %22817 = vst [vmem:[#allocation43_spill] sm:$0xff] %v21624_v2  ;;  %v21661_v26 = vmul.f32 %v16288_v9, %v21586_v14  ;;  %v21704_v7 = vmul.f32 %v16297_v0, %v21586_v14  ;;  %v21713_v61 = vmul.f32 %v16299_v51, %v21586_v14  ;;  %v16302_v9 = vld [vmem:[%s17482_s24 + $0x189] sm:$0xff] }
 0x78d   : > { %v11991_v12 = vmin.f32 %v11989_v59, 6.0  ;;  %v11988_v18 = vmax.f32 %v11986_v21, 0.0  ;;  %v16284_v21 = vld [vmem:[%s17482_s24 + $0xb1] sm:$0xff] }
 0x78e   : > { %22826 = vst [vmem:[#allocation45_spill] sm:$0xff] %v21704_v7  ;;  %22827 = vst [vmem:[#allocation59_spill] sm:$0xff] %v21713_v61 }
 0x78f   : > { %v11990_v1 = vmin.f32 %v11988_v18, 6.0  ;;  %v11993_v22 = vmul.f32 %v11991_v12, %v11985_v62  ;;  %v21632_v62 = vmul.f32 %v16281_v46, %v21586_v14  ;;  %v21644_v12 = vmul.f32 %v16284_v21, %v21586_v14  ;;  %v16285_v18 = vld [vmem:[%s17482_s24 + $0xc1] sm:$0xff]  ;;  %v16300_v46 = vld [vmem:[%s17482_s24 + $0x171] sm:$0xff] }
 0x790   : > { %v16256_v55 = vpop.eup %16255  ;;  %v21718_v49 = vmul.f32 %v16300_v46, %v21586_v14 }
 0x791   : > { %v11992_v39 = vmul.f32 %v11990_v1, %v11984_v31  ;;  %v11995_v20 = vmul.f32 0.16666667, %v11993_v22  ;;  %v11896_v44 = vadd.f32 1.0, %v16256_v55  ;;  %22818 = vst [vmem:[#allocation82_spill] sm:$0xff] %v21632_v62  ;;  %v16283_v31 = vld [vmem:[%s17482_s24 + $0xa9] sm:$0xff]  ;;  %v21648_v1 = vmul.f32 %v16285_v18, %v21586_v14 }
 0x792   : > { %v16258_v42 = vpop.eup %16257  ;;  %v21640_v59 = vmul.f32 %v16283_v31, %v21586_v14  ;;  %v16286_v22 = vld [vmem:[%s17482_s24 + $0xc9] sm:$0xff]  ;;  %v16301_v31 = vld [vmem:[%s17482_s24 + $0x181] sm:$0xff] }
 0x793   : > { %v11994_v4 = vmul.f32 0.16666667, %v11992_v39  ;;  %16259 = vrcp.f32 %v11896_v44  ;;  %v11895_v33 = vadd.f32 1.0, %v16258_v42  ;;  %22820 = vst [vmem:[#allocation61_spill] sm:$0xff] %v21648_v1  ;;  %v21652_v39 = vmul.f32 %v16286_v22, %v21586_v14  ;;  %v16289_v44 = vld [vmem:[%s17482_s24 + $0xf1] sm:$0xff] }
 0x794   : > { %22819 = vst [vmem:[#allocation60_spill] sm:$0xff] %v21640_v59  ;;  %v21667_v42 = vmul.f32 %v16289_v44, %v21586_v14  ;;  %v21722_v21 = vmul.f32 %v16301_v31, %v21586_v14 }
 0x795   : > { %16106 = vmatprep.mubr.msk.f32.mxu1 %vm11807_vm11, %v11994_v4  ;;  %16261 = vrcp.f32 %v11895_v33  ;;  %v16287_v4 = vld [vmem:[%s17482_s24 + $0xd9] sm:$0xff] }
 0x796   : > { %16107 = vmatmul.mubr.msk.f32.vlgmr.msra.gmra.mxu1 %vm11807_vm11, %v11995_v20  ;;  %v21656_v20 = vmul.f32 %v16287_v4, %v21586_v14  ;;  %22822 = vst [vmem:[#allocation58_spill] sm:$0xff] %v21667_v42  ;;  %v16290_v33 = vld [vmem:[%s17482_s24 + $0xf9] sm:$0xff]  ;;  %22828 = vst [vmem:[#allocation11_spill] sm:$0xff] %v21722_v21 }
 0x797   : > { %v21671_v38 = vmul.f32 %v16290_v33, %v21586_v14  ;;  %v22850_v42 = vld [vmem:[#allocation84_spill] sm:$0xff] }
 0x798   : > { %22821 = vst [vmem:[#allocation83_spill] sm:$0xff] %v21656_v20  ;;  %v22853_v20 = vld [vmem:[#allocation4_spill] sm:$0xff] }
 0x7a0   : > { %v16260_v19 = vpop.eup %16259 }
 0x7a1   : > { %v12148_v50 = vcombine.high %v16260_v19, %v16260_v19  ;;  %v12155_v34 = vrot.slane %v16260_v19, %v21583_v5  ;;  %v16293_v19 = vld [vmem:[%s17482_s24 + $0x121] sm:$0xff] }
 0x7a2   : > { %v16262_v16 = vpop.eup %16261 }
 0x7a3   : > { %v12162_v10 = vrot.slane %v12148_v50, %v21583_v5  ;;  %v12163_v30 = vcombine.high %v12155_v34, %v12155_v34  ;;  %v12099_v29 = vcombine.high %v16262_v16, %v16262_v16  ;;  %v12106_v8 = vrot.slane %v16262_v16, %v21583_v5  ;;  %v16295_v50 = vld [vmem:[%s17482_s24 + $0x139] sm:$0xff] }
 0x7a4   : > { %v12171_v15 = vrot.slane %v12155_v34, %v21583_v5  ;;  %v21696_v34 = vmul.f32 %v16295_v50, %v21586_v14  ;;  %v22829_v50 = vld [vmem:[#allocation63_spill] sm:$0xff] }
 0x7a5   : > { %v12164_v3 = vcombine.high %v12162_v10, %v12162_v10  ;;  %v12185_v55 = vrot.slane %v12163_v30, %v21583_v5  ;;  %v12113_v53 = vrot.slane %v12099_v29, %v21583_v5  ;;  %v12114_v52 = vcombine.high %v12106_v8, %v12106_v8 }
 0x7a6   : > { %22825 = vst [vmem:[#allocation27_spill] sm:$0xff] %v21696_v34  ;;  %v12193_v13 = vcombine.high %v12171_v15, %v12171_v15  ;;  %v12232_v43 = vrot.slane %v12171_v15, %v21674_v40  ;;  %v12122_v15 = vrot.slane %v12106_v8, %v21583_v5  ;;  %v22844_v34 = vld [vmem:[#allocation86_spill] sm:$0xff] }
 0x7a7   : > { %v12192_v27 = vrot.slane %v12164_v3, %v21583_v5  ;;  %v12195_v58 = vcombine.high %v12185_v55, %v12185_v55  ;;  %v12115_v29 = vcombine.high %v12113_v53, %v12113_v53  ;;  %v21726_v3 = vmul.f32 %v16302_v9, %v21586_v14  ;;  %v22833_v9 = vld [vmem:[#allocation31_spill] sm:$0xff] }
 0x7a8   : > { %v12236_v44 = vrot.slane %v12185_v55, %v21674_v40  ;;  %v12136_v33 = vrot.slane %v12114_v52, %v21583_v5  ;;  %v22830_v52 = vld [vmem:[#allocation16_spill] sm:$0xff]  ;;  %v12200_v61 = vrot.slane %v12122_v15, %v21674_v40 }
 0x7a9   : > { %v12143_v0 = vrot.slane %v12115_v29, %v21583_v5  ;;  %v12252_v55 = vrot.slane %v12192_v27, %v21674_v40 }
 0x7aa   : > { %v12146_v31 = vcombine.high %v12136_v33, %v12136_v33 }
 0x7ab   : > { %v12147_v21 = vcombine.high %v12143_v0, %v12143_v0 }
 0x856   : > { %v16108_v47 = vpop.f32.mrf.mxu1 }
 0x857   : > { %v12082_v60 = vadd.f32 %v16108_v47, %v13828_v35  ;;  %v16292_v47 = vld [vmem:[%s17482_s24 + $0x111] sm:$0xff] }
 0x858   : > { %v12076_v17 = vpop.f32.mrf.mxu1 }
 0x859   : > { %v13832_v37 = vmul.f32 -1.442695, %v12082_v60  ;;  %v12077_v48 = vadd.f32 %v13828_v35, %v12076_v17  ;;  %v21679_v35 = vmul.f32 %v16291_v45, %v21586_v14  ;;  %v21683_v60 = vmul.f32 %v16292_v47, %v21586_v14 }
 0x85a   : > { %v21687_v17 = vmul.f32 %v16293_v19, %v21586_v14  ;;  %v12196_v45 = vcombine.high %v12192_v27, %v12192_v27  ;;  %v12240_v47 = vrot.slane %v12193_v13, %v21674_v40  ;;  %v12244_v19 = vrot.slane %v12195_v58, %v21674_v40  ;;  %v22831_v13 = vld [vmem:[#allocation32_spill] sm:$0xff]  ;;  %v22835_v27 = vld [vmem:[#allocation81_spill] sm:$0xff] }
 0x85b   : > { %16263 = vpow2.f32 %v13832_v37  ;;  %v13831_v24 = vmul.f32 -1.442695, %v12077_v48  ;;  %22823 = vst [vmem:[#allocation17_spill] sm:$0xff] %v21679_v35  ;;  %v12178_v37 = vrot.slane %v12162_v10, %v21583_v5  ;;  %v21692_v48 = vmul.f32 %v16294_v32, %v21586_v14  ;;  %v16298_v10 = vld [vmem:[%s17482_s24 + $0x159] sm:$0xff] }
 0x85c   : > { %22824 = vst [vmem:[#allocation25_spill] sm:$0xff] %v21687_v17  ;;  %v21709_v30 = vmul.f32 %v16298_v10, %v21586_v14  ;;  %v21743_v51 = vmul.f32 %v12236_v44, %v22831_v13  ;;  %v22832_v58 = vld [vmem:[#allocation80_spill] sm:$0xff] }
 0x85d   : > { %16265 = vpow2.f32 %v13831_v24  ;;  %v16296_v24 = vld [vmem:[%s17482_s24 + $0x141] sm:$0xff]  ;;  %v12194_v18 = vcombine.high %v12178_v37, %v12178_v37  ;;  %v12248_v32 = vrot.slane %v12178_v37, %v21674_v40  ;;  %v12296_v46 = vmul.f32 %v12236_v44, %v22832_v58  ;;  %s13835_s24 = sshll.u32 %s22884_s19, 8 }
 0x85e   : > { %v21700_v16 = vmul.f32 %v16296_v24, %v21586_v14  ;;  %v21735_v24 = vmul.f32 %v12232_v43, %v22829_v50  ;;  %v12129_v14 = vrot.slane %v12113_v53, %v21583_v5  ;;  %v12144_v37 = vcombine.high %v12122_v15, %v12122_v15  ;;  %v22834_v5 = vld [vmem:[#allocation55_spill] sm:$0xff]  ;;  %v22838_v44 = vld [vmem:[#allocation65_spill] sm:$0xff]  ;;  %s21807_s21 = scalar_lea.vmem %s21935_s15, %s13835_s24 }
 0x85f   : > { %v12256_v8 = vrot.slane %v12194_v18, %v21674_v40  ;;  %v21748_v53 = vmul.f32 %v12240_v47, %v22833_v9  ;;  %v12298_v29 = vmul.f32 %v12240_v47, %v22834_v5  ;;  %v21752_v50 = vmul.f32 %v12244_v19, %v22835_v27  ;;  %v22836_v18 = vld [vmem:[#allocation64_spill] sm:$0xff]  ;;  %v22839_v9 = vld [vmem:[#allocation78_spill] sm:$0xff] }
 0x860   : > { %v12145_v13 = vcombine.high %v12129_v14, %v12129_v14  ;;  %v12302_v58 = vmul.f32 %v12248_v32, %v22838_v44  ;;  %v21762_v7 = vmul.f32 %v12252_v55, %v22839_v9  ;;  %v22841_v47 = vld [vmem:[#allocation88_spill] sm:$0xff]  ;;  %v12208_v27 = vrot.slane %v12144_v37, %v21674_v40  ;;  %v22847_v44 = vld [vmem:[#allocation90_spill] sm:$0xff] }
 0x861   : > { %v12304_v5 = vmul.f32 %v12252_v55, %v22841_v47  ;;  %v12306_v17 = vmul.f32 %v12256_v8, %v22844_v34  ;;  %v12220_v15 = vrot.slane %v12143_v0, %v21674_v40  ;;  %v12228_v37 = vrot.slane %v12147_v21, %v21674_v40  ;;  %v22848_v47 = vld [vmem:[#allocation8_spill] sm:$0xff] }
 0x862   : > { %22840 = vst [vmem:[#allocation47_spill] sm:$0xff] %v21762_v7  ;;  %v12224_v55 = vrot.slane %v12145_v13, %v21674_v40  ;;  %v12282_v1 = vmul.f32 %v12208_v27, %v22853_v20  ;;  %v22855_v13 = vld [vmem:[#allocation52_spill] sm:$0xff]  ;;  %v22862_v20 = vld [vmem:[#allocation53_spill] sm:$0xff] }
 0x868   : > { %v16264_v63 = vpop.eup %16263 }
 0x869   : > { %v12092_v22 = vadd.f32 1.0, %v16264_v63  ;;  %v12294_v63 = vmul.f32 %v12232_v43, %v22830_v52  ;;  %v12300_v43 = vmul.f32 %v12244_v19, %v22836_v18  ;;  %v12212_v19 = vrot.slane %v12146_v31, %v21674_v40  ;;  %v22842_v18 = vld [vmem:[#allocation22_spill] sm:$0xff] }
 0x86a   : > { %v16266_v4 = vpop.eup %16265  ;;  %v21780_v31 = vmul.f32 %v12200_v61, %v22848_v47  ;;  %v22857_v47 = vld [vmem:[#allocation51_spill] sm:$0xff] }
 0x86b   : > { %16267 = vrcp.f32 %v12092_v22  ;;  %v12091_v10 = vadd.f32 1.0, %v16266_v4  ;;  %v12260_v22 = vrot.slane %v12196_v45, %v21674_v40  ;;  %v22837_v4 = vld [vmem:[#allocation40_spill] sm:$0xff]  ;;  %v12204_v45 = vrot.slane %v12136_v33, %v21674_v40  ;;  %v22845_v33 = vld [vmem:[#allocation39_spill] sm:$0xff] }
 0x86c   : > { %v21756_v52 = vmul.f32 %v12248_v32, %v22837_v4  ;;  %v21768_v4 = vmul.f32 %v12256_v8, %v22842_v18  ;;  %v12216_v32 = vrot.slane %v12129_v14, %v21674_v40  ;;  %v22849_v18 = vld [vmem:[#allocation79_spill] sm:$0xff]  ;;  %v22851_v14 = vld [vmem:[#allocation30_spill] sm:$0xff]  ;;  %v22852_v8 = vld [vmem:[#allocation89_spill] sm:$0xff]  ;;  %v12284_v59 = vmul.f32 %v12212_v19, %v22855_v13 }
 0x86d   : > { %16269 = vrcp.f32 %v12091_v10  ;;  %v21774_v10 = vmul.f32 %v12260_v22, %v22845_v33  ;;  %v12308_v9 = vmul.f32 %v12260_v22, %v22847_v44  ;;  %v12278_v35 = vmul.f32 %v12200_v61, %v22849_v18  ;;  %v22854_v22 = vld [vmem:[#allocation12_spill] sm:$0xff]  ;;  %v22856_v40 = vld [vmem:[#allocation85_spill] sm:$0xff]  ;;  %v22858_v61 = vld [vmem:[#allocation87_spill] sm:$0xff] }
 0x86e   : > { %22843 = vst [vmem:[#allocation10_spill] sm:$0xff] %v21768_v4  ;;  %v21784_v34 = vmul.f32 %v12204_v45, %v22850_v42  ;;  %v12280_v0 = vmul.f32 %v12204_v45, %v22851_v14  ;;  %v12281_v33 = vmul.f32 %v12208_v27, %v22852_v8  ;;  %v12283_v44 = vmul.f32 %v12212_v19, %v22854_v22  ;;  %v22859_v42 = vld [vmem:[#allocation19_spill] sm:$0xff]  ;;  %v22860_v45 = vld [vmem:[#allocation5_spill] sm:$0xff]  ;;  %v22863_v22 = vld [vmem:[#allocation54_spill] sm:$0xff] }
 0x86f   : > { %22846 = vst [vmem:[#allocation18_spill] sm:$0xff] %v21774_v10  ;;  %v21792_v21 = vmul.f32 %v12216_v32, %v22856_v40  ;;  %v12286_v62 = vmul.f32 %v12216_v32, %v22857_v47  ;;  %v21796_v18 = vmul.f32 %v12220_v15, %v22858_v61  ;;  %v12288_v2 = vmul.f32 %v12220_v15, %v22859_v42  ;;  %v22861_v8 = vld [vmem:[#allocation15_spill] sm:$0xff] }
 0x870   : > { %v12289_v14 = vmul.f32 %v12224_v55, %v22860_v45  ;;  %v12290_v11 = vmul.f32 %v12224_v55, %v22861_v8  ;;  %v12291_v27 = vmul.f32 %v12228_v37, %v22862_v20  ;;  %v12292_v28 = vmul.f32 %v12228_v37, %v22863_v22  ;;  %v22872_v45 = vld [vmem:[#allocation82_spill] sm:$0xff]  ;;  %v22873_v8 = vld [vmem:[#allocation60_spill] sm:$0xff] }
 0x878   : > { %v16268_v23 = vpop.eup %16267 }
 0x879   : > { %v12310_v19 = vmul.f32 %v16268_v23, %v12278_v35  ;;  %v12312_v13 = vmul.f32 %v16268_v23, %v12280_v0  ;;  %v12314_v40 = vmul.f32 %v16268_v23, %v12282_v1  ;;  %v12316_v57 = vmul.f32 %v16268_v23, %v12284_v59  ;;  %v22867_v0 = vld [vmem:[#allocation24_spill] sm:$0xff] }
 0x87a   : > { %v12318_v32 = vmul.f32 %v16268_v23, %v12286_v62  ;;  %v12320_v47 = vmul.f32 %v16268_v23, %v12288_v2  ;;  %v12322_v61 = vmul.f32 %v16268_v23, %v12290_v11  ;;  %v12324_v10 = vmul.f32 %v16268_v23, %v12292_v28  ;;  %v16270_v59 = vpop.eup %16269 }
 0x87b   : > { %v12326_v4 = vmul.f32 %v16268_v23, %v12294_v63  ;;  %v12328_v15 = vmul.f32 %v16268_v23, %v12296_v46  ;;  %v12330_v42 = vmul.f32 %v16268_v23, %v12298_v29  ;;  %v12332_v7 = vmul.f32 %v16268_v23, %v12300_v43 }
 0x87c   : > { %v12334_v55 = vmul.f32 %v16268_v23, %v12302_v58  ;;  %v12336_v37 = vmul.f32 %v16268_v23, %v12304_v5  ;;  %v12338_v35 = vmul.f32 %v16268_v23, %v12306_v17  ;;  %v12340_v1 = vmul.f32 %v16268_v23, %v12308_v9  ;;  %v22864_v5 = vld [vmem:[#allocation47_spill] sm:$0xff] }
 0x87d   : > { %v12342_v2 = vadd.f32 %v12310_v19, %v21595_v6  ;;  %v12344_v28 = vadd.f32 %v12312_v13, %v21603_v25  ;;  %v12346_v11 = vadd.f32 %v12314_v40, %v21611_v54  ;;  %v12348_v62 = vadd.f32 %v12316_v57, %v21620_v36  ;;  %v22875_v19 = vld [vmem:[#allocation83_spill] sm:$0xff]  ;;  %v22876_v40 = vld [vmem:[#allocation58_spill] sm:$0xff] }
 0x87e   : > { %v12350_v63 = vadd.f32 %v12318_v32, %v21628_v56  ;;  %v12352_v46 = vadd.f32 %v12320_v47, %v21636_v41  ;;  %v12354_v17 = vadd.f32 %v12322_v61, %v21644_v12  ;;  %v12356_v23 = vadd.f32 %v12324_v10, %v21652_v39  ;;  %v22865_v10 = vld [vmem:[#allocation10_spill] sm:$0xff]  ;;  %v22877_v47 = vld [vmem:[#allocation17_spill] sm:$0xff] }
 0x87f   : > { %v12358_v6 = vadd.f32 %v12326_v4, %v21661_v26  ;;  %v12360_v25 = vadd.f32 %v12328_v15, %v21671_v38  ;;  %v12362_v57 = vadd.f32 %v12330_v42, %v21683_v60  ;;  %v12364_v54 = vadd.f32 %v12332_v7, %v21692_v48  ;;  %12374 = vst.msk [vmem:[%s21807_s21 + $0x8] sm:$0xff] %vm582_vm1, %v12342_v2  ;;  %v22878_v15 = vld [vmem:[#allocation25_spill] sm:$0xff]  ;;  %v22881_v2 = vld [vmem:[#allocation59_spill] sm:$0xff] }
 0x880   : > { %12376 = vst.msk [vmem:[%s21807_s21 + $0x18] sm:$0xff] %vm582_vm1, %v12344_v28  ;;  %12378 = vst.msk [vmem:[%s21807_s21 + $0x28] sm:$0xff] %vm582_vm1, %v12346_v11  ;;  %v12366_v36 = vadd.f32 %v12334_v55, %v21700_v16  ;;  %v12368_v56 = vadd.f32 %v12336_v37, %v21709_v30  ;;  %v12370_v41 = vadd.f32 %v12338_v35, %v21718_v49  ;;  %v22879_v55 = vld [vmem:[#allocation27_spill] sm:$0xff]  ;;  %v22880_v35 = vld [vmem:[#allocation45_spill] sm:$0xff] }
 0x881   : > { %12380 = vst.msk [vmem:[%s21807_s21 + $0x38] sm:$0xff] %vm582_vm1, %v12348_v62  ;;  %v12372_v12 = vadd.f32 %v12340_v1, %v21726_v3  ;;  %12382 = vst.msk [vmem:[%s21807_s21 + $0x48] sm:$0xff] %vm582_vm1, %v12350_v63  ;;  %v12309_v39 = vmul.f32 %v16270_v59, %v21780_v31  ;;  %v12311_v26 = vmul.f32 %v16270_v59, %v21784_v34  ;;  %v22866_v31 = vld [vmem:[#allocation18_spill] sm:$0xff]  ;;  %v22882_v11 = vld [vmem:[#allocation11_spill] sm:$0xff] }
 0x882   : > { %12384 = vst.msk [vmem:[%s21807_s21 + $0x58] sm:$0xff] %vm582_vm1, %v12352_v46  ;;  %12386 = vst.msk [vmem:[%s21807_s21 + $0x68] sm:$0xff] %vm582_vm1, %v12354_v17  ;;  %v12313_v38 = vmul.f32 %v16270_v59, %v12281_v33  ;;  %v12315_v60 = vmul.f32 %v16270_v59, %v12283_v44  ;;  %v12317_v48 = vmul.f32 %v16270_v59, %v21792_v21  ;;  %v22868_v33 = vld [vmem:[#allocation41_spill] sm:$0xff]  ;;  %v22869_v44 = vld [vmem:[#allocation6_spill] sm:$0xff] }
 0x883   : > { %12388 = vst.msk [vmem:[%s21807_s21 + $0x78] sm:$0xff] %vm582_vm1, %v12356_v23  ;;  %12390 = vst.msk [vmem:[%s21807_s21 + $0x88] sm:$0xff] %vm582_vm1, %v12358_v6  ;;  %v12319_v16 = vmul.f32 %v16270_v59, %v21796_v18  ;;  %v12321_v7 = vmul.f32 %v16270_v59, %v12289_v14  ;;  %v12323_v30 = vmul.f32 %v16270_v59, %v12291_v27  ;;  %v22870_v21 = vld [vmem:[#allocation9_spill] sm:$0xff]  ;;  %v22871_v18 = vld [vmem:[#allocation43_spill] sm:$0xff] }
 0x884   : > { %12392 = vst.msk [vmem:[%s21807_s21 + $0x98] sm:$0xff] %vm582_vm1, %v12360_v25  ;;  %12394 = vst.msk [vmem:[%s21807_s21 + $0xa8] sm:$0xff] %vm582_vm1, %v12362_v57  ;;  %v12325_v49 = vmul.f32 %v16270_v59, %v21735_v24  ;;  %v12327_v3 = vmul.f32 %v16270_v59, %v21743_v51  ;;  %v12329_v29 = vmul.f32 %v16270_v59, %v21748_v53  ;;  %v22874_v27 = vld [vmem:[#allocation61_spill] sm:$0xff] }
 0x885   : > { %12396 = vst.msk [vmem:[%s21807_s21 + $0xb8] sm:$0xff] %vm582_vm1, %v12364_v54  ;;  %12398 = vst.msk [vmem:[%s21807_s21 + $0xc8] sm:$0xff] %vm582_vm1, %v12366_v36  ;;  %v12331_v43 = vmul.f32 %v16270_v59, %v21752_v50  ;;  %v12333_v58 = vmul.f32 %v16270_v59, %v21756_v52  ;;  %v12335_v4 = vmul.f32 %v16270_v59, %v22864_v5 }
 0x886   : > { %12400 = vst.msk [vmem:[%s21807_s21 + $0xd8] sm:$0xff] %vm582_vm1, %v12368_v56  ;;  %12402 = vst.msk [vmem:[%s21807_s21 + $0xe8] sm:$0xff] %vm582_vm1, %v12370_v41  ;;  %v12337_v9 = vmul.f32 %v16270_v59, %v22865_v10  ;;  %v12339_v34 = vmul.f32 %v16270_v59, %v22866_v31  ;;  %v12341_v24 = vadd.f32 %v12309_v39, %v22867_v0 }
 0x887   : > { %12404 = vst.msk [vmem:[%s21807_s21 + $0xf8] sm:$0xff] %vm582_vm1, %v12372_v12  ;;  %v12343_v51 = vadd.f32 %v12311_v26, %v22868_v33  ;;  %v12345_v53 = vadd.f32 %v12313_v38, %v22869_v44  ;;  %v12347_v50 = vadd.f32 %v12315_v60, %v22870_v21  ;;  %v12349_v52 = vadd.f32 %v12317_v48, %v22871_v18 }
 0x888   : > { %v12351_v14 = vadd.f32 %v12319_v16, %v22872_v45  ;;  %v12353_v20 = vadd.f32 %v12321_v7, %v22873_v8  ;;  %v12355_v22 = vadd.f32 %v12323_v30, %v22874_v27  ;;  %v12357_v13 = vadd.f32 %v12325_v49, %v22875_v19  ;;  %12373 = vst.msk [vmem:[%s21807_s21] sm:$0xff] %vm582_vm1, %v12341_v24 }
 0x889   : > { %v12359_v32 = vadd.f32 %v12327_v3, %v22876_v40  ;;  %v12361_v61 = vadd.f32 %v12329_v29, %v22877_v47  ;;  %v12363_v42 = vadd.f32 %v12331_v43, %v22878_v15  ;;  %12375 = vst.msk [vmem:[%s21807_s21 + $0x10] sm:$0xff] %vm582_vm1, %v12343_v51  ;;  %12377 = vst.msk [vmem:[%s21807_s21 + $0x20] sm:$0xff] %vm582_vm1, %v12345_v53 }
 0x88a   : > { %12379 = vst.msk [vmem:[%s21807_s21 + $0x30] sm:$0xff] %vm582_vm1, %v12347_v50  ;;  %v12365_v37 = vadd.f32 %v12333_v58, %v22879_v55  ;;  %v12367_v1 = vadd.f32 %v12335_v4, %v22880_v35  ;;  %v12369_v28 = vadd.f32 %v12337_v9, %v22881_v2  ;;  %v12371_v62 = vadd.f32 %v12339_v34, %v22882_v11 }
 0x88b   : > { %12381 = vst.msk [vmem:[%s21807_s21 + $0x40] sm:$0xff] %vm582_vm1, %v12349_v52  ;;  %12383 = vst.msk [vmem:[%s21807_s21 + $0x50] sm:$0xff] %vm582_vm1, %v12351_v14 }
 0x88c   : > { %12385 = vst.msk [vmem:[%s21807_s21 + $0x60] sm:$0xff] %vm582_vm1, %v12353_v20  ;;  %12387 = vst.msk [vmem:[%s21807_s21 + $0x70] sm:$0xff] %vm582_vm1, %v12355_v22 }
 0x88d   : > { %12389 = vst.msk [vmem:[%s21807_s21 + $0x80] sm:$0xff] %vm582_vm1, %v12357_v13  ;;  %12391 = vst.msk [vmem:[%s21807_s21 + $0x90] sm:$0xff] %vm582_vm1, %v12359_v32 }
 0x88e   : > { %12393 = vst.msk [vmem:[%s21807_s21 + $0xa0] sm:$0xff] %vm582_vm1, %v12361_v61  ;;  %12395 = vst.msk [vmem:[%s21807_s21 + $0xb0] sm:$0xff] %vm582_vm1, %v12363_v42 }
 0x88f   : > { %12397 = vst.msk [vmem:[%s21807_s21 + $0xc0] sm:$0xff] %vm582_vm1, %v12365_v37  ;;  %12399 = vst.msk [vmem:[%s21807_s21 + $0xd0] sm:$0xff] %vm582_vm1, %v12367_v1 }
 0x890   : > { %12401 = vst.msk [vmem:[%s21807_s21 + $0xe0] sm:$0xff] %vm582_vm1, %v12369_v28  ;;  %12403 = vst.msk [vmem:[%s21807_s21 + $0xf0] sm:$0xff] %vm582_vm1, %v12371_v62 }
 0x891 PF: > { %s25_s18 = sadd.s32 1, %s16309_s18  }
 0x892   : > { %p22_p4 = scmp.ge.s32.totalorder %s25_s18, 4  }
 0x894   :  { %24 = sbr.rel (!%p22_p4) target bundleno = 1 (0x1), region = 143 }

</bundles_post_ra>
